<compile_context>
chip_gen: v5e
topology: v5e:2x2
jax: 0.10.0
libtpu: 0.0.40
codegen_flags: <defaults>
</compile_context>

<pallas_src>
import jax
import jax.numpy as jnp
from jax.experimental import pallas as pl
from jax.experimental.pallas import tpu as pltpu


def _act_kernel(x, activation):
    """Activation used inside the kernel (f32 in / f32 out)."""
    if activation == "mish":
        # mish(x) = x * tanh(softplus(x)) = x * ((1+e^x)^2 - 1) / ((1+e^x)^2 + 1)
        # 1 EUP exp + 1 approx reciprocal instead of exp + log + tanh.
        # Clamp: for x > 20, mish(x) == x to f32 precision (avoids inf*0 -> nan).
        t = 1.0 + jnp.exp(jnp.minimum(x, 20.0))
        tt = t * t
        return x * (tt - 1.0) * pl.reciprocal(tt + 1.0, approx=True)
    if activation == "leaky":
        return jnp.where(x >= 0.0, x, 0.1 * x)  # ConvLayer uses LeakyReLU(0.1)
    return x  # 'linear'


def _act_ref(x, activation):
    """Reference activation (standard formulation, pure JAX)."""
    if activation == "mish":
        sp = jnp.maximum(x, 0.0) + jnp.log1p(jnp.exp(-jnp.abs(x)))
        return x * jnp.tanh(sp)
    if activation == "leaky":
        return jnp.where(x >= 0.0, x, 0.1 * x)
    return x


def _make_kernel(activation):
    def kernel(x_ref, w1_ref, b1_ref, w2_ref, b2_ref, o_ref, pad_ref):
        # x_ref  : (Bt, H, W, Cin)    bf16, channels-last
        # w1_ref : (Cin, Cn)          bf16, BN1 scale folded in
        # b1_ref : (1, Cn)            f32 folded BN1 bias
        # w2_ref : (9*Cn, Cin)        bf16 im2col weight, BN2 scale folded in
        # b2_ref : (1, Cin)           f32 folded BN2 bias
        # o_ref  : (Bt, H, W, Cin)    output (original dtype)
        # pad_ref: (Bt, H+2, Wp, Cn)  bf16 zero-padded intermediate (VMEM scratch)
        Bt, H, W, Cin = x_ref.shape
        Cn = w1_ref.shape[1]
        Hp = pad_ref.shape[1]
        Wp = pad_ref.shape[2]
        M = Bt * H * W

        # ---- conv1 (1x1) + folded-BN bias + activation: one MXU matmul --------
        x = x_ref[...].reshape(M, Cin)                       # leading-dim collapse
        y1 = jnp.dot(x, w1_ref[...], preferred_element_type=jnp.float32)
        y1 = _act_kernel(y1 + b1_ref[...], activation)

        # ---- padded intermediate: zero only the border strips that are read ---
        zrow = jnp.zeros((Bt, 1, Wp, Cn), pad_ref.dtype)
        pad_ref[:, 0:1, :, :] = zrow
        pad_ref[:, H + 1:H + 2, :, :] = zrow
        zcol = jnp.zeros((Bt, Hp, 1, Cn), pad_ref.dtype)
        pad_ref[:, :, 0:1, :] = zcol
        pad_ref[:, :, W + 1:W + 2, :] = zcol
        pad_ref[:, 1:H + 1, 1:W + 1, :] = (
            y1.reshape(Bt, H, W, Cn).astype(pad_ref.dtype))

        # ---- conv2 (3x3, pad 1): single im2col matmul with K = 9*Cn -----------
        taps = []
        for k in range(9):
            dh, dw = divmod(k, 3)
            taps.append(pad_ref[:, dh:dh + H, dw:dw + W, :].reshape(M, Cn))
        col = jnp.concatenate(taps, axis=-1)                 # (M, 9*Cn) bf16
        y2 = jnp.dot(col, w2_ref[...], preferred_element_type=jnp.float32)
        y2 = _act_kernel(y2 + b2_ref[...], activation)

        o_ref[...] = y2.reshape(Bt, H, W, Cin).astype(o_ref.dtype)

    return kernel


def _pick_batch_tile(B, H, W, target_rows=512):
    """Smallest divisor of B whose tile gives >= target_rows matmul rows."""
    for bt in range(1, B + 1):
        if B % bt == 0 and bt * H * W >= target_rows:
            return bt
    return B


def bottleneck_forward(x, params, *, activation="mish", eps=1e-5,
                       batch_tile=None, vmem_limit_bytes=32 * 1024 * 1024):
    """BottleNeckLayer forward. x: (B, Cin, H, W) NCHW, like PyTorch."""
    B, Cin, H, W = x.shape
    Cn = params["w1"].shape[0]
    f32, bf16 = jnp.float32, jnp.bfloat16

    # Fold BatchNorm (inference semantics) into the conv weights + a bias.
    s1 = (params["g1"] / jnp.sqrt(params["v1"] + eps)).astype(f32)       # (Cn,)
    b1 = (params["b1"] - params["m1"] * s1).astype(f32)                  # (Cn,)
    s2 = (params["g2"] / jnp.sqrt(params["v2"] + eps)).astype(f32)       # (Cin,)
    b2 = (params["b2"] - params["m2"] * s2).astype(f32)                  # (Cin,)

    # conv1 weight (Cn, Cin): scale rows by s1, transpose -> (Cin, Cn), bf16.
    w1_mat = (params["w1"].astype(f32) * s1[:, None]).T.astype(bf16)
    # conv2 weight (Cin_out, Cn, 3, 3) OIHW: scale per output channel, reorder to
    # (KH, KW, I, O) and flatten -> (9*Cn, Cin) im2col matrix, bf16.
    w2_mat = jnp.transpose(params["w2"].astype(f32) * s2[:, None, None, None],
                           (2, 3, 1, 0)).reshape(9 * Cn, Cin).astype(bf16)

    x_nhwc = jnp.transpose(x, (0, 2, 3, 1)).astype(bf16)                 # (B,H,W,Cin)

    Bt = batch_tile if batch_tile is not None else _pick_batch_tile(B, H, W)
    assert B % Bt == 0, (B, Bt)
    Wp = ((W + 2 + 7) // 8) * 8         # pad scratch W dim to a multiple of 8

    kernel = _make_kernel(activation)
    out_nhwc = pl.pallas_call(
        kernel,
        out_shape=jax.ShapeDtypeStruct((B, H, W, Cin), x.dtype),
        grid_spec=pltpu.PrefetchScalarGridSpec(
            num_scalar_prefetch=0,
            grid=(B // Bt,),
            in_specs=[
                pl.BlockSpec((Bt, H, W, Cin), lambda b: (b, 0, 0, 0)),
                pl.BlockSpec((Cin, Cn), lambda b: (0, 0)),
                pl.BlockSpec((1, Cn), lambda b: (0, 0)),
                pl.BlockSpec((9 * Cn, Cin), lambda b: (0, 0)),
                pl.BlockSpec((1, Cin), lambda b: (0, 0)),
            ],
            out_specs=pl.BlockSpec((Bt, H, W, Cin), lambda b: (b, 0, 0, 0)),
            scratch_shapes=[pltpu.VMEM((Bt, H + 2, Wp, Cn), bf16)],
        ),
        compiler_params=pltpu.CompilerParams(
            dimension_semantics=("parallel",),
            vmem_limit_bytes=vmem_limit_bytes,
        ),
    )(x_nhwc, w1_mat, b1.reshape(1, Cn), w2_mat, b2.reshape(1, Cin))

    return jnp.transpose(out_nhwc, (0, 3, 1, 2))                         # back to NCHW


def reference_forward(x, params, *, activation="mish", eps=1e-5):
    """Pure-JAX reference of BottleNeckLayer (inference-mode BN, f32 HIGHEST)."""
    hi = jax.lax.Precision.HIGHEST
    s1 = params["g1"] / jnp.sqrt(params["v1"] + eps)
    o1 = params["b1"] - params["m1"] * s1
    s2 = params["g2"] / jnp.sqrt(params["v2"] + eps)
    o2 = params["b2"] - params["m2"] * s2

    y = jnp.einsum("bchw,nc->bnhw", x, params["w1"], precision=hi)
    y = y * s1[None, :, None, None] + o1[None, :, None, None]
    y = _act_ref(y, activation)
    y = jax.lax.conv_general_dilated(
        y, params["w2"], window_strides=(1, 1), padding=((1, 1), (1, 1)),
        dimension_numbers=("NCHW", "OIHW", "NCHW"), precision=hi)
    y = y * s2[None, :, None, None] + o2[None, :, None, None]
    y = _act_ref(y, activation)
    return y


if __name__ == "__main__":
    key = jax.random.PRNGKey(0)
    B, Cin, Cn, H, W = 2, 32, 16, 16, 16
    ks = jax.random.split(key, 11)

    x = jax.random.normal(ks[0], (B, Cin, H, W), dtype=jnp.float32)
    params = dict(
        w1=0.1 * jax.random.normal(ks[1], (Cn, Cin), dtype=jnp.float32),
        g1=jax.random.uniform(ks[2], (Cn,), minval=0.5, maxval=1.5, dtype=jnp.float32),
        b1=0.1 * jax.random.normal(ks[3], (Cn,), dtype=jnp.float32),
        m1=0.1 * jax.random.normal(ks[4], (Cn,), dtype=jnp.float32),
        v1=jax.random.uniform(ks[5], (Cn,), minval=0.5, maxval=1.5, dtype=jnp.float32),
        w2=0.1 * jax.random.normal(ks[6], (Cin, Cn, 3, 3), dtype=jnp.float32),
        g2=jax.random.uniform(ks[7], (Cin,), minval=0.5, maxval=1.5, dtype=jnp.float32),
        b2=0.1 * jax.random.normal(ks[8], (Cin,), dtype=jnp.float32),
        m2=0.1 * jax.random.normal(ks[9], (Cin,), dtype=jnp.float32),
        v2=jax.random.uniform(ks[10], (Cin,), minval=0.5, maxval=1.5, dtype=jnp.float32),
    )

    activation = "mish"
    y = bottleneck_forward(x, params, activation=activation)
    y = jax.block_until_ready(y)

    ref = reference_forward(x, params, activation=activation)

    assert y.shape == (B, Cin, H, W), y.shape
    assert y.dtype == x.dtype, y.dtype
    max_err = float(jnp.max(jnp.abs(y - ref)))
    # bf16 MXU operands vs. f32 Precision.HIGHEST reference -> slightly looser tol.
    assert jnp.allclose(y, ref, rtol=2e-2, atol=3e-2), f"max abs err {max_err}"

    print("KERNEL_OK")
</pallas_src>

<mosaic_0001>
module attributes {stable_mosaic.version = 11 : i64} {
  func.func @kernel(%arg0: i32, %arg1: memref<2x16x16x32xbf16, #tpu.memory_space<vmem>>, %arg2: memref<32x16xbf16, #tpu.memory_space<vmem>>, %arg3: memref<1x16xf32, #tpu.memory_space<vmem>>, %arg4: memref<144x32xbf16, #tpu.memory_space<vmem>>, %arg5: memref<1x32xf32, #tpu.memory_space<vmem>>, %arg6: memref<2x16x16x32xf32, #tpu.memory_space<vmem>>, %arg7: memref<2x18x24x16xbf16, #tpu.memory_space<vmem>>) attributes {dimension_semantics = [#tpu.dimension_semantics<parallel>], iteration_bounds = array<i64: 1>, scalar_prefetch = 0 : i64, scratch_operands = 1 : i64, tpu.core_type = #tpu.core_type<tc>, window_params = [{transform_indices = @transform_0, window_bounds = array<i64: 2, 16, 16, 32>}, {pipeline_mode = #tpu.pipeline_mode<synchronous>, transform_indices = @transform_1, window_bounds = array<i64: 32, 16>}, {pipeline_mode = #tpu.pipeline_mode<synchronous>, transform_indices = @transform_2, window_bounds = array<i64: 1, 16>}, {pipeline_mode = #tpu.pipeline_mode<synchronous>, transform_indices = @transform_3, window_bounds = array<i64: 144, 32>}, {pipeline_mode = #tpu.pipeline_mode<synchronous>, transform_indices = @transform_4, window_bounds = array<i64: 1, 32>}, {transform_indices = @transform_5, window_bounds = array<i64: 2, 16, 16, 32>}]} {
    %c0 = arith.constant 0 : index
    %c0_0 = arith.constant 0 : index
    %c0_1 = arith.constant 0 : index
    %c0_2 = arith.constant 0 : index
    %0 = vector.load %arg1[%c0, %c0_0, %c0_1, %c0_2] : memref<2x16x16x32xbf16, #tpu.memory_space<vmem>>, vector<2x16x16x32xbf16>
    %1 = vector.shape_cast %0 : vector<2x16x16x32xbf16> to vector<512x32xbf16>
    %c0_3 = arith.constant 0 : index
    %c0_4 = arith.constant 0 : index
    %2 = vector.load %arg2[%c0_3, %c0_4] : memref<32x16xbf16, #tpu.memory_space<vmem>>, vector<32x16xbf16>
    %cst = arith.constant dense<0.000000e+00> : vector<512x16xf32>
    %3 = tpu.matmul %1, %2, %cst {dimension_numbers = #tpu.dot_dimension_numbers<[1], [0], [0], [1], [0, 0, 1, 1], [], []>} : vector<512x32xbf16>, vector<32x16xbf16>, vector<512x16xf32> -> vector<512x16xf32>
    %c0_5 = arith.constant 0 : index
    %c0_6 = arith.constant 0 : index
    %4 = vector.load %arg3[%c0_5, %c0_6] : memref<1x16xf32, #tpu.memory_space<vmem>>, vector<1x16xf32>
    %5 = vector.broadcast %4 : vector<1x16xf32> to vector<512x16xf32>
    %6 = arith.addf %3, %5 : vector<512x16xf32>
    %cst_7 = arith.constant 2.000000e+01 : f32
    %7 = vector.broadcast %cst_7 : f32 to vector<512x16xf32>
    %8 = arith.minimumf %6, %7 : vector<512x16xf32>
    %9 = math.exp %8 : vector<512x16xf32>
    %cst_8 = arith.constant 1.000000e+00 : f32
    %10 = vector.broadcast %cst_8 : f32 to vector<512x16xf32>
    %11 = arith.addf %10, %9 : vector<512x16xf32>
    %12 = arith.mulf %11, %11 : vector<512x16xf32>
    %cst_9 = arith.constant 1.000000e+00 : f32
    %13 = vector.broadcast %cst_9 : f32 to vector<512x16xf32>
    %14 = arith.subf %12, %13 : vector<512x16xf32>
    %15 = arith.mulf %6, %14 : vector<512x16xf32>
    %cst_10 = arith.constant 1.000000e+00 : f32
    %16 = vector.broadcast %cst_10 : f32 to vector<512x16xf32>
    %17 = arith.addf %12, %16 : vector<512x16xf32>
    %18 = tpu.reciprocal %17 {approx = true} : vector<512x16xf32> -> vector<512x16xf32>
    %19 = arith.mulf %15, %18 : vector<512x16xf32>
    %cst_11 = arith.constant 0.000000e+00 : bf16
    %20 = vector.broadcast %cst_11 : bf16 to vector<2x1x24x16xbf16>
    %c0_12 = arith.constant 0 : index
    %c0_13 = arith.constant 0 : index
    %c0_14 = arith.constant 0 : index
    %c0_15 = arith.constant 0 : index
    %21 = vector.load %arg7[%c0_12, %c0_13, %c0_14, %c0_15] : memref<2x18x24x16xbf16, #tpu.memory_space<vmem>>, vector<2x1x24x16xbf16>
    tpu.vector_store %arg7[%c0_12, %c0_13, %c0_14, %c0_15], %20 {strides = array<i32>} : memref<2x18x24x16xbf16, #tpu.memory_space<vmem>>, vector<2x1x24x16xbf16>,
    %c0_16 = arith.constant 0 : index
    %c17 = arith.constant 17 : index
    %c0_17 = arith.constant 0 : index
    %c0_18 = arith.constant 0 : index
    %22 = vector.load %arg7[%c0_16, %c17, %c0_17, %c0_18] : memref<2x18x24x16xbf16, #tpu.memory_space<vmem>>, vector<2x1x24x16xbf16>
    tpu.vector_store %arg7[%c0_16, %c17, %c0_17, %c0_18], %20 {strides = array<i32>} : memref<2x18x24x16xbf16, #tpu.memory_space<vmem>>, vector<2x1x24x16xbf16>,
    %cst_19 = arith.constant 0.000000e+00 : bf16
    %23 = vector.broadcast %cst_19 : bf16 to vector<2x18x1x16xbf16>
    %c0_20 = arith.constant 0 : index
    %c0_21 = arith.constant 0 : index
    %c0_22 = arith.constant 0 : index
    %c0_23 = arith.constant 0 : index
    %24 = vector.load %arg7[%c0_20, %c0_21, %c0_22, %c0_23] : memref<2x18x24x16xbf16, #tpu.memory_space<vmem>>, vector<2x18x1x16xbf16>
    tpu.vector_store %arg7[%c0_20, %c0_21, %c0_22, %c0_23], %23 {strides = array<i32>} : memref<2x18x24x16xbf16, #tpu.memory_space<vmem>>, vector<2x18x1x16xbf16>,
    %c0_24 = arith.constant 0 : index
    %c0_25 = arith.constant 0 : index
    %c17_26 = arith.constant 17 : index
    %c0_27 = arith.constant 0 : index
    %25 = vector.load %arg7[%c0_24, %c0_25, %c17_26, %c0_27] : memref<2x18x24x16xbf16, #tpu.memory_space<vmem>>, vector<2x18x1x16xbf16>
    tpu.vector_store %arg7[%c0_24, %c0_25, %c17_26, %c0_27], %23 {strides = array<i32>} : memref<2x18x24x16xbf16, #tpu.memory_space<vmem>>, vector<2x18x1x16xbf16>,
    %26 = vector.shape_cast %19 : vector<512x16xf32> to vector<2x16x16x16xf32>
    %27 = arith.truncf %26 : vector<2x16x16x16xf32> to vector<2x16x16x16xbf16>
    %c0_28 = arith.constant 0 : index
    %c1 = arith.constant 1 : index
    %c1_29 = arith.constant 1 : index
    %c0_30 = arith.constant 0 : index
    %28 = vector.load %arg7[%c0_28, %c1, %c1_29, %c0_30] : memref<2x18x24x16xbf16, #tpu.memory_space<vmem>>, vector<2x16x16x16xbf16>
    tpu.vector_store %arg7[%c0_28, %c1, %c1_29, %c0_30], %27 {strides = array<i32>} : memref<2x18x24x16xbf16, #tpu.memory_space<vmem>>, vector<2x16x16x16xbf16>,
    %c0_31 = arith.constant 0 : index
    %c0_32 = arith.constant 0 : index
    %c0_33 = arith.constant 0 : index
    %c0_34 = arith.constant 0 : index
    %29 = vector.load %arg7[%c0_31, %c0_32, %c0_33, %c0_34] : memref<2x18x24x16xbf16, #tpu.memory_space<vmem>>, vector<2x16x16x16xbf16>
    %30 = vector.shape_cast %29 : vector<2x16x16x16xbf16> to vector<512x16xbf16>
    %c0_35 = arith.constant 0 : index
    %c0_36 = arith.constant 0 : index
    %c1_37 = arith.constant 1 : index
    %c0_38 = arith.constant 0 : index
    %31 = vector.load %arg7[%c0_35, %c0_36, %c1_37, %c0_38] : memref<2x18x24x16xbf16, #tpu.memory_space<vmem>>, vector<2x16x16x16xbf16>
    %32 = vector.shape_cast %31 : vector<2x16x16x16xbf16> to vector<512x16xbf16>
    %c0_39 = arith.constant 0 : index
    %c0_40 = arith.constant 0 : index
    %c2 = arith.constant 2 : index
    %c0_41 = arith.constant 0 : index
    %33 = vector.load %arg7[%c0_39, %c0_40, %c2, %c0_41] : memref<2x18x24x16xbf16, #tpu.memory_space<vmem>>, vector<2x16x16x16xbf16>
    %34 = vector.shape_cast %33 : vector<2x16x16x16xbf16> to vector<512x16xbf16>
    %c0_42 = arith.constant 0 : index
    %c1_43 = arith.constant 1 : index
    %c0_44 = arith.constant 0 : index
    %c0_45 = arith.constant 0 : index
    %35 = vector.load %arg7[%c0_42, %c1_43, %c0_44, %c0_45] : memref<2x18x24x16xbf16, #tpu.memory_space<vmem>>, vector<2x16x16x16xbf16>
    %36 = vector.shape_cast %35 : vector<2x16x16x16xbf16> to vector<512x16xbf16>
    %c0_46 = arith.constant 0 : index
    %c1_47 = arith.constant 1 : index
    %c1_48 = arith.constant 1 : index
    %c0_49 = arith.constant 0 : index
    %37 = vector.load %arg7[%c0_46, %c1_47, %c1_48, %c0_49] : memref<2x18x24x16xbf16, #tpu.memory_space<vmem>>, vector<2x16x16x16xbf16>
    %38 = vector.shape_cast %37 : vector<2x16x16x16xbf16> to vector<512x16xbf16>
    %c0_50 = arith.constant 0 : index
    %c1_51 = arith.constant 1 : index
    %c2_52 = arith.constant 2 : index
    %c0_53 = arith.constant 0 : index
    %39 = vector.load %arg7[%c0_50, %c1_51, %c2_52, %c0_53] : memref<2x18x24x16xbf16, #tpu.memory_space<vmem>>, vector<2x16x16x16xbf16>
    %40 = vector.shape_cast %39 : vector<2x16x16x16xbf16> to vector<512x16xbf16>
    %c0_54 = arith.constant 0 : index
    %c2_55 = arith.constant 2 : index
    %c0_56 = arith.constant 0 : index
    %c0_57 = arith.constant 0 : index
    %41 = vector.load %arg7[%c0_54, %c2_55, %c0_56, %c0_57] : memref<2x18x24x16xbf16, #tpu.memory_space<vmem>>, vector<2x16x16x16xbf16>
    %42 = vector.shape_cast %41 : vector<2x16x16x16xbf16> to vector<512x16xbf16>
    %c0_58 = arith.constant 0 : index
    %c2_59 = arith.constant 2 : index
    %c1_60 = arith.constant 1 : index
    %c0_61 = arith.constant 0 : index
    %43 = vector.load %arg7[%c0_58, %c2_59, %c1_60, %c0_61] : memref<2x18x24x16xbf16, #tpu.memory_space<vmem>>, vector<2x16x16x16xbf16>
    %44 = vector.shape_cast %43 : vector<2x16x16x16xbf16> to vector<512x16xbf16>
    %c0_62 = arith.constant 0 : index
    %c2_63 = arith.constant 2 : index
    %c2_64 = arith.constant 2 : index
    %c0_65 = arith.constant 0 : index
    %45 = vector.load %arg7[%c0_62, %c2_63, %c2_64, %c0_65] : memref<2x18x24x16xbf16, #tpu.memory_space<vmem>>, vector<2x16x16x16xbf16>
    %46 = vector.shape_cast %45 : vector<2x16x16x16xbf16> to vector<512x16xbf16>
    %47 = tpu.concatenate %30, %32, %34, %36, %38, %40, %42, %44, %46 in 1 : vector<512x16xbf16>, vector<512x16xbf16>, vector<512x16xbf16>, vector<512x16xbf16>, vector<512x16xbf16>, vector<512x16xbf16>, vector<512x16xbf16>, vector<512x16xbf16>, vector<512x16xbf16> -> vector<512x144xbf16>
    %c0_66 = arith.constant 0 : index
    %c0_67 = arith.constant 0 : index
    %48 = vector.load %arg4[%c0_66, %c0_67] : memref<144x32xbf16, #tpu.memory_space<vmem>>, vector<144x32xbf16>
    %cst_68 = arith.constant dense<0.000000e+00> : vector<512x32xf32>
    %49 = tpu.matmul %47, %48, %cst_68 {dimension_numbers = #tpu.dot_dimension_numbers<[1], [0], [0], [1], [0, 0, 1, 1], [], []>} : vector<512x144xbf16>, vector<144x32xbf16>, vector<512x32xf32> -> vector<512x32xf32>
    %c0_69 = arith.constant 0 : index
    %c0_70 = arith.constant 0 : index
    %50 = vector.load %arg5[%c0_69, %c0_70] : memref<1x32xf32, #tpu.memory_space<vmem>>, vector<1x32xf32>
    %51 = vector.broadcast %50 : vector<1x32xf32> to vector<512x32xf32>
    %52 = arith.addf %49, %51 : vector<512x32xf32>
    %cst_71 = arith.constant 2.000000e+01 : f32
    %53 = vector.broadcast %cst_71 : f32 to vector<512x32xf32>
    %54 = arith.minimumf %52, %53 : vector<512x32xf32>
    %55 = math.exp %54 : vector<512x32xf32>
    %cst_72 = arith.constant 1.000000e+00 : f32
    %56 = vector.broadcast %cst_72 : f32 to vector<512x32xf32>
    %57 = arith.addf %56, %55 : vector<512x32xf32>
    %58 = arith.mulf %57, %57 : vector<512x32xf32>
    %cst_73 = arith.constant 1.000000e+00 : f32
    %59 = vector.broadcast %cst_73 : f32 to vector<512x32xf32>
    %60 = arith.subf %58, %59 : vector<512x32xf32>
    %61 = arith.mulf %52, %60 : vector<512x32xf32>
    %cst_74 = arith.constant 1.000000e+00 : f32
    %62 = vector.broadcast %cst_74 : f32 to vector<512x32xf32>
    %63 = arith.addf %58, %62 : vector<512x32xf32>
    %64 = tpu.reciprocal %63 {approx = true} : vector<512x32xf32> -> vector<512x32xf32>
    %65 = arith.mulf %61, %64 : vector<512x32xf32>
    %66 = vector.shape_cast %65 : vector<512x32xf32> to vector<2x16x16x32xf32>
    %c0_75 = arith.constant 0 : index
    %c0_76 = arith.constant 0 : index
    %c0_77 = arith.constant 0 : index
    %c0_78 = arith.constant 0 : index
    %67 = vector.load %arg6[%c0_75, %c0_76, %c0_77, %c0_78] : memref<2x16x16x32xf32, #tpu.memory_space<vmem>>, vector<2x16x16x32xf32>
    tpu.vector_store %arg6[%c0_75, %c0_76, %c0_77, %c0_78], %66 {strides = array<i32>} : memref<2x16x16x32xf32, #tpu.memory_space<vmem>>, vector<2x16x16x32xf32>,
    return
  }
  func.func @transform_0(%arg0: i32) -> (i32, i32, i32, i32) {
    %c0_i32 = arith.constant 0 : i32
    %c0_i32_0 = arith.constant 0 : i32
    %c0_i32_1 = arith.constant 0 : i32
    %c0_i32_2 = arith.constant 0 : i32
    return %arg0, %c0_i32, %c0_i32_0, %c0_i32_1 : i32, i32, i32, i32
  }
  func.func @transform_1(%arg0: i32) -> (i32, i32) {
    %c0_i32 = arith.constant 0 : i32
    %c0_i32_0 = arith.constant 0 : i32
    %c0_i32_1 = arith.constant 0 : i32
    return %c0_i32, %c0_i32_0 : i32, i32
  }
  func.func @transform_2(%arg0: i32) -> (i32, i32) {
    %c0_i32 = arith.constant 0 : i32
    %c0_i32_0 = arith.constant 0 : i32
    %c0_i32_1 = arith.constant 0 : i32
    return %c0_i32, %c0_i32_0 : i32, i32
  }
  func.func @transform_3(%arg0: i32) -> (i32, i32) {
    %c0_i32 = arith.constant 0 : i32
    %c0_i32_0 = arith.constant 0 : i32
    %c0_i32_1 = arith.constant 0 : i32
    return %c0_i32, %c0_i32_0 : i32, i32
  }
  func.func @transform_4(%arg0: i32) -> (i32, i32) {
    %c0_i32 = arith.constant 0 : i32
    %c0_i32_0 = arith.constant 0 : i32
    %c0_i32_1 = arith.constant 0 : i32
    return %c0_i32, %c0_i32_0 : i32, i32
  }
  func.func @transform_5(%arg0: i32) -> (i32, i32, i32, i32) {
    %c0_i32 = arith.constant 0 : i32
    %c0_i32_0 = arith.constant 0 : i32
    %c0_i32_1 = arith.constant 0 : i32
    %c0_i32_2 = arith.constant 0 : i32
    return %arg0, %c0_i32, %c0_i32_0, %c0_i32_1 : i32, i32, i32, i32
  }
}

</mosaic_0001>

<bundles_post_ra>
// kernel: tpu_custom_call.1
= control target key start
LH: loop header
LB: loop body
LE: loop exit
PB: predicated region body
PF: predicated region fallthrough
CT: control target
= control target key end

     0   :  { %10 = vsyncpa [#allocation4], 0  ;;  %s14722_s0 = inlined_call_operand.hbm [shape: bf16[2,16,16,32], index: 0, kind: input, shape index: {}]   ;;  %s14723_s1 = inlined_call_operand.vmem [shape: bf16[32,16], index: 1, kind: input, shape index: {}]   ;;  %s14724_s2 = inlined_call_operand.vmem [shape: f32[1,16], index: 2, kind: input, shape index: {}]   ;;  %s14725_s3 = inlined_call_operand.vmem [shape: bf16[144,32], index: 3, kind: input, shape index: {}]   ;;  %s14726_s4 = inlined_call_operand.vmem [shape: f32[1,32], index: 4, kind: input, shape index: {}]   ;;  %s14727_s5 = inlined_call_operand.hbm [shape: f32[2,16,16,32], index: 5, kind: output, shape index: {}]  }
   0x1   :  { %11 = vsyncpa [#allocation5], 0  ;;  %s16_s20 = sshll.u32 %s14722_s0, 4  ;;  %s10845_s21 = smov [#allocation3]   ;;  %s17_s20 = int_to_ptr.hbm [resolvable:$true] %s16_s20 }
   0x2   :  { %s18_s22 = sshll.u32 %s10845_s21, 4  ;;  %s10846_s23 = smov 64   ;;  %s19_s22 = int_to_ptr.vmem [resolvable:$true] %s18_s22 }
   0x3   :  { %s10847_s24 = smov 4  }
   0x4   :  { %24 = dma.hbm_to_vmem [thread:$0]  %s17_s20, 4096, %s19_s22, [#allocation4], %s10846_s23, %s10846_s23, %s10847_s24  }
   0x5   :  { %10841 = dma.done.wait [#allocation4], 4096  }
   0x6   :  { %10842 = vsyncadd [#allocation4], 4294963200  ;;  %v10047_v0 = vld [vmem:[%s14723_s1 + $0x8] sm:$0xff]  ;;  %v10046_v1 = vld [vmem:[%s14723_s1] sm:$0xff]  ;;  %vm282_vm0 = vcmask 261120   ;;  %vm1188_vm1 = vcmask 125952  }
   0x7   :  { %385 = vmatpush.bf16.msra.mxu0 %v10047_v0  ;;  %10153 = vmatpush.bf16.msra.mxu3 %v10047_v0  ;;  %v10014_v2 = vld [vmem:[#allocation3] sm:$0xff]  ;;  %v10039_v3 = vld [vmem:[#allocation3 + $0xc8] sm:$0xff]  ;;  %v10040_v5 = vld [vmem:[#allocation3 + $0xd0] sm:$0xff]  ;;  %v10848_v15 = vmov 0   ;;  %vm1202_vm2 = vcmask 122880   ;;  %s10849_s29 = smov 16  }
   0x8   :  { %v10015_v4 = vld [vmem:[#allocation3 + $0x8] sm:$0xff]  ;;  %v10016_v6 = vld [vmem:[#allocation3 + $0x10] sm:$0xff]  ;;  %v10041_v7 = vld [vmem:[#allocation3 + $0xd8] sm:$0xff]  ;;  %1192 = vst.msk [vmem:[#allocation2 + $0xd8] sm:$0xf] %vm1188_vm1, %v10848_v15  ;;  %s10850_s30 = smov 48  }
   0x9   :  { %v10017_v8 = vld [vmem:[#allocation3 + $0x18] sm:$0xff]  ;;  %v10018_v9 = vld [vmem:[#allocation3 + $0x20] sm:$0xff]  ;;  %v10019_v11 = vld [vmem:[#allocation3 + $0x28] sm:$0xff]  ;;  %1193 = vst.msk [vmem:[#allocation2 + $0xdc] sm:$0xf] %vm1188_vm1, %v10848_v15  ;;  %vm3351_vm13 = vcmask 1042432  }
   0xa   :  { %v10042_v10 = vld [vmem:[#allocation3 + $0xe0] sm:$0xff]  ;;  %v10020_v12 = vld [vmem:[#allocation3 + $0x30] sm:$0xff]  ;;  %v10043_v13 = vld [vmem:[#allocation3 + $0xe8] sm:$0xff]  ;;  %1194 = vst.msk [vmem:[#allocation2 + $0xe0] sm:$0xf] %vm1188_vm1, %v10848_v15  ;;  %vm3352_vm14 = vcmask 1046532  }
   0xb   :  { %386 = vmatpush.bf16.msra.mxu0 %v10046_v1  ;;  %10154 = vmatpush.bf16.msra.mxu3 %v10046_v1  ;;  %v10021_v14 = vld [vmem:[#allocation3 + $0x38] sm:$0xff]  ;;  %vm1203_vm3 = vsmask.f32 256  ;;  %1189 = vst.msk [vmem:[#allocation2] sm:$0xf] %vm1188_vm1, %v10848_v15  ;;  %v10022_v23 = vld [vmem:[#allocation3 + $0x40] sm:$0xff]  ;;  %vm11123_vm15 = vmor %vm3351_vm13, %vm3352_vm14 }
   0xc   :  { %1190 = vst.msk [vmem:[#allocation2 + $0x4] sm:$0xf] %vm1188_vm1, %v10848_v15  ;;  %vm10919_vm4 = vmand %vm1202_vm2, %vm1203_vm3  ;;  %v1208_v17 = vld [vmem:[#allocation2 + $0xc] sm:$0x1]  ;;  %vm1313_vm5 = vsmask.f32 7938 }
   0xd   :  { %1191 = vst.msk [vmem:[#allocation2 + $0x8] sm:$0xf] %vm1188_vm1, %v10848_v15  ;;  %v1209_v19 = vsel %vm10919_vm4, 0, %v1208_v17  ;;  %v10933_v21 = vld [vmem:[%s14724_s2] ss:$0 sm:$0xff]  ;;  %vm10937_vm6 = vmand %vm1202_vm2, %vm1313_vm5  ;;  %s10851_s6 = smov 96  }
   0xe   :  { %9306 = vmatmul.msk.bf16.vlgmr.msra.gmra.mxu0 %vm282_vm0, %v10014_v2  ;;  %9331 = vmatmul.msk.bf16.vlgmr.msra.gmra.mxu3 %vm282_vm0, %v10039_v3  ;;  %1196 = vst.msk [vmem:[#allocation2 + $0xcc] sm:$0xf] %vm1188_vm1, %v10848_v15  ;;  %v10044_v28 = vld [vmem:[#allocation3 + $0xf0] sm:$0xff]  ;;  %v1318_v31 = vld [vmem:[#allocation2 + $0x14] sm:$0x1]  ;;  %vm11029_vm11 = vmand %vm1188_vm1, %vm1313_vm5  ;;  %s10852_s7 = smov 32  }
   0xf   :  { %v1259_v18 = vld [vmem:[#allocation2 + $0xd8] sm:$0x1]  ;;  %1197 = vst.msk [vmem:[#allocation2 + $0xd0] sm:$0xf] %vm1188_vm1, %v10848_v15  ;;  %v1319_v32 = vsel %vm10937_vm6, 0, %v1318_v31  ;;  %vm7419_vm2 = vcmask 130048  }
  0x10   :  { %v1260_v20 = vsel %vm10919_vm4, 0, %v1259_v18  ;;  %1210 = vst [vmem:[#allocation2 + $0xc] sm:$0x1] %v1209_v19  ;;  %v2389_v33 = vld [vmem:[#allocation2 + $0xdc] sm:$0xf]  ;;  %s10853_s12 = smov 80  }
  0x11   :  { %1261 = vst [vmem:[#allocation2 + $0xd8] sm:$0x1] %v1260_v20  ;;  %v1369_v24 = vld [vmem:[#allocation2 + $0xe0] sm:$0x1]  ;;  %v1289_v38 = vld [vmem:[#allocation2 + $0x150] sm:$0x1] }
  0x12   :  { %1198 = vst.msk [vmem:[#allocation2 + $0xd4] sm:$0xf] %vm1188_vm1, %v10848_v15  ;;  %v1370_v26 = vsel %vm10937_vm6, 0, %v1369_v24  ;;  %v1205_v29 = vld [vmem:[#allocation2] sm:$0x1]  ;;  %v2849_v41 = vshll.u32 %v2389_v33, 16 }
  0x13   :  { %1199 = vst.msk [vmem:[#allocation2 + $0x1a4] sm:$0xf] %vm1188_vm1, %v10848_v15  ;;  %v1206_v34 = vsel %vm10919_vm4, 0, %v1205_v29  ;;  %v2853_v42 = vshrl.u32 %v2389_v33, 16  ;;  %v1290_v44 = vsel %vm10919_vm4, 0, %v1289_v38  ;;  %s10854_s13 = smov 112  }
  0x14   :  { %1371 = vst [vmem:[#allocation2 + $0xe0] sm:$0x1] %v1370_v26  ;;  %v2851_v51 = vrot.slane %v2849_v41, 5  ;;  %v1315_v53 = vld [vmem:[#allocation2 + $0x8] sm:$0x1]  ;;  %vm7645_vm5 = vcmask 523264  }
  0x15   :  { %1200 = vst.msk [vmem:[#allocation2 + $0x1a8] sm:$0xf] %vm1188_vm1, %v10848_v15  ;;  %v2855_v52 = vrot.slane %v2853_v42, 4  ;;  %v1211_v59 = vld [vmem:[#allocation2 + $0x18] sm:$0x1]  ;;  %v1316_v60 = vsel %vm10937_vm6, 0, %v1315_v53 }
  0x16   :  { %1201 = vst.msk [vmem:[#allocation2 + $0x1ac] sm:$0xf] %vm1188_vm1, %v10848_v15  ;;  %vm2452_vm7 = vsmask.f32 3328  ;;  %v1212_v63 = vsel %vm10919_vm4, 0, %v1211_v59  ;;  %s10856_s11 = smov 128  }
  0x17   :  { %1320 = vst [vmem:[#allocation2 + $0x14] sm:$0x1] %v1319_v32  ;;  %v2856_v58 = vor.u32 %v2855_v52, %v2851_v51  ;;  %vm2453_vm8 = vsmask.f32 7440  ;;  %v10988_v20 = vld [vmem:[#allocation2 + $0x4] sm:$0xf] }
  0x18   :  { %v2388_v36 = vld [vmem:[#allocation2 + $0xd8] sm:$0xf]  ;;  %1207 = vst [vmem:[#allocation2] sm:$0x1] %v1206_v34  ;;  %vm10971_vm9 = vmor %vm2452_vm7, %vm2453_vm8  ;;  %v1321_v33 = vld [vmem:[#allocation2 + $0x20] sm:$0x1] }
  0x19   :  { %v2840_v39 = vshrl.u32 %v2388_v36, 16  ;;  %v2843_v40 = vshll.u32 %v2388_v36, 16  ;;  %1291 = vst [vmem:[#allocation2 + $0x150] sm:$0x1] %v1290_v44  ;;  %v1322_v38 = vsel %vm10937_vm6, 0, %v1321_v33  ;;  %vm7710_vm7 = vcmask 654336  }
  0x1a   :  { %1213 = vst [vmem:[#allocation2 + $0x18] sm:$0x1] %v1212_v63  ;;  %vm1487_vm10 = vsmask.f32 4368  ;;  %vm7775_vm8 = vcmask 785408   ;;  %s10857_s14 = smov 8  }
  0x1b   :  { %v2436_v46 = vld [vmem:[#allocation2 + $0xe0] sm:$0x1]  ;;  %v2842_v47 = vrot.slane %v2840_v39, 4  ;;  %v2845_v48 = vrot.slane %v2843_v40, 5  ;;  %1317 = vst [vmem:[#allocation2 + $0x8] sm:$0x1] %v1316_v60  ;;  %vm11052_vm12 = vmor %vm1203_vm3, %vm1487_vm10 }
  0x1c   :  { %v2859_v55 = vshll.u32 %v2436_v46, 16  ;;  %1323 = vst [vmem:[#allocation2 + $0x20] sm:$0x1] %v1322_v38  ;;  %vm7580_vm3 = vcmask 392192   ;;  %vm7840_vm10 = vcmask 916480  }
  0x1d   :  { %v2846_v54 = vor.u32 %v2845_v48, %v2842_v47  ;;  %v2469_v47 = vshrl.u32 %v10988_v20, 16  ;;  %v3239_v16 = vld [vmem:[#allocation2 + $0xd8] sm:$0xe] }
  0x1e   :  { %9307 = vmatmul.msk.bf16.gmra.mxu0 %vm282_vm0, %v10015_v4  ;;  %9332 = vmatmul.msk.bf16.gmra.mxu3 %vm282_vm0, %v10040_v5  ;;  %v2857_v4 = vrot.slane %v2856_v58, 4  ;;  %v2861_v5 = vrot.slane %v2859_v55, 5 }
  0x1f   :  { %v2847_v3 = vrot.slane %v2846_v54, 4 }
  0x22   :  { %v11001_v53 = vld [vmem:[#allocation2 + $0x8] sm:$0x1] }
  0x2e   :  { %9308 = vmatmul.msk.bf16.gmra.mxu0 %vm282_vm0, %v10016_v6  ;;  %9333 = vmatmul.msk.bf16.gmra.mxu3 %vm282_vm0, %v10041_v7  ;;  %v1399_v7 = vld [vmem:[#allocation2 + $0x158] sm:$0x1] }
  0x3e   :  { %9309 = vmatmul.msk.bf16.gmra.mxu0 %vm282_vm0, %v10017_v8  ;;  %9334 = vmatmul.msk.bf16.gmra.mxu3 %vm282_vm0, %v10042_v10  ;;  %v10023_v8 = vld [vmem:[#allocation3 + $0x48] sm:$0xff]  ;;  %v1400_v10 = vsel %vm10937_vm6, 0, %v1399_v7 }
  0x3f   :  { %1401 = vst [vmem:[#allocation2 + $0x158] sm:$0x1] %v1400_v10 }
  0x4e   :  { %9310 = vmatmul.msk.bf16.gmra.mxu0 %vm282_vm0, %v10018_v9  ;;  %9335 = vmatmul.msk.bf16.gmra.mxu3 %vm282_vm0, %v10043_v13  ;;  %v2862_v13 = vsel %vm10971_vm9, %v2857_v4, %v2861_v5 }
  0x4f   :  { %v6172_v19 = vunpack.c.l.b16 %v2862_v13 }
  0x5e   :  { %9311 = vmatmul.msk.bf16.gmra.mxu0 %vm282_vm0, %v10019_v11  ;;  %9336 = vmatmul.msk.bf16.gmra.mxu3 %vm282_vm0, %v10044_v28 }
  0x6e   :  { %9312 = vmatmul.msk.bf16.gmra.mxu0 %vm282_vm0, %v10020_v12  ;;  %v2852_v12 = vsel %vm10971_vm9, %v2847_v3, %v2851_v51 }
  0x6f   :  { %v6171_v18 = vunpack.c.l.b16 %v2852_v12 }
  0x71   :  { %v6219_v31 = vpack.c.b16 %v6172_v19, %v6171_v18 }
  0x73   :  { %6267 = vrot.lane.b32.xlu1 %v6219_v31, %s10849_s29 }
  0x7e   :  { %9313 = vmatmul.msk.bf16.gmra.mxu0 %vm282_vm0, %v10021_v14  ;;  %v2356_v14 = vld [vmem:[#allocation2] sm:$0xf] }
  0x7f   :  { %v2459_v26 = vshll.u32 %v2356_v14, 16 }
  0x81   :  { %v2461_v39 = vrot.slane %v2459_v26, 5 }
  0x8b   :  { %v388_v25 = vpop.f32.mrf.mxu0 }
  0x8c   :  { %v10946_v27 = vadd.f32 %v10933_v21, %v388_v25  ;;  %v2456_v25 = vshrl.u32 %v2356_v14, 16 }
  0x8e   :  { %v548_v30 = vmin.f32 %v10946_v27, 20.0  ;;  %9314 = vmatmul.msk.bf16.gmra.mxu0 %vm282_vm0, %v10022_v23  ;;  %v2458_v34 = vrot.slane %v2456_v25, 4 }
  0x90   :  { %v612_v35 = vmul.f32 1.442695, %v548_v30  ;;  %v2462_v46 = vor.u32 %v2461_v39, %v2458_v34 }
  0x91   :  { %v513_v37 = vpop.f32.mrf.mxu3 }
  0x92   :  { %10179 = vpow2.f32 %v612_v35  ;;  %v10958_v43 = vadd.f32 %v10933_v21, %v513_v37  ;;  %v2465_v35 = vshll.u32 %v10988_v20, 16 }
  0x93   :  { %v390_v45 = vpop.f32.mrf.mxu0 }
  0x94   :  { %v598_v49 = vmin.f32 %v10958_v43, 20.0  ;;  %v10964_v50 = vadd.f32 %v10933_v21, %v390_v45  ;;  %v2467_v54 = vrot.slane %v2465_v35, 5 }
  0x96   :  { %v712_v56 = vmul.f32 1.442695, %v598_v49  ;;  %v549_v57 = vmin.f32 %v10964_v50, 20.0 }
  0x98   :  { %v10180_v61 = vpop.eup %10179  ;;  %10181 = vpow2.f32 %v712_v56  ;;  %v614_v62 = vmul.f32 1.442695, %v549_v57  ;;  %v2463_v56 = vrot.slane %v2462_v46, 4  ;;  %v2471_v57 = vrot.slane %v2469_v47, 4 }
  0x99   :  { %v740_v0 = vadd.f32 1.0, %v10180_v61  ;;  %v515_v1 = vpop.f32.mrf.mxu3 }
  0x9a   :  { %10183 = vpow2.f32 %v614_v62  ;;  %v10976_v6 = vadd.f32 %v10933_v21, %v515_v1  ;;  %v2475_v1 = vshll.u32 %v11001_v53, 16  ;;  %v2468_v4 = vsel %vm10971_vm9, %v2463_v56, %v2467_v54 }
  0x9b   :  { %v804_v9 = vmul.f32 %v740_v0, %v740_v0  ;;  %v393_v11 = vpop.f32.mrf.mxu0  ;;  %v2472_v5 = vor.u32 %v2471_v57, %v2467_v54 }
  0x9c   :  { %v599_v15 = vmin.f32 %v10976_v6, 20.0  ;;  %v10986_v17 = vadd.f32 %v10933_v21, %v393_v11  ;;  %v1214_v11 = vld [vmem:[#allocation2 + $0x24] sm:$0x1] }
  0x9d   :  { %v9338_v23 = vadd.f32 -1.0, %v804_v9  ;;  %v996_v24 = vadd.f32 1.0, %v804_v9 }
  0x9e   :  { %v10182_v28 = vpop.eup %10181  ;;  %v714_v29 = vmul.f32 1.442695, %v599_v15  ;;  %v550_v30 = vmin.f32 %v10986_v17, 20.0  ;;  %9315 = vmatmul.msk.bf16.gmra.mxu0 %vm282_vm0, %v10023_v8  ;;  %v1215_v15 = vsel %vm10919_vm4, 0, %v1214_v11 }
  0x9f   :  { %10185 = vrcp.f32 %v996_v24  ;;  %v790_v32 = vadd.f32 1.0, %v10182_v28  ;;  %v932_v40 = vmul.f32 %v9338_v23, %v10946_v27  ;;  %1216 = vst [vmem:[#allocation2 + $0x24] sm:$0x1] %v1215_v15  ;;  %v10024_v23 = vld [vmem:[#allocation3 + $0x50] sm:$0xff] }
  0xa0   :  { %v10184_v36 = vpop.eup %10183  ;;  %10187 = vpow2.f32 %v714_v29  ;;  %v616_v37 = vmul.f32 1.442695, %v550_v30  ;;  %v11020_v30 = vrot.slane %v2472_v5, 4 }
  0xa1   :  { %v854_v41 = vmul.f32 %v790_v32, %v790_v32  ;;  %v741_v42 = vadd.f32 1.0, %v10184_v36  ;;  %v518_v44 = vpop.f32.mrf.mxu3 }
  0xa2   :  { %10189 = vpow2.f32 %v616_v37  ;;  %v10998_v45 = vadd.f32 %v10933_v21, %v518_v44  ;;  %v2132_v37 = vld [vmem:[#allocation2 + $0xc] sm:$0xf] }
  0xa3   :  { %v9388_v48 = vadd.f32 -1.0, %v854_v41  ;;  %v1046_v49 = vadd.f32 1.0, %v854_v41  ;;  %v805_v51 = vmul.f32 %v741_v42, %v741_v42  ;;  %v395_v52 = vpop.f32.mrf.mxu0 }
  0xa4   :  { %v11004_v27 = vadd.f32 %v10933_v21, %v395_v52  ;;  %v600_v55 = vmin.f32 %v10998_v45, 20.0 }
  0xa5   :  { %v10186_v58 = vpop.eup %10185  ;;  %10191 = vrcp.f32 %v1046_v49  ;;  %v9339_v59 = vadd.f32 -1.0, %v805_v51  ;;  %v997_v60 = vadd.f32 1.0, %v805_v51  ;;  %v982_v9 = vmul.f32 %v9388_v48, %v10958_v43 }
  0xa6   :  { %v10188_v61 = vpop.eup %10187  ;;  %v1124_v62 = vmul.f32 %v10186_v58, %v932_v40  ;;  %v551_v63 = vmin.f32 %v11004_v27, 20.0  ;;  %v716_v0 = vmul.f32 1.442695, %v600_v55  ;;  %v11018_v43 = vunpack.c.l.b16 %v2468_v4  ;;  %v1324_v58 = vld [vmem:[#allocation2 + $0x2c] sm:$0x1] }
  0xa7   :  { %10193 = vrcp.f32 %v997_v60  ;;  %v791_v3 = vadd.f32 1.0, %v10188_v61  ;;  %v933_v12 = vmul.f32 %v9339_v59, %v10964_v50  ;;  %v11034_v40 = vrot.slane %v2475_v1, 5  ;;  %v2307_v4 = vld [vmem:[#allocation2 + $0x150] sm:$0xf] }
  0xa8   :  { %v10190_v7 = vpop.eup %10189  ;;  %v1423_v8 = vpack.c.bf16 %v1124_v62, %v1124_v62  ;;  %v618_v10 = vmul.f32 1.442695, %v551_v63  ;;  %10195 = vpow2.f32 %v716_v0  ;;  %v1325_v61 = vsel %vm10937_vm6, 0, %v1324_v58 }
  0xa9   :  { %v855_v13 = vmul.f32 %v791_v3, %v791_v3  ;;  %v742_v14 = vadd.f32 1.0, %v10190_v7  ;;  %v520_v18 = vpop.f32.mrf.mxu3  ;;  %1326 = vst [vmem:[#allocation2 + $0x2c] sm:$0x1] %v1325_v61 }
  0xaa   :  { %v1490_v19 = vshrl.u32 %v1423_v8, 16  ;;  %10197 = vpow2.f32 %v618_v10  ;;  %v11016_v24 = vadd.f32 %v10933_v21, %v520_v18  ;;  %v1493_v32 = vshll.u32 %v1423_v8, 16  ;;  %v2136_v18 = vld [vmem:[#allocation2 + $0x14] sm:$0x1] }
  0xab   :  { %v10192_v25 = vpop.eup %10191  ;;  %v9389_v26 = vadd.f32 -1.0, %v855_v13  ;;  %v1047_v28 = vadd.f32 1.0, %v855_v13  ;;  %v806_v50 = vmul.f32 %v742_v14, %v742_v14  ;;  %v398_v29 = vpop.f32.mrf.mxu0 }
  0xac   :  { %v11022_v31 = vrot.slane %v1490_v19, 7  ;;  %v1174_v33 = vmul.f32 %v10192_v25, %v982_v9  ;;  %v11025_v34 = vadd.f32 %v10933_v21, %v398_v29  ;;  %v601_v39 = vmin.f32 %v11016_v24, 20.0 }
  0xad   :  { %v10194_v35 = vpop.eup %10193  ;;  %10199 = vrcp.f32 %v1047_v28  ;;  %v998_v38 = vadd.f32 1.0, %v806_v50  ;;  %v9340_v47 = vadd.f32 -1.0, %v806_v50  ;;  %v983_v48 = vmul.f32 %v9389_v26, %v10976_v6 }
  0xae   :  { %v10196_v41 = vpop.eup %10195  ;;  %v1495_v42 = vor.u32 %v1493_v32, %v11022_v31  ;;  %v1473_v44 = vpack.c.bf16 %v1174_v33, %v1174_v33  ;;  %v1125_v46 = vmul.f32 %v10194_v35, %v933_v12  ;;  %9316 = vmatmul.msk.bf16.gmra.mxu0 %vm282_vm0, %v10024_v23  ;;  %v552_v49 = vmin.f32 %v11025_v34, 20.0 }
  0xaf   :  { %10201 = vrcp.f32 %v998_v38  ;;  %v792_v51 = vadd.f32 1.0, %v10196_v41  ;;  %v1496_v6 = vrot.slane %v11022_v31, 4  ;;  %v934_v1 = vmul.f32 %v9340_v47, %v10986_v17 }
  0xb0   :  { %v10198_v52 = vpop.eup %10197  ;;  %v2133_v54 = vsel %vm11029_vm11, %v1495_v42, %v2132_v37  ;;  %v1915_v55 = vshrl.u32 %v1473_v44, 16  ;;  %v1918_v56 = vshll.u32 %v1473_v44, 16  ;;  %v1424_v57 = vpack.c.bf16 %v1125_v46, %v1125_v46  ;;  %v1292_v46 = vld [vmem:[#allocation2 + $0x15c] sm:$0x1] }
  0xb1   :  { %2134 = vst [vmem:[#allocation2 + $0xc] sm:$0xf] %v2133_v54  ;;  %v743_v59 = vadd.f32 1.0, %v10198_v52  ;;  %v620_v60 = vmul.f32 1.442695, %v552_v49  ;;  %v856_v62 = vmul.f32 %v792_v51, %v792_v51  ;;  %v2478_v47 = vsel %vm10971_vm9, %v11020_v30, %v11034_v40  ;;  %v10025_v52 = vld [vmem:[#allocation3 + $0x58] sm:$0xff] }
  0xb2   :  { %v11045_v63 = vrot.slane %v1915_v55, 7  ;;  %v1498_v0 = vshrl.u32 %v1424_v57, 16  ;;  %v1501_v5 = vshll.u32 %v1424_v57, 16  ;;  %v718_v13 = vmul.f32 1.442695, %v601_v39 }
  0xb3   :  { %v10200_v3 = vpop.eup %10199  ;;  %v807_v7 = vmul.f32 %v743_v59, %v743_v59  ;;  %10203 = vpow2.f32 %v620_v60  ;;  %v400_v8 = vpop.f32.mrf.mxu0  ;;  %v1048_v9 = vadd.f32 1.0, %v856_v62  ;;  %v9390_v33 = vadd.f32 -1.0, %v856_v62  ;;  %v2311_v54 = vld [vmem:[#allocation2 + $0x158] sm:$0x1]  ;;  %v1217_v59 = vld [vmem:[#allocation2 + $0x30] sm:$0x1] }
  0xb4   :  { %v1920_v10 = vor.u32 %v1918_v56, %v11045_v63  ;;  %v1500_v11 = vrot.slane %v1498_v0, 7  ;;  %v1175_v12 = vmul.f32 %v10200_v3, %v983_v48  ;;  %v1921_v15 = vrot.slane %v11045_v63, 4  ;;  %v2139_v3 = vld [vmem:[#allocation2 + $0x18] sm:$0xf] }
  0xb5   :  { %v10202_v14 = vpop.eup %10201  ;;  %v9341_v19 = vadd.f32 -1.0, %v807_v7  ;;  %v999_v23 = vadd.f32 1.0, %v807_v7  ;;  %v11057_v25 = vadd.f32 %v10933_v21, %v400_v8  ;;  %v984_v56 = vmul.f32 %v9390_v33, %v10998_v45 }
  0xb6   :  { %v2308_v26 = vsel %vm11029_vm11, %v1920_v10, %v2307_v4  ;;  %v1503_v28 = vor.u32 %v1501_v5, %v1500_v11  ;;  %v1505_v50 = vrot.slane %v1500_v11, 4  ;;  %v1474_v29 = vpack.c.bf16 %v1175_v12, %v1175_v12 }
  0xb7   :  { %2309 = vst [vmem:[#allocation2 + $0x150] sm:$0xf] %v2308_v26  ;;  %v1126_v31 = vmul.f32 %v10202_v14, %v934_v1  ;;  %10205 = vrcp.f32 %v999_v23  ;;  %v553_v32 = vmin.f32 %v11057_v25, 20.0  ;;  %v935_v49 = vmul.f32 %v9341_v19, %v11004_v27 }
  0xb8   :  { %v1504_v35 = vsel %vm11052_vm12, %v1496_v6, %v1503_v28  ;;  %v2137_v37 = vsel %vm10919_vm4, %v1505_v50, %v2136_v18  ;;  %v1923_v38 = vshrl.u32 %v1474_v29, 16  ;;  %v1926_v39 = vshll.u32 %v1474_v29, 16  ;;  %v1327_v29 = vld [vmem:[#allocation2 + $0x38] sm:$0x1] }
  0xb9   :  { %v10204_v41 = vpop.eup %10203  ;;  %2135 = vst.msk [vmem:[#allocation2 + $0x10] sm:$0xf] %vm1188_vm1, %v1504_v35  ;;  %v1425_v42 = vpack.c.bf16 %v1126_v31, %v1126_v31  ;;  %v622_v44 = vmul.f32 1.442695, %v553_v32  ;;  %10207 = vrcp.f32 %v1048_v9  ;;  %v1293_v57 = vsel %vm10919_vm4, 0, %v1292_v46 }
  0xba   :  { %2138 = vst [vmem:[#allocation2 + $0x14] sm:$0x1] %v2137_v37  ;;  %v1925_v48 = vrot.slane %v1923_v38, 7  ;;  %v744_v51 = vadd.f32 1.0, %v10204_v41  ;;  %10209 = vpow2.f32 %v718_v13  ;;  %v6140_v40 = vunpack.c.l.b16 %v2478_v47  ;;  %v2143_v46 = vld [vmem:[#allocation2 + $0x20] sm:$0x1] }
  0xbb   :  { %v1507_v55 = vshrl.u32 %v1425_v42, 16  ;;  %10211 = vpow2.f32 %v622_v44  ;;  %v403_v58 = vpop.f32.mrf.mxu0  ;;  %1294 = vst [vmem:[#allocation2 + $0x15c] sm:$0x1] %v1293_v57  ;;  %v1510_v6 = vshll.u32 %v1425_v42, 16  ;;  %v1218_v45 = vsel %vm10919_vm4, 0, %v1217_v59 }
  0xbc   :  { %v1928_v60 = vor.u32 %v1926_v39, %v1925_v48  ;;  %v1930_v61 = vrot.slane %v1925_v48, 4  ;;  %v808_v30 = vmul.f32 %v744_v51, %v744_v51  ;;  %v11078_v63 = vadd.f32 %v10933_v21, %v403_v58  ;;  %1219 = vst [vmem:[#allocation2 + $0x30] sm:$0x1] %v1218_v45 }
  0xbd   :  { %v10206_v62 = vpop.eup %10205  ;;  %v11075_v27 = vrot.slane %v1507_v55, 7  ;;  %v6203_v18 = vpack.c.b16 %v6140_v40, %v11018_v43  ;;  %v1328_v38 = vsel %vm10937_vm6, 0, %v1327_v29 }
  0xbe   :  { %v1929_v0 = vsel %vm11052_vm12, %v1921_v15, %v1928_v60  ;;  %v2312_v1 = vsel %vm10919_vm4, %v1930_v61, %v2311_v54  ;;  %v1127_v4 = vmul.f32 %v10206_v62, %v935_v49  ;;  %v9342_v5 = vadd.f32 -1.0, %v808_v30  ;;  %9317 = vmatmul.msk.bf16.gmra.mxu0 %vm282_vm0, %v10025_v52  ;;  %1329 = vst [vmem:[#allocation2 + $0x38] sm:$0x1] %v1328_v38 }
  0xbf   :  { %v10208_v7 = vpop.eup %10207  ;;  %2310 = vst.msk [vmem:[#allocation2 + $0x154] sm:$0xf] %vm1188_vm1, %v1929_v0  ;;  %v1512_v8 = vor.u32 %v1510_v6, %v11075_v27  ;;  %v1513_v9 = vrot.slane %v11075_v27, 4  ;;  %v1000_v10 = vadd.f32 1.0, %v808_v30  ;;  %v554_v11 = vmin.f32 %v11078_v63, 20.0  ;;  %6235 = vrot.lane.b32.xlu0 %v6203_v18, %s10849_s29 }
  0xc0   :  { %v10210_v12 = vpop.eup %10209  ;;  %2313 = vst [vmem:[#allocation2 + $0x158] sm:$0x1] %v2312_v1  ;;  %v1426_v13 = vpack.c.bf16 %v1127_v4, %v1127_v4  ;;  %v936_v14 = vmul.f32 %v9342_v5, %v11025_v34  ;;  %v1176_v15 = vmul.f32 %v10208_v7, %v984_v56  ;;  %v10080_v19 = vld [vmem:[#allocation2 + $0xc] sm:$0xff]  ;;  %v1402_v34 = vld [vmem:[#allocation2 + $0x164] sm:$0x1] }
  0xc1   :  { %v10212_v23 = vpop.eup %10211  ;;  %v2140_v26 = vsel %vm11029_vm11, %v1512_v8, %v2139_v3  ;;  %10213 = vrcp.f32 %v1000_v10  ;;  %v624_v28 = vmul.f32 1.442695, %v554_v11  ;;  %v793_v50 = vadd.f32 1.0, %v10210_v12  ;;  %6587 = vrot.lane.b32.xlu1 %v10080_v19, %s10850_s30  ;;  %v3223_v30 = vld [vmem:[#allocation2] sm:$0xe] }
  0xc2   :  { %2141 = vst [vmem:[#allocation2 + $0x18] sm:$0xf] %v2140_v26  ;;  %v1515_v31 = vshrl.u32 %v1426_v13, 16  ;;  %v1518_v32 = vshll.u32 %v1426_v13, 16  ;;  %v745_v33 = vadd.f32 1.0, %v10212_v23  ;;  %v1475_v35 = vpack.c.bf16 %v1176_v15, %v1176_v15 }
  0xc3   :  { %10215 = vpow2.f32 %v624_v28  ;;  %v857_v43 = vmul.f32 %v793_v50, %v793_v50  ;;  %v405_v37 = vpop.f32.mrf.mxu0  ;;  %v1403_v49 = vsel %vm10937_vm6, 0, %v1402_v34  ;;  %v2314_v0 = vld [vmem:[#allocation2 + $0x15c] sm:$0xf]  ;;  %v11113_v1 = vld [vmem:[#allocation2 + $0xc] sm:$0xf]  ;;  %v3356_v12 = vrot.slane %v10988_v20, 5 }
  0xc4   :  { %v1517_v39 = vrot.slane %v1515_v31, 7  ;;  %v809_v41 = vmul.f32 %v745_v33, %v745_v33  ;;  %v1932_v42 = vshrl.u32 %v1475_v35, 16  ;;  %v1935_v44 = vshll.u32 %v1475_v35, 16  ;;  %1404 = vst [vmem:[#allocation2 + $0x164] sm:$0x1] %v1403_v49 }
  0xc5   :  { %v9391_v47 = vadd.f32 -1.0, %v857_v43  ;;  %v1049_v48 = vadd.f32 1.0, %v857_v43  ;;  %v11102_v51 = vadd.f32 %v10933_v21, %v405_v37  ;;  %v3359_v13 = vrot.slane %v11001_v53, 5  ;;  %v1220_v26 = vld [vmem:[#allocation2 + $0x3c] sm:$0x1] }
  0xc6   :  { %v1520_v52 = vor.u32 %v1518_v32, %v1517_v39  ;;  %v1522_v54 = vrot.slane %v1517_v39, 4  ;;  %v9343_v55 = vadd.f32 -1.0, %v809_v41  ;;  %v1001_v56 = vadd.f32 1.0, %v809_v41  ;;  %v10105_v57 = vld [vmem:[#allocation2 + $0x150] sm:$0xff]  ;;  %v2146_v34 = vld [vmem:[#allocation2 + $0x24] sm:$0xf] }
  0xc7   :  { %v10214_v58 = vpop.eup %10213  ;;  %v11104_v59 = vrot.slane %v1932_v42, 7  ;;  %v985_v60 = vmul.f32 %v9391_v47, %v11016_v24  ;;  %10217 = vrcp.f32 %v1049_v48  ;;  %v555_v61 = vmin.f32 %v11102_v51, 20.0  ;;  %v10136_v40 = vld [vmem:[#allocation2 + $0x150] sm:$0xff]  ;;  %6637 = vrot.lane.b32.xlu0 %v10105_v57, %s10850_s30 }
  0xc8   :  { %v1521_v62 = vsel %vm11052_vm12, %v1513_v9, %v1520_v52  ;;  %v2144_v27 = vsel %vm10919_vm4, %v1522_v54, %v2143_v46  ;;  %v1128_v6 = vmul.f32 %v10214_v58, %v936_v14  ;;  %v937_v45 = vmul.f32 %v9343_v55, %v11057_v25  ;;  %v10026_v25 = vld [vmem:[#allocation3 + $0x60] sm:$0xff] }
  0xc9   :  { %v10216_v3 = vpop.eup %10215  ;;  %2142 = vst.msk [vmem:[#allocation2 + $0x1c] sm:$0xf] %vm1188_vm1, %v1521_v62  ;;  %10219 = vrcp.f32 %v1001_v56  ;;  %v1937_v24 = vor.u32 %v1935_v44, %v11104_v59  ;;  %v1938_v4 = vrot.slane %v11104_v59, 4  ;;  %v626_v5 = vmul.f32 1.442695, %v555_v61  ;;  %7147 = vrot.lane.b32.xlu1 %v10136_v40, %s10851_s6 }
  0xca   :  { %2145 = vst [vmem:[#allocation2 + $0x20] sm:$0x1] %v2144_v27  ;;  %v1427_v7 = vpack.c.bf16 %v1128_v6, %v1128_v6  ;;  %v746_v8 = vadd.f32 1.0, %v10216_v3  ;;  %v9402_v9 = vrot.slane %v3223_v30, 9  ;;  %v3358_v29 = vrot.slane %v3356_v12, 4 }
  0xcb   :  { %v2315_v10 = vsel %vm11029_vm11, %v1937_v24, %v2314_v0  ;;  %10221 = vpow2.f32 %v626_v5  ;;  %v408_v14 = vpop.f32.mrf.mxu0  ;;  %v1221_v31 = vsel %vm10919_vm4, 0, %v1220_v26  ;;  %v3675_v20 = vshrl.u32 %v11113_v1, 16  ;;  %v11146_v55 = vld [vmem:[#allocation2 + $0x10] sm:$0xf]  ;;  %v10152_v26 = vld [vmem:[%s14725_s3 + $0x40] sm:$0xff] }
  0xcc   :  { %v1524_v15 = vshrl.u32 %v1427_v7, 16  ;;  %v1527_v18 = vshll.u32 %v1427_v7, 16  ;;  %2316 = vst [vmem:[#allocation2 + $0x15c] sm:$0xf] %v2315_v10  ;;  %v810_v19 = vmul.f32 %v746_v8, %v746_v8  ;;  %v11130_v23 = vadd.f32 %v10933_v21, %v408_v14  ;;  %v2318_v8 = vld [vmem:[#allocation2 + $0x164] sm:$0x1]  ;;  %8285 = vmatpush.bf16.msra.mxu2 %v10152_v26 }
  0xcd   :  { %v10218_v28 = vpop.eup %10217  ;;  %v3357_v50 = vsel %vm11123_vm15, %v9402_v9, %v3356_v12  ;;  %1222 = vst [vmem:[#allocation2 + $0x3c] sm:$0x1] %v1221_v31  ;;  %v3360_v37 = vsel %vm11123_vm15, %v3358_v29, %v3359_v13  ;;  %v3677_v41 = vrot.slane %v3675_v20, 4  ;;  %v3678_v61 = vshll.u32 %v11113_v1, 16  ;;  %v2150_v13 = vld [vmem:[#allocation2 + $0x2c] sm:$0x1] }
  0xce   :  { %v11137_v53 = vrot.slane %v1524_v15, 7  ;;  %v9344_v32 = vadd.f32 -1.0, %v810_v19  ;;  %v1002_v33 = vadd.f32 1.0, %v810_v19  ;;  %v1177_v35 = vmul.f32 %v10218_v28, %v985_v60  ;;  %9318 = vmatmul.msk.bf16.gmra.mxu0 %vm282_vm0, %v10026_v25  ;;  %v11150_v60 = vld [vmem:[#allocation2 + $0x14] sm:$0x1] }
  0xcf   :  { %v10220_v43 = vpop.eup %10219  ;;  %v6299_v38 = vunpack.c.l.b16 %v3357_v50  ;;  %v556_v39 = vmin.f32 %v11130_v23, 20.0  ;;  %v6300_v52 = vunpack.c.l.b16 %v3360_v37  ;;  %v3680_v0 = vrot.slane %v3678_v61, 5  ;;  %v3224_v20 = vld [vmem:[#allocation2 + $0xc] sm:$0xe] }
  0xd0   :  { %v1529_v42 = vor.u32 %v1527_v18, %v11137_v53  ;;  %v1530_v44 = vrot.slane %v11137_v53, 4  ;;  %v1129_v46 = vmul.f32 %v10220_v43, %v937_v45  ;;  %v938_v47 = vmul.f32 %v9344_v32, %v11078_v63  ;;  %v10112_v30 = vld [vmem:[#allocation2 + $0x18] sm:$0xff]  ;;  %v11168_v43 = vld [vmem:[#allocation2 + $0x10] sm:$0xf]  ;;  %v4442_v26 = vld [vmem:[#allocation2 + $0xc] sm:$0xe] }
  0xd1   :  { %v10222_v48 = vpop.eup %10221  ;;  %10223 = vrcp.f32 %v1002_v33  ;;  %v1476_v49 = vpack.c.bf16 %v1177_v35, %v1177_v35  ;;  %v628_v54 = vmul.f32 1.442695, %v556_v39  ;;  %v6363_v62 = vpack.c.b16 %v6300_v52, %v6299_v38  ;;  %7099 = vrot.lane.b32.xlu1 %v10112_v30, %s10851_s6  ;;  %v11175_v38 = vld [vmem:[#allocation2 + $0x14] sm:$0x1]  ;;  %v10081_v61 = vld [vmem:[#allocation2 + $0x18] sm:$0xff] }
  0xd2   :  { %v2147_v56 = vsel %vm11029_vm11, %v1529_v42, %v2146_v34  ;;  %v1428_v57 = vpack.c.bf16 %v1129_v46, %v1129_v46  ;;  %v747_v58 = vadd.f32 1.0, %v10222_v48  ;;  %v3684_v24 = vshll.u32 %v11146_v55, 16 }
  0xd3   :  { %2148 = vst [vmem:[#allocation2 + $0x24] sm:$0xf] %v2147_v56  ;;  %v1940_v40 = vshrl.u32 %v1476_v49, 16  ;;  %v1943_v63 = vshll.u32 %v1476_v49, 16  ;;  %10225 = vpow2.f32 %v628_v54  ;;  %6395 = vrot.lane.b32.xlu2 %v6363_v62, %s10852_s7  ;;  %v3688_v1 = vshrl.u32 %v11146_v55, 16 }
  0xd4   :  { %v1532_v27 = vshrl.u32 %v1428_v57, 16  ;;  %v1535_v6 = vshll.u32 %v1428_v57, 16  ;;  %v811_v45 = vmul.f32 %v747_v58, %v747_v58  ;;  %v3694_v5 = vshll.u32 %v11150_v60, 16 }
  0xd5   :  { %v1942_v3 = vrot.slane %v1940_v40, 7  ;;  %v3681_v10 = vor.u32 %v3680_v0, %v3677_v41  ;;  %v3686_v18 = vrot.slane %v3684_v24, 5  ;;  %v3690_v19 = vrot.slane %v3688_v1, 4  ;;  %v2153_v40 = vld [vmem:[#allocation2 + $0x30] sm:$0xf] }
  0xd6   :  { %v1534_v7 = vrot.slane %v1532_v27, 7  ;;  %v9345_v9 = vadd.f32 -1.0, %v811_v45  ;;  %v1003_v25 = vadd.f32 1.0, %v811_v45  ;;  %v3696_v42 = vrot.slane %v3694_v5, 5  ;;  %v11194_v24 = vld [vmem:[#allocation2 + $0x154] sm:$0xf] }
  0xd7   :  { %v10224_v12 = vpop.eup %10223  ;;  %v1945_v14 = vor.u32 %v1943_v63, %v1942_v3  ;;  %v1947_v15 = vrot.slane %v1942_v3, 4  ;;  %v3682_v35 = vrot.slane %v3681_v10, 4  ;;  %v3691_v41 = vor.u32 %v3690_v19, %v3686_v18 }
  0xd8   :  { %v1537_v28 = vor.u32 %v1535_v6, %v1534_v7  ;;  %v1539_v50 = vrot.slane %v1534_v7, 4  ;;  %v1130_v29 = vmul.f32 %v10224_v12, %v938_v47  ;;  %v939_v31 = vmul.f32 %v9345_v9, %v11102_v51  ;;  %v1330_v47 = vld [vmem:[#allocation2 + $0x44] sm:$0x1]  ;;  %v11200_v9 = vld [vmem:[#allocation2 + $0x158] sm:$0x1] }
  0xd9   :  { %v10226_v53 = vpop.eup %10225  ;;  %v1946_v32 = vsel %vm11052_vm12, %v1938_v4, %v1945_v14  ;;  %v2319_v33 = vsel %vm10919_vm4, %v1947_v15, %v2318_v8  ;;  %10227 = vrcp.f32 %v1003_v25  ;;  %v410_v4 = vpop.f32.mrf.mxu0  ;;  %v3687_v39 = vsel %vm10971_vm9, %v3682_v35, %v3686_v18  ;;  %6589 = vrot.lane.b32.xlu1 %v10081_v61, %s10850_s30  ;;  %v4467_v25 = vld [vmem:[#allocation2 + $0x150] sm:$0xe]  ;;  %v10027_v61 = vld [vmem:[#allocation3 + $0x68] sm:$0xff] }
  0xda   :  { %v1538_v34 = vsel %vm11052_vm12, %v1530_v44, %v1537_v28  ;;  %v2151_v51 = vsel %vm10919_vm4, %v1539_v50, %v2150_v13  ;;  %v1429_v37 = vpack.c.bf16 %v1130_v29, %v1130_v29  ;;  %2317 = vst.msk [vmem:[#allocation2 + $0x160] sm:$0xf] %vm1188_vm1, %v1946_v32  ;;  %v748_v59 = vadd.f32 1.0, %v10226_v53  ;;  %v5659_v28 = vld [vmem:[#allocation2 + $0x18] sm:$0xe] }
  0xdb   :  { %2149 = vst.msk [vmem:[#allocation2 + $0x28] sm:$0xf] %vm1188_vm1, %v1538_v34  ;;  %v9403_v46 = vrot.slane %v3224_v20, 9  ;;  %v6651_v52 = vunpack.c.l.b16 %v3687_v39  ;;  %v3692_v54 = vrot.slane %v3691_v41, 4  ;;  %v3363_v56 = vrot.slane %v11168_v43, 5 }
  0xdc   :  { %2152 = vst [vmem:[#allocation2 + $0x2c] sm:$0x1] %v2151_v51  ;;  %v1541_v44 = vshrl.u32 %v1429_v37, 16  ;;  %v1544_v48 = vshll.u32 %v1429_v37, 16  ;;  %v812_v49 = vmul.f32 %v748_v59, %v748_v59  ;;  %v3366_v57 = vrot.slane %v11175_v38, 5 }
  0xdd   :  { %2320 = vst [vmem:[#allocation2 + $0x164] sm:$0x1] %v2319_v33  ;;  %v11183_v58 = vadd.f32 %v10933_v21, %v410_v4  ;;  %v1331_v27 = vsel %vm10937_vm6, 0, %v1330_v47  ;;  %v3697_v45 = vsel %vm10971_vm9, %v3692_v54, %v3696_v42  ;;  %v3364_v0 = vsel %vm11123_vm15, %v9403_v46, %v3363_v56  ;;  %v11208_v33 = vld [vmem:[#allocation2 + $0x1c] sm:$0xf] }
  0xde   :  { %v11185_v30 = vrot.slane %v1541_v44, 7  ;;  %v9346_v63 = vadd.f32 -1.0, %v812_v49  ;;  %v1004_v62 = vadd.f32 1.0, %v812_v49  ;;  %v3365_v3 = vrot.slane %v3363_v56, 4  ;;  %1332 = vst [vmem:[#allocation2 + $0x44] sm:$0x1] %v1331_v27  ;;  %9319 = vmatmul.msk.bf16.gmra.mxu0 %vm282_vm0, %v10027_v61 }
  0xdf   :  { %v10228_v6 = vpop.eup %10227  ;;  %v557_v21 = vmin.f32 %v11183_v58, 20.0  ;;  %v6652_v10 = vunpack.c.l.b16 %v3697_v45  ;;  %v6301_v13 = vunpack.c.l.b16 %v3364_v0  ;;  %v4747_v29 = vrot.slane %v11194_v24, 5  ;;  %v2157_v46 = vld [vmem:[#allocation2 + $0x38] sm:$0x1] }
  0xe0   :  { %v1546_v1 = vor.u32 %v1544_v48, %v11185_v30  ;;  %v1547_v5 = vrot.slane %v11185_v30, 4  ;;  %v1131_v7 = vmul.f32 %v10228_v6, %v939_v31  ;;  %v940_v8 = vmul.f32 %v9346_v63, %v11130_v23 }
  0xe1   :  { %10229 = vrcp.f32 %v1004_v62  ;;  %v3367_v12 = vsel %vm11123_vm15, %v3365_v3, %v3366_v57  ;;  %v630_v19 = vmul.f32 1.442695, %v557_v21  ;;  %v6715_v50 = vpack.c.b16 %v6652_v10, %v6651_v52  ;;  %v11221_v57 = vld [vmem:[#allocation2 + $0x20] sm:$0x1]  ;;  %v413_v62 = vpop.f32.mrf.mxu0  ;;  %v1223_v21 = vld [vmem:[#allocation2 + $0x48] sm:$0x1] }
  0xe2   :  { %v2154_v14 = vsel %vm11029_vm11, %v1546_v1, %v2153_v40  ;;  %v1430_v15 = vpack.c.bf16 %v1131_v7, %v1131_v7  ;;  %v6302_v18 = vunpack.c.l.b16 %v3367_v12  ;;  %v9459_v23 = vrot.slane %v4467_v25, 9  ;;  %v11232_v1 = vld [vmem:[#allocation2 + $0x154] sm:$0xf]  ;;  %v11234_v7 = vld [vmem:[#allocation2 + $0x158] sm:$0x1] }
  0xe3   :  { %2155 = vst [vmem:[#allocation2 + $0x30] sm:$0xf] %v2154_v14  ;;  %v4750_v31 = vrot.slane %v11200_v9, 5  ;;  %10231 = vpow2.f32 %v630_v19  ;;  %6747 = vrot.lane.b32.xlu2 %v6715_v50, %s10846_s23  ;;  %v4749_v34 = vrot.slane %v4747_v29, 4  ;;  %v9434_v51 = vrot.slane %v4442_v26, 9 }
  0xe4   :  { %v1549_v20 = vshrl.u32 %v1430_v15, 16  ;;  %v1552_v53 = vshll.u32 %v1430_v15, 16  ;;  %v6364_v32 = vpack.c.b16 %v6302_v18, %v6301_v13  ;;  %v4748_v35 = vsel %vm11123_vm15, %v9459_v23, %v4747_v29  ;;  %v11241_v15 = vld [vmem:[%s14724_s2] ss:$0 sm:$0xff] }
  0xe5   :  { %v4572_v37 = vrot.slane %v11146_v55, 5  ;;  %v6861_v4 = vunpack.c.l.b16 %v4748_v35  ;;  %v4575_v39 = vrot.slane %v11150_v60, 5  ;;  %v9466_v41 = vrot.slane %v5659_v28, 9 }
  0xe6   :  { %v1551_v59 = vrot.slane %v1549_v20, 7  ;;  %6397 = vrot.lane.b32.xlu0 %v6364_v32, %s10852_s7  ;;  %v4751_v47 = vsel %vm11123_vm15, %v4749_v34, %v4750_v31  ;;  %v5789_v49 = vrot.slane %v11208_v33, 5  ;;  %v5792_v10 = vrot.slane %v11221_v57, 5 }
  0xe7   :  { %v10230_v42 = vpop.eup %10229  ;;  %v4573_v44 = vsel %vm11123_vm15, %v9434_v51, %v4572_v37  ;;  %v4574_v48 = vrot.slane %v4572_v37, 4  ;;  %v6862_v56 = vunpack.c.l.b16 %v4751_v47  ;;  %v11244_v18 = vadd.f32 %v11241_v15, %v413_v62 }
  0xe8   :  { %v1554_v52 = vor.u32 %v1552_v53, %v1551_v59  ;;  %v1556_v55 = vrot.slane %v1551_v59, 4  ;;  %v1132_v54 = vmul.f32 %v10230_v42, %v940_v8  ;;  %v6811_v30 = vunpack.c.l.b16 %v4573_v44  ;;  %v2160_v53 = vld [vmem:[#allocation2 + $0x3c] sm:$0xf]  ;;  %v2358_v42 = vld [vmem:[#allocation2 + $0xc] sm:$0xf] }
  0xe9   :  { %v4576_v60 = vsel %vm11123_vm15, %v4574_v48, %v4575_v39  ;;  %v5790_v40 = vsel %vm11123_vm15, %v9466_v41, %v5789_v49  ;;  %v5791_v63 = vrot.slane %v5789_v49, 4  ;;  %v10232_v27 = vpop.eup %10231  ;;  %v6900_v3 = vpack.c.b16 %v6862_v56, %v6861_v4  ;;  %v523_v41 = vpop.f32.mrf.mxu3  ;;  %v1295_v44 = vld [vmem:[#allocation2 + $0x168] sm:$0x1] }
  0xea   :  { %v1555_v6 = vsel %vm11052_vm12, %v1547_v5, %v1554_v52  ;;  %v2158_v45 = vsel %vm10919_vm4, %v1556_v55, %v2157_v46  ;;  %v1431_v0 = vpack.c.bf16 %v1132_v54, %v1132_v54  ;;  %v749_v8 = vadd.f32 1.0, %v10232_v27  ;;  %v3249_v5 = vld [vmem:[#allocation2 + $0x150] sm:$0xe] }
  0xeb   :  { %2156 = vst.msk [vmem:[#allocation2 + $0x34] sm:$0xf] %vm1188_vm1, %v1555_v6  ;;  %v6812_v25 = vunpack.c.l.b16 %v4576_v60  ;;  %v7323_v12 = vunpack.c.l.b16 %v5790_v40  ;;  %6957 = vrot.lane.b32.xlu2 %v6900_v3, %s10853_s12  ;;  %v5793_v28 = vsel %vm11123_vm15, %v5791_v63, %v5792_v10  ;;  %v1224_v50 = vsel %vm10919_vm4, 0, %v1223_v21  ;;  %v3628_v54 = vld [vmem:[#allocation2 + $0x150] sm:$0xf] }
  0xec   :  { %2159 = vst [vmem:[#allocation2 + $0x38] sm:$0x1] %v2158_v45  ;;  %v1558_v13 = vshrl.u32 %v1431_v0, 16  ;;  %v1561_v14 = vshll.u32 %v1431_v0, 16  ;;  %v813_v19 = vmul.f32 %v749_v8, %v749_v8  ;;  %v7324_v29 = vunpack.c.l.b16 %v5793_v28  ;;  %v1333_v10 = vld [vmem:[#allocation2 + $0x50] sm:$0x1] }
  0xed   :  { %v6875_v26 = vpack.c.b16 %v6812_v25, %v6811_v30  ;;  %v558_v31 = vmin.f32 %v11244_v18, 20.0  ;;  %1225 = vst [vmem:[#allocation2 + $0x48] sm:$0x1] %v1224_v50  ;;  %v9428_v20 = vrot.slane %v3249_v5, 9  ;;  %v3538_v34 = vrot.slane %v11232_v1, 5  ;;  %v415_v25 = vpop.f32.mrf.mxu0 }
  0xee   :  { %v11251_v23 = vrot.slane %v1558_v13, 7  ;;  %v9347_v32 = vadd.f32 -1.0, %v813_v19  ;;  %v1005_v35 = vadd.f32 1.0, %v813_v19  ;;  %v3541_v51 = vrot.slane %v11234_v7, 5 }
  0xef   :  { %6907 = vrot.lane.b32.xlu0 %v6875_v26, %s10853_s12  ;;  %v7387_v4 = vpack.c.b16 %v7324_v29, %v7323_v12  ;;  %v632_v39 = vmul.f32 1.442695, %v558_v31  ;;  %v11261_v47 = vadd.f32 %v11241_v15, %v523_v41  ;;  %v3539_v48 = vsel %vm11123_vm15, %v9428_v20, %v3538_v34 }
  0xf0   :  { %v1563_v37 = vor.u32 %v1561_v14, %v11251_v23  ;;  %v1564_v59 = vrot.slane %v11251_v23, 4  ;;  %v941_v46 = vmul.f32 %v9347_v32, %v11183_v58  ;;  %10233 = vrcp.f32 %v1005_v35 }
  0xf1   :  { %9918 = vmatmul.msk.bf16.vlgmr.msra.gmra.mxu2 %vm7419_vm2, %v7387_v4  ;;  %10235 = vpow2.f32 %v632_v39  ;;  %v1296_v52 = vsel %vm10919_vm4, 0, %v1295_v44  ;;  %v3540_v55 = vrot.slane %v3538_v34, 4  ;;  %v602_v58 = vmin.f32 %v11261_v47, 20.0 }
  0xf2   :  { %v2161_v49 = vsel %vm11029_vm11, %v1563_v37, %v2160_v53  ;;  %v6351_v56 = vunpack.c.l.b16 %v3539_v48  ;;  %v2480_v61 = vshrl.u32 %v2358_v42, 16  ;;  %v2483_v60 = vshll.u32 %v2358_v42, 16  ;;  %1297 = vst [vmem:[#allocation2 + $0x168] sm:$0x1] %v1296_v52 }
  0xf3   :  { %2162 = vst [vmem:[#allocation2 + $0x3c] sm:$0xf] %v2161_v49  ;;  %v3542_v30 = vsel %vm11123_vm15, %v3540_v55, %v3541_v51  ;;  %v2489_v40 = vshll.u32 %v11168_v43, 16  ;;  %v2493_v63 = vshrl.u32 %v11168_v43, 16  ;;  %v2499_v62 = vshll.u32 %v11175_v38, 16 }
  0xf4   :  { %v720_v27 = vmul.f32 1.442695, %v602_v58  ;;  %v6352_v6 = vunpack.c.l.b16 %v3542_v30  ;;  %v2482_v45 = vrot.slane %v2480_v61, 4  ;;  %v2485_v0 = vrot.slane %v2483_v60, 5  ;;  %v525_v58 = vpop.f32.mrf.mxu3 }
  0xf5   :  { %v2491_v3 = vrot.slane %v2489_v40, 5  ;;  %v2495_v21 = vrot.slane %v2493_v63, 4  ;;  %v2501_v8 = vrot.slane %v2499_v62, 5  ;;  %v4275_v12 = vshrl.u32 %v3628_v54, 16  ;;  %v2164_v40 = vld [vmem:[#allocation2 + $0x44] sm:$0x1] }
  0xf6   :  { %v10234_v5 = vpop.eup %10233  ;;  %10237 = vpow2.f32 %v720_v27  ;;  %v6389_v13 = vpack.c.b16 %v6352_v6, %v6351_v56  ;;  %v2486_v14 = vor.u32 %v2485_v0, %v2482_v45  ;;  %v11277_v19 = vadd.f32 %v11241_v15, %v415_v25  ;;  %v1405_v56 = vld [vmem:[#allocation2 + $0x170] sm:$0x1] }
  0xf7   :  { %v10236_v43 = vpop.eup %10235  ;;  %v1133_v26 = vmul.f32 %v10234_v5, %v941_v46  ;;  %v2496_v38 = vor.u32 %v2495_v21, %v2491_v3  ;;  %v1334_v28 = vsel %vm10937_vm6, 0, %v1333_v10  ;;  %v4277_v50 = vrot.slane %v4275_v12, 4 }
  0xf8   :  { %v750_v29 = vadd.f32 1.0, %v10236_v43  ;;  %6447 = vrot.lane.b32.xlu2 %v6389_v13, %s10852_s7  ;;  %v2487_v31 = vrot.slane %v2486_v14, 4  ;;  %v559_v20 = vmin.f32 %v11277_v19, 20.0  ;;  %1335 = vst [vmem:[#allocation2 + $0x50] sm:$0x1] %v1334_v28  ;;  %v4278_v53 = vshll.u32 %v3628_v54, 16 }
  0xf9   :  { %v1432_v32 = vpack.c.bf16 %v1133_v26, %v1133_v26  ;;  %v2497_v35 = vrot.slane %v2496_v38, 4  ;;  %v4284_v34 = vshll.u32 %v11194_v24, 16  ;;  %v4288_v51 = vshrl.u32 %v11194_v24, 16  ;;  %v2408_v14 = vld [vmem:[#allocation2 + $0x150] sm:$0xf] }
  0xfa   :  { %v814_v37 = vmul.f32 %v750_v29, %v750_v29  ;;  %v2492_v4 = vsel %vm10971_vm9, %v2487_v31, %v2491_v3  ;;  %v634_v39 = vmul.f32 1.442695, %v559_v20  ;;  %v4280_v41 = vrot.slane %v4278_v53, 5 }
  0xfb   :  { %v1566_v42 = vshrl.u32 %v1432_v32, 16  ;;  %v1569_v46 = vshll.u32 %v1432_v32, 16  ;;  %v2502_v44 = vsel %vm10971_vm9, %v2497_v35, %v2501_v8  ;;  %v6141_v48 = vunpack.c.l.b16 %v2492_v4 }
  0xfc   :  { %v10238_v49 = vpop.eup %10237  ;;  %v9348_v52 = vadd.f32 -1.0, %v814_v37  ;;  %v1006_v55 = vadd.f32 1.0, %v814_v37  ;;  %v6142_v54 = vunpack.c.l.b16 %v2502_v44  ;;  %10239 = vpow2.f32 %v634_v39 }
  0xfd   :  { %v1568_v24 = vrot.slane %v1566_v42, 7  ;;  %v794_v61 = vadd.f32 1.0, %v10238_v49  ;;  %v11290_v60 = vadd.f32 %v11241_v15, %v525_v58  ;;  %v1406_v30 = vsel %vm10937_vm6, 0, %v1405_v56 }
  0xfe   :  { %v942_v63 = vmul.f32 %v9348_v52, %v11244_v18  ;;  %10241 = vrcp.f32 %v1006_v55  ;;  %v6204_v62 = vpack.c.b16 %v6142_v54, %v6141_v48  ;;  %1407 = vst [vmem:[#allocation2 + $0x170] sm:$0x1] %v1406_v30  ;;  %v4281_v27 = vor.u32 %v4280_v41, %v4277_v50  ;;  %v10028_v41 = vld [vmem:[#allocation3 + $0x70] sm:$0xff]  ;;  %v4843_v54 = vld [vmem:[#allocation2 + $0x150] sm:$0xf] }
  0xff   :  { %v1571_v6 = vor.u32 %v1569_v46, %v1568_v24  ;;  %v1573_v45 = vrot.slane %v1568_v24, 4  ;;  %v858_v0 = vmul.f32 %v794_v61, %v794_v61  ;;  %v603_v3 = vmin.f32 %v11290_v60, 20.0  ;;  %9320 = vmatmul.msk.bf16.gmra.mxu0 %vm282_vm0, %v10028_v41 }
 0x100   :  { %6237 = vrot.lane.b32.xlu0 %v6204_v62, %s10849_s29  ;;  %v4282_v21 = vrot.slane %v4281_v27, 4  ;;  %v4286_v8 = vrot.slane %v4284_v34, 5  ;;  %v4290_v25 = vrot.slane %v4288_v51, 4  ;;  %v4294_v10 = vshll.u32 %v11200_v9, 16  ;;  %v4844_v62 = vld [vmem:[#allocation2 + $0x154] sm:$0xf] }
 0x101   :  { %v1572_v18 = vsel %vm11052_vm12, %v1564_v59, %v1571_v6  ;;  %v2165_v12 = vsel %vm10919_vm4, %v1573_v45, %v2164_v40  ;;  %v9392_v5 = vadd.f32 -1.0, %v858_v0  ;;  %v1050_v13 = vadd.f32 1.0, %v858_v0 }
 0x102   :  { %v10240_v43 = vpop.eup %10239  ;;  %2163 = vst.msk [vmem:[#allocation2 + $0x40] sm:$0xf] %vm1188_vm1, %v1572_v18  ;;  %v722_v26 = vmul.f32 1.442695, %v603_v3  ;;  %v4287_v38 = vsel %vm10971_vm9, %v4282_v21, %v4286_v8  ;;  %v4291_v28 = vor.u32 %v4290_v25, %v4286_v8  ;;  %v4296_v9 = vrot.slane %v4294_v10, 5 }
 0x103   :  { %2166 = vst [vmem:[#allocation2 + $0x44] sm:$0x1] %v2165_v12  ;;  %v986_v23 = vmul.f32 %v9392_v5, %v11261_v47  ;;  %10243 = vrcp.f32 %v1050_v13  ;;  %v751_v59 = vadd.f32 1.0, %v10240_v43  ;;  %v6701_v50 = vunpack.c.l.b16 %v4287_v38  ;;  %v2167_v3 = vld [vmem:[#allocation2 + $0x48] sm:$0xf] }
 0x104   :  { %v10242_v29 = vpop.eup %10241  ;;  %10245 = vpow2.f32 %v722_v26  ;;  %v4292_v31 = vrot.slane %v4291_v28, 4  ;;  %v3080_v20 = vshrl.u32 %v2408_v14, 16  ;;  %v3083_v53 = vshll.u32 %v2408_v14, 16 }
 0x105   :  { %v1134_v32 = vmul.f32 %v10242_v29, %v942_v63  ;;  %v815_v35 = vmul.f32 %v751_v59, %v751_v59  ;;  %v3089_v34 = vshll.u32 %v11232_v1, 16  ;;  %v3093_v51 = vshrl.u32 %v11232_v1, 16  ;;  %v5660_v29 = vld [vmem:[#allocation2 + $0x24] sm:$0xe] }
 0x106   :  { %v4297_v37 = vsel %vm10971_vm9, %v4292_v31, %v4296_v9  ;;  %v3082_v4 = vrot.slane %v3080_v20, 4  ;;  %v3085_v39 = vrot.slane %v3083_v53, 5  ;;  %v3099_v47 = vshll.u32 %v11234_v7, 16 }
 0x107   :  { %v1433_v42 = vpack.c.bf16 %v1134_v32, %v1134_v32  ;;  %v9349_v46 = vadd.f32 -1.0, %v815_v35  ;;  %v1007_v44 = vadd.f32 1.0, %v815_v35  ;;  %v6702_v48 = vunpack.c.l.b16 %v4297_v37  ;;  %v10137_v35 = vld [vmem:[#allocation2 + $0x15c] sm:$0xff] }
 0x108   :  { %v3086_v49 = vor.u32 %v3085_v39, %v3082_v4  ;;  %v3091_v52 = vrot.slane %v3089_v34, 5  ;;  %v3095_v55 = vrot.slane %v3093_v51, 4  ;;  %v3101_v24 = vrot.slane %v3099_v47, 5  ;;  %v2321_v34 = vld [vmem:[#allocation2 + $0x168] sm:$0xf] }
 0x109   :  { %v10244_v58 = vpop.eup %10243  ;;  %v1575_v1 = vshrl.u32 %v1433_v42, 16  ;;  %v1578_v56 = vshll.u32 %v1433_v42, 16  ;;  %10247 = vrcp.f32 %v1007_v44  ;;  %v6740_v40 = vpack.c.b16 %v6702_v48, %v6701_v50  ;;  %v4883_v50 = vld [vmem:[#allocation2 + $0x158] sm:$0x1]  ;;  %v4860_v44 = vld [vmem:[#allocation2 + $0x2c] sm:$0x1]  ;;  %v418_v48 = vpop.f32.mrf.mxu0 }
 0x10a   :  { %v10246_v61 = vpop.eup %10245  ;;  %v1178_v30 = vmul.f32 %v10244_v58, %v986_v23  ;;  %v3087_v7 = vrot.slane %v3086_v49, 4  ;;  %v3096_v63 = vor.u32 %v3095_v55, %v3091_v52  ;;  %v943_v6 = vmul.f32 %v9349_v46, %v11277_v19  ;;  %v4798_v46 = vld [vmem:[#allocation2 + $0x28] sm:$0xf]  ;;  %v1226_v58 = vld [vmem:[#allocation2 + $0x54] sm:$0x1] }
 0x10b   :  { %v11314_v27 = vrot.slane %v1575_v1, 7  ;;  %v795_v45 = vadd.f32 1.0, %v10246_v61  ;;  %v5468_v0 = vshrl.u32 %v4843_v54, 16  ;;  %6797 = vrot.lane.b32.xlu1 %v6740_v40, %s10846_s23  ;;  %v5471_v10 = vshll.u32 %v4843_v54, 16 }
 0x10c   :  { %v1477_v21 = vpack.c.bf16 %v1178_v30, %v1178_v30  ;;  %v3092_v8 = vsel %vm10971_vm9, %v3087_v7, %v3091_v52  ;;  %v3097_v25 = vrot.slane %v3096_v63, 4  ;;  %v5477_v13 = vshll.u32 %v4844_v62, 16 }
 0x10d   :  { %v1580_v18 = vor.u32 %v1578_v56, %v11314_v27  ;;  %v859_v12 = vmul.f32 %v795_v45, %v795_v45  ;;  %v6191_v5 = vunpack.c.l.b16 %v3092_v8  ;;  %v5470_v26 = vrot.slane %v5468_v0, 4  ;;  %v4795_v45 = vld [vmem:[#allocation2 + $0x18] sm:$0xf] }
 0x10e   :  { %v1949_v14 = vshrl.u32 %v1477_v21, 16  ;;  %v1952_v43 = vshll.u32 %v1477_v21, 16  ;;  %v3102_v19 = vsel %vm10971_vm9, %v3097_v25, %v3101_v24  ;;  %v1581_v31 = vrot.slane %v11314_v27, 4 }
 0x10f   :  { %v10248_v38 = vpop.eup %10247  ;;  %v2168_v28 = vsel %vm11029_vm11, %v1580_v18, %v2167_v3  ;;  %v9393_v9 = vadd.f32 -1.0, %v859_v12  ;;  %v1051_v23 = vadd.f32 1.0, %v859_v12  ;;  %v6192_v59 = vunpack.c.l.b16 %v3102_v19  ;;  %v2171_v3 = vld [vmem:[#allocation2 + $0x50] sm:$0x1] }
 0x110   :  { %2169 = vst [vmem:[#allocation2 + $0x48] sm:$0xf] %v2168_v28  ;;  %v11326_v20 = vrot.slane %v1949_v14, 7  ;;  %v1135_v53 = vmul.f32 %v10248_v38, %v943_v6  ;;  %v5473_v32 = vrot.slane %v5471_v10, 5  ;;  %v5479_v37 = vrot.slane %v5477_v13, 5 }
 0x111   :  { %10249 = vrcp.f32 %v1051_v23  ;;  %v6229_v51 = vpack.c.b16 %v6192_v59, %v6191_v5  ;;  %v5481_v4 = vshrl.u32 %v4844_v62, 16  ;;  %v987_v41 = vmul.f32 %v9393_v9, %v11290_v60  ;;  %v3225_v59 = vld [vmem:[#allocation2 + $0x18] sm:$0xe] }
 0x112   :  { %v1954_v39 = vor.u32 %v1952_v43, %v11326_v20  ;;  %v1434_v47 = vpack.c.bf16 %v1135_v53, %v1135_v53  ;;  %v5474_v42 = vor.u32 %v5473_v32, %v5470_v26  ;;  %v1955_v49 = vrot.slane %v11326_v20, 4 }
 0x113   :  { %6287 = vrot.lane.b32.xlu2 %v6229_v51, %s10849_s29  ;;  %v5483_v52 = vrot.slane %v5481_v4, 4  ;;  %v5487_v55 = vshll.u32 %v4883_v50, 16  ;;  %v9467_v54 = vrot.slane %v5660_v29, 9  ;;  %7149 = vrot.lane.b32.xlu1 %v10137_v35, %s10851_s6  ;;  %v5796_v40 = vrot.slane %v4798_v46, 5  ;;  %v420_v4 = vpop.f32.mrf.mxu0  ;;  %v3580_v46 = vld [vmem:[#allocation2 + $0x18] sm:$0xf] }
 0x114   :  { %v2322_v1 = vsel %vm11029_vm11, %v1954_v39, %v2321_v34  ;;  %v1583_v56 = vshrl.u32 %v1434_v47, 16  ;;  %v1586_v24 = vshll.u32 %v1434_v47, 16  ;;  %v5475_v61 = vrot.slane %v5474_v42, 4  ;;  %v11356_v42 = vld [vmem:[#allocation2 + $0x1c] sm:$0xf] }
 0x115   :  { %2323 = vst [vmem:[#allocation2 + $0x168] sm:$0xf] %v2322_v1  ;;  %v5484_v60 = vor.u32 %v5483_v52, %v5479_v37  ;;  %v5489_v30 = vrot.slane %v5487_v55, 5  ;;  %v5799_v7 = vrot.slane %v4860_v44, 5  ;;  %v11338_v27 = vadd.f32 %v11241_v15, %v418_v48 }
 0x116   :  { %v1585_v63 = vrot.slane %v1583_v56, 7  ;;  %v5480_v62 = vsel %vm10971_vm9, %v5475_v61, %v5479_v37  ;;  %v1227_v6 = vsel %vm10919_vm4, 0, %v1226_v58  ;;  %v5797_v25 = vsel %vm11123_vm15, %v9467_v54, %v5796_v40  ;;  %v11363_v54 = vld [vmem:[#allocation2 + $0x20] sm:$0x1]  ;;  %v2325_v58 = vld [vmem:[#allocation2 + $0x170] sm:$0x1] }
 0x117   :  { %v10250_v0 = vpop.eup %10249  ;;  %v5485_v21 = vrot.slane %v5484_v60, 4  ;;  %v7211_v8 = vunpack.c.l.b16 %v5480_v62  ;;  %v5798_v10 = vrot.slane %v5796_v40, 4  ;;  %1228 = vst [vmem:[#allocation2 + $0x54] sm:$0x1] %v1227_v6  ;;  %v7325_v13 = vunpack.c.l.b16 %v5797_v25 }
 0x118   :  { %v1588_v18 = vor.u32 %v1586_v24, %v1585_v63  ;;  %v1590_v12 = vrot.slane %v1585_v63, 4  ;;  %v1179_v5 = vmul.f32 %v10250_v0, %v987_v41  ;;  %v560_v19 = vmin.f32 %v11338_v27, 20.0  ;;  %v1336_v41 = vld [vmem:[#allocation2 + $0x5c] sm:$0x1] }
 0x119   :  { %v5490_v14 = vsel %vm10971_vm9, %v5485_v21, %v5489_v30  ;;  %v5800_v43 = vsel %vm11123_vm15, %v5798_v10, %v5799_v7  ;;  %v4892_v26 = vshrl.u32 %v4795_v45, 16  ;;  %v4895_v32 = vshll.u32 %v4795_v45, 16  ;;  %v10106_v0 = vld [vmem:[#allocation2 + $0x15c] sm:$0xff] }
 0x11a   :  { %v1589_v38 = vsel %vm11052_vm12, %v1581_v31, %v1588_v18  ;;  %v2172_v28 = vsel %vm10919_vm4, %v1590_v12, %v2171_v3  ;;  %v1478_v9 = vpack.c.bf16 %v1179_v5, %v1179_v5  ;;  %v7212_v23 = vunpack.c.l.b16 %v5490_v14  ;;  %v3581_v12 = vld [vmem:[#allocation2 + $0x1c] sm:$0xf]  ;;  %v3643_v14 = vld [vmem:[#allocation2 + $0x20] sm:$0x1] }
 0x11b   :  { %2170 = vst.msk [vmem:[#allocation2 + $0x4c] sm:$0xf] %vm1188_vm1, %v1589_v38  ;;  %v7326_v50 = vunpack.c.l.b16 %v5800_v43  ;;  %v636_v29 = vmul.f32 1.442695, %v560_v19  ;;  %v4894_v53 = vrot.slane %v4892_v26, 4  ;;  %v4901_v37 = vshll.u32 %v11208_v33, 16 }
 0x11c   :  { %2173 = vst [vmem:[#allocation2 + $0x50] sm:$0x1] %v2172_v28  ;;  %v1957_v35 = vshrl.u32 %v1478_v9, 16  ;;  %v1960_v34 = vshll.u32 %v1478_v9, 16  ;;  %v7251_v51 = vpack.c.b16 %v7212_v23, %v7211_v8  ;;  %v4897_v39 = vrot.slane %v4895_v32, 5 }
 0x11d   :  { %v7388_v31 = vpack.c.b16 %v7326_v50, %v7325_v13  ;;  %10251 = vpow2.f32 %v636_v29  ;;  %v4905_v47 = vshrl.u32 %v11208_v33, 16  ;;  %v4903_v48 = vrot.slane %v4901_v37, 5  ;;  %v4443_v50 = vld [vmem:[#allocation2 + $0x18] sm:$0xe] }
 0x11e   :  { %v1959_v44 = vrot.slane %v1957_v35, 7  ;;  %7307 = vrot.lane.b32.xlu0 %v7251_v51, %s10854_s13  ;;  %v4911_v52 = vshll.u32 %v11221_v57, 16  ;;  %v11361_v55 = vadd.f32 %v11241_v15, %v420_v4  ;;  %v4898_v33 = vor.u32 %v4897_v39, %v4894_v53  ;;  %v4800_v4 = vld [vmem:[#allocation2 + $0x34] sm:$0xf] }
 0x11f   :  { %9919 = vmatmul.msk.bf16.gmra.mxu2 %vm7419_vm2, %v7388_v31  ;;  %v4907_v1 = vrot.slane %v4905_v47, 4  ;;  %v1337_v56 = vsel %vm10937_vm6, 0, %v1336_v41  ;;  %v9404_v24 = vrot.slane %v3225_v59, 9  ;;  %v3370_v63 = vrot.slane %v11356_v42, 5 }
 0x120   :  { %v1962_v61 = vor.u32 %v1960_v34, %v1959_v44  ;;  %v1964_v60 = vrot.slane %v1959_v44, 4  ;;  %v4913_v30 = vrot.slane %v4911_v52, 5  ;;  %v561_v40 = vmin.f32 %v11361_v55, 20.0  ;;  %1338 = vst [vmem:[#allocation2 + $0x5c] sm:$0x1] %v1337_v56 }
 0x121   :  { %v4899_v57 = vrot.slane %v4898_v33, 4  ;;  %v4908_v7 = vor.u32 %v4907_v1, %v4903_v48  ;;  %v3373_v62 = vrot.slane %v11363_v54, 5  ;;  %v3699_v21 = vshrl.u32 %v3580_v46, 16  ;;  %v4861_v33 = vld [vmem:[#allocation2 + $0x38] sm:$0x1] }
 0x122   :  { %v1963_v6 = vsel %vm11052_vm12, %v1955_v49, %v1962_v61  ;;  %v2326_v45 = vsel %vm10919_vm4, %v1964_v60, %v2325_v58  ;;  %v638_v3 = vmul.f32 1.442695, %v561_v40  ;;  %v3371_v18 = vsel %vm11123_vm15, %v9404_v24, %v3370_v63 }
 0x123   :  { %v10252_v8 = vpop.eup %10251  ;;  %2324 = vst.msk [vmem:[#allocation2 + $0x16c] sm:$0xf] %vm1188_vm1, %v1963_v6  ;;  %v4904_v25 = vsel %vm10971_vm9, %v4899_v57, %v4903_v48  ;;  %v4909_v10 = vrot.slane %v4908_v7, 4  ;;  %v3372_v20 = vrot.slane %v3370_v63, 4  ;;  %v6303_v13 = vunpack.c.l.b16 %v3371_v18  ;;  %v423_v6 = vpop.f32.mrf.mxu0 }
 0x124   :  { %2327 = vst [vmem:[#allocation2 + $0x170] sm:$0x1] %v2326_v45  ;;  %v752_v49 = vadd.f32 1.0, %v10252_v8  ;;  %v7163_v5 = vunpack.c.l.b16 %v4904_v25  ;;  %10253 = vpow2.f32 %v638_v3  ;;  %v3701_v26 = vrot.slane %v3699_v21, 4 }
 0x125   :  { %v4914_v43 = vsel %vm10971_vm9, %v4909_v10, %v4913_v30  ;;  %v3374_v19 = vsel %vm11123_vm15, %v3372_v20, %v3373_v62  ;;  %v3702_v38 = vshll.u32 %v3580_v46, 16  ;;  %v3708_v59 = vshll.u32 %v3581_v12, 16  ;;  %v5661_v46 = vld [vmem:[#allocation2 + $0x30] sm:$0xe]  ;;  %v1229_v20 = vld [vmem:[#allocation2 + $0x60] sm:$0x1] }
 0x126   :  { %v816_v28 = vmul.f32 %v752_v49, %v752_v49  ;;  %v7164_v9 = vunpack.c.l.b16 %v4914_v43  ;;  %6639 = vrot.lane.b32.xlu0 %v10106_v0, %s10850_s30  ;;  %v6304_v23 = vunpack.c.l.b16 %v3374_v19  ;;  %v3712_v53 = vshrl.u32 %v3581_v12, 16  ;;  %v2360_v43 = vld [vmem:[#allocation2 + $0x18] sm:$0xf] }
 0x127   :  { %v3704_v29 = vrot.slane %v3702_v38, 5  ;;  %v3718_v32 = vshll.u32 %v3643_v14, 16  ;;  %v3710_v39 = vrot.slane %v3708_v59, 5  ;;  %v9435_v41 = vrot.slane %v4443_v50, 9 }
 0x128   :  { %v9350_v35 = vadd.f32 -1.0, %v816_v28  ;;  %v1008_v34 = vadd.f32 1.0, %v816_v28  ;;  %v7227_v51 = vpack.c.b16 %v7164_v9, %v7163_v5  ;;  %v6365_v37 = vpack.c.b16 %v6304_v23, %v6303_v13 }
 0x129   :  { %v3705_v31 = vor.u32 %v3704_v29, %v3701_v26  ;;  %v3714_v47 = vrot.slane %v3712_v53, 4  ;;  %v3720_v52 = vrot.slane %v3718_v32, 5  ;;  %v4579_v58 = vrot.slane %v3581_v12, 5 }
 0x12a   :  { %v10254_v44 = vpop.eup %10253  ;;  %v944_v48 = vmul.f32 %v9350_v35, %v11338_v27  ;;  %10255 = vrcp.f32 %v1008_v34  ;;  %7259 = vrot.lane.b32.xlu2 %v7227_v51, %s10854_s13  ;;  %6399 = vrot.lane.b32.xlu1 %v6365_v37, %s10852_s7  ;;  %v4582_v61 = vrot.slane %v3643_v14, 5  ;;  %v9468_v40 = vrot.slane %v5661_v46, 9  ;;  %v3226_v35 = vld [vmem:[#allocation2 + $0x24] sm:$0xe] }
 0x12b   :  { %v753_v1 = vadd.f32 1.0, %v10254_v44  ;;  %v3706_v56 = vrot.slane %v3705_v31, 4  ;;  %v3715_v24 = vor.u32 %v3714_v47, %v3710_v39  ;;  %v4580_v60 = vsel %vm11123_vm15, %v9435_v41, %v4579_v58  ;;  %v11413_v31 = vld [vmem:[#allocation2 + $0x28] sm:$0xf] }
 0x12c   :  { %v4581_v30 = vrot.slane %v4579_v58, 4  ;;  %v5803_v57 = vrot.slane %v4800_v4, 5  ;;  %v5806_v62 = vrot.slane %v4861_v33, 5  ;;  %v6813_v0 = vunpack.c.l.b16 %v4580_v60  ;;  %v10029_v44 = vld [vmem:[#allocation3 + $0x78] sm:$0xff]  ;;  %v528_v58 = vpop.f32.mrf.mxu3  ;;  %v1298_v33 = vld [vmem:[#allocation2 + $0x174] sm:$0x1] }
 0x12d   :  { %v817_v7 = vmul.f32 %v753_v1, %v753_v1  ;;  %v3711_v27 = vsel %vm10971_vm9, %v3706_v56, %v3710_v39  ;;  %v3716_v63 = vrot.slane %v3715_v24, 4  ;;  %v11403_v14 = vadd.f32 %v11241_v15, %v423_v6  ;;  %9321 = vmatmul.msk.bf16.gmra.mxu0 %vm282_vm0, %v10029_v44  ;;  %v10082_v6 = vld [vmem:[#allocation2 + $0x24] sm:$0xff] }
 0x12e   :  { %v4583_v45 = vsel %vm11123_vm15, %v4581_v30, %v4582_v61  ;;  %v5804_v3 = vsel %vm11123_vm15, %v9468_v40, %v5803_v57  ;;  %v5805_v21 = vrot.slane %v5803_v57, 4  ;;  %v6653_v10 = vunpack.c.l.b16 %v3711_v27  ;;  %v2174_v61 = vld [vmem:[#allocation2 + $0x54] sm:$0xf] }
 0x12f   :  { %v1009_v8 = vadd.f32 1.0, %v817_v7  ;;  %v3721_v25 = vsel %vm10971_vm9, %v3716_v63, %v3720_v52  ;;  %v6814_v18 = vunpack.c.l.b16 %v4583_v45  ;;  %v9351_v49 = vadd.f32 -1.0, %v817_v7 }
 0x130   :  { %v10256_v12 = vpop.eup %10255  ;;  %v6654_v5 = vunpack.c.l.b16 %v3721_v25  ;;  %v5807_v13 = vsel %vm11123_vm15, %v5805_v21, %v5806_v62  ;;  %v7327_v38 = vunpack.c.l.b16 %v5804_v3  ;;  %v562_v23 = vmin.f32 %v11403_v14, 20.0 }
 0x131   :  { %v1136_v19 = vmul.f32 %v10256_v12, %v944_v48  ;;  %10257 = vrcp.f32 %v1009_v8  ;;  %v6876_v26 = vpack.c.b16 %v6814_v18, %v6813_v0  ;;  %v7328_v9 = vunpack.c.l.b16 %v5807_v13 }
 0x132   :  { %v6716_v28 = vpack.c.b16 %v6654_v5, %v6653_v10  ;;  %v1230_v59 = vsel %vm10919_vm4, 0, %v1229_v20  ;;  %v2504_v29 = vshrl.u32 %v2360_v43, 16  ;;  %v2507_v53 = vshll.u32 %v2360_v43, 16  ;;  %v11436_v43 = vld [vmem:[#allocation2 + $0x160] sm:$0xf] }
 0x133   :  { %v1435_v50 = vpack.c.bf16 %v1136_v19, %v1136_v19  ;;  %6909 = vrot.lane.b32.xlu0 %v6876_v26, %s10853_s12  ;;  %1231 = vst [vmem:[#allocation2 + $0x60] sm:$0x1] %v1230_v59  ;;  %v2513_v32 = vshll.u32 %v11356_v42, 16  ;;  %v945_v34 = vmul.f32 %v9351_v49, %v11361_v55  ;;  %v7389_v51 = vpack.c.b16 %v7328_v9, %v7327_v38  ;;  %v425_v19 = vpop.f32.mrf.mxu0  ;;  %v11438_v26 = vld [vmem:[#allocation2 + $0x2c] sm:$0x1] }
 0x134   :  { %6749 = vrot.lane.b32.xlu2 %v6716_v28, %s10846_s23  ;;  %v640_v37 = vmul.f32 1.442695, %v562_v23  ;;  %v2517_v4 = vshrl.u32 %v11356_v42, 16  ;;  %v2506_v47 = vrot.slane %v2504_v29, 4  ;;  %v2509_v41 = vrot.slane %v2507_v53, 5 }
 0x135   :  { %v1592_v39 = vshrl.u32 %v1435_v50, 16  ;;  %v2523_v46 = vshll.u32 %v11363_v54, 16  ;;  %v1595_v48 = vshll.u32 %v1435_v50, 16  ;;  %9920 = vmatmul.msk.bf16.gmra.mxu2 %vm7419_vm2, %v7389_v51  ;;  %v2515_v52 = vrot.slane %v2513_v32, 5  ;;  %v11440_v9 = vld [vmem:[#allocation2 + $0x164] sm:$0x1] }
 0x136   :  { %10259 = vpow2.f32 %v640_v37  ;;  %v2519_v55 = vrot.slane %v2517_v4, 4  ;;  %v2510_v24 = vor.u32 %v2509_v41, %v2506_v47  ;;  %v11419_v42 = vadd.f32 %v11241_v15, %v528_v58  ;;  %v4468_v23 = vld [vmem:[#allocation2 + $0x15c] sm:$0xe] }
 0x137   :  { %v10258_v1 = vpop.eup %10257  ;;  %v1594_v56 = vrot.slane %v1592_v39, 7  ;;  %v1299_v54 = vsel %vm10919_vm4, 0, %v1298_v33  ;;  %v9405_v40 = vrot.slane %v3226_v35, 9  ;;  %v3377_v57 = vrot.slane %v11413_v31, 5  ;;  %v1339_v35 = vld [vmem:[#allocation2 + $0x68] sm:$0x1] }
 0x138   :  { %v1137_v60 = vmul.f32 %v10258_v1, %v945_v34  ;;  %v2520_v30 = vor.u32 %v2519_v55, %v2515_v52  ;;  %1300 = vst [vmem:[#allocation2 + $0x174] sm:$0x1] %v1299_v54  ;;  %v2511_v27 = vrot.slane %v2510_v24, 4  ;;  %v2525_v63 = vrot.slane %v2523_v46, 5  ;;  %v2178_v34 = vld [vmem:[#allocation2 + $0x5c] sm:$0x1] }
 0x139   :  { %v1597_v7 = vor.u32 %v1595_v48, %v1594_v56  ;;  %v604_v62 = vmin.f32 %v11419_v42, 20.0  ;;  %v1598_v45 = vrot.slane %v1594_v56, 4  ;;  %v11427_v21 = vsel %vm11123_vm15, %v9405_v40, %v3377_v57  ;;  %v11460_v54 = vld [vmem:[#allocation2 + $0x3c] sm:$0xe] }
 0x13a   :  { %v1436_v0 = vpack.c.bf16 %v1137_v60, %v1137_v60  ;;  %v2521_v3 = vrot.slane %v2520_v30, 4  ;;  %v2516_v25 = vsel %vm10971_vm9, %v2511_v27, %v2515_v52  ;;  %v3379_v18 = vrot.slane %v3377_v57, 4  ;;  %v1408_v27 = vld [vmem:[#allocation2 + $0x17c] sm:$0x1] }
 0x13b   :  { %v2175_v8 = vsel %vm11029_vm11, %v1597_v7, %v2174_v61  ;;  %v724_v10 = vmul.f32 1.442695, %v604_v62  ;;  %6591 = vrot.lane.b32.xlu0 %v10082_v6, %s10850_s30  ;;  %v6143_v13 = vunpack.c.l.b16 %v2516_v25  ;;  %v4754_v59 = vrot.slane %v11436_v43, 5  ;;  %v530_v7 = vpop.f32.mrf.mxu3 }
 0x13c   :  { %v10260_v20 = vpop.eup %10259  ;;  %2176 = vst [vmem:[#allocation2 + $0x54] sm:$0xf] %v2175_v8  ;;  %v1600_v12 = vshrl.u32 %v1436_v0, 16  ;;  %v1603_v49 = vshll.u32 %v1436_v0, 16  ;;  %v2526_v5 = vsel %vm10971_vm9, %v2521_v3, %v2525_v63  ;;  %v9460_v29 = vrot.slane %v4468_v23, 9 }
 0x13d   :  { %v754_v38 = vadd.f32 1.0, %v10260_v20  ;;  %v6144_v28 = vunpack.c.l.b16 %v2526_v5  ;;  %10261 = vpow2.f32 %v724_v10  ;;  %v4757_v53 = vrot.slane %v11440_v9, 5  ;;  %v2410_v0 = vld [vmem:[#allocation2 + $0x15c] sm:$0xf] }
 0x13e   :  { %v1602_v50 = vrot.slane %v1600_v12, 7  ;;  %v11445_v32 = vadd.f32 %v11241_v15, %v425_v19  ;;  %v4756_v4 = vrot.slane %v4754_v59, 4  ;;  %v1340_v39 = vsel %vm10937_vm6, 0, %v1339_v35  ;;  %v10113_v12 = vld [vmem:[#allocation2 + $0x24] sm:$0xff]  ;;  %v3250_v23 = vld [vmem:[#allocation2 + $0x15c] sm:$0xe] }
 0x13f   :  { %v818_v51 = vmul.f32 %v754_v38, %v754_v38  ;;  %v6205_v37 = vpack.c.b16 %v6144_v28, %v6143_v13  ;;  %v4755_v46 = vsel %vm11123_vm15, %v9460_v29, %v4754_v59  ;;  %1341 = vst [vmem:[#allocation2 + $0x68] sm:$0x1] %v1340_v39  ;;  %v3380_v58 = vrot.slane %v11438_v26, 5 }
 0x140   :  { %v1605_v47 = vor.u32 %v1603_v49, %v1602_v50  ;;  %v1607_v41 = vrot.slane %v1602_v50, 4  ;;  %v563_v44 = vmin.f32 %v11445_v32, 20.0  ;;  %v4758_v52 = vsel %vm11123_vm15, %v4756_v4, %v4757_v53 }
 0x141   :  { %v1010_v48 = vadd.f32 1.0, %v818_v51  ;;  %6239 = vrot.lane.b32.xlu1 %v6205_v37, %s10849_s29  ;;  %v6863_v55 = vunpack.c.l.b16 %v4755_v46  ;;  %v6864_v56 = vunpack.c.l.b16 %v4758_v52  ;;  %v9352_v60 = vadd.f32 -1.0, %v818_v51 }
 0x142   :  { %v1606_v33 = vsel %vm11052_vm12, %v1598_v45, %v1605_v47  ;;  %v2179_v1 = vsel %vm10919_vm4, %v1607_v41, %v2178_v34  ;;  %v642_v24 = vmul.f32 1.442695, %v563_v44  ;;  %v3381_v30 = vsel %vm11123_vm15, %v3379_v18, %v3380_v58  ;;  %v2411_v45 = vld [vmem:[#allocation2 + $0x160] sm:$0xf] }
 0x143   :  { %v10262_v61 = vpop.eup %10261  ;;  %2177 = vst.msk [vmem:[#allocation2 + $0x58] sm:$0xf] %vm1188_vm1, %v1606_v33  ;;  %10263 = vrcp.f32 %v1010_v48  ;;  %v6901_v57 = vpack.c.b16 %v6864_v56, %v6863_v55  ;;  %v9469_v63 = vrot.slane %v11460_v54, 9  ;;  %v11467_v62 = vadd.f32 %v11241_v15, %v530_v7  ;;  %v4802_v55 = vld [vmem:[#allocation2 + $0x40] sm:$0xf] }
 0x144   :  { %2180 = vst [vmem:[#allocation2 + $0x5c] sm:$0x1] %v2179_v1  ;;  %v796_v40 = vadd.f32 1.0, %v10262_v61  ;;  %10265 = vpow2.f32 %v642_v24  ;;  %v1409_v6 = vsel %vm10937_vm6, 0, %v1408_v27  ;;  %v6305_v3 = vunpack.c.l.b16 %v11427_v21  ;;  %v2447_v21 = vld [vmem:[#allocation2 + $0x164] sm:$0x1] }
 0x145   :  { %v6306_v8 = vunpack.c.l.b16 %v3381_v30  ;;  %6959 = vrot.lane.b32.xlu2 %v6901_v57, %s10853_s12  ;;  %1410 = vst [vmem:[#allocation2 + $0x17c] sm:$0x1] %v1409_v6  ;;  %v3104_v10 = vshrl.u32 %v2410_v0, 16  ;;  %v3107_v18 = vshll.u32 %v2410_v0, 16  ;;  %v3113_v20 = vshll.u32 %v2411_v45, 16 }
 0x146   :  { %v860_v25 = vmul.f32 %v796_v40, %v796_v40  ;;  %v605_v49 = vmin.f32 %v11467_v62, 20.0  ;;  %v3545_v15 = vrot.slane %v2411_v45, 5  ;;  %v3117_v5 = vshrl.u32 %v2411_v45, 16 }
 0x147   :  { %v4308_v13 = vshll.u32 %v11436_v43, 16  ;;  %v946_v19 = vmul.f32 %v9352_v60, %v11403_v14  ;;  %v11476_v59 = vpack.c.b16 %v6306_v8, %v6305_v3  ;;  %v9429_v53 = vrot.slane %v3250_v23, 9 }
 0x148   :  { %v9394_v38 = vadd.f32 -1.0, %v860_v25  ;;  %v1052_v28 = vadd.f32 1.0, %v860_v25  ;;  %v726_v29 = vmul.f32 1.442695, %v605_v49  ;;  %v3547_v35 = vrot.slane %v3545_v15, 4 }
 0x149   :  { %v10264_v50 = vpop.eup %10263  ;;  %7101 = vrot.lane.b32.xlu1 %v10113_v12, %s10851_s6  ;;  %v3548_v34 = vrot.slane %v2447_v21, 5  ;;  %v3106_v39 = vrot.slane %v3104_v10, 4  ;;  %v3546_v47 = vsel %vm11123_vm15, %v9429_v53, %v3545_v15  ;;  %v3109_v52 = vrot.slane %v3107_v18, 5  ;;  %v2181_v10 = vld [vmem:[#allocation2 + $0x60] sm:$0xf] }
 0x14a   :  { %v10266_v51 = vpop.eup %10265  ;;  %v1138_v37 = vmul.f32 %v10264_v50, %v946_v19  ;;  %v988_v4 = vmul.f32 %v9394_v38, %v11419_v42  ;;  %10267 = vrcp.f32 %v1052_v28  ;;  %v6353_v44 = vunpack.c.l.b16 %v3546_v47  ;;  %v4862_v42 = vld [vmem:[#allocation2 + $0x44] sm:$0x1]  ;;  %v428_v38 = vpop.f32.mrf.mxu0 }
 0x14b   :  { %v755_v14 = vadd.f32 1.0, %v10266_v51  ;;  %10269 = vpow2.f32 %v726_v29  ;;  %v3549_v41 = vsel %vm11123_vm15, %v3547_v35, %v3548_v34  ;;  %v3115_v33 = vrot.slane %v3113_v20, 5  ;;  %v1232_v34 = vld [vmem:[#allocation2 + $0x6c] sm:$0x1] }
 0x14c   :  { %v1437_v46 = vpack.c.bf16 %v1138_v37, %v1138_v37  ;;  %v6354_v48 = vunpack.c.l.b16 %v3549_v41  ;;  %v3119_v1 = vrot.slane %v3117_v5, 4  ;;  %v3123_v56 = vshll.u32 %v2447_v21, 16 }
 0x14d   :  { %v819_v58 = vmul.f32 %v755_v14, %v755_v14  ;;  %v3110_v30 = vor.u32 %v3109_v52, %v3106_v39  ;;  %v5810_v3 = vrot.slane %v4802_v55, 5  ;;  %v5813_v8 = vrot.slane %v4862_v42, 5  ;;  %v11503_v39 = vld [vmem:[%s14724_s2] ss:$0 sm:$0xff] }
 0x14e   :  { %v1609_v24 = vshrl.u32 %v1437_v46, 16  ;;  %v1612_v61 = vshll.u32 %v1437_v46, 16  ;;  %v6390_v60 = vpack.c.b16 %v6354_v48, %v6353_v44  ;;  %v3120_v7 = vor.u32 %v3119_v1, %v3115_v33  ;;  %v10030_v44 = vld [vmem:[#allocation3 + $0x80] sm:$0xff] }
 0x14f   :  { %v9353_v40 = vadd.f32 -1.0, %v819_v58  ;;  %v1011_v57 = vadd.f32 1.0, %v819_v58  ;;  %v3125_v27 = vrot.slane %v3123_v56, 5  ;;  %v3111_v0 = vrot.slane %v3110_v30, 4  ;;  %v2328_v1 = vld [vmem:[#allocation2 + $0x174] sm:$0xf]  ;;  %9322 = vmatmul.msk.bf16.gmra.mxu0 %vm282_vm0, %v10030_v44 }
 0x150   :  { %v10268_v6 = vpop.eup %10267  ;;  %v11484_v45 = vrot.slane %v1609_v24, 7  ;;  %6449 = vrot.lane.b32.xlu2 %v6390_v60, %s10852_s7  ;;  %v3121_v12 = vrot.slane %v3120_v7, 4  ;;  %v5812_v35 = vrot.slane %v5810_v3, 4  ;;  %v11506_v54 = vadd.f32 %v11503_v39, %v428_v38 }
 0x151   :  { %v10270_v25 = vpop.eup %10269  ;;  %v1180_v18 = vmul.f32 %v10268_v6, %v988_v4  ;;  %v947_v20 = vmul.f32 %v9353_v40, %v11445_v32  ;;  %10271 = vrcp.f32 %v1011_v57  ;;  %v3116_v19 = vsel %vm10971_vm9, %v3111_v0, %v3115_v33  ;;  %v4845_v57 = vld [vmem:[#allocation2 + $0x15c] sm:$0xf]  ;;  %v11524_v0 = vld [vmem:[#allocation2 + $0x160] sm:$0xf] }
 0x152   :  { %v1614_v49 = vor.u32 %v1612_v61, %v11484_v45  ;;  %v1615_v15 = vrot.slane %v11484_v45, 4  ;;  %v797_v5 = vadd.f32 1.0, %v10270_v25  ;;  %v3126_v21 = vsel %vm10971_vm9, %v3121_v12, %v3125_v27  ;;  %14745 = vst [vmem:[#allocation9_spill] sm:$0xff] %v11524_v0 }
 0x153   :  { %v1479_v28 = vpack.c.bf16 %v1180_v18, %v1180_v18  ;;  %v6193_v23 = vunpack.c.l.b16 %v3116_v19  ;;  %v5811_v32 = vsel %vm11123_vm15, %v9469_v63, %v5810_v3  ;;  %v6194_v53 = vunpack.c.l.b16 %v3126_v21  ;;  %v3630_v63 = vld [vmem:[#allocation2 + $0x15c] sm:$0xf]  ;;  %v4884_v21 = vld [vmem:[#allocation2 + $0x164] sm:$0x1] }
 0x154   :  { %v2182_v50 = vsel %vm11029_vm11, %v1614_v49, %v2181_v10  ;;  %v861_v29 = vmul.f32 %v797_v5, %v797_v5  ;;  %v7329_v4 = vunpack.c.l.b16 %v5811_v32  ;;  %v5814_v46 = vsel %vm11123_vm15, %v5812_v35, %v5813_v8 }
 0x155   :  { %2183 = vst [vmem:[#allocation2 + $0x60] sm:$0xf] %v2182_v50  ;;  %v1966_v51 = vshrl.u32 %v1479_v28, 16  ;;  %v1969_v37 = vshll.u32 %v1479_v28, 16  ;;  %v6230_v41 = vpack.c.b16 %v6194_v53, %v6193_v23  ;;  %v7330_v55 = vunpack.c.l.b16 %v5814_v46 }
 0x156   :  { %v9395_v14 = vadd.f32 -1.0, %v861_v29  ;;  %v1053_v47 = vadd.f32 1.0, %v861_v29  ;;  %v564_v58 = vmin.f32 %v11506_v54, 20.0  ;;  %v1233_v33 = vsel %vm10919_vm4, 0, %v1232_v34 }
 0x157   :  { %v10272_v48 = vpop.eup %10271  ;;  %v11510_v52 = vrot.slane %v1966_v51, 7  ;;  %6289 = vrot.lane.b32.xlu0 %v6230_v41, %s10849_s29  ;;  %1234 = vst [vmem:[#allocation2 + $0x6c] sm:$0x1] %v1233_v33  ;;  %v4299_v24 = vshrl.u32 %v3630_v63, 16  ;;  %v7390_v30 = vpack.c.b16 %v7330_v55, %v7329_v4  ;;  %v4310_v6 = vrot.slane %v4308_v13, 5 }
 0x158   :  { %v1139_v56 = vmul.f32 %v10272_v48, %v947_v20  ;;  %v989_v42 = vmul.f32 %v9395_v14, %v11467_v62  ;;  %10273 = vrcp.f32 %v1053_v47  ;;  %v644_v40 = vmul.f32 1.442695, %v564_v58  ;;  %6401 = vrot.lane.b32.xlu2 %v11476_v59, %s10852_s7 }
 0x159   :  { %v1971_v61 = vor.u32 %v1969_v37, %v11510_v52  ;;  %v1972_v60 = vrot.slane %v11510_v52, 4  ;;  %v4301_v27 = vrot.slane %v4299_v24, 4  ;;  %v4302_v62 = vshll.u32 %v3630_v63, 16  ;;  %9921 = vmatmul.msk.bf16.gmra.mxu2 %vm7419_vm2, %v7390_v30 }
 0x15a   :  { %v1438_v7 = vpack.c.bf16 %v1139_v56, %v1139_v56  ;;  %10275 = vpow2.f32 %v644_v40  ;;  %v4312_v8 = vshrl.u32 %v11436_v43, 16  ;;  %v4318_v25 = vshll.u32 %v11440_v9, 16  ;;  %v2185_v43 = vld [vmem:[#allocation2 + $0x68] sm:$0x1] }
 0x15b   :  { %v2329_v3 = vsel %vm11029_vm11, %v1971_v61, %v2328_v1  ;;  %v4304_v18 = vrot.slane %v4302_v62, 5  ;;  %v5492_v20 = vshrl.u32 %v4845_v57, 16  ;;  %v5495_v13 = vshll.u32 %v4845_v57, 16  ;;  %v430_v61 = vpop.f32.mrf.mxu0  ;;  %v2332_v62 = vld [vmem:[#allocation2 + $0x17c] sm:$0x1] }
 0x15c   :  { %2330 = vst [vmem:[#allocation2 + $0x174] sm:$0xf] %v2329_v3  ;;  %v1617_v59 = vshrl.u32 %v1438_v7, 16  ;;  %v1620_v10 = vshll.u32 %v1438_v7, 16  ;;  %v4314_v12 = vrot.slane %v4312_v8, 4  ;;  %v4320_v49 = vrot.slane %v4318_v25, 5 }
 0x15d   :  { %v5501_v5 = vshll.u32 %v11524_v0, 16  ;;  %v4305_v28 = vor.u32 %v4304_v18, %v4301_v27  ;;  %v5494_v23 = vrot.slane %v5492_v20, 4  ;;  %v5505_v32 = vshrl.u32 %v11524_v0, 16  ;;  %v4444_v27 = vld [vmem:[#allocation2 + $0x24] sm:$0xe] }
 0x15e   :  { %v10274_v19 = vpop.eup %10273  ;;  %v1619_v38 = vrot.slane %v1617_v59, 7  ;;  %v4315_v9 = vor.u32 %v4314_v12, %v4310_v6  ;;  %v5497_v29 = vrot.slane %v5495_v13, 5  ;;  %v5511_v41 = vshll.u32 %v4884_v21, 16  ;;  %v11547_v59 = vld [vmem:[#allocation2 + $0x28] sm:$0xf] }
 0x15f   :  { %v1181_v50 = vmul.f32 %v10274_v19, %v989_v42  ;;  %v5503_v53 = vrot.slane %v5501_v5, 5  ;;  %v4306_v51 = vrot.slane %v4305_v28, 4  ;;  %v5507_v37 = vrot.slane %v5505_v32, 4  ;;  %v11555_v19 = vld [vmem:[#allocation2 + $0x2c] sm:$0x1] }
 0x160   :  { %v1622_v35 = vor.u32 %v1620_v10, %v1619_v38  ;;  %v1624_v34 = vrot.slane %v1619_v38, 4  ;;  %v10276_v4 = vpop.eup %10275  ;;  %v4316_v14 = vrot.slane %v4315_v9, 4  ;;  %v5498_v47 = vor.u32 %v5497_v29, %v5494_v23  ;;  %v2362_v28 = vld [vmem:[#allocation2 + $0x24] sm:$0xf]  ;;  %v10138_v29 = vld [vmem:[#allocation2 + $0x168] sm:$0xff] }
 0x161   :  { %v1480_v63 = vpack.c.bf16 %v1181_v50, %v1181_v50  ;;  %v756_v48 = vadd.f32 1.0, %v10276_v4  ;;  %v4311_v55 = vsel %vm10971_vm9, %v4306_v51, %v4310_v6  ;;  %v5513_v40 = vrot.slane %v5511_v41, 5 }
 0x162   :  { %v1623_v46 = vsel %vm11052_vm12, %v1615_v15, %v1622_v35  ;;  %v2186_v44 = vsel %vm10919_vm4, %v1624_v34, %v2185_v43  ;;  %v4321_v1 = vsel %vm10971_vm9, %v4316_v14, %v4320_v49  ;;  %v6703_v56 = vunpack.c.l.b16 %v4311_v55  ;;  %v1342_v49 = vld [vmem:[#allocation2 + $0x74] sm:$0x1]  ;;  %v4804_v55 = vld [vmem:[#allocation2 + $0x4c] sm:$0xf] }
 0x163   :  { %2184 = vst.msk [vmem:[#allocation2 + $0x64] sm:$0xf] %vm1188_vm1, %v1623_v46  ;;  %v1974_v58 = vshrl.u32 %v1480_v63, 16  ;;  %v1977_v33 = vshll.u32 %v1480_v63, 16  ;;  %v820_v45 = vmul.f32 %v756_v48, %v756_v48  ;;  %v6704_v42 = vunpack.c.l.b16 %v4321_v1 }
 0x164   :  { %2187 = vst [vmem:[#allocation2 + $0x68] sm:$0x1] %v2186_v44  ;;  %v5499_v24 = vrot.slane %v5498_v47, 4  ;;  %v5508_v15 = vor.u32 %v5507_v37, %v5503_v53  ;;  %v14728_v57 = vrot.slane %v11524_v0, 5  ;;  %v5967_v7 = vrot.slane %v4884_v21, 5 }
 0x165   :  { %v1976_v30 = vrot.slane %v1974_v58, 7  ;;  %v9354_v6 = vadd.f32 -1.0, %v820_v45  ;;  %v1012_v3 = vadd.f32 1.0, %v820_v45  ;;  %v6741_v8 = vpack.c.b16 %v6704_v42, %v6703_v56  ;;  %v4863_v58 = vld [vmem:[#allocation2 + $0x50] sm:$0x1] }
 0x166   :  { %v5504_v25 = vsel %vm10971_vm9, %v5499_v24, %v5503_v53  ;;  %v5509_v20 = vrot.slane %v5508_v15, 4  ;;  %v5966_v12 = vrot.slane %v14728_v57, 4  ;;  %v11553_v5 = vadd.f32 %v11503_v39, %v430_v61  ;;  %v1235_v15 = vld [vmem:[#allocation2 + $0x78] sm:$0x1] }
 0x167   :  { %v1979_v10 = vor.u32 %v1977_v33, %v1976_v30  ;;  %v1981_v18 = vrot.slane %v1976_v30, 4  ;;  %10277 = vrcp.f32 %v1012_v3  ;;  %6799 = vrot.lane.b32.xlu1 %v6741_v8, %s10846_s23  ;;  %v7213_v13 = vunpack.c.l.b16 %v5504_v25  ;;  %v433_v33 = vpop.f32.mrf.mxu0  ;;  %v10107_v25 = vld [vmem:[#allocation2 + $0x168] sm:$0xff] }
 0x168   :  { %v9436_v38 = vrot.slane %v4444_v27, 9  ;;  %v5514_v32 = vsel %vm10971_vm9, %v5509_v20, %v5513_v40  ;;  %v11567_v43 = vsel %vm11123_vm15, %v5966_v12, %v5967_v7  ;;  %v948_v50 = vmul.f32 %v9354_v6, %v11506_v54 }
 0x169   :  { %v1980_v21 = vsel %vm11052_vm12, %v1972_v60, %v1979_v10  ;;  %v2333_v23 = vsel %vm10919_vm4, %v1981_v18, %v2332_v62  ;;  %14746 = vst [vmem:[#allocation10_spill] sm:$0xff] %v11567_v43  ;;  %v7214_v9 = vunpack.c.l.b16 %v5514_v32  ;;  %v565_v52 = vmin.f32 %v11553_v5, 20.0 }
 0x16a   :  { %2331 = vst.msk [vmem:[#allocation2 + $0x178] sm:$0xf] %vm1188_vm1, %v1980_v21  ;;  %v1343_v60 = vsel %vm10937_vm6, 0, %v1342_v49  ;;  %v4586_v53 = vrot.slane %v11547_v59, 5  ;;  %v4589_v35 = vrot.slane %v11555_v19, 5  ;;  %v2528_v34 = vshrl.u32 %v2362_v28, 16 }
 0x16b   :  { %2334 = vst [vmem:[#allocation2 + $0x17c] sm:$0x1] %v2333_v23  ;;  %v2531_v51 = vshll.u32 %v2362_v28, 16  ;;  %v7252_v37 = vpack.c.b16 %v7214_v9, %v7213_v13  ;;  %v646_v4 = vmul.f32 1.442695, %v565_v52  ;;  %v2537_v63 = vshll.u32 %v11413_v31, 16 }
 0x16c   :  { %1344 = vst [vmem:[#allocation2 + $0x74] sm:$0x1] %v1343_v60  ;;  %v2541_v54 = vshrl.u32 %v11413_v31, 16  ;;  %v4587_v14 = vsel %vm11123_vm15, %v9436_v38, %v4586_v53  ;;  %v4588_v47 = vrot.slane %v4586_v53, 4  ;;  %v2530_v41 = vrot.slane %v2528_v34, 4  ;;  %v10031_v53 = vld [vmem:[#allocation3 + $0x88] sm:$0xff] }
 0x16d   :  { %v2533_v46 = vrot.slane %v2531_v51, 5  ;;  %v10278_v44 = vpop.eup %10277  ;;  %7309 = vrot.lane.b32.xlu0 %v7252_v37, %s10854_s13  ;;  %10279 = vpow2.f32 %v646_v4  ;;  %v6815_v48 = vunpack.c.l.b16 %v4587_v14  ;;  %v2539_v1 = vrot.slane %v2537_v63, 5  ;;  %v5663_v31 = vld [vmem:[#allocation2 + $0x48] sm:$0xe]  ;;  %v4797_v9 = vld [vmem:[#allocation2 + $0x24] sm:$0xf]  ;;  %9323 = vmatmul.msk.bf16.gmra.mxu0 %vm282_vm0, %v10031_v53 }
 0x16e   :  { %v1140_v56 = vmul.f32 %v10278_v44, %v948_v50  ;;  %v4590_v45 = vsel %vm11123_vm15, %v4588_v47, %v4589_v35  ;;  %v5817_v42 = vrot.slane %v4804_v55, 5  ;;  %v5820_v24 = vrot.slane %v4863_v58, 5  ;;  %v2188_v35 = vld [vmem:[#allocation2 + $0x6c] sm:$0xf] }
 0x16f   :  { %7151 = vrot.lane.b32.xlu1 %v10138_v29, %s10851_s6  ;;  %v6816_v61 = vunpack.c.l.b16 %v4590_v45  ;;  %v9470_v30 = vrot.slane %v5663_v31, 9  ;;  %v11585_v40 = vadd.f32 %v11503_v39, %v433_v33  ;;  %v1236_v7 = vsel %vm10919_vm4, 0, %v1235_v15  ;;  %v3582_v33 = vld [vmem:[#allocation2 + $0x24] sm:$0xf]  ;;  %v10693_v31 = vld [vmem:[#allocation2 + $0x28] sm:$0xf] }
 0x170   :  { %v1439_v27 = vpack.c.bf16 %v1140_v56, %v1140_v56  ;;  %v5819_v62 = vrot.slane %v5817_v42, 4  ;;  %1237 = vst [vmem:[#allocation2 + $0x78] sm:$0x1] %v1236_v7  ;;  %v2534_v6 = vor.u32 %v2533_v46, %v2530_v41  ;;  %v2543_v3 = vrot.slane %v2541_v54, 4  ;;  %v533_v54 = vpop.f32.mrf.mxu3 }
 0x171   :  { %v6877_v8 = vpack.c.b16 %v6816_v61, %v6815_v48  ;;  %v5818_v10 = vsel %vm11123_vm15, %v9470_v30, %v5817_v42  ;;  %v566_v18 = vmin.f32 %v11585_v40, 20.0  ;;  %v2547_v20 = vshll.u32 %v11438_v26, 16  ;;  %v1301_v26 = vld [vmem:[#allocation2 + $0x180] sm:$0x1] }
 0x172   :  { %v1626_v12 = vshrl.u32 %v1439_v27, 16  ;;  %v1629_v49 = vshll.u32 %v1439_v27, 16  ;;  %v5821_v13 = vsel %vm11123_vm15, %v5819_v62, %v5820_v24  ;;  %v7331_v38 = vunpack.c.l.b16 %v5818_v10 }
 0x173   :  { %v10280_v28 = vpop.eup %10279  ;;  %6911 = vrot.lane.b32.xlu2 %v6877_v8, %s10853_s12  ;;  %v7332_v21 = vunpack.c.l.b16 %v5821_v13  ;;  %v648_v23 = vmul.f32 1.442695, %v566_v18  ;;  %v2535_v32 = vrot.slane %v2534_v6, 4  ;;  %v2544_v50 = vor.u32 %v2543_v3, %v2539_v1  ;;  %v10694_v6 = vld [vmem:[#allocation2 + $0x2c] sm:$0x1]  ;;  %v10114_v8 = vld [vmem:[#allocation2 + $0x30] sm:$0xff]  ;;  %v435_v18 = vpop.f32.mrf.mxu0 }
 0x174   :  { %v11596_v52 = vrot.slane %v1626_v12, 7  ;;  %v757_v60 = vadd.f32 1.0, %v10280_v28  ;;  %v2549_v29 = vrot.slane %v2547_v20, 5  ;;  %v11607_v47 = vadd.f32 %v11503_v39, %v533_v54  ;;  %v1345_v20 = vld [vmem:[#allocation2 + $0x80] sm:$0x1] }
 0x175   :  { %6641 = vrot.lane.b32.xlu0 %v10107_v25, %s10850_s30  ;;  %v7391_v34 = vpack.c.b16 %v7332_v21, %v7331_v38  ;;  %10281 = vpow2.f32 %v648_v23  ;;  %v2540_v51 = vsel %vm10971_vm9, %v2535_v32, %v2539_v1  ;;  %v2545_v37 = vrot.slane %v2544_v50, 4 }
 0x176   :  { %v1631_v4 = vor.u32 %v1629_v49, %v11596_v52  ;;  %v821_v63 = vmul.f32 %v757_v60, %v757_v60  ;;  %v1302_v41 = vsel %vm10919_vm4, 0, %v1301_v26  ;;  %v4916_v46 = vshrl.u32 %v4797_v9, 16 }
 0x177   :  { %9922 = vmatmul.msk.bf16.gmra.mxu2 %vm7419_vm2, %v7391_v34  ;;  %v2550_v14 = vsel %vm10971_vm9, %v2545_v37, %v2549_v29  ;;  %v6145_v55 = vunpack.c.l.b16 %v2540_v51  ;;  %1303 = vst [vmem:[#allocation2 + $0x180] sm:$0x1] %v1302_v41  ;;  %v606_v1 = vmin.f32 %v11607_v47, 20.0  ;;  %v4919_v45 = vshll.u32 %v4797_v9, 16 }
 0x178   :  { %v2189_v44 = vsel %vm11029_vm11, %v1631_v4, %v2188_v35  ;;  %v1013_v48 = vadd.f32 1.0, %v821_v63  ;;  %v6146_v58 = vunpack.c.l.b16 %v2550_v14  ;;  %v4918_v56 = vrot.slane %v4916_v46, 4 }
 0x179   :  { %2190 = vst [vmem:[#allocation2 + $0x6c] sm:$0xf] %v2189_v44  ;;  %v4925_v42 = vshll.u32 %v10693_v31, 16  ;;  %v9355_v24 = vadd.f32 -1.0, %v821_v63  ;;  %v4929_v61 = vshrl.u32 %v10693_v31, 16  ;;  %v4921_v27 = vrot.slane %v4919_v45, 5 }
 0x17a   :  { %10283 = vrcp.f32 %v1013_v48  ;;  %v6206_v15 = vpack.c.b16 %v6146_v58, %v6145_v55  ;;  %v728_v7 = vmul.f32 1.442695, %v606_v1  ;;  %v4935_v3 = vshll.u32 %v10694_v6, 16  ;;  %v11630_v1 = vld [vmem:[#allocation2 + $0x30] sm:$0xe] }
 0x17b   :  { %v10282_v30 = vpop.eup %10281  ;;  %v4927_v62 = vrot.slane %v4925_v42, 5  ;;  %v4931_v10 = vrot.slane %v4929_v61, 4  ;;  %v3723_v12 = vshrl.u32 %v3582_v33, 16  ;;  %v3726_v49 = vshll.u32 %v3582_v33, 16  ;;  %v535_v33 = vpop.f32.mrf.mxu3 }
 0x17c   :  { %v758_v25 = vadd.f32 1.0, %v10282_v30  ;;  %6241 = vrot.lane.b32.xlu1 %v6206_v15, %s10849_s29  ;;  %v1632_v13 = vrot.slane %v11596_v52, 4  ;;  %10285 = vpow2.f32 %v728_v7  ;;  %v4922_v38 = vor.u32 %v4921_v27, %v4918_v56 }
 0x17d   :  { %7103 = vrot.lane.b32.xlu0 %v10114_v8, %s10851_s6  ;;  %v11618_v28 = vadd.f32 %v11503_v39, %v435_v18  ;;  %v949_v21 = vmul.f32 %v9355_v24, %v11553_v5  ;;  %v4932_v32 = vor.u32 %v4931_v10, %v4927_v62  ;;  %v1346_v50 = vsel %vm10937_vm6, 0, %v1345_v20  ;;  %v2192_v10 = vld [vmem:[#allocation2 + $0x74] sm:$0x1] }
 0x17e   :  { %v822_v23 = vmul.f32 %v758_v25, %v758_v25  ;;  %v4923_v9 = vrot.slane %v4922_v38, 4  ;;  %v4937_v60 = vrot.slane %v4935_v3, 5  ;;  %1347 = vst [vmem:[#allocation2 + $0x80] sm:$0x1] %v1346_v50  ;;  %v3725_v53 = vrot.slane %v3723_v12, 4 }
 0x17f   :  { %v567_v29 = vmin.f32 %v11618_v28, 20.0  ;;  %v4933_v51 = vrot.slane %v4932_v32, 4  ;;  %v3728_v37 = vrot.slane %v3726_v49, 5  ;;  %v3732_v54 = vshll.u32 %v11547_v59, 16 }
 0x180   :  { %v10284_v26 = vpop.eup %10283  ;;  %v9356_v35 = vadd.f32 -1.0, %v822_v23  ;;  %v1014_v34 = vadd.f32 1.0, %v822_v23  ;;  %v4928_v5 = vsel %vm10971_vm9, %v4923_v9, %v4927_v62  ;;  %v3736_v31 = vshrl.u32 %v11547_v59, 16  ;;  %v11644_v9 = vld [vmem:[#allocation2 + $0x34] sm:$0xf] }
 0x181   :  { %v1141_v4 = vmul.f32 %v10284_v26, %v949_v21  ;;  %v650_v63 = vmul.f32 1.442695, %v567_v29  ;;  %v4938_v41 = vsel %vm10971_vm9, %v4933_v51, %v4937_v60  ;;  %v7165_v46 = vunpack.c.l.b16 %v4928_v5  ;;  %v11646_v60 = vld [vmem:[#allocation2 + $0x38] sm:$0x1] }
 0x182   :  { %v950_v14 = vmul.f32 %v9356_v35, %v11585_v40  ;;  %10287 = vrcp.f32 %v1014_v34  ;;  %v10286_v44 = vpop.eup %10285  ;;  %v7166_v55 = vunpack.c.l.b16 %v4938_v41  ;;  %v3729_v58 = vor.u32 %v3728_v37, %v3725_v53  ;;  %v1411_v40 = vld [vmem:[#allocation2 + $0x188] sm:$0x1]  ;;  %v438_v41 = vpop.f32.mrf.mxu0 }
 0x183   :  { %v1440_v48 = vpack.c.bf16 %v1141_v4, %v1141_v4  ;;  %10289 = vpow2.f32 %v650_v63  ;;  %v798_v56 = vadd.f32 1.0, %v10286_v44  ;;  %v3734_v45 = vrot.slane %v3732_v54, 5 }
 0x184   :  { %v3742_v42 = vshll.u32 %v11555_v19, 16  ;;  %v7228_v61 = vpack.c.b16 %v7166_v55, %v7165_v46  ;;  %v3730_v30 = vrot.slane %v3729_v58, 4  ;;  %v3738_v27 = vrot.slane %v3736_v31, 4  ;;  %v4469_v55 = vld [vmem:[#allocation2 + $0x168] sm:$0xe] }
 0x185   :  { %v1634_v24 = vshrl.u32 %v1440_v48, 16  ;;  %v1637_v15 = vshll.u32 %v1440_v48, 16  ;;  %v862_v7 = vmul.f32 %v798_v56, %v798_v56  ;;  %v11635_v6 = vadd.f32 %v11503_v39, %v535_v33  ;;  %v11662_v48 = vld [vmem:[#allocation2 + $0x170] sm:$0x1]  ;;  %v2195_v33 = vld [vmem:[#allocation2 + $0x78] sm:$0xf] }
 0x186   :  { %v3744_v62 = vrot.slane %v3742_v42, 5  ;;  %7261 = vrot.lane.b32.xlu2 %v7228_v61, %s10854_s13  ;;  %v3735_v8 = vsel %vm10971_vm9, %v3730_v30, %v3734_v45  ;;  %v1412_v59 = vsel %vm10937_vm6, 0, %v1411_v40  ;;  %v9406_v19 = vrot.slane %v11630_v1, 9  ;;  %v4847_v40 = vld [vmem:[#allocation2 + $0x168] sm:$0xf] }
 0x187   :  { %v1636_v3 = vrot.slane %v1634_v24, 7  ;;  %v9396_v18 = vadd.f32 -1.0, %v862_v7  ;;  %v1054_v20 = vadd.f32 1.0, %v862_v7  ;;  %v3739_v12 = vor.u32 %v3738_v27, %v3734_v45  ;;  %1413 = vst [vmem:[#allocation2 + $0x188] sm:$0x1] %v1412_v59 }
 0x188   :  { %v10288_v25 = vpop.eup %10287  ;;  %v6655_v49 = vunpack.c.l.b16 %v3735_v8  ;;  %v607_v50 = vmin.f32 %v11635_v6, 20.0  ;;  %v3387_v63 = vrot.slane %v11646_v60, 5  ;;  %v9461_v56 = vrot.slane %v4469_v55, 9  ;;  %v4848_v24 = vld [vmem:[#allocation2 + $0x16c] sm:$0xf] }
 0x189   :  { %v10290_v38 = vpop.eup %10289  ;;  %v1639_v21 = vor.u32 %v1637_v15, %v1636_v3  ;;  %v1641_v23 = vrot.slane %v1636_v3, 4  ;;  %v1142_v32 = vmul.f32 %v10288_v25, %v950_v14  ;;  %v990_v29 = vmul.f32 %v9396_v18, %v11607_v47 }
 0x18a   :  { %10291 = vrcp.f32 %v1054_v20  ;;  %v759_v53 = vadd.f32 1.0, %v10290_v38  ;;  %v3740_v26 = vrot.slane %v3739_v12, 4  ;;  %v730_v37 = vmul.f32 1.442695, %v607_v50  ;;  %v4885_v20 = vld [vmem:[#allocation2 + $0x170] sm:$0x1] }
 0x18b   :  { %v1640_v35 = vsel %vm11052_vm12, %v1632_v13, %v1639_v21  ;;  %v2193_v34 = vsel %vm10919_vm4, %v1641_v23, %v2192_v10  ;;  %v1441_v51 = vpack.c.bf16 %v1142_v32, %v1142_v32  ;;  %v3384_v47 = vrot.slane %v11644_v9, 5  ;;  %v11660_v13 = vld [vmem:[#allocation2 + $0x16c] sm:$0xf] }
 0x18c   :  { %2191 = vst.msk [vmem:[#allocation2 + $0x70] sm:$0xf] %vm1188_vm1, %v1640_v35  ;;  %v823_v4 = vmul.f32 %v759_v53, %v759_v53  ;;  %v3745_v5 = vsel %vm10971_vm9, %v3740_v26, %v3744_v62  ;;  %10293 = vpow2.f32 %v730_v37  ;;  %v4761_v45 = vrot.slane %v11660_v13, 5 }
 0x18d   :  { %2194 = vst [vmem:[#allocation2 + $0x74] sm:$0x1] %v2193_v34  ;;  %v1643_v52 = vshrl.u32 %v1441_v51, 16  ;;  %v1646_v54 = vshll.u32 %v1441_v51, 16  ;;  %v6656_v14 = vunpack.c.l.b16 %v3745_v5  ;;  %v4764_v42 = vrot.slane %v11662_v48, 5 }
 0x18e   :  { %v9357_v46 = vadd.f32 -1.0, %v823_v4  ;;  %v1015_v44 = vadd.f32 1.0, %v823_v4  ;;  %v11669_v15 = vadd.f32 %v11503_v39, %v438_v41  ;;  %v11675_v61 = vsel %vm11123_vm15, %v9406_v19, %v3384_v47 }
 0x18f   :  { %v11664_v58 = vrot.slane %v1643_v52, 7  ;;  %v6717_v1 = vpack.c.b16 %v6656_v14, %v6655_v49  ;;  %v4762_v62 = vsel %vm11123_vm15, %v9461_v56, %v4761_v45  ;;  %v4763_v3 = vrot.slane %v4761_v45, 4  ;;  %v2335_v14 = vld [vmem:[#allocation2 + $0x180] sm:$0xf] }
 0x190   :  { %v10292_v31 = vpop.eup %10291  ;;  %10295 = vrcp.f32 %v1015_v44  ;;  %v951_v27 = vmul.f32 %v9357_v46, %v11618_v28  ;;  %v6865_v8 = vunpack.c.l.b16 %v4762_v62  ;;  %v5516_v59 = vshrl.u32 %v4847_v40, 16 }
 0x191   :  { %v1648_v30 = vor.u32 %v1646_v54, %v11664_v58  ;;  %v1182_v7 = vmul.f32 %v10292_v31, %v990_v29  ;;  %6751 = vrot.lane.b32.xlu1 %v6717_v1, %s10846_s23  ;;  %v5519_v25 = vshll.u32 %v4847_v40, 16  ;;  %v5525_v12 = vshll.u32 %v4848_v24, 16  ;;  %v4806_v31 = vld [vmem:[#allocation2 + $0x58] sm:$0xf] }
 0x192   :  { %v10294_v10 = vpop.eup %10293  ;;  %v5529_v49 = vshrl.u32 %v4848_v24, 16  ;;  %v4765_v28 = vsel %vm11123_vm15, %v4763_v3, %v4764_v42  ;;  %v5518_v21 = vrot.slane %v5516_v59, 4  ;;  %v5535_v37 = vshll.u32 %v4885_v20, 16  ;;  %v5664_v42 = vld [vmem:[#allocation2 + $0x54] sm:$0xe] }
 0x193   :  { %v2196_v18 = vsel %vm11029_vm11, %v1648_v30, %v2195_v33  ;;  %v1481_v19 = vpack.c.bf16 %v1182_v7, %v1182_v7  ;;  %v799_v38 = vadd.f32 1.0, %v10294_v10  ;;  %v5521_v23 = vrot.slane %v5519_v25, 5  ;;  %v1238_v7 = vld [vmem:[#allocation2 + $0x84] sm:$0x1]  ;;  %v2199_v20 = vld [vmem:[#allocation2 + $0x80] sm:$0x1] }
 0x194   :  { %2197 = vst [vmem:[#allocation2 + $0x78] sm:$0xf] %v2196_v18  ;;  %v6866_v29 = vunpack.c.l.b16 %v4765_v28  ;;  %v5527_v53 = vrot.slane %v5525_v12, 5  ;;  %v5531_v51 = vrot.slane %v5529_v49, 4  ;;  %v568_v54 = vmin.f32 %v11669_v15, 20.0 }
 0x195   :  { %v1983_v32 = vshrl.u32 %v1481_v19, 16  ;;  %v1986_v50 = vshll.u32 %v1481_v19, 16  ;;  %v863_v35 = vmul.f32 %v799_v38, %v799_v38  ;;  %v5522_v34 = vor.u32 %v5521_v23, %v5518_v21 }
 0x196   :  { %v10296_v26 = vpop.eup %10295  ;;  %v6902_v52 = vpack.c.b16 %v6866_v29, %v6865_v8  ;;  %v5532_v55 = vor.u32 %v5531_v51, %v5527_v53  ;;  %v1649_v33 = vrot.slane %v11664_v58, 4  ;;  %v5537_v45 = vrot.slane %v5535_v37, 5  ;;  %v4864_v8 = vld [vmem:[#allocation2 + $0x5c] sm:$0x1] }
 0x197   :  { %v11686_v4 = vrot.slane %v1983_v32, 7  ;;  %v1143_v5 = vmul.f32 %v10296_v26, %v951_v27  ;;  %v9397_v41 = vadd.f32 -1.0, %v863_v35  ;;  %v1055_v46 = vadd.f32 1.0, %v863_v35  ;;  %v2412_v26 = vld [vmem:[#allocation2 + $0x168] sm:$0xf] }
 0x198   :  { %v5523_v44 = vrot.slane %v5522_v34, 4  ;;  %6961 = vrot.lane.b32.xlu2 %v6902_v52, %s10853_s12  ;;  %v5533_v30 = vrot.slane %v5532_v55, 4  ;;  %v9471_v10 = vrot.slane %v5664_v42, 9  ;;  %v5824_v18 = vrot.slane %v4806_v31, 5  ;;  %v2413_v35 = vld [vmem:[#allocation2 + $0x16c] sm:$0xf] }
 0x199   :  { %v1988_v1 = vor.u32 %v1986_v50, %v11686_v4  ;;  %v1442_v56 = vpack.c.bf16 %v1143_v5, %v1143_v5  ;;  %v1989_v40 = vrot.slane %v11686_v4, 4  ;;  %10297 = vrcp.f32 %v1055_v46  ;;  %v10083_v34 = vld [vmem:[#allocation2 + $0x30] sm:$0xff]  ;;  %v1304_v55 = vld [vmem:[#allocation2 + $0x18c] sm:$0x1] }
 0x19a   :  { %v5528_v24 = vsel %vm10971_vm9, %v5523_v44, %v5527_v53  ;;  %v991_v62 = vmul.f32 %v9397_v41, %v11635_v6  ;;  %v5538_v25 = vsel %vm10971_vm9, %v5533_v30, %v5537_v45  ;;  %v652_v49 = vmul.f32 1.442695, %v568_v54  ;;  %v2448_v5 = vld [vmem:[#allocation2 + $0x170] sm:$0x1]  ;;  %v538_v30 = vpop.f32.mrf.mxu3 }
 0x19b   :  { %v2336_v27 = vsel %vm11029_vm11, %v1988_v1, %v2335_v14  ;;  %v1651_v58 = vshrl.u32 %v1442_v56, 16  ;;  %v7215_v3 = vunpack.c.l.b16 %v5528_v24  ;;  %v1654_v59 = vshll.u32 %v1442_v56, 16  ;;  %v10032_v14 = vld [vmem:[#allocation3 + $0x90] sm:$0xff] }
 0x19c   :  { %2337 = vst [vmem:[#allocation2 + $0x180] sm:$0xf] %v2336_v27  ;;  %v7216_v12 = vunpack.c.l.b16 %v5538_v25  ;;  %v1239_v38 = vsel %vm10919_vm4, 0, %v1238_v7  ;;  %v5825_v28 = vsel %vm11123_vm15, %v9471_v10, %v5824_v18  ;;  %v5826_v6 = vrot.slane %v5824_v18, 4  ;;  %9324 = vmatmul.msk.bf16.gmra.mxu0 %vm282_vm0, %v10032_v14 }
 0x19d   :  { %v1653_v19 = vrot.slane %v1651_v58, 7  ;;  %v5827_v21 = vrot.slane %v4864_v8, 5  ;;  %1240 = vst [vmem:[#allocation2 + $0x84] sm:$0x1] %v1239_v38  ;;  %v3386_v23 = vrot.slane %v3384_v47, 4  ;;  %v7333_v53 = vunpack.c.l.b16 %v5825_v28 }
 0x19e   :  { %v7253_v29 = vpack.c.b16 %v7216_v12, %v7215_v3  ;;  %10299 = vpow2.f32 %v652_v49  ;;  %v3128_v52 = vshrl.u32 %v2412_v26, 16  ;;  %v3131_v54 = vshll.u32 %v2412_v26, 16  ;;  %v2364_v8 = vld [vmem:[#allocation2 + $0x30] sm:$0xf] }
 0x19f   :  { %v1656_v32 = vor.u32 %v1654_v59, %v1653_v19  ;;  %v1658_v50 = vrot.slane %v1653_v19, 4  ;;  %v10298_v51 = vpop.eup %10297  ;;  %v5828_v37 = vsel %vm11123_vm15, %v5826_v6, %v5827_v21  ;;  %v3137_v45 = vshll.u32 %v2413_v35, 16 }
 0x1a0   :  { %v1183_v46 = vmul.f32 %v10298_v51, %v991_v62  ;;  %7311 = vrot.lane.b32.xlu0 %v7253_v29, %s10854_s13  ;;  %v7334_v44 = vunpack.c.l.b16 %v5828_v37  ;;  %6593 = vrot.lane.b32.xlu2 %v10083_v34, %s10850_s30  ;;  %v3130_v1 = vrot.slane %v3128_v52, 4  ;;  %v3133_v56 = vrot.slane %v3131_v54, 5  ;;  %v440_v54 = vpop.f32.mrf.mxu0 }
 0x1a1   :  { %v1657_v41 = vsel %vm11052_vm12, %v1649_v33, %v1656_v32  ;;  %v2200_v47 = vsel %vm10919_vm4, %v1658_v50, %v2199_v20  ;;  %v3141_v31 = vshrl.u32 %v2413_v35, 16  ;;  %v3147_v24 = vshll.u32 %v2448_v5, 16  ;;  %v2339_v32 = vld [vmem:[#allocation2 + $0x188] sm:$0x1]  ;;  %v10151_v5 = vld [vmem:[%s14725_s3 + $0x38] sm:$0xff] }
 0x1a2   :  { %2198 = vst.msk [vmem:[#allocation2 + $0x7c] sm:$0xf] %vm1188_vm1, %v1657_v41  ;;  %v1482_v33 = vpack.c.bf16 %v1183_v46, %v1183_v46  ;;  %v7392_v42 = vpack.c.b16 %v7334_v44, %v7333_v53  ;;  %v6307_v7 = vunpack.c.l.b16 %v11675_v61  ;;  %v3134_v27 = vor.u32 %v3133_v56, %v3130_v1  ;;  %8109 = vmatpush.bf16.msra.mxu1 %v10151_v5  ;;  %v6236_v56 = vpop.permute.xlu0 %6235 }
 0x1a3   :  { %2201 = vst [vmem:[#allocation2 + $0x80] sm:$0x1] %v2200_v47  ;;  %v3139_v58 = vrot.slane %v3137_v45, 5  ;;  %v3143_v62 = vrot.slane %v3141_v31, 4  ;;  %v11718_v3 = vadd.f32 %v11503_v39, %v538_v30  ;;  %v3149_v10 = vrot.slane %v3147_v24, 5  ;;  %10155 = vmatpush.bf16.msrb.mxu3 %v10151_v5 }
 0x1a4   :  { %v1991_v59 = vshrl.u32 %v1482_v33, 16  ;;  %v1994_v25 = vshll.u32 %v1482_v33, 16  ;;  %9923 = vmatmul.msk.bf16.gmra.mxu2 %vm7419_vm2, %v7392_v42  ;;  %v1305_v18 = vsel %vm10919_vm4, 0, %v1304_v55  ;;  %v10300_v19 = vpop.eup %10299  ;;  %v3135_v20 = vrot.slane %v3134_v27, 4  ;;  %v10048_v55 = vld [vmem:[#allocation2] sm:$0xff] }
 0x1a5   :  { %v3144_v12 = vor.u32 %v3143_v62, %v3139_v58  ;;  %v608_v61 = vmin.f32 %v11718_v3, 20.0  ;;  %1306 = vst [vmem:[#allocation2 + $0x18c] sm:$0x1] %v1305_v18  ;;  %v3388_v49 = vsel %vm11123_vm15, %v3386_v23, %v3387_v63  ;;  %v760_v28 = vadd.f32 1.0, %v10300_v19  ;;  %v1348_v63 = vld [vmem:[#allocation2 + $0x8c] sm:$0x1] }
 0x1a6   :  { %v1993_v38 = vrot.slane %v1991_v59, 7  ;;  %v6308_v6 = vunpack.c.l.b16 %v3388_v49  ;;  %v2552_v21 = vshrl.u32 %v2364_v8, 16  ;;  %v3140_v50 = vsel %vm10971_vm9, %v3135_v20, %v3139_v58  ;;  %v3584_v33 = vld [vmem:[#allocation2 + $0x30] sm:$0xf]  ;;  %v11752_v27 = vld [vmem:[#allocation2 + $0x34] sm:$0xf] }
 0x1a7   :  { %v3145_v29 = vrot.slane %v3144_v12, 4  ;;  %v732_v53 = vmul.f32 1.442695, %v608_v61  ;;  %v2555_v26 = vshll.u32 %v2364_v8, 16  ;;  %v824_v51 = vmul.f32 %v760_v28, %v760_v28  ;;  %v3632_v12 = vld [vmem:[#allocation2 + $0x168] sm:$0xf] }
 0x1a8   :  { %v1996_v35 = vor.u32 %v1994_v25, %v1993_v38  ;;  %v1998_v34 = vrot.slane %v1993_v38, 4  ;;  %v6195_v37 = vunpack.c.l.b16 %v3140_v50  ;;  %v6367_v52 = vpack.c.b16 %v6308_v6, %v6307_v7  ;;  %v10150_v50 = vld [vmem:[%s14725_s3 + $0x30] sm:$0xff] }
 0x1a9   :  { %v3150_v23 = vsel %vm10971_vm9, %v3145_v29, %v3149_v10  ;;  %10301 = vpow2.f32 %v732_v53  ;;  %v1349_v14 = vsel %vm10937_vm6, 0, %v1348_v63  ;;  %v9358_v46 = vadd.f32 -1.0, %v824_v51  ;;  %v11766_v53 = vpop.permute.xlu1 %6267  ;;  %8110 = vmatpush.bf16.msra.mxu1 %v10150_v50  ;;  %10156 = vmatpush.bf16.msrb.mxu3 %v10150_v50  ;;  %v6396_v63 = vpop.permute.xlu2 %6395  ;;  %v11798_v50 = vld [vmem:[#allocation2 + $0x38] sm:$0x1] }
 0x1aa   :  { %v1997_v41 = vsel %vm11052_vm12, %v1989_v40, %v1996_v35  ;;  %v2340_v47 = vsel %vm10919_vm4, %v1998_v34, %v2339_v32  ;;  %v1016_v44 = vadd.f32 1.0, %v824_v51  ;;  %1350 = vst [vmem:[#allocation2 + $0x8c] sm:$0x1] %v1349_v14  ;;  %v6196_v1 = vunpack.c.l.b16 %v3150_v23  ;;  %6403 = vrot.lane.b32.xlu0 %v6367_v52, %s10852_s7  ;;  %v12443_v0 = vld [vmem:[#allocation2 + $0x80] sm:$0x1] }
 0x1ab   :  { %2338 = vst.msk [vmem:[#allocation2 + $0x184] sm:$0xf] %vm1188_vm1, %v1997_v41  ;;  %v11746_v4 = vadd.f32 %v11503_v39, %v440_v54  ;;  %v2554_v45 = vrot.slane %v2552_v21, 4  ;;  %v2557_v40 = vrot.slane %v2555_v26, 5  ;;  %v2561_v31 = vshll.u32 %v11644_v9, 16  ;;  %v540_v54 = vpop.f32.mrf.mxu3 }
 0x1ac   :  { %2341 = vst [vmem:[#allocation2 + $0x188] sm:$0x1] %v2340_v47  ;;  %10303 = vrcp.f32 %v1016_v44  ;;  %v6231_v42 = vpack.c.b16 %v6196_v1, %v6195_v37  ;;  %v2565_v30 = vshrl.u32 %v11644_v9, 16  ;;  %v2571_v7 = vshll.u32 %v11646_v60, 16  ;;  %v1414_v44 = vld [vmem:[#allocation2 + $0x194] sm:$0x1] }
 0x1ad   :  { %v569_v24 = vmin.f32 %v11746_v4, 20.0  ;;  %v952_v58 = vmul.f32 %v9358_v46, %v11669_v15  ;;  %v7422_v39 = vsel %vm7419_vm2, %v10048_v55, %v6236_v56  ;;  %v2558_v62 = vor.u32 %v2557_v40, %v2554_v45  ;;  %14747 = vst [vmem:[#allocation11_spill] sm:$0xff] %v11766_v53 }
 0x1ae   :  { %6291 = vrot.lane.b32.xlu1 %v6231_v42, %s10849_s29  ;;  %v11757_v25 = vrot.slane %v2561_v31, 5  ;;  %v3747_v10 = vshrl.u32 %v3584_v33, 16  ;;  %v3750_v18 = vshll.u32 %v3584_v33, 16  ;;  %v2567_v20 = vrot.slane %v2565_v30, 4 }
 0x1af   :  { %v10302_v8 = vpop.eup %10301  ;;  %v654_v59 = vmul.f32 1.442695, %v569_v24  ;;  %v2573_v9 = vrot.slane %v2571_v7, 5  ;;  %v3756_v60 = vshll.u32 %v11752_v27, 16  ;;  %v4332_v15 = vshll.u32 %v11660_v13, 16 }
 0x1b0   :  { %v800_v19 = vadd.f32 1.0, %v10302_v8  ;;  %v4336_v61 = vshrl.u32 %v11660_v13, 16  ;;  %v2559_v49 = vrot.slane %v2558_v62, 4  ;;  %v4323_v6 = vshrl.u32 %v3632_v12, 16  ;;  %v2202_v62 = vld [vmem:[#allocation2 + $0x84] sm:$0xf] }
 0x1b1   :  { %10305 = vpow2.f32 %v654_v59  ;;  %v4326_v21 = vshll.u32 %v3632_v12, 16  ;;  %v4342_v32 = vshll.u32 %v11662_v48, 16  ;;  %v4334_v26 = vrot.slane %v4332_v15, 5 }
 0x1b2   :  { %v10304_v38 = vpop.eup %10303  ;;  %v864_v28 = vmul.f32 %v800_v19, %v800_v19  ;;  %v4338_v35 = vrot.slane %v4336_v61, 4  ;;  %v11768_v34 = vrot.slane %v3747_v10, 4  ;;  %v4325_v37 = vrot.slane %v4323_v6, 4 }
 0x1b3   :  { %v1144_v29 = vmul.f32 %v10304_v38, %v952_v58  ;;  %v4328_v5 = vrot.slane %v4326_v21, 5  ;;  %v4344_v52 = vrot.slane %v4342_v32, 5  ;;  %v3752_v14 = vrot.slane %v3750_v18, 5  ;;  %v6588_v32 = vpop.permute.xlu1 %6587 }
 0x1b4   :  { %v9398_v51 = vadd.f32 -1.0, %v864_v28  ;;  %v1056_v13 = vadd.f32 1.0, %v864_v28  ;;  %v4339_v48 = vor.u32 %v4338_v35, %v4334_v26  ;;  %v7517_v46 = vsel %vm282_vm0, %v7422_v39, %v6396_v63 }
 0x1b5   :  { %v1443_v23 = vpack.c.bf16 %v1144_v29, %v1144_v29  ;;  %v4329_v47 = vor.u32 %v4328_v5, %v4325_v37  ;;  %v2564_v45 = vsel %vm10971_vm9, %v2559_v49, %v11757_v25  ;;  %v2568_v40 = vor.u32 %v2567_v20, %v11757_v25  ;;  %v4808_v5 = vld [vmem:[#allocation2 + $0x64] sm:$0xf] }
 0x1b6   :  { %v992_v41 = vmul.f32 %v9398_v51, %v11718_v3  ;;  %10307 = vrcp.f32 %v1056_v13  ;;  %v4340_v56 = vrot.slane %v4339_v48, 4  ;;  %v11779_v3 = vld [vmem:[%s14724_s2] ss:$0 sm:$0xff]  ;;  %v1415_v39 = vsel %vm10937_vm6, 0, %v1414_v44  ;;  %v10149_v51 = vld [vmem:[%s14725_s3 + $0x28] sm:$0xff] }
 0x1b7   :  { %v10306_v55 = vpop.eup %10305  ;;  %v1660_v1 = vshrl.u32 %v1443_v23, 16  ;;  %v1663_v31 = vshll.u32 %v1443_v23, 16  ;;  %v4330_v42 = vrot.slane %v4329_v47, 4  ;;  %v11782_v24 = vadd.f32 %v11779_v3, %v540_v54  ;;  %1416 = vst [vmem:[#allocation2 + $0x194] sm:$0x1] %v1415_v39  ;;  %8111 = vmatpush.bf16.msra.mxu1 %v10149_v51  ;;  %10157 = vmatpush.bf16.msrb.mxu3 %v10149_v51 }
 0x1b8   :  { %v761_v33 = vadd.f32 1.0, %v10306_v55  ;;  %v4345_v7 = vsel %vm10971_vm9, %v4340_v56, %v4344_v52  ;;  %v2569_v58 = vrot.slane %v2568_v40, 4  ;;  %v6147_v61 = vunpack.c.l.b16 %v2564_v45  ;;  %v5665_v23 = vld [vmem:[#allocation2 + $0x60] sm:$0xe]  ;;  %v443_v52 = vpop.f32.mrf.mxu0  ;;  %v4865_v44 = vld [vmem:[#allocation2 + $0x68] sm:$0x1] }
 0x1b9   :  { %v11784_v30 = vrot.slane %v1660_v1, 7  ;;  %v4335_v59 = vsel %vm10971_vm9, %v4330_v42, %v4334_v26  ;;  %v6706_v25 = vunpack.c.l.b16 %v4345_v7  ;;  %v609_v10 = vmin.f32 %v11782_v24, 20.0  ;;  %v1241_v56 = vld [vmem:[#allocation2 + $0x90] sm:$0x1]  ;;  %v2342_v7 = vld [vmem:[#allocation2 + $0x18c] sm:$0xf] }
 0x1ba   :  { %v825_v8 = vmul.f32 %v761_v33, %v761_v33  ;;  %v6705_v19 = vunpack.c.l.b16 %v4335_v59  ;;  %v2574_v20 = vsel %vm10971_vm9, %v2569_v58, %v2573_v9  ;;  %v3753_v29 = vor.u32 %v3752_v14, %v11768_v34 }
 0x1bb   :  { %v1665_v18 = vor.u32 %v1663_v31, %v11784_v30  ;;  %v6148_v49 = vunpack.c.l.b16 %v2574_v20  ;;  %v734_v38 = vmul.f32 1.442695, %v609_v10  ;;  %v3758_v13 = vrot.slane %v3756_v60, 5 }
 0x1bc   :  { %v10308_v12 = vpop.eup %10307  ;;  %v1017_v15 = vadd.f32 1.0, %v825_v8  ;;  %v6742_v21 = vpack.c.b16 %v6706_v25, %v6705_v19  ;;  %v9359_v26 = vadd.f32 -1.0, %v825_v8  ;;  %v3760_v37 = vshrl.u32 %v11752_v27, 16  ;;  %v11828_v19 = vpop.permute.xlu2 %6747 }
 0x1bd   :  { %v2203_v28 = vsel %vm11029_vm11, %v1665_v18, %v2202_v62  ;;  %v1184_v6 = vmul.f32 %v10308_v12, %v992_v41  ;;  %v6207_v35 = vpack.c.b16 %v6148_v49, %v6147_v61  ;;  %v11809_v34 = vsel %vm7580_vm3, %v7517_v46, %v6588_v32  ;;  %v10115_v49 = vld [vmem:[#allocation2 + $0x3c] sm:$0xff] }
 0x1be   :  { %2204 = vst [vmem:[#allocation2 + $0x84] sm:$0xf] %v2203_v28  ;;  %10309 = vrcp.f32 %v1017_v15  ;;  %6801 = vrot.lane.b32.xlu1 %v6742_v21, %s10846_s23  ;;  %v3766_v63 = vshll.u32 %v11798_v50, 16  ;;  %v5831_v48 = vrot.slane %v4808_v5, 5  ;;  %v3754_v41 = vrot.slane %v3753_v29, 4  ;;  %v10148_v5 = vld [vmem:[%s14725_s3 + $0x20] sm:$0xff] }
 0x1bf   :  { %v1483_v9 = vpack.c.bf16 %v1184_v6, %v1184_v6  ;;  %10311 = vpow2.f32 %v734_v38  ;;  %6243 = vrot.lane.b32.xlu2 %v6207_v35, %s10849_s29  ;;  %v3762_v47 = vrot.slane %v3760_v37, 4  ;;  %v1666_v60 = vrot.slane %v11784_v30, 4  ;;  %v4445_v38 = vld [vmem:[#allocation2 + $0x30] sm:$0xe]  ;;  %v10139_v37 = vld [vmem:[#allocation2 + $0x174] sm:$0xff]  ;;  %8112 = vmatpush.bf16.msra.mxu1 %v10148_v5 }
 0x1c0   :  { %v953_v55 = vmul.f32 %v9359_v26, %v11746_v4  ;;  %v9472_v46 = vrot.slane %v5665_v23, 9  ;;  %v5833_v1 = vrot.slane %v5831_v48, 4  ;;  %v3759_v40 = vsel %vm10971_vm9, %v3754_v41, %v3758_v13  ;;  %v445_v41 = vpop.f32.mrf.mxu0  ;;  %10158 = vmatpush.bf16.msrb.mxu3 %v10148_v5 }
 0x1c1   :  { %v2000_v54 = vshrl.u32 %v1483_v9, 16  ;;  %v2003_v14 = vshll.u32 %v1483_v9, 16  ;;  %v3763_v31 = vor.u32 %v3762_v47, %v3758_v13  ;;  %v11820_v33 = vadd.f32 %v11779_v3, %v443_v52 }
 0x1c2   :  { %v3768_v58 = vrot.slane %v3766_v63, 5  ;;  %v5832_v39 = vsel %vm11123_vm15, %v9472_v46, %v5831_v48  ;;  %v5834_v62 = vrot.slane %v4865_v44, 5  ;;  %v1242_v4 = vsel %vm10919_vm4, 0, %v1241_v56  ;;  %v10033_v63 = vld [vmem:[#allocation3 + $0x98] sm:$0xff]  ;;  %v4850_v44 = vld [vmem:[#allocation2 + $0x178] sm:$0xf] }
 0x1c3   :  { %v11815_v45 = vrot.slane %v2000_v54, 7  ;;  %v3764_v10 = vrot.slane %v3763_v31, 4  ;;  %1243 = vst [vmem:[#allocation2 + $0x90] sm:$0x1] %v1242_v4  ;;  %v4593_v18 = vrot.slane %v11752_v27, 5  ;;  %v7335_v15 = vunpack.c.l.b16 %v5832_v39  ;;  %v10147_v31 = vld [vmem:[%s14725_s3 + $0x18] sm:$0xff]  ;;  %9325 = vmatmul.msk.bf16.gmra.mxu0 %vm282_vm0, %v10033_v63 }
 0x1c4   :  { %v10310_v42 = vpop.eup %10309  ;;  %v5835_v12 = vsel %vm11123_vm15, %v5833_v1, %v5834_v62  ;;  %v570_v61 = vmin.f32 %v11820_v33, 20.0  ;;  %v6657_v29 = vunpack.c.l.b16 %v3759_v40  ;;  %v9437_v23 = vrot.slane %v4445_v38, 9  ;;  %v2206_v40 = vld [vmem:[#allocation2 + $0x8c] sm:$0x1]  ;;  %8113 = vmatpush.bf16.msra.mxu1 %v10147_v31  ;;  %10159 = vmatpush.bf16.msrb.mxu3 %v10147_v31 }
 0x1c5   :  { %v10312_v8 = vpop.eup %10311  ;;  %v2005_v59 = vor.u32 %v2003_v14, %v11815_v45  ;;  %v1145_v25 = vmul.f32 %v10310_v42, %v953_v55  ;;  %v3769_v21 = vsel %vm10971_vm9, %v3764_v10, %v3768_v58  ;;  %v7336_v32 = vunpack.c.l.b16 %v5835_v12  ;;  %v4849_v14 = vld [vmem:[#allocation2 + $0x174] sm:$0xf]  ;;  %v4886_v55 = vld [vmem:[#allocation2 + $0x17c] sm:$0x1] }
 0x1c6   :  { %v801_v20 = vadd.f32 1.0, %v10312_v8  ;;  %v6658_v26 = vunpack.c.l.b16 %v3769_v21  ;;  %v656_v35 = vmul.f32 1.442695, %v570_v61  ;;  %7153 = vrot.lane.b32.xlu1 %v10139_v37, %s10851_s6  ;;  %v5540_v46 = vshrl.u32 %v4849_v14, 16 }
 0x1c7   :  { %v2343_v28 = vsel %vm11029_vm11, %v2005_v59, %v2342_v7  ;;  %v1444_v6 = vpack.c.bf16 %v1145_v25, %v1145_v25  ;;  %7105 = vrot.lane.b32.xlu2 %v10115_v49, %s10851_s6  ;;  %v7393_v13 = vpack.c.b16 %v7336_v32, %v7335_v15  ;;  %v11844_v1 = vadd.f32 %v11779_v3, %v445_v41  ;;  %v1351_v59 = vld [vmem:[#allocation2 + $0x98] sm:$0x1]  ;;  %v10084_v15 = vld [vmem:[#allocation2 + $0x3c] sm:$0xff]  ;;  %v11862_v49 = vpop.permute.xlu0 %6637  ;;  %v11867_v32 = vpop.permute.xlu2 %6957 }
 0x1c8   :  { %2344 = vst [vmem:[#allocation2 + $0x18c] sm:$0xf] %v2343_v28  ;;  %v865_v27 = vmul.f32 %v801_v20, %v801_v20  ;;  %v6718_v54 = vpack.c.b16 %v6658_v26, %v6657_v29  ;;  %10313 = vpow2.f32 %v656_v35  ;;  %v11848_v56 = vsel %vm11123_vm15, %v9437_v23, %v4593_v18 }
 0x1c9   :  { %v1668_v9 = vshrl.u32 %v1444_v6, 16  ;;  %v1671_v51 = vshll.u32 %v1444_v6, 16  ;;  %9924 = vmatmul.msk.bf16.gmra.mxu2 %vm7419_vm2, %v7393_v13  ;;  %v5543_v42 = vshll.u32 %v4849_v14, 16  ;;  %v5549_v7 = vshll.u32 %v4850_v44, 16  ;;  %14748 = vst [vmem:[#allocation12_spill] sm:$0xff] %v11862_v49 }
 0x1ca   :  { %v9399_v48 = vadd.f32 -1.0, %v865_v27  ;;  %v1057_v52 = vadd.f32 1.0, %v865_v27  ;;  %6753 = vrot.lane.b32.xlu0 %v6718_v54, %s10846_s23  ;;  %v4595_v58 = vrot.slane %v4593_v18, 4  ;;  %v5542_v4 = vrot.slane %v5540_v46, 4  ;;  %v11865_v6 = vld [vmem:[#allocation2 + $0x40] sm:$0xf] }
 0x1cb   :  { %v1670_v47 = vrot.slane %v1668_v9, 7  ;;  %v5553_v8 = vshrl.u32 %v4850_v44, 16  ;;  %v5545_v10 = vrot.slane %v5543_v42, 5  ;;  %v5551_v20 = vrot.slane %v5549_v7, 5  ;;  %14749 = vst [vmem:[#allocation13_spill] sm:$0xff] %v11867_v32  ;;  %v10146_v54 = vld [vmem:[%s14725_s3 + $0x10] sm:$0xff] }
 0x1cc   :  { %10315 = vrcp.f32 %v1057_v52  ;;  %v993_v25 = vmul.f32 %v9399_v48, %v11782_v24  ;;  %v5559_v12 = vshll.u32 %v4886_v55, 16  ;;  %v571_v28 = vmin.f32 %v11844_v1, 20.0  ;;  %v3228_v24 = vld [vmem:[#allocation2 + $0x3c] sm:$0xe]  ;;  %v11881_v14 = vld [vmem:[#allocation2 + $0x44] sm:$0x1]  ;;  %8114 = vmatpush.bf16.msra.mxu1 %v10146_v54  ;;  %10160 = vmatpush.bf16.msrb.mxu3 %v10146_v54 }
 0x1cd   :  { %v1673_v39 = vor.u32 %v1671_v51, %v1670_v47  ;;  %v1675_v62 = vrot.slane %v1670_v47, 4  ;;  %v5555_v38 = vrot.slane %v5553_v8, 4  ;;  %v5546_v30 = vor.u32 %v5545_v10, %v5542_v4  ;;  %v10145_v42 = vld [vmem:[%s14725_s3 + $0x8] sm:$0xff]  ;;  %v4799_v7 = vld [vmem:[#allocation2 + $0x30] sm:$0xf] }
 0x1ce   :  { %v10314_v21 = vpop.eup %10313  ;;  %v5561_v27 = vrot.slane %v5559_v12, 5  ;;  %v4596_v29 = vrot.slane %v11798_v50, 5  ;;  %v658_v9 = vmul.f32 1.442695, %v571_v28  ;;  %v6817_v51 = vunpack.c.l.b16 %v11848_v56  ;;  %v4810_v8 = vld [vmem:[#allocation2 + $0x70] sm:$0xf]  ;;  %v448_v12 = vpop.f32.mrf.mxu0 }
 0x1cf   :  { %v1674_v61 = vsel %vm11052_vm12, %v1666_v60, %v1673_v39  ;;  %v2207_v18 = vsel %vm10919_vm4, %v1675_v62, %v2206_v40  ;;  %v1352_v60 = vsel %vm10937_vm6, 0, %v1351_v59  ;;  %6595 = vrot.lane.b32.xlu2 %v10084_v15, %s10850_s30  ;;  %v762_v26 = vadd.f32 1.0, %v10314_v21  ;;  %v5666_v59 = vld [vmem:[#allocation2 + $0x6c] sm:$0xe]  ;;  %v1244_v15 = vld [vmem:[#allocation2 + $0x9c] sm:$0x1] }
 0x1d0   :  { %2205 = vst.msk [vmem:[#allocation2 + $0x88] sm:$0xf] %vm1188_vm1, %v1674_v61  ;;  %v5556_v35 = vor.u32 %v5555_v38, %v5551_v20  ;;  %v5547_v37 = vrot.slane %v5546_v30, 4  ;;  %v4597_v5 = vsel %vm11123_vm15, %v4595_v58, %v4596_v29  ;;  %v9407_v63 = vrot.slane %v3228_v24, 9  ;;  %v4866_v24 = vld [vmem:[#allocation2 + $0x74] sm:$0x1]  ;;  %8115 = vmatpush.bf16.msra.mxu1 %v10145_v42  ;;  %10161 = vmatpush.bf16.msrb.mxu3 %v10145_v42 }
 0x1d1   :  { %2208 = vst [vmem:[#allocation2 + $0x8c] sm:$0x1] %v2207_v18  ;;  %v3391_v23 = vrot.slane %v11865_v6, 5  ;;  %v826_v50 = vmul.f32 %v762_v26, %v762_v26  ;;  %10317 = vpow2.f32 %v658_v9  ;;  %v6818_v47 = vunpack.c.l.b16 %v4597_v5  ;;  %v2346_v26 = vld [vmem:[#allocation2 + $0x194] sm:$0x1] }
 0x1d2   :  { %v10316_v13 = vpop.eup %10315  ;;  %1353 = vst [vmem:[#allocation2 + $0x98] sm:$0x1] %v1352_v60  ;;  %v5557_v52 = vrot.slane %v5556_v35, 4  ;;  %v5552_v41 = vsel %vm10971_vm9, %v5547_v37, %v5551_v20  ;;  %v3394_v4 = vrot.slane %v11881_v14, 5  ;;  %v9473_v60 = vrot.slane %v5666_v59, 9 }
 0x1d3   :  { %v1185_v48 = vmul.f32 %v10316_v13, %v993_v25  ;;  %v11887_v44 = vsel %vm11123_vm15, %v9407_v63, %v3391_v23  ;;  %v3393_v55 = vrot.slane %v3391_v23, 4  ;;  %v9360_v56 = vadd.f32 -1.0, %v826_v50 }
 0x1d4   :  { %v1018_v40 = vadd.f32 1.0, %v826_v50  ;;  %v5562_v31 = vsel %vm10971_vm9, %v5557_v52, %v5561_v27  ;;  %v7217_v58 = vunpack.c.l.b16 %v5552_v41  ;;  %v6878_v62 = vpack.c.b16 %v6818_v47, %v6817_v51  ;;  %v11901_v27 = vpop.permute.xlu0 %6397 }
 0x1d5   :  { %v1484_v46 = vpack.c.bf16 %v1185_v48, %v1185_v48  ;;  %v7218_v39 = vunpack.c.l.b16 %v5562_v31  ;;  %v2006_v25 = vrot.slane %v11815_v45, 4  ;;  %v954_v61 = vmul.f32 %v9360_v56, %v11820_v33  ;;  %v11903_v33 = vpop.permute.xlu2 %6447 }
 0x1d6   :  { %10319 = vrcp.f32 %v1018_v40  ;;  %6913 = vrot.lane.b32.xlu1 %v6878_v62, %s10853_s12  ;;  %v3395_v38 = vsel %vm11123_vm15, %v3393_v55, %v3394_v4  ;;  %v6309_v28 = vunpack.c.l.b16 %v11887_v44  ;;  %v5838_v29 = vrot.slane %v4810_v8, 5  ;;  %v10696_v4 = vld [vmem:[#allocation2 + $0x34] sm:$0xf] }
 0x1d7   :  { %v2008_v10 = vshrl.u32 %v1484_v46, 16  ;;  %v2011_v20 = vshll.u32 %v1484_v46, 16  ;;  %v7254_v18 = vpack.c.b16 %v7218_v39, %v7217_v58  ;;  %v10318_v21 = vpop.eup %10317  ;;  %v6310_v45 = vunpack.c.l.b16 %v3395_v38 }
 0x1d8   :  { %v763_v35 = vadd.f32 1.0, %v10318_v21  ;;  %v11907_v9 = vadd.f32 %v11779_v3, %v448_v12  ;;  %v1245_v51 = vsel %vm10919_vm4, 0, %v1244_v15  ;;  %v4940_v13 = vshrl.u32 %v4799_v7, 16  ;;  %v2414_v12 = vld [vmem:[#allocation2 + $0x174] sm:$0xf]  ;;  %v11924_v15 = vpop.permute.xlu1 %7147 }
 0x1d9   :  { %v2010_v30 = vrot.slane %v2008_v10, 7  ;;  %7313 = vrot.lane.b32.xlu0 %v7254_v18, %s10854_s13  ;;  %v5839_v63 = vsel %vm11123_vm15, %v9473_v60, %v5838_v29  ;;  %v5841_v23 = vrot.slane %v4866_v24, 5  ;;  %1246 = vst [vmem:[#allocation2 + $0x9c] sm:$0x1] %v1245_v51  ;;  %v5840_v50 = vrot.slane %v5838_v29, 4 }
 0x1da   :  { %v827_v48 = vmul.f32 %v763_v35, %v763_v35  ;;  %v7337_v52 = vunpack.c.l.b16 %v5839_v63  ;;  %v572_v54 = vmin.f32 %v11907_v9, 20.0  ;;  %v4942_v55 = vrot.slane %v4940_v13, 4  ;;  %14750 = vst [vmem:[#allocation14_spill] sm:$0xff] %v11924_v15  ;;  %v2209_v63 = vld [vmem:[#allocation2 + $0x90] sm:$0xf] }
 0x1db   :  { %v2013_v37 = vor.u32 %v2011_v20, %v2010_v30  ;;  %v2015_v5 = vrot.slane %v2010_v30, 4  ;;  %v4943_v46 = vshll.u32 %v4799_v7, 16  ;;  %v5842_v42 = vsel %vm11123_vm15, %v5840_v50, %v5841_v23  ;;  %v10144_v7 = vld [vmem:[%s14725_s3] sm:$0xff]  ;;  %v10034_v20 = vld [vmem:[#allocation3 + $0xa0] sm:$0xff]  ;;  %v2449_v50 = vld [vmem:[#allocation2 + $0x17c] sm:$0x1] }
 0x1dc   :  { %v10320_v41 = vpop.eup %10319  ;;  %v9361_v40 = vadd.f32 -1.0, %v827_v48  ;;  %v1019_v31 = vadd.f32 1.0, %v827_v48  ;;  %v7338_v58 = vunpack.c.l.b16 %v5842_v42  ;;  %v660_v39 = vmul.f32 1.442695, %v572_v54  ;;  %8116 = vmatpush.bf16.msra.mxu1 %v10144_v7  ;;  %v6908_v29 = vpop.permute.xlu0 %6907  ;;  %9326 = vmatmul.msk.bf16.gmra.mxu0 %vm282_vm0, %v10034_v20 }
 0x1dd   :  { %v2014_v47 = vsel %vm11052_vm12, %v2006_v25, %v2013_v37  ;;  %v2347_v44 = vsel %vm10919_vm4, %v2015_v5, %v2346_v26  ;;  %v1146_v56 = vmul.f32 %v10320_v41, %v954_v61  ;;  %v4945_v62 = vrot.slane %v4943_v46, 5  ;;  %v11932_v13 = vpop.permute.xlu2 %6287  ;;  %v2415_v5 = vld [vmem:[#allocation2 + $0x178] sm:$0xf]  ;;  %10162 = vmatpush.bf16.msrb.mxu3 %v10144_v7  ;;  %v10698_v41 = vld [vmem:[%s14725_s3 + $0x40] sm:$0xff] }
 0x1de   :  { %2345 = vst.msk [vmem:[#allocation2 + $0x190] sm:$0xf] %vm1188_vm1, %v2014_v47  ;;  %v4949_v8 = vshll.u32 %v10696_v4, 16  ;;  %10321 = vrcp.f32 %v1019_v31  ;;  %v6368_v25 = vpack.c.b16 %v6310_v45, %v6309_v28  ;;  %v4953_v10 = vshrl.u32 %v10696_v4, 16  ;;  %v10697_v28 = vld [vmem:[#allocation2 + $0x38] sm:$0x1] }
 0x1df   :  { %2348 = vst [vmem:[#allocation2 + $0x194] sm:$0x1] %v2347_v44  ;;  %v1445_v59 = vpack.c.bf16 %v1146_v56, %v1146_v56  ;;  %v7394_v61 = vpack.c.b16 %v7338_v58, %v7337_v52  ;;  %10323 = vpow2.f32 %v660_v39  ;;  %v4946_v18 = vor.u32 %v4945_v62, %v4942_v55 }
 0x1e0   :  { %v4951_v38 = vrot.slane %v4949_v8, 5  ;;  %v955_v21 = vmul.f32 %v9361_v40, %v11844_v1  ;;  %v4955_v30 = vrot.slane %v4953_v10, 4  ;;  %v4959_v45 = vshll.u32 %v10697_v28, 16 }
 0x1e1   :  { %v1677_v24 = vshrl.u32 %v1445_v59, 16  ;;  %6405 = vrot.lane.b32.xlu0 %v6368_v25, %s10852_s7  ;;  %9925 = vmatmul.msk.bf16.gmra.mxu2 %vm7419_vm2, %v7394_v61  ;;  %v4947_v60 = vrot.slane %v4946_v18, 4  ;;  %v3152_v26 = vshrl.u32 %v2414_v12, 16  ;;  %v1680_v51 = vshll.u32 %v1445_v59, 16  ;;  %v4801_v61 = vld [vmem:[#allocation2 + $0x3c] sm:$0xf] }
 0x1e2   :  { %v4956_v1 = vor.u32 %v4955_v30, %v4951_v38  ;;  %v4961_v37 = vrot.slane %v4959_v45, 5  ;;  %v7647_v48 = vsel %vm7645_vm5, %v11809_v34, %v11828_v19  ;;  %v3155_v54 = vshll.u32 %v2414_v12, 16  ;;  %10163 = vmatpush.bf16.msra.mxu3 %v10698_v41  ;;  %v450_v41 = vpop.f32.mrf.mxu0 }
 0x1e3   :  { %v11930_v35 = vrot.slane %v1677_v24, 7  ;;  %v4952_v23 = vsel %vm10971_vm9, %v4947_v60, %v4951_v38  ;;  %v3154_v52 = vrot.slane %v3152_v26, 4  ;;  %v7712_v56 = vsel %vm7710_vm7, %v7647_v48, %v6908_v29  ;;  %v7100_v38 = vpop.permute.xlu1 %7099 }
 0x1e4   :  { %v10322_v47 = vpop.eup %10321  ;;  %v4957_v55 = vrot.slane %v4956_v1, 4  ;;  %v7167_v46 = vunpack.c.l.b16 %v4952_v23  ;;  %v3157_v42 = vrot.slane %v3155_v54, 5  ;;  %v3161_v58 = vshll.u32 %v2415_v5, 16  ;;  %v2213_v1 = vld [vmem:[#allocation2 + $0x98] sm:$0x1] }
 0x1e5   :  { %v1682_v44 = vor.u32 %v1680_v51, %v11930_v35  ;;  %v10324_v40 = vpop.eup %10323  ;;  %v1147_v31 = vmul.f32 %v10322_v47, %v955_v21  ;;  %v3165_v34 = vshrl.u32 %v2415_v5, 16  ;;  %v3171_v4 = vshll.u32 %v2449_v50, 16 }
 0x1e6   :  { %v764_v39 = vadd.f32 1.0, %v10324_v40  ;;  %v4962_v62 = vsel %vm10971_vm9, %v4957_v55, %v4961_v37  ;;  %v3158_v25 = vor.u32 %v3157_v42, %v3154_v52  ;;  %v3163_v10 = vrot.slane %v3161_v58, 5  ;;  %v7260_v37 = vpop.permute.xlu2 %7259  ;;  %v10699_v55 = vld [vmem:[#allocation2 + $0x40] sm:$0xf]  ;;  %v1354_v40 = vld [vmem:[#allocation2 + $0xa4] sm:$0x1] }
 0x1e7   :  { %v2210_v19 = vsel %vm11029_vm11, %v1682_v44, %v2209_v63  ;;  %v1446_v8 = vpack.c.bf16 %v1147_v31, %v1147_v31  ;;  %v7168_v59 = vunpack.c.l.b16 %v4962_v62  ;;  %v1683_v7 = vrot.slane %v11930_v35, 4  ;;  %v4446_v31 = vld [vmem:[#allocation2 + $0x3c] sm:$0xe]  ;;  %v11960_v62 = vld [vmem:[#allocation2 + $0x40] sm:$0xf] }
 0x1e8   :  { %2211 = vst [vmem:[#allocation2 + $0x90] sm:$0xf] %v2210_v19  ;;  %v828_v20 = vmul.f32 %v764_v39, %v764_v39  ;;  %v3167_v12 = vrot.slane %v3165_v34, 4  ;;  %v3159_v21 = vrot.slane %v3158_v25, 4  ;;  %v3173_v30 = vrot.slane %v3171_v4, 5 }
 0x1e9   :  { %v1685_v18 = vshrl.u32 %v1446_v8, 16  ;;  %v7229_v24 = vpack.c.b16 %v7168_v59, %v7167_v46  ;;  %v1688_v28 = vshll.u32 %v1446_v8, 16  ;;  %v7777_v29 = vsel %vm7775_vm8, %v7712_v56, %v7100_v38  ;;  %v10700_v19 = vld [vmem:[#allocation2 + $0x44] sm:$0x1]  ;;  %v2366_v4 = vld [vmem:[#allocation2 + $0x3c] sm:$0xf] }
 0x1ea   :  { %v1020_v45 = vadd.f32 1.0, %v828_v20  ;;  %v3168_v60 = vor.u32 %v3167_v12, %v3163_v10  ;;  %v3164_v35 = vsel %vm10971_vm9, %v3159_v21, %v3163_v10  ;;  %v4964_v51 = vshrl.u32 %v4801_v61, 16 }
 0x1eb   :  { %v1687_v26 = vrot.slane %v1685_v18, 7  ;;  %7263 = vrot.lane.b32.xlu1 %v7229_v24, %s10854_s13  ;;  %v9362_v5 = vadd.f32 -1.0, %v828_v20  ;;  %v6197_v23 = vunpack.c.l.b16 %v3164_v35  ;;  %v7842_v52 = vsel %vm7840_vm10, %v7777_v29, %v7260_v37  ;;  %v11969_v18 = vld [vmem:[#allocation2 + $0x44] sm:$0x1] }
 0x1ec   :  { %10325 = vrcp.f32 %v1020_v45  ;;  %v3169_v63 = vrot.slane %v3168_v60, 4  ;;  %v4966_v54 = vrot.slane %v4964_v51, 4  ;;  %8117 = vmatmul.bf16.vlgmr.msra.gmra.mxu1 %v7842_v52  ;;  %v4967_v44 = vshll.u32 %v4801_v61, 16 }
 0x1ed   :  { %v1690_v48 = vor.u32 %v1688_v28, %v1687_v26  ;;  %v1692_v50 = vrot.slane %v1687_v26, 4  ;;  %v4973_v46 = vshll.u32 %v10699_v55, 16  ;;  %v4977_v56 = vshrl.u32 %v10699_v55, 16 }
 0x1ee   :  { %v3174_v47 = vsel %vm10971_vm9, %v3169_v63, %v3173_v30  ;;  %v4983_v39 = vshll.u32 %v10700_v19, 16  ;;  %v4969_v8 = vrot.slane %v4967_v44, 5  ;;  %v11964_v10 = vadd.f32 %v11779_v3, %v450_v41  ;;  %v2216_v19 = vld [vmem:[#allocation2 + $0x9c] sm:$0xf] }
 0x1ef   :  { %v1691_v42 = vsel %vm11052_vm12, %v1683_v7, %v1690_v48  ;;  %v2214_v58 = vsel %vm10919_vm4, %v1692_v50, %v2213_v1  ;;  %v6198_v34 = vunpack.c.l.b16 %v3174_v47  ;;  %v4975_v59 = vrot.slane %v4973_v46, 5 }
 0x1f0   :  { %2212 = vst.msk [vmem:[#allocation2 + $0x94] sm:$0xf] %vm1188_vm1, %v1691_v42  ;;  %v4979_v25 = vrot.slane %v4977_v56, 4  ;;  %v956_v7 = vmul.f32 %v9362_v5, %v11907_v9  ;;  %v4985_v12 = vrot.slane %v4983_v39, 5  ;;  %v1355_v61 = vsel %vm10937_vm6, 0, %v1354_v40 }
 0x1f1   :  { %2215 = vst [vmem:[#allocation2 + $0x98] sm:$0x1] %v2214_v58  ;;  %v6232_v20 = vpack.c.b16 %v6198_v34, %v6197_v23  ;;  %v4970_v24 = vor.u32 %v4969_v8, %v4966_v54  ;;  %v573_v30 = vmin.f32 %v11964_v10, 20.0  ;;  %v4600_v28 = vrot.slane %v11960_v62, 5  ;;  %v3586_v40 = vld [vmem:[#allocation2 + $0x3c] sm:$0xf] }
 0x1f2   :  { %v10326_v38 = vpop.eup %10325  ;;  %v4980_v21 = vor.u32 %v4979_v25, %v4975_v59  ;;  %1356 = vst [vmem:[#allocation2 + $0xa4] sm:$0x1] %v1355_v61  ;;  %v9438_v60 = vrot.slane %v4446_v31, 9  ;;  %v2576_v9 = vshrl.u32 %v2366_v4, 16  ;;  %v2579_v29 = vshll.u32 %v2366_v4, 16 }
 0x1f3   :  { %v1148_v45 = vmul.f32 %v10326_v38, %v956_v7  ;;  %6293 = vrot.lane.b32.xlu2 %v6232_v20, %s10849_s29  ;;  %v4971_v26 = vrot.slane %v4970_v24, 4  ;;  %v662_v51 = vmul.f32 1.442695, %v573_v30  ;;  %v4603_v1 = vrot.slane %v11969_v18, 5 }
 0x1f4   :  { %v4981_v35 = vrot.slane %v4980_v21, 4  ;;  %v4601_v5 = vsel %vm11123_vm15, %v9438_v60, %v4600_v28  ;;  %v4602_v63 = vrot.slane %v4600_v28, 4  ;;  %v2578_v23 = vrot.slane %v2576_v9, 4  ;;  %v4812_v21 = vld [vmem:[#allocation2 + $0x7c] sm:$0xf] }
 0x1f5   :  { %v1447_v37 = vpack.c.bf16 %v1148_v45, %v1148_v45  ;;  %v4976_v48 = vsel %vm10971_vm9, %v4971_v26, %v4975_v59  ;;  %10327 = vpow2.f32 %v662_v51  ;;  %v2581_v52 = vrot.slane %v2579_v29, 5  ;;  %v5667_v60 = vld [vmem:[#allocation2 + $0x78] sm:$0xe] }
 0x1f6   :  { %v4986_v50 = vsel %vm10971_vm9, %v4981_v35, %v4985_v12  ;;  %v7169_v41 = vunpack.c.l.b16 %v4976_v48  ;;  %v4604_v44 = vsel %vm11123_vm15, %v4602_v63, %v4603_v1  ;;  %v6819_v55 = vunpack.c.l.b16 %v4601_v5 }
 0x1f7   :  { %v1694_v54 = vshrl.u32 %v1447_v37, 16  ;;  %v7170_v47 = vunpack.c.l.b16 %v4986_v50  ;;  %v2582_v46 = vor.u32 %v2581_v52, %v2578_v23  ;;  %v2585_v56 = vshll.u32 %v11865_v6, 16  ;;  %v4867_v50 = vld [vmem:[#allocation2 + $0x80] sm:$0x1] }
 0x1f8   :  { %v1697_v42 = vshll.u32 %v1447_v37, 16  ;;  %v6820_v34 = vunpack.c.l.b16 %v4604_v44  ;;  %v2589_v8 = vshrl.u32 %v11865_v6, 16  ;;  %v2595_v7 = vshll.u32 %v11881_v14, 16  ;;  %v453_v44 = vpop.f32.mrf.mxu0 }
 0x1f9   :  { %v11984_v31 = vrot.slane %v1694_v54, 7  ;;  %v7230_v58 = vpack.c.b16 %v7170_v47, %v7169_v41  ;;  %v2583_v39 = vrot.slane %v2582_v46, 4  ;;  %v2587_v4 = vrot.slane %v2585_v56, 5 }
 0x1fa   :  { %v6879_v25 = vpack.c.b16 %v6820_v34, %v6819_v55  ;;  %v3771_v20 = vshrl.u32 %v3586_v40, 16  ;;  %v2591_v38 = vrot.slane %v2589_v8, 4  ;;  %v3774_v24 = vshll.u32 %v3586_v40, 16  ;;  %v1247_v40 = vld [vmem:[#allocation2 + $0xa8] sm:$0x1] }
 0x1fb   :  { %v1699_v59 = vor.u32 %v1697_v42, %v11984_v31  ;;  %7265 = vrot.lane.b32.xlu0 %v7230_v58, %s10854_s13  ;;  %v10328_v12 = vpop.eup %10327  ;;  %v1700_v61 = vrot.slane %v11984_v31, 4  ;;  %v2588_v6 = vsel %vm10971_vm9, %v2583_v39, %v2587_v4  ;;  %v3780_v29 = vshll.u32 %v11960_v62, 16  ;;  %v10085_v34 = vld [vmem:[#allocation2 + $0x48] sm:$0xff] }
 0x1fc   :  { %v765_v28 = vadd.f32 1.0, %v10328_v12  ;;  %6915 = vrot.lane.b32.xlu1 %v6879_v25, %s10853_s12  ;;  %v3773_v45 = vrot.slane %v3771_v20, 4  ;;  %v2592_v14 = vor.u32 %v2591_v38, %v2587_v4  ;;  %v3776_v9 = vrot.slane %v3774_v24, 5  ;;  %v3229_v25 = vld [vmem:[#allocation2 + $0x48] sm:$0xe] }
 0x1fd   :  { %v2217_v30 = vsel %vm11029_vm11, %v1699_v59, %v2216_v19  ;;  %v3784_v26 = vshrl.u32 %v11960_v62, 16  ;;  %v2597_v51 = vrot.slane %v2595_v7, 5  ;;  %v3790_v1 = vshll.u32 %v11969_v18, 16  ;;  %v12008_v59 = vld [vmem:[#allocation2 + $0x4c] sm:$0xf]  ;;  %v12010_v7 = vpop.permute.xlu1 %6589 }
 0x1fe   :  { %2218 = vst [vmem:[#allocation2 + $0x9c] sm:$0xf] %v2217_v30  ;;  %v829_v35 = vmul.f32 %v765_v28, %v765_v28  ;;  %v5845_v37 = vrot.slane %v4812_v21, 5  ;;  %v2593_v5 = vrot.slane %v2592_v14, 4  ;;  %v3777_v63 = vor.u32 %v3776_v9, %v3773_v45  ;;  %v12018_v21 = vld [vmem:[#allocation2 + $0x50] sm:$0x1] }
 0x1ff   :  { %v3782_v23 = vrot.slane %v3780_v29, 5  ;;  %v3786_v48 = vrot.slane %v3784_v26, 4  ;;  %v6149_v41 = vunpack.c.l.b16 %v2588_v6  ;;  %v9474_v47 = vrot.slane %v5667_v60, 9  ;;  %v12020_v30 = vld [vmem:[#allocation2 + $0x48] sm:$0xf] }
 0x200   :  { %v9363_v52 = vadd.f32 -1.0, %v829_v35  ;;  %v1021_v54 = vadd.f32 1.0, %v829_v35  ;;  %v2598_v55 = vsel %vm10971_vm9, %v2593_v5, %v2597_v51  ;;  %v3778_v46 = vrot.slane %v3777_v63, 4 }
 0x201   :  { %v3787_v62 = vor.u32 %v3786_v48, %v3782_v23  ;;  %v5847_v56 = vrot.slane %v5845_v37, 4  ;;  %v6150_v18 = vunpack.c.l.b16 %v2598_v55  ;;  %v5846_v42 = vsel %vm11123_vm15, %v9474_v47, %v5845_v37  ;;  %v2416_v48 = vld [vmem:[#allocation2 + $0x180] sm:$0xf]  ;;  %v2450_v47 = vld [vmem:[#allocation2 + $0x188] sm:$0x1] }
 0x202   :  { %10329 = vrcp.f32 %v1021_v54  ;;  %v5848_v58 = vrot.slane %v4867_v50, 5  ;;  %v3783_v19 = vsel %vm10971_vm9, %v3778_v46, %v3782_v23  ;;  %v3792_v4 = vrot.slane %v3790_v1, 5  ;;  %v12028_v1 = vld [vmem:[#allocation2 + $0x4c] sm:$0xf]  ;;  %v10035_v23 = vld [vmem:[#allocation3 + $0xa8] sm:$0xff] }
 0x203   :  { %v3788_v39 = vrot.slane %v3787_v62, 4  ;;  %v12006_v8 = vadd.f32 %v11779_v3, %v453_v44  ;;  %v957_v20 = vmul.f32 %v9363_v52, %v11964_v10  ;;  %v6208_v12 = vpack.c.b16 %v6150_v18, %v6149_v41  ;;  %v2417_v50 = vld [vmem:[#allocation2 + $0x184] sm:$0xf]  ;;  %v1357_v46 = vld [vmem:[#allocation2 + $0xb0] sm:$0x1]  ;;  %v12035_v62 = vpop.permute.xlu2 %6749  ;;  %9327 = vmatmul.msk.bf16.gmra.mxu0 %vm282_vm0, %v10035_v23 }
 0x204   :  { %v5849_v38 = vsel %vm11123_vm15, %v5847_v56, %v5848_v58  ;;  %v1248_v24 = vsel %vm10919_vm4, 0, %v1247_v40  ;;  %6597 = vrot.lane.b32.xlu1 %v10085_v34, %s10850_s30  ;;  %v7339_v6 = vunpack.c.l.b16 %v5846_v42  ;;  %v6659_v60 = vunpack.c.l.b16 %v3783_v19  ;;  %v455_v42 = vpop.f32.mrf.mxu0  ;;  %v2220_v23 = vld [vmem:[#allocation2 + $0xa4] sm:$0x1] }
 0x205   :  { %v3793_v28 = vsel %vm10971_vm9, %v3788_v39, %v3792_v4  ;;  %v7340_v45 = vunpack.c.l.b16 %v5849_v38  ;;  %v574_v10 = vmin.f32 %v12006_v8, 20.0  ;;  %1249 = vst [vmem:[#allocation2 + $0xa8] sm:$0x1] %v1248_v24  ;;  %6245 = vrot.lane.b32.xlu2 %v6208_v12, %s10849_s29  ;;  %v9408_v9 = vrot.slane %v3229_v25, 9  ;;  %v10116_v25 = vld [vmem:[#allocation2 + $0x48] sm:$0xff] }
 0x206   :  { %v6660_v14 = vunpack.c.l.b16 %v3793_v28  ;;  %v3398_v29 = vrot.slane %v12008_v59, 5  ;;  %v3401_v51 = vrot.slane %v12018_v21, 5  ;;  %v3795_v37 = vshrl.u32 %v12020_v30, 16 }
 0x207   :  { %v7395_v26 = vpack.c.b16 %v7340_v45, %v7339_v6  ;;  %v664_v35 = vmul.f32 1.442695, %v574_v10  ;;  %v3798_v54 = vshll.u32 %v12020_v30, 16  ;;  %v3176_v44 = vshrl.u32 %v2416_v48, 16 }
 0x208   :  { %v10330_v5 = vpop.eup %10329  ;;  %v6719_v63 = vpack.c.b16 %v6660_v14, %v6659_v60  ;;  %v3399_v52 = vsel %vm11123_vm15, %v9408_v9, %v3398_v29  ;;  %v3179_v55 = vshll.u32 %v2416_v48, 16  ;;  %v3185_v56 = vshll.u32 %v2417_v50, 16  ;;  %v12046_v60 = vpop.permute.xlu1 %6797 }
 0x209   :  { %v1149_v41 = vmul.f32 %v10330_v5, %v957_v20  ;;  %9926 = vmatmul.msk.bf16.gmra.mxu2 %vm7419_vm2, %v7395_v26  ;;  %10331 = vpow2.f32 %v664_v35  ;;  %v3189_v40 = vshrl.u32 %v2417_v50, 16  ;;  %v3195_v18 = vshll.u32 %v2450_v47, 16  ;;  %14751 = vst [vmem:[#allocation15_spill] sm:$0xff] %v12046_v60 }
 0x20a   :  { %6755 = vrot.lane.b32.xlu0 %v6719_v63, %s10846_s23  ;;  %v3400_v58 = vrot.slane %v3398_v29, 4  ;;  %v3178_v19 = vrot.slane %v3176_v44, 4  ;;  %v3181_v39 = vrot.slane %v3179_v55, 5  ;;  %v12040_v4 = vadd.f32 %v11779_v3, %v455_v42  ;;  %v3647_v42 = vld [vmem:[#allocation2 + $0x50] sm:$0x1] }
 0x20b   :  { %v1448_v34 = vpack.c.bf16 %v1149_v41, %v1149_v41  ;;  %v3187_v20 = vrot.slane %v3185_v56, 5  ;;  %v3191_v12 = vrot.slane %v3189_v40, 4  ;;  %v1358_v38 = vsel %vm10937_vm6, 0, %v1357_v46  ;;  %v12051_v46 = vpop.permute.xlu0 %6237 }
 0x20c   :  { %v3804_v24 = vshll.u32 %v12028_v1, 16  ;;  %v3182_v28 = vor.u32 %v3181_v39, %v3178_v19  ;;  %v3197_v6 = vrot.slane %v3195_v18, 5  ;;  %v575_v45 = vmin.f32 %v12040_v4, 20.0  ;;  %1359 = vst [vmem:[#allocation2 + $0xb0] sm:$0x1] %v1358_v38  ;;  %v12064_v19 = vpop.permute.xlu2 %6959 }
 0x20d   :  { %v1702_v30 = vshrl.u32 %v1448_v34, 16  ;;  %v1705_v10 = vshll.u32 %v1448_v34, 16  ;;  %7107 = vrot.lane.b32.xlu2 %v10116_v25, %s10851_s6  ;;  %v3192_v3 = vor.u32 %v3191_v12, %v3187_v20  ;;  %v3402_v14 = vsel %vm11123_vm15, %v3400_v58, %v3401_v51  ;;  %v4447_v34 = vld [vmem:[#allocation2 + $0x48] sm:$0xe] }
 0x20e   :  { %v6311_v9 = vunpack.c.l.b16 %v3399_v52  ;;  %v3183_v35 = vrot.slane %v3182_v28, 4  ;;  %v666_v5 = vmul.f32 1.442695, %v575_v45  ;;  %v6312_v63 = vunpack.c.l.b16 %v3402_v14 }
 0x20f   :  { %v10332_v29 = vpop.eup %10331  ;;  %v1704_v26 = vrot.slane %v1702_v30, 7  ;;  %v3193_v50 = vrot.slane %v3192_v3, 4  ;;  %v3797_v41 = vrot.slane %v3795_v37, 4  ;;  %v3800_v47 = vrot.slane %v3798_v54, 5  ;;  %v5668_v30 = vld [vmem:[#allocation2 + $0x84] sm:$0xe] }
 0x210   :  { %v766_v48 = vadd.f32 1.0, %v10332_v29  ;;  %v3188_v56 = vsel %vm10971_vm9, %v3183_v35, %v3187_v20  ;;  %10333 = vpow2.f32 %v666_v5  ;;  %v6369_v18 = vpack.c.b16 %v6312_v63, %v6311_v9  ;;  %v458_v35 = vpop.f32.mrf.mxu0  ;;  %v12071_v5 = vpop.permute.xlu1 %7149 }
 0x211   :  { %v1707_v44 = vor.u32 %v1705_v10, %v1704_v26  ;;  %v1709_v55 = vrot.slane %v1704_v26, 4  ;;  %v3198_v52 = vsel %vm10971_vm9, %v3193_v50, %v3197_v6  ;;  %v6199_v40 = vunpack.c.l.b16 %v3188_v56  ;;  %v4814_v10 = vld [vmem:[#allocation2 + $0x88] sm:$0xf]  ;;  %v4868_v26 = vld [vmem:[#allocation2 + $0x8c] sm:$0x1]  ;;  %14752 = vst [vmem:[#allocation16_spill] sm:$0xff] %v12071_v5 }
 0x212   :  { %v830_v51 = vmul.f32 %v766_v48, %v766_v48  ;;  %v6200_v58 = vunpack.c.l.b16 %v3198_v52  ;;  %6407 = vrot.lane.b32.xlu1 %v6369_v18, %s10852_s7  ;;  %v3801_v20 = vor.u32 %v3800_v47, %v3797_v41  ;;  %v3806_v12 = vrot.slane %v3804_v24, 5 }
 0x213   :  { %v1708_v37 = vsel %vm11052_vm12, %v1700_v61, %v1707_v44  ;;  %v2221_v54 = vsel %vm10919_vm4, %v1709_v55, %v2220_v23  ;;  %v3808_v38 = vshrl.u32 %v12028_v1, 16  ;;  %v3814_v61 = vshll.u32 %v3647_v42, 16  ;;  %v12087_v18 = vpop.permute.xlu0 %7307 }
 0x214   :  { %2219 = vst.msk [vmem:[#allocation2 + $0xa0] sm:$0xf] %vm1188_vm1, %v1708_v37  ;;  %v9364_v39 = vadd.f32 -1.0, %v830_v51  ;;  %v1022_v25 = vadd.f32 1.0, %v830_v51  ;;  %v6233_v31 = vpack.c.b16 %v6200_v58, %v6199_v40  ;;  %v9439_v6 = vrot.slane %v4447_v34, 9  ;;  %v10117_v40 = vld [vmem:[#allocation2 + $0x54] sm:$0xff] }
 0x215   :  { %2222 = vst [vmem:[#allocation2 + $0xa4] sm:$0x1] %v2221_v54  ;;  %v4607_v45 = vrot.slane %v12028_v1, 5  ;;  %v3802_v14 = vrot.slane %v3801_v20, 4  ;;  %v3810_v9 = vrot.slane %v3808_v38, 4  ;;  %v3816_v29 = vrot.slane %v3814_v61, 5 }
 0x216   :  { %v958_v28 = vmul.f32 %v9364_v39, %v12006_v8  ;;  %10335 = vrcp.f32 %v1022_v25  ;;  %v10334_v3 = vpop.eup %10333  ;;  %6295 = vrot.lane.b32.xlu0 %v6233_v31, %s10849_s29  ;;  %v4610_v24 = vrot.slane %v3647_v42, 5  ;;  %v9475_v48 = vrot.slane %v5668_v30, 9  ;;  %v12082_v51 = vld [vmem:[%s14724_s2] ss:$0 sm:$0xff]  ;;  %14753 = vst [vmem:[#allocation17_spill] sm:$0xff] %v12087_v18  ;;  %v10049_v38 = vld [vmem:[#allocation2 + $0xc] sm:$0xff] }
 0x217   :  { %v767_v63 = vadd.f32 1.0, %v10334_v3  ;;  %v4608_v8 = vsel %vm11123_vm15, %v9439_v6, %v4607_v45  ;;  %v4609_v23 = vrot.slane %v4607_v45, 4  ;;  %v3807_v1 = vsel %vm10971_vm9, %v3802_v14, %v3806_v12  ;;  %v1250_v31 = vld [vmem:[#allocation2 + $0xb4] sm:$0x1]  ;;  %v4448_v3 = vld [vmem:[#allocation2 + $0x54] sm:$0xe]  ;;  %v12099_v14 = vpop.permute.xlu2 %6449 }
 0x218   :  { %v3811_v50 = vor.u32 %v3810_v9, %v3806_v12  ;;  %v6821_v41 = vunpack.c.l.b16 %v4608_v8  ;;  %v5852_v47 = vrot.slane %v4814_v10, 5  ;;  %v5855_v56 = vrot.slane %v4868_v26, 5  ;;  %v12097_v10 = vld [vmem:[#allocation2 + $0x58] sm:$0xf] }
 0x219   :  { %v831_v44 = vmul.f32 %v767_v63, %v767_v63  ;;  %v4611_v55 = vsel %vm11123_vm15, %v4609_v23, %v4610_v24  ;;  %v12085_v52 = vadd.f32 %v12082_v51, %v458_v35  ;;  %v6661_v20 = vunpack.c.l.b16 %v3807_v1  ;;  %v2368_v35 = vld [vmem:[#allocation2 + $0x48] sm:$0xf]  ;;  %v12106_v23 = vld [vmem:[#allocation2 + $0x5c] sm:$0x1] }
 0x21a   :  { %v3812_v42 = vrot.slane %v3811_v50, 4  ;;  %v6822_v37 = vunpack.c.l.b16 %v4611_v55  ;;  %v5853_v54 = vsel %vm11123_vm15, %v9475_v48, %v5852_v47  ;;  %v5854_v58 = vrot.slane %v5852_v47, 4  ;;  %7109 = vrot.lane.b32.xlu1 %v10117_v40, %s10851_s6  ;;  %v10036_v50 = vld [vmem:[#allocation3 + $0xb0] sm:$0xff] }
 0x21b   :  { %v9365_v39 = vadd.f32 -1.0, %v831_v44  ;;  %v1023_v25 = vadd.f32 1.0, %v831_v44  ;;  %v576_v12 = vmin.f32 %v12085_v52, 20.0  ;;  %v7341_v24 = vunpack.c.l.b16 %v5853_v54  ;;  %9328 = vmatmul.msk.bf16.gmra.mxu0 %vm282_vm0, %v10036_v50 }
 0x21c   :  { %v10336_v34 = vpop.eup %10335  ;;  %v3817_v30 = vsel %vm10971_vm9, %v3812_v42, %v3816_v29  ;;  %v6880_v6 = vpack.c.b16 %v6822_v37, %v6821_v41  ;;  %v5856_v45 = vsel %vm11123_vm15, %v5854_v58, %v5855_v56  ;;  %v1251_v8 = vsel %vm10919_vm4, 0, %v1250_v31  ;;  %v12112_v56 = vpop.permute.xlu1 %6399 }
 0x21d   :  { %v1150_v61 = vmul.f32 %v10336_v34, %v958_v28  ;;  %10337 = vrcp.f32 %v1023_v25  ;;  %v6662_v9 = vunpack.c.l.b16 %v3817_v30  ;;  %v7342_v26 = vunpack.c.l.b16 %v5856_v45  ;;  %1252 = vst [vmem:[#allocation2 + $0xb4] sm:$0x1] %v1251_v8  ;;  %v460_v45 = vpop.f32.mrf.mxu0 }
 0x21e   :  { %v7425_v28 = vsel %vm7419_vm2, %v10049_v38, %v12051_v46  ;;  %6917 = vrot.lane.b32.xlu0 %v6880_v6, %s10853_s12  ;;  %v668_v29 = vmul.f32 1.442695, %v576_v12  ;;  %v9440_v41 = vrot.slane %v4448_v3, 9  ;;  %v4614_v47 = vrot.slane %v12097_v10, 5 }
 0x21f   :  { %v1449_v63 = vpack.c.bf16 %v1150_v61, %v1150_v61  ;;  %v6720_v48 = vpack.c.b16 %v6662_v9, %v6661_v20  ;;  %v7396_v1 = vpack.c.b16 %v7342_v26, %v7341_v24  ;;  %v7519_v46 = vsel %vm282_vm0, %v7425_v28, %v11901_v27  ;;  %v12125_v61 = vpop.permute.xlu0 %6639 }
 0x220   :  { %10339 = vpow2.f32 %v668_v29  ;;  %v959_v55 = vmul.f32 %v9365_v39, %v12040_v4  ;;  %v4615_v40 = vsel %vm11123_vm15, %v9440_v41, %v4614_v47  ;;  %v4616_v42 = vrot.slane %v4614_v47, 4  ;;  %v2223_v4 = vld [vmem:[#allocation2 + $0xa8] sm:$0xf]  ;;  %v4805_v47 = vld [vmem:[#allocation2 + $0x54] sm:$0xf] }
 0x221   :  { %v1711_v44 = vshrl.u32 %v1449_v63, 16  ;;  %6757 = vrot.lane.b32.xlu2 %v6720_v48, %s10846_s23  ;;  %9927 = vmatmul.msk.bf16.gmra.mxu2 %vm7419_vm2, %v7396_v1  ;;  %v1714_v54 = vshll.u32 %v1449_v63, 16  ;;  %v4617_v58 = vrot.slane %v12106_v23, 5  ;;  %v2600_v27 = vshrl.u32 %v2368_v35, 16  ;;  %v12134_v48 = vpop.permute.xlu2 %6401 }
 0x222   :  { %v6823_v39 = vunpack.c.l.b16 %v4615_v40  ;;  %v2603_v25 = vshll.u32 %v2368_v35, 16  ;;  %v2609_v20 = vshll.u32 %v12008_v59, 16  ;;  %v2613_v12 = vshrl.u32 %v12008_v59, 16  ;;  %v1360_v35 = vld [vmem:[#allocation2 + $0xbc] sm:$0x1] }
 0x223   :  { %v12118_v37 = vrot.slane %v1711_v44, 7  ;;  %v10338_v34 = vpop.eup %10337  ;;  %v4618_v30 = vsel %vm11123_vm15, %v4616_v42, %v4617_v58  ;;  %v2619_v6 = vshll.u32 %v12018_v21, 16  ;;  %v2602_v9 = vrot.slane %v2600_v27, 4 }
 0x224   :  { %v1151_v38 = vmul.f32 %v10338_v34, %v959_v55  ;;  %v6824_v3 = vunpack.c.l.b16 %v4618_v30  ;;  %v2605_v24 = vrot.slane %v2603_v25, 5  ;;  %v2611_v26 = vrot.slane %v2609_v20, 5  ;;  %v2227_v25 = vld [vmem:[#allocation2 + $0xb0] sm:$0x1] }
 0x225   :  { %v1716_v31 = vor.u32 %v1714_v54, %v12118_v37  ;;  %v7584_v29 = vsel %vm7580_vm3, %v7519_v46, %v12010_v7  ;;  %v2615_v8 = vrot.slane %v2613_v12, 4  ;;  %v12137_v41 = vadd.f32 %v12082_v51, %v460_v45 }
 0x226   :  { %v10340_v28 = vpop.eup %10339  ;;  %v1450_v63 = vpack.c.bf16 %v1151_v38, %v1151_v38  ;;  %v6881_v21 = vpack.c.b16 %v6824_v3, %v6823_v39  ;;  %v2606_v50 = vor.u32 %v2605_v24, %v2602_v9  ;;  %v1717_v44 = vrot.slane %v12118_v37, 4  ;;  %v12144_v37 = vpop.permute.xlu1 %6239  ;;  %v10702_v3 = vld [vmem:[#allocation2 + $0x58] sm:$0xf] }
 0x227   :  { %v2224_v59 = vsel %vm11029_vm11, %v1716_v31, %v2223_v4  ;;  %v768_v1 = vadd.f32 1.0, %v10340_v28  ;;  %v2616_v40 = vor.u32 %v2615_v8, %v2611_v26  ;;  %v1361_v42 = vsel %vm10937_vm6, 0, %v1360_v35  ;;  %v2418_v8 = vld [vmem:[#allocation2 + $0x18c] sm:$0xf] }
 0x228   :  { %2225 = vst [vmem:[#allocation2 + $0xa8] sm:$0xf] %v2224_v59  ;;  %v1719_v55 = vshrl.u32 %v1450_v63, 16  ;;  %v2607_v7 = vrot.slane %v2606_v50, 4  ;;  %v2621_v46 = vrot.slane %v2619_v6, 5  ;;  %v577_v58 = vmin.f32 %v12137_v41, 20.0 }
 0x229   :  { %v832_v54 = vmul.f32 %v768_v1, %v768_v1  ;;  %6919 = vrot.lane.b32.xlu2 %v6881_v21, %s10853_s12  ;;  %1362 = vst [vmem:[#allocation2 + $0xbc] sm:$0x1] %v1361_v42  ;;  %v1722_v34 = vshll.u32 %v1450_v63, 16  ;;  %v2617_v4 = vrot.slane %v2616_v40, 4  ;;  %v5012_v39 = vshrl.u32 %v4805_v47, 16 }
 0x22a   :  { %v1721_v27 = vrot.slane %v1719_v55, 7  ;;  %v2612_v12 = vsel %vm10971_vm9, %v2607_v7, %v2611_v26  ;;  %v670_v31 = vmul.f32 1.442695, %v577_v58  ;;  %v5015_v38 = vshll.u32 %v4805_v47, 16  ;;  %v6910_v26 = vpop.permute.xlu0 %6909  ;;  %v2419_v1 = vld [vmem:[#allocation2 + $0x190] sm:$0xf] }
 0x22b   :  { %v1024_v20 = vadd.f32 1.0, %v832_v54  ;;  %v2622_v6 = vsel %vm10971_vm9, %v2617_v4, %v2621_v46  ;;  %v5021_v9 = vshll.u32 %v10702_v3, 16  ;;  %v9366_v24 = vadd.f32 -1.0, %v832_v54  ;;  %v2451_v21 = vld [vmem:[#allocation2 + $0x194] sm:$0x1] }
 0x22c   :  { %v1724_v30 = vor.u32 %v1722_v34, %v1721_v27  ;;  %v1726_v45 = vrot.slane %v1721_v27, 4  ;;  %v6151_v35 = vunpack.c.l.b16 %v2612_v12  ;;  %v6152_v28 = vunpack.c.l.b16 %v2622_v6  ;;  %v4803_v50 = vld [vmem:[#allocation2 + $0x48] sm:$0xf]  ;;  %v12158_v27 = vpop.permute.xlu2 %6911 }
 0x22d   :  { %10341 = vrcp.f32 %v1024_v20  ;;  %v3200_v55 = vshrl.u32 %v2418_v8, 16  ;;  %v3203_v40 = vshll.u32 %v2418_v8, 16  ;;  %v3209_v42 = vshll.u32 %v2419_v1, 16 }
 0x22e   :  { %v1725_v59 = vsel %vm11052_vm12, %v1717_v44, %v1724_v30  ;;  %v2228_v63 = vsel %vm10919_vm4, %v1726_v45, %v2227_v25  ;;  %10343 = vpow2.f32 %v670_v31  ;;  %v6209_v47 = vpack.c.b16 %v6152_v28, %v6151_v35 }
 0x22f   :  { %2226 = vst.msk [vmem:[#allocation2 + $0xac] sm:$0xf] %vm1188_vm1, %v1725_v59  ;;  %v7649_v54 = vsel %vm7645_vm5, %v7584_v29, %v12035_v62  ;;  %v3213_v44 = vshrl.u32 %v2419_v1, 16  ;;  %v3219_v7 = vshll.u32 %v2451_v21, 16  ;;  %v5014_v46 = vrot.slane %v5012_v39, 4  ;;  %v7102_v21 = vpop.permute.xlu1 %7101 }
 0x230   :  { %2229 = vst [vmem:[#allocation2 + $0xb0] sm:$0x1] %v2228_v63  ;;  %v7714_v58 = vsel %vm7710_vm7, %v7649_v54, %v6910_v26  ;;  %6247 = vrot.lane.b32.xlu0 %v6209_v47, %s10849_s29  ;;  %v3202_v34 = vrot.slane %v3200_v55, 4  ;;  %v3205_v4 = vrot.slane %v3203_v40, 5  ;;  %v3211_v25 = vrot.slane %v3209_v42, 5 }
 0x231   :  { %v960_v20 = vmul.f32 %v9366_v24, %v12085_v52  ;;  %v3215_v12 = vrot.slane %v3213_v44, 4  ;;  %v3221_v31 = vrot.slane %v3219_v7, 5  ;;  %v5017_v30 = vrot.slane %v5015_v38, 5  ;;  %v10703_v55 = vld [vmem:[#allocation2 + $0x5c] sm:$0x1] }
 0x232   :  { %v3206_v6 = vor.u32 %v3205_v4, %v3202_v34  ;;  %v5023_v62 = vrot.slane %v5021_v9, 5  ;;  %v5025_v29 = vshrl.u32 %v10702_v3, 16  ;;  %v4988_v35 = vshrl.u32 %v4803_v50, 16 }
 0x233   :  { %v10342_v45 = vpop.eup %10341  ;;  %v3216_v59 = vor.u32 %v3215_v12, %v3211_v25  ;;  %v5018_v63 = vor.u32 %v5017_v30, %v5014_v46  ;;  %v4991_v26 = vshll.u32 %v4803_v50, 16  ;;  %v5031_v40 = vshll.u32 %v10703_v55, 16 }
 0x234   :  { %v10344_v39 = vpop.eup %10343  ;;  %v1152_v28 = vmul.f32 %v10342_v45, %v960_v20  ;;  %v3207_v1 = vrot.slane %v3206_v6, 4  ;;  %v5027_v47 = vrot.slane %v5025_v29, 4  ;;  %v4990_v38 = vrot.slane %v4988_v35, 4  ;;  %v2230_v29 = vld [vmem:[#allocation2 + $0xb4] sm:$0xf] }
 0x235   :  { %v769_v8 = vadd.f32 1.0, %v10344_v39  ;;  %v3217_v24 = vrot.slane %v3216_v59, 4  ;;  %v5019_v42 = vrot.slane %v5018_v63, 4  ;;  %v4993_v44 = vrot.slane %v4991_v26, 5  ;;  %v7262_v59 = vpop.permute.xlu2 %7261  ;;  %v4816_v26 = vld [vmem:[#allocation2 + $0x94] sm:$0xf] }
 0x236   :  { %v1451_v52 = vpack.c.bf16 %v1152_v28, %v1152_v28  ;;  %v3212_v3 = vsel %vm10971_vm9, %v3207_v1, %v3211_v25  ;;  %v5028_v9 = vor.u32 %v5027_v47, %v5023_v62  ;;  %v7779_v34 = vsel %vm7775_vm8, %v7714_v58, %v7102_v21  ;;  %v5669_v58 = vld [vmem:[#allocation2 + $0x90] sm:$0xe] }
 0x237   :  { %v833_v54 = vmul.f32 %v769_v8, %v769_v8  ;;  %v3222_v50 = vsel %vm10971_vm9, %v3217_v24, %v3221_v31  ;;  %v6201_v46 = vunpack.c.l.b16 %v3212_v3  ;;  %v5024_v12 = vsel %vm10971_vm9, %v5019_v42, %v5023_v62  ;;  %v10704_v31 = vld [vmem:[#allocation2 + $0x4c] sm:$0xf]  ;;  %v4869_v42 = vld [vmem:[#allocation2 + $0x98] sm:$0x1] }
 0x238   :  { %v1728_v7 = vshrl.u32 %v1451_v52, 16  ;;  %v6202_v20 = vunpack.c.l.b16 %v3222_v50  ;;  %v5033_v30 = vrot.slane %v5031_v40, 5  ;;  %v1731_v6 = vshll.u32 %v1451_v52, 16  ;;  %v10705_v52 = vld [vmem:[#allocation2 + $0x50] sm:$0x1] }
 0x239   :  { %v1025_v4 = vadd.f32 1.0, %v833_v54  ;;  %v5029_v25 = vrot.slane %v5028_v9, 4  ;;  %v4994_v35 = vor.u32 %v4993_v44, %v4990_v38  ;;  %v9367_v39 = vadd.f32 -1.0, %v833_v54  ;;  %v463_v44 = vpop.f32.mrf.mxu0 }
 0x23a   :  { %v12169_v45 = vrot.slane %v1728_v7, 7  ;;  %v6234_v28 = vpack.c.b16 %v6202_v20, %v6201_v46  ;;  %v4997_v63 = vshll.u32 %v10704_v31, 16  ;;  %v7173_v1 = vunpack.c.l.b16 %v5024_v12  ;;  %v1253_v7 = vld [vmem:[#allocation2 + $0xc0] sm:$0x1]  ;;  %v2370_v12 = vld [vmem:[#allocation2 + $0x54] sm:$0xf] }
 0x23b   :  { %10345 = vrcp.f32 %v1025_v4  ;;  %v5034_v62 = vsel %vm10971_vm9, %v5029_v25, %v5033_v30  ;;  %v4995_v21 = vrot.slane %v4994_v35, 4  ;;  %v5001_v40 = vshrl.u32 %v10704_v31, 16  ;;  %v12183_v25 = vld [vmem:[#allocation2 + $0x58] sm:$0xf] }
 0x23c   :  { %v1733_v8 = vor.u32 %v1731_v6, %v12169_v45  ;;  %6297 = vrot.lane.b32.xlu1 %v6234_v28, %s10849_s29  ;;  %v7174_v47 = vunpack.c.l.b16 %v5034_v62  ;;  %v4999_v55 = vrot.slane %v4997_v63, 5  ;;  %v5007_v24 = vshll.u32 %v10705_v52, 16 }
 0x23d   :  { %v7845_v54 = vsel %vm7840_vm10, %v7779_v34, %v7262_v59  ;;  %v9476_v3 = vrot.slane %v5669_v58, 9  ;;  %v5859_v9 = vrot.slane %v4816_v26, 5  ;;  %v961_v50 = vmul.f32 %v9367_v39, %v12137_v41 }
 0x23e   :  { %v2231_v38 = vsel %vm11029_vm11, %v1733_v8, %v2230_v29  ;;  %v7232_v46 = vpack.c.b16 %v7174_v47, %v7173_v1  ;;  %v5000_v4 = vsel %vm10971_vm9, %v4995_v21, %v4999_v55  ;;  %v5003_v20 = vrot.slane %v5001_v40, 4  ;;  %8122 = vmatmul.bf16.gmra.mxu1 %v7845_v54 }
 0x23f   :  { %2232 = vst [vmem:[#allocation2 + $0xb4] sm:$0xf] %v2231_v38  ;;  %v5009_v30 = vrot.slane %v5007_v24, 5  ;;  %v5860_v6 = vsel %vm11123_vm15, %v9476_v3, %v5859_v9  ;;  %v5861_v29 = vrot.slane %v5859_v9, 4  ;;  %v5862_v34 = vrot.slane %v4869_v42, 5 }
 0x240   :  { %7269 = vrot.lane.b32.xlu2 %v7232_v46, %s10854_s13  ;;  %v5004_v28 = vor.u32 %v5003_v20, %v4999_v55  ;;  %v7343_v41 = vunpack.c.l.b16 %v5860_v6  ;;  %v12187_v39 = vadd.f32 %v12082_v51, %v463_v44  ;;  %v1254_v59 = vsel %vm10919_vm4, 0, %v1253_v7  ;;  %v12195_v55 = vld [vmem:[#allocation2 + $0x5c] sm:$0x1]  ;;  %v10037_v46 = vld [vmem:[#allocation3 + $0xb8] sm:$0xff] }
 0x241   :  { %v10346_v35 = vpop.eup %10345  ;;  %v5863_v63 = vsel %vm11123_vm15, %v5861_v29, %v5862_v34  ;;  %1255 = vst [vmem:[#allocation2 + $0xc0] sm:$0x1] %v1254_v59  ;;  %v2624_v26 = vshrl.u32 %v2370_v12, 16  ;;  %v2627_v58 = vshll.u32 %v2370_v12, 16  ;;  %v2633_v21 = vshll.u32 %v12183_v25, 16  ;;  %v10087_v34 = vld [vmem:[#allocation2 + $0x60] sm:$0xff]  ;;  %9329 = vmatmul.msk.bf16.gmra.mxu0 %vm282_vm0, %v10037_v46 }
 0x242   :  { %v1153_v31 = vmul.f32 %v10346_v35, %v961_v50  ;;  %v5005_v8 = vrot.slane %v5004_v28, 4  ;;  %v7344_v62 = vunpack.c.l.b16 %v5863_v63  ;;  %v578_v1 = vmin.f32 %v12187_v39, 20.0  ;;  %v1363_v20 = vld [vmem:[#allocation2 + $0xc8] sm:$0x1]  ;;  %v3590_v35 = vld [vmem:[#allocation2 + $0x54] sm:$0xf] }
 0x243   :  { %v2626_v40 = vrot.slane %v2624_v26, 4  ;;  %v2629_v52 = vrot.slane %v2627_v58, 5  ;;  %v2637_v24 = vshrl.u32 %v12183_v25, 16  ;;  %v2635_v3 = vrot.slane %v2633_v21, 5 }
 0x244   :  { %v1452_v47 = vpack.c.bf16 %v1153_v31, %v1153_v31  ;;  %v5010_v42 = vsel %vm10971_vm9, %v5005_v8, %v5009_v30  ;;  %v7397_v38 = vpack.c.b16 %v7344_v62, %v7343_v41  ;;  %v672_v54 = vmul.f32 1.442695, %v578_v1  ;;  %v2234_v31 = vld [vmem:[#allocation2 + $0xbc] sm:$0x1] }
 0x245   :  { %v7171_v44 = vunpack.c.l.b16 %v5000_v4  ;;  %v7172_v7 = vunpack.c.l.b16 %v5010_v42  ;;  %v2630_v50 = vor.u32 %v2629_v52, %v2626_v40  ;;  %v1734_v12 = vrot.slane %v12169_v45, 4  ;;  %v465_v4 = vpop.f32.mrf.mxu0 }
 0x246   :  { %v1736_v9 = vshrl.u32 %v1452_v47, 16  ;;  %9928 = vmatmul.msk.bf16.gmra.mxu2 %vm7419_vm2, %v7397_v38  ;;  %10347 = vpow2.f32 %v672_v54  ;;  %v2639_v6 = vrot.slane %v2637_v24, 4  ;;  %v2643_v29 = vshll.u32 %v12195_v55, 16 }
 0x247   :  { %v1739_v28 = vshll.u32 %v1452_v47, 16  ;;  %v7231_v41 = vpack.c.b16 %v7172_v7, %v7171_v44  ;;  %v2631_v59 = vrot.slane %v2630_v50, 4  ;;  %v12206_v45 = vadd.f32 %v12082_v51, %v465_v4  ;;  %v12219_v44 = vld [vmem:[#allocation2 + $0x64] sm:$0xf]  ;;  %v4449_v7 = vld [vmem:[#allocation2 + $0x60] sm:$0xe] }
 0x248   :  { %v1738_v30 = vrot.slane %v1736_v9, 7  ;;  %v2640_v63 = vor.u32 %v2639_v6, %v2635_v3  ;;  %v2645_v26 = vrot.slane %v2643_v29, 5  ;;  %6601 = vrot.lane.b32.xlu2 %v10087_v34, %s10850_s30  ;;  %v1364_v58 = vsel %vm10937_vm6, 0, %v1363_v20 }
 0x249   :  { %7267 = vrot.lane.b32.xlu0 %v7231_v41, %s10854_s13  ;;  %v2636_v1 = vsel %vm10971_vm9, %v2631_v59, %v2635_v3  ;;  %1365 = vst [vmem:[#allocation2 + $0xc8] sm:$0x1] %v1364_v58  ;;  %v3819_v21 = vshrl.u32 %v3590_v35, 16  ;;  %v579_v52 = vmin.f32 %v12206_v45, 20.0  ;;  %v3822_v24 = vshll.u32 %v3590_v35, 16 }
 0x24a   :  { %v1741_v8 = vor.u32 %v1739_v28, %v1738_v30  ;;  %v1743_v62 = vrot.slane %v1738_v30, 4  ;;  %v2641_v47 = vrot.slane %v2640_v63, 4  ;;  %v6153_v40 = vunpack.c.l.b16 %v2636_v1  ;;  %v12226_v41 = vld [vmem:[#allocation2 + $0x68] sm:$0x1] }
 0x24b   :  { %v3821_v54 = vrot.slane %v3819_v21, 4  ;;  %v3828_v9 = vshll.u32 %v12097_v10, 16  ;;  %v674_v46 = vmul.f32 1.442695, %v579_v52  ;;  %v3824_v20 = vrot.slane %v3822_v24, 5 }
 0x24c   :  { %v1742_v42 = vsel %vm11052_vm12, %v1734_v12, %v1741_v8  ;;  %v2235_v38 = vsel %vm10919_vm4, %v1743_v62, %v2234_v31  ;;  %v10348_v3 = vpop.eup %10347  ;;  %v2646_v50 = vsel %vm10971_vm9, %v2641_v47, %v2645_v26  ;;  %v3832_v6 = vshrl.u32 %v12097_v10, 16  ;;  %v10086_v31 = vld [vmem:[#allocation2 + $0x54] sm:$0xff] }
 0x24d   :  { %2233 = vst.msk [vmem:[#allocation2 + $0xb8] sm:$0xf] %vm1188_vm1, %v1742_v42  ;;  %v770_v12 = vadd.f32 1.0, %v10348_v3  ;;  %v6154_v29 = vunpack.c.l.b16 %v2646_v50  ;;  %v3830_v34 = vrot.slane %v3828_v9, 5  ;;  %v3838_v35 = vshll.u32 %v12106_v23, 16 }
 0x24e   :  { %2236 = vst [vmem:[#allocation2 + $0xbc] sm:$0x1] %v2235_v38  ;;  %10349 = vpow2.f32 %v674_v46  ;;  %v3825_v30 = vor.u32 %v3824_v20, %v3821_v54  ;;  %v3834_v28 = vrot.slane %v3832_v6, 4  ;;  %v9441_v58 = vrot.slane %v4449_v7, 9  ;;  %v3230_v10 = vld [vmem:[#allocation2 + $0x54] sm:$0xe] }
 0x24f   :  { %v834_v59 = vmul.f32 %v770_v12, %v770_v12  ;;  %v6210_v4 = vpack.c.b16 %v6154_v29, %v6153_v40  ;;  %v4621_v8 = vrot.slane %v12219_v44, 5  ;;  %v3840_v23 = vrot.slane %v3838_v35, 5  ;;  %v4818_v9 = vld [vmem:[#allocation2 + $0xa0] sm:$0xf]  ;;  %v5670_v7 = vld [vmem:[#allocation2 + $0x9c] sm:$0xe] }
 0x250   :  { %v3826_v63 = vrot.slane %v3825_v30, 4  ;;  %v3835_v26 = vor.u32 %v3834_v28, %v3830_v34  ;;  %v4624_v21 = vrot.slane %v12226_v41, 5  ;;  %v9409_v54 = vrot.slane %v3230_v10, 9  ;;  %v4870_v12 = vld [vmem:[#allocation2 + $0xa4] sm:$0x1]  ;;  %v468_v30 = vpop.f32.mrf.mxu0 }
 0x251   :  { %v9368_v62 = vadd.f32 -1.0, %v834_v59  ;;  %v1026_v1 = vadd.f32 1.0, %v834_v59  ;;  %6249 = vrot.lane.b32.xlu1 %v6210_v4, %s10849_s29  ;;  %6599 = vrot.lane.b32.xlu0 %v10086_v31, %s10850_s30  ;;  %v4622_v52 = vsel %vm11123_vm15, %v9441_v58, %v4621_v8  ;;  %v4623_v24 = vrot.slane %v4621_v8, 4  ;;  %v1262_v10 = vld [vmem:[#allocation2 + $0xe4] sm:$0x1] }
 0x252   :  { %v3831_v47 = vsel %vm10971_vm9, %v3826_v63, %v3830_v34  ;;  %v3836_v40 = vrot.slane %v3835_v26, 4  ;;  %v6825_v20 = vunpack.c.l.b16 %v4622_v52  ;;  %v3405_v6 = vrot.slane %v12183_v25, 5 }
 0x253   :  { %v962_v42 = vmul.f32 %v9368_v62, %v12187_v39  ;;  %10351 = vrcp.f32 %v1026_v1  ;;  %v6663_v38 = vunpack.c.l.b16 %v3831_v47  ;;  %v4625_v46 = vsel %vm11123_vm15, %v4623_v24, %v4624_v21  ;;  %v4807_v24 = vld [vmem:[#allocation2 + $0x60] sm:$0xf] }
 0x254   :  { %v10350_v3 = vpop.eup %10349  ;;  %v3841_v50 = vsel %vm10971_vm9, %v3836_v40, %v3840_v23  ;;  %v6826_v35 = vunpack.c.l.b16 %v4625_v46  ;;  %v3408_v39 = vrot.slane %v12195_v55, 5  ;;  %v3406_v28 = vsel %vm11123_vm15, %v9409_v54, %v3405_v6 }
 0x255   :  { %v771_v29 = vadd.f32 1.0, %v10350_v3  ;;  %v6664_v34 = vunpack.c.l.b16 %v3841_v50  ;;  %v3407_v59 = vrot.slane %v3405_v6, 4  ;;  %v9477_v4 = vrot.slane %v5670_v7, 9 }
 0x256   :  { %v5866_v31 = vrot.slane %v4818_v9, 5  ;;  %v6882_v58 = vpack.c.b16 %v6826_v35, %v6825_v20  ;;  %v5869_v8 = vrot.slane %v4870_v12, 5  ;;  %v12250_v55 = vadd.f32 %v12082_v51, %v468_v30  ;;  %v10038_v30 = vld [vmem:[#allocation3 + $0xc0] sm:$0xff] }
 0x257   :  { %v835_v63 = vmul.f32 %v771_v29, %v771_v29  ;;  %v6721_v26 = vpack.c.b16 %v6664_v34, %v6663_v38  ;;  %v3409_v25 = vsel %vm11123_vm15, %v3407_v59, %v3408_v39  ;;  %v6313_v40 = vunpack.c.l.b16 %v3406_v28  ;;  %v10706_v34 = vld [vmem:[#allocation2 + $0x64] sm:$0xf]  ;;  %v2372_v28 = vld [vmem:[#allocation2 + $0x60] sm:$0xf]  ;;  %9330 = vmatmul.msk.bf16.gmra.mxu0 %vm282_vm0, %v10038_v30 }
 0x258   :  { %v5867_v62 = vsel %vm11123_vm15, %v9477_v4, %v5866_v31  ;;  %v5868_v1 = vrot.slane %v5866_v31, 4  ;;  %6921 = vrot.lane.b32.xlu2 %v6882_v58, %s10853_s12  ;;  %v6314_v52 = vunpack.c.l.b16 %v3409_v25  ;;  %v580_v9 = vmin.f32 %v12250_v55, 20.0  ;;  %v10707_v31 = vld [vmem:[#allocation2 + $0x68] sm:$0x1] }
 0x259   :  { %v10352_v23 = vpop.eup %10351  ;;  %v9369_v21 = vadd.f32 -1.0, %v835_v63  ;;  %v1027_v47 = vadd.f32 1.0, %v835_v63  ;;  %6759 = vrot.lane.b32.xlu1 %v6721_v26, %s10846_s23  ;;  %v1263_v7 = vsel %vm10919_vm4, 0, %v1262_v10  ;;  %v7345_v50 = vunpack.c.l.b16 %v5867_v62 }
 0x25a   :  { %v1154_v38 = vmul.f32 %v10352_v23, %v962_v42  ;;  %v5870_v54 = vsel %vm11123_vm15, %v5868_v1, %v5869_v8  ;;  %v6370_v3 = vpack.c.b16 %v6314_v52, %v6313_v40  ;;  %1264 = vst [vmem:[#allocation2 + $0xe4] sm:$0x1] %v1263_v7  ;;  %v676_v6 = vmul.f32 1.442695, %v580_v9  ;;  %v12263_v1 = vld [vmem:[#allocation2 + $0x64] sm:$0xf] }
 0x25b   :  { %10353 = vrcp.f32 %v1027_v47  ;;  %v7346_v46 = vunpack.c.l.b16 %v5870_v54  ;;  %v5036_v12 = vshrl.u32 %v4807_v24, 16  ;;  %v5039_v29 = vshll.u32 %v4807_v24, 16  ;;  %v2237_v40 = vld [vmem:[#allocation2 + $0xc0] sm:$0xf] }
 0x25c   :  { %v1453_v20 = vpack.c.bf16 %v1154_v38, %v1154_v38  ;;  %6409 = vrot.lane.b32.xlu0 %v6370_v3, %s10852_s7  ;;  %v5045_v35 = vshll.u32 %v10706_v34, 16  ;;  %v5049_v39 = vshrl.u32 %v10706_v34, 16  ;;  %10355 = vpow2.f32 %v676_v6  ;;  %v12265_v38 = vld [vmem:[#allocation2 + $0x68] sm:$0x1] }
 0x25d   :  { %v7398_v42 = vpack.c.b16 %v7346_v46, %v7345_v50  ;;  %v5038_v4 = vrot.slane %v5036_v12, 4  ;;  %v5055_v63 = vshll.u32 %v10707_v31, 16  ;;  %v5041_v26 = vrot.slane %v5039_v29, 5  ;;  %v10118_v12 = vld [vmem:[#allocation2 + $0x60] sm:$0xff] }
 0x25e   :  { %v1745_v59 = vshrl.u32 %v1453_v20, 16  ;;  %v5047_v58 = vrot.slane %v5045_v35, 5  ;;  %v5051_v8 = vrot.slane %v5049_v39, 4  ;;  %v1748_v25 = vshll.u32 %v1453_v20, 16 }
 0x25f   :  { %9929 = vmatmul.msk.bf16.gmra.mxu2 %vm7419_vm2, %v7398_v42  ;;  %v963_v62 = vmul.f32 %v9369_v21, %v12206_v45  ;;  %v2648_v23 = vshrl.u32 %v2372_v28, 16  ;;  %v5042_v52 = vor.u32 %v5041_v26, %v5038_v4  ;;  %v5057_v7 = vrot.slane %v5055_v63, 5 }
 0x260   :  { %v1747_v10 = vrot.slane %v1745_v59, 7  ;;  %v5052_v24 = vor.u32 %v5051_v8, %v5047_v58  ;;  %v2651_v6 = vshll.u32 %v2372_v28, 16  ;;  %v2657_v20 = vshll.u32 %v12263_v1, 16 }
 0x261   :  { %v10354_v47 = vpop.eup %10353  ;;  %v2650_v3 = vrot.slane %v2648_v23, 4  ;;  %v5043_v50 = vrot.slane %v5042_v52, 4  ;;  %v2661_v42 = vshrl.u32 %v12263_v1, 16  ;;  %v2667_v34 = vshll.u32 %v12265_v38, 16  ;;  %v1372_v23 = vld [vmem:[#allocation2 + $0xec] sm:$0x1] }
 0x262   :  { %v1750_v54 = vor.u32 %v1748_v25, %v1747_v10  ;;  %v1155_v9 = vmul.f32 %v10354_v47, %v963_v62  ;;  %v5053_v46 = vrot.slane %v5052_v24, 4  ;;  %v10356_v45 = vpop.eup %10355  ;;  %v2653_v28 = vrot.slane %v2651_v6, 5  ;;  %v470_v62 = vpop.f32.mrf.mxu0 }
 0x263   :  { %v772_v35 = vadd.f32 1.0, %v10356_v45  ;;  %v5048_v39 = vsel %vm10971_vm9, %v5043_v50, %v5047_v58  ;;  %v2659_v8 = vrot.slane %v2657_v20, 5  ;;  %v2663_v25 = vrot.slane %v2661_v42, 4  ;;  %v12277_v58 = vpop.permute.xlu1 %6799  ;;  %v3592_v20 = vld [vmem:[#allocation2 + $0x60] sm:$0xf] }
 0x264   :  { %v2238_v21 = vsel %vm11029_vm11, %v1750_v54, %v2237_v40  ;;  %v1454_v29 = vpack.c.bf16 %v1155_v9, %v1155_v9  ;;  %v5058_v30 = vsel %vm10971_vm9, %v5053_v46, %v5057_v7  ;;  %7111 = vrot.lane.b32.xlu0 %v10118_v12, %s10851_s6  ;;  %v7175_v4 = vunpack.c.l.b16 %v5048_v39  ;;  %v2241_v54 = vld [vmem:[#allocation2 + $0xc8] sm:$0x1] }
 0x265   :  { %2239 = vst [vmem:[#allocation2 + $0xc0] sm:$0xf] %v2238_v21  ;;  %v7176_v31 = vunpack.c.l.b16 %v5058_v30  ;;  %v836_v63 = vmul.f32 %v772_v35, %v772_v35  ;;  %v2654_v26 = vor.u32 %v2653_v28, %v2650_v3  ;;  %v1751_v47 = vrot.slane %v1747_v10, 4  ;;  %v3231_v30 = vld [vmem:[#allocation2 + $0x60] sm:$0xe] }
 0x266   :  { %v1753_v59 = vshrl.u32 %v1454_v29, 16  ;;  %v1756_v52 = vshll.u32 %v1454_v29, 16  ;;  %v2664_v50 = vor.u32 %v2663_v25, %v2659_v8  ;;  %v2669_v46 = vrot.slane %v2667_v34, 5 }
 0x267   :  { %v7233_v24 = vpack.c.b16 %v7176_v31, %v7175_v4  ;;  %v1028_v9 = vadd.f32 1.0, %v836_v63  ;;  %v2655_v7 = vrot.slane %v2654_v26, 4  ;;  %v12281_v3 = vadd.f32 %v12082_v51, %v470_v62 }
 0x268   :  { %v1755_v40 = vrot.slane %v1753_v59, 7  ;;  %v1373_v10 = vsel %vm10937_vm6, 0, %v1372_v23  ;;  %v9370_v45 = vadd.f32 -1.0, %v836_v63  ;;  %v2665_v29 = vrot.slane %v2664_v50, 4 }
 0x269   :  { %7271 = vrot.lane.b32.xlu1 %v7233_v24, %s10854_s13  ;;  %10357 = vrcp.f32 %v1028_v9  ;;  %v2660_v21 = vsel %vm10971_vm9, %v2655_v7, %v2659_v8  ;;  %1374 = vst [vmem:[#allocation2 + $0xec] sm:$0x1] %v1373_v10  ;;  %v581_v39 = vmin.f32 %v12281_v3, 20.0  ;;  %v3843_v59 = vshrl.u32 %v3592_v20, 16  ;;  %v12300_v10 = vpop.f32.mrf.mxu2 }
 0x26a   :  { %v1758_v6 = vor.u32 %v1756_v52, %v1755_v40  ;;  %v1760_v12 = vrot.slane %v1755_v40, 4  ;;  %v6155_v35 = vunpack.c.l.b16 %v2660_v21  ;;  %v2670_v28 = vsel %vm10971_vm9, %v2665_v29, %v2669_v46  ;;  %v4871_v21 = vld [vmem:[#allocation2 + $0xb0] sm:$0x1] }
 0x26b   :  { %v3846_v4 = vshll.u32 %v3592_v20, 16  ;;  %v3852_v31 = vshll.u32 %v12219_v44, 16  ;;  %v6156_v63 = vunpack.c.l.b16 %v2670_v28  ;;  %v678_v26 = vmul.f32 1.442695, %v581_v39 }
 0x26c   :  { %v1759_v42 = vsel %vm11052_vm12, %v1751_v47, %v1758_v6  ;;  %v2242_v34 = vsel %vm10919_vm4, %v1760_v12, %v2241_v54  ;;  %v3856_v8 = vshrl.u32 %v12219_v44, 16  ;;  %v3862_v25 = vshll.u32 %v12226_v41, 16  ;;  %v4820_v54 = vld [vmem:[#allocation2 + $0xac] sm:$0xf]  ;;  %v5671_v6 = vld [vmem:[#allocation2 + $0xa8] sm:$0xe] }
 0x26d   :  { %2240 = vst.msk [vmem:[#allocation2 + $0xc4] sm:$0xf] %vm1188_vm1, %v1759_v42  ;;  %v3845_v62 = vrot.slane %v3843_v59, 4  ;;  %v3848_v23 = vrot.slane %v3846_v4, 5  ;;  %v3854_v47 = vrot.slane %v3852_v31, 5  ;;  %v964_v40 = vmul.f32 %v9370_v45, %v12250_v55  ;;  %v12303_v45 = vpop.permute.xlu1 %7151  ;;  %v12310_v59 = vpop.permute.xlu0 %6591 }
 0x26e   :  { %2243 = vst [vmem:[#allocation2 + $0xc8] sm:$0x1] %v2242_v34  ;;  %v6211_v52 = vpack.c.b16 %v6156_v63, %v6155_v35  ;;  %10359 = vpow2.f32 %v678_v26  ;;  %v3858_v24 = vrot.slane %v3856_v8, 4  ;;  %v9410_v50 = vrot.slane %v3231_v30, 9  ;;  %v473_v8 = vpop.f32.mrf.mxu0 }
 0x26f   :  { %v10358_v9 = vpop.eup %10357  ;;  %v3849_v7 = vor.u32 %v3848_v23, %v3845_v62  ;;  %v3412_v46 = vrot.slane %v12263_v1, 5  ;;  %v5873_v12 = vrot.slane %v4820_v54, 5  ;;  %v3864_v20 = vrot.slane %v3862_v25, 5 }
 0x270   :  { %v1156_v44 = vmul.f32 %v10358_v9, %v964_v40  ;;  %6251 = vrot.lane.b32.xlu2 %v6211_v52, %s10849_s29  ;;  %v3859_v41 = vor.u32 %v3858_v24, %v3854_v47  ;;  %v9478_v55 = vrot.slane %v5671_v6, 9  ;;  %v3415_v1 = vrot.slane %v12265_v38, 5  ;;  %v1265_v52 = vld [vmem:[#allocation2 + $0xf0] sm:$0x1] }
 0x271   :  { %v3850_v29 = vrot.slane %v3849_v7, 4  ;;  %v3413_v42 = vsel %vm11123_vm15, %v9410_v50, %v3412_v46  ;;  %v3414_v34 = vrot.slane %v3412_v46, 4  ;;  %v5875_v63 = vrot.slane %v5873_v12, 4  ;;  %v10088_v50 = vld [vmem:[#allocation2 + $0x6c] sm:$0xff] }
 0x272   :  { %v1455_v35 = vpack.c.bf16 %v1156_v44, %v1156_v44  ;;  %v3860_v39 = vrot.slane %v3859_v41, 4  ;;  %v6315_v30 = vunpack.c.l.b16 %v3413_v42  ;;  %v5874_v28 = vsel %vm11123_vm15, %v9478_v55, %v5873_v12  ;;  %v4809_v44 = vld [vmem:[#allocation2 + $0x6c] sm:$0xf]  ;;  %v2244_v41 = vld [vmem:[#allocation2 + $0xe4] sm:$0xf] }
 0x273   :  { %v3855_v4 = vsel %vm10971_vm9, %v3850_v29, %v3854_v47  ;;  %v3416_v31 = vsel %vm11123_vm15, %v3414_v34, %v3415_v1  ;;  %v5876_v26 = vrot.slane %v4871_v21, 5  ;;  %v7347_v46 = vunpack.c.l.b16 %v5874_v28 }
 0x274   :  { %v10360_v25 = vpop.eup %10359  ;;  %v1762_v62 = vshrl.u32 %v1455_v35, 16  ;;  %v1765_v38 = vshll.u32 %v1455_v35, 16  ;;  %v3865_v23 = vsel %vm10971_vm9, %v3860_v39, %v3864_v20  ;;  %v6665_v40 = vunpack.c.l.b16 %v3855_v4  ;;  %v12332_v4 = vpop.f32.mrf.mxu2 }
 0x275   :  { %v773_v24 = vadd.f32 1.0, %v10360_v25  ;;  %v6666_v54 = vunpack.c.l.b16 %v3865_v23  ;;  %v6316_v9 = vunpack.c.l.b16 %v3416_v31  ;;  %v5877_v47 = vsel %vm11123_vm15, %v5875_v63, %v5876_v26  ;;  %v10708_v26 = vld [vmem:[#allocation2 + $0x70] sm:$0xf] }
 0x276   :  { %v12320_v7 = vrot.slane %v1762_v62, 7  ;;  %v7348_v6 = vunpack.c.l.b16 %v5877_v47  ;;  %v12323_v12 = vadd.f32 %v12082_v51, %v473_v8  ;;  %v1266_v29 = vsel %vm10919_vm4, 0, %v1265_v52  ;;  %v12337_v62 = vld [vmem:[#allocation2 + $0x70] sm:$0xf]  ;;  %v12341_v52 = vld [vmem:[#allocation2 + $0x74] sm:$0x1] }
 0x277   :  { %v837_v21 = vmul.f32 %v773_v24, %v773_v24  ;;  %v6722_v20 = vpack.c.b16 %v6666_v54, %v6665_v40  ;;  %v6371_v55 = vpack.c.b16 %v6316_v9, %v6315_v30  ;;  %1267 = vst [vmem:[#allocation2 + $0xf0] sm:$0x1] %v1266_v29  ;;  %v5060_v51 = vshrl.u32 %v4809_v44, 16  ;;  %v4450_v30 = vld [vmem:[#allocation2 + $0x6c] sm:$0xe] }
 0x278   :  { %v1767_v42 = vor.u32 %v1765_v38, %v12320_v7  ;;  %6603 = vrot.lane.b32.xlu2 %v10088_v50, %s10850_s30  ;;  %v7399_v34 = vpack.c.b16 %v7348_v6, %v7347_v46  ;;  %v582_v1 = vmin.f32 %v12323_v12, 20.0  ;;  %v5063_v28 = vshll.u32 %v4809_v44, 16  ;;  %v12339_v38 = vpop.permute.xlu1 %6241  ;;  %v10709_v9 = vld [vmem:[#allocation2 + $0x74] sm:$0x1]  ;;  %v1375_v50 = vld [vmem:[#allocation2 + $0xf8] sm:$0x1]  ;;  %v12343_v46 = vpop.permute.xlu0 %6289 }
 0x279   :  { %v9371_v35 = vadd.f32 -1.0, %v837_v21  ;;  %v1029_v39 = vadd.f32 1.0, %v837_v21  ;;  %6761 = vrot.lane.b32.xlu1 %v6722_v20, %s10846_s23  ;;  %6411 = vrot.lane.b32.xlu0 %v6371_v55, %s10852_s7  ;;  %v5069_v8 = vshll.u32 %v10708_v26, 16  ;;  %v5073_v25 = vshrl.u32 %v10708_v26, 16  ;;  %v475_v20 = vpop.f32.mrf.mxu0  ;;  %v3594_v55 = vld [vmem:[#allocation2 + $0x6c] sm:$0xf] }
 0x27a   :  { %v2245_v31 = vsel %vm11029_vm11, %v1767_v42, %v2244_v41  ;;  %9930 = vmatmul.msk.bf16.gmra.mxu2 %vm7419_vm2, %v7399_v34  ;;  %v680_v63 = vmul.f32 1.442695, %v582_v1  ;;  %v5062_v23 = vrot.slane %v5060_v51, 4  ;;  %v5065_v40 = vrot.slane %v5063_v28, 5  ;;  %v12351_v1 = vld [vmem:[%s14724_s2] ss:$0 sm:$0xff] }
 0x27b   :  { %2246 = vst [vmem:[#allocation2 + $0xe4] sm:$0xf] %v2245_v31  ;;  %10361 = vrcp.f32 %v1029_v39  ;;  %v5071_v24 = vrot.slane %v5069_v8, 5  ;;  %v5075_v54 = vrot.slane %v5073_v25, 4  ;;  %v5079_v47 = vshll.u32 %v10709_v9, 16  ;;  %v10119_v28 = vld [vmem:[#allocation2 + $0x6c] sm:$0xff] }
 0x27c   :  { %10363 = vpow2.f32 %v680_v63  ;;  %v965_v6 = vmul.f32 %v9371_v35, %v12281_v3  ;;  %v5066_v44 = vor.u32 %v5065_v40, %v5062_v23  ;;  %v9442_v41 = vrot.slane %v4450_v30, 9 }
 0x27d   :  { %v4628_v21 = vrot.slane %v12337_v62, 5  ;;  %v5076_v29 = vor.u32 %v5075_v54, %v5071_v24  ;;  %v5081_v42 = vrot.slane %v5079_v47, 5  ;;  %v4631_v34 = vrot.slane %v12341_v52, 5 }
 0x27e   :  { %v12354_v39 = vadd.f32 %v12351_v1, %v475_v20  ;;  %v5067_v51 = vrot.slane %v5066_v44, 4  ;;  %v1376_v30 = vsel %vm10937_vm6, 0, %v1375_v50  ;;  %v3867_v8 = vshrl.u32 %v3594_v55, 16 }
 0x27f   :  { %v4629_v3 = vsel %vm11123_vm15, %v9442_v41, %v4628_v21  ;;  %v4630_v35 = vrot.slane %v4628_v21, 4  ;;  %v5077_v31 = vrot.slane %v5076_v29, 4  ;;  %1377 = vst [vmem:[#allocation2 + $0xf8] sm:$0x1] %v1376_v30  ;;  %v3870_v54 = vshll.u32 %v3594_v55, 16 }
 0x280   :  { %v6827_v63 = vunpack.c.l.b16 %v4629_v3  ;;  %v583_v26 = vmin.f32 %v12354_v39, 20.0  ;;  %v5072_v23 = vsel %vm10971_vm9, %v5067_v51, %v5071_v24  ;;  %v3876_v9 = vshll.u32 %v12337_v62, 16 }
 0x281   :  { %v10362_v25 = vpop.eup %10361  ;;  %v4632_v40 = vsel %vm11123_vm15, %v4630_v35, %v4631_v34  ;;  %7113 = vrot.lane.b32.xlu0 %v10119_v28, %s10851_s6  ;;  %v5082_v44 = vsel %vm10971_vm9, %v5077_v31, %v5081_v42  ;;  %v7177_v41 = vunpack.c.l.b16 %v5072_v23  ;;  %v3869_v30 = vrot.slane %v3867_v8, 4  ;;  %v12369_v35 = vpop.permute.xlu1 %6751  ;;  %v3232_v23 = vld [vmem:[#allocation2 + $0x6c] sm:$0xe] }
 0x282   :  { %v10364_v47 = vpop.eup %10363  ;;  %v1157_v50 = vmul.f32 %v10362_v25, %v965_v6  ;;  %v6828_v21 = vunpack.c.l.b16 %v4632_v40  ;;  %v7178_v29 = vunpack.c.l.b16 %v5082_v44  ;;  %v682_v3 = vmul.f32 1.442695, %v583_v26  ;;  %v12374_v26 = vpop.permute.xlu0 %7309 }
 0x283   :  { %v774_v20 = vadd.f32 1.0, %v10364_v47  ;;  %v3872_v57 = vrot.slane %v3870_v54, 5  ;;  %v3878_v34 = vrot.slane %v3876_v9, 5  ;;  %v3880_v6 = vshrl.u32 %v12337_v62, 16  ;;  %14754 = vst [vmem:[#allocation18_spill] sm:$0xff] %v12374_v26 }
 0x284   :  { %v1456_v24 = vpack.c.bf16 %v1157_v50, %v1157_v50  ;;  %v6883_v51 = vpack.c.b16 %v6828_v21, %v6827_v63  ;;  %v7234_v28 = vpack.c.b16 %v7178_v29, %v7177_v41  ;;  %10365 = vpow2.f32 %v682_v3  ;;  %v12377_v54 = vld [vmem:[#allocation2 + $0x70] sm:$0xf]  ;;  %v12379_v62 = vld [vmem:[#allocation2 + $0x74] sm:$0x1]  ;;  %v5672_v21 = vld [vmem:[#allocation2 + $0xb4] sm:$0xe] }
 0x285   :  { %v838_v55 = vmul.f32 %v774_v20, %v774_v20  ;;  %v3873_v42 = vor.u32 %v3872_v57, %v3869_v30  ;;  %v3886_v31 = vshll.u32 %v12341_v52, 16  ;;  %v3882_v40 = vrot.slane %v3880_v6, 4  ;;  %v2248_v57 = vld [vmem:[#allocation2 + $0xec] sm:$0x1] }
 0x286   :  { %v1770_v25 = vshrl.u32 %v1456_v24, 16  ;;  %6923 = vrot.lane.b32.xlu2 %v6883_v51, %s10853_s12  ;;  %7273 = vrot.lane.b32.xlu1 %v7234_v28, %s10854_s13  ;;  %v1773_v47 = vshll.u32 %v1456_v24, 16  ;;  %v1768_v44 = vrot.slane %v12320_v7, 4  ;;  %v4822_v51 = vld [vmem:[#allocation2 + $0xb8] sm:$0xf]  ;;  %v9411_v28 = vrot.slane %v3232_v23, 9 }
 0x287   :  { %v9372_v8 = vadd.f32 -1.0, %v838_v55  ;;  %v1030_v63 = vadd.f32 1.0, %v838_v55  ;;  %v3874_v50 = vrot.slane %v3873_v42, 4  ;;  %v3883_v52 = vor.u32 %v3882_v40, %v3878_v34  ;;  %v12387_v42 = vpop.f32.mrf.mxu2  ;;  %v478_v40 = vpop.f32.mrf.mxu0 }
 0x288   :  { %v1772_v9 = vrot.slane %v1770_v25, 7  ;;  %v3888_v41 = vrot.slane %v3886_v31, 5  ;;  %v3419_v6 = vrot.slane %v12377_v54, 5  ;;  %v3422_v7 = vrot.slane %v12379_v62, 5  ;;  %v4872_v25 = vld [vmem:[#allocation2 + $0xbc] sm:$0x1] }
 0x289   :  { %10367 = vrcp.f32 %v1030_v63  ;;  %v966_v3 = vmul.f32 %v9372_v8, %v12323_v12  ;;  %v3879_v30 = vsel %vm10971_vm9, %v3874_v50, %v3878_v34  ;;  %v3884_v24 = vrot.slane %v3883_v52, 4  ;;  %v10089_v63 = vld [vmem:[#allocation2 + $0x78] sm:$0xff] }
 0x28a   :  { %v1775_v20 = vor.u32 %v1773_v47, %v1772_v9  ;;  %v1777_v29 = vrot.slane %v1772_v9, 4  ;;  %v10366_v55 = vpop.eup %10365  ;;  %v9479_v34 = vrot.slane %v5672_v21, 9  ;;  %v3420_v9 = vsel %vm11123_vm15, %v9411_v28, %v3419_v6  ;;  %v12399_v21 = vpop.permute.xlu1 %6291 }
 0x28b   :  { %v775_v8 = vadd.f32 1.0, %v10366_v55  ;;  %v3889_v23 = vsel %vm10971_vm9, %v3884_v24, %v3888_v41  ;;  %v3421_v47 = vrot.slane %v3419_v6, 4  ;;  %v5880_v50 = vrot.slane %v4822_v51, 5 }
 0x28c   :  { %v1776_v31 = vsel %vm11052_vm12, %v1768_v44, %v1775_v20  ;;  %v2249_v12 = vsel %vm10919_vm4, %v1777_v29, %v2248_v57  ;;  %v6667_v44 = vunpack.c.l.b16 %v3879_v30  ;;  %v6668_v20 = vunpack.c.l.b16 %v3889_v23 }
 0x28d   :  { %2247 = vst.msk [vmem:[#allocation2 + $0xe8] sm:$0xf] %vm1188_vm1, %v1776_v31  ;;  %v839_v52 = vmul.f32 %v775_v8, %v775_v8  ;;  %v5883_v57 = vrot.slane %v4872_v25, 5  ;;  %v3423_v55 = vsel %vm11123_vm15, %v3421_v47, %v3422_v7  ;;  %v5881_v41 = vsel %vm11123_vm15, %v9479_v34, %v5880_v50  ;;  %v2376_v8 = vld [vmem:[#allocation2 + $0x78] sm:$0xf]  ;;  %v12408_v25 = vpop.permute.xlu0 %6641 }
 0x28e   :  { %2250 = vst [vmem:[#allocation2 + $0xec] sm:$0x1] %v2249_v12  ;;  %6605 = vrot.lane.b32.xlu2 %v10089_v63, %s10850_s30  ;;  %v5882_v24 = vrot.slane %v5880_v50, 4  ;;  %v12406_v28 = vadd.f32 %v12351_v1, %v478_v40  ;;  %v6723_v30 = vpack.c.b16 %v6668_v20, %v6667_v44  ;;  %v6317_v31 = vunpack.c.l.b16 %v3420_v9  ;;  %v1268_v12 = vld [vmem:[#allocation2 + $0xfc] sm:$0x1] }
 0x28f   :  { %v10368_v29 = vpop.eup %10367  ;;  %v1031_v6 = vadd.f32 1.0, %v839_v52  ;;  %v9373_v63 = vadd.f32 -1.0, %v839_v52  ;;  %v6318_v23 = vunpack.c.l.b16 %v3423_v55  ;;  %v10050_v34 = vld [vmem:[#allocation2 + $0x18] sm:$0xff]  ;;  %v1269_v52 = vsel %vm10919_vm4, 0, %v1268_v12  ;;  %v12425_v12 = vpop.f32.mrf.mxu2 }
 0x290   :  { %v1158_v51 = vmul.f32 %v10368_v29, %v966_v3  ;;  %v5884_v7 = vsel %vm11123_vm15, %v5882_v24, %v5883_v57  ;;  %v584_v47 = vmin.f32 %v12406_v28, 20.0  ;;  %6763 = vrot.lane.b32.xlu1 %v6723_v30, %s10846_s23  ;;  %v7349_v3 = vunpack.c.l.b16 %v5881_v41  ;;  %v12414_v44 = vld [vmem:[#allocation2 + $0x7c] sm:$0xf]  ;;  %v12418_v29 = vld [vmem:[#allocation2 + $0x80] sm:$0x1]  ;;  %v10051_v30 = vld [vmem:[#allocation2 + $0x24] sm:$0xff] }
 0x291   :  { %10369 = vrcp.f32 %v1031_v6  ;;  %v7350_v40 = vunpack.c.l.b16 %v5884_v7  ;;  %v6372_v9 = vpack.c.b16 %v6318_v23, %v6317_v31  ;;  %v2696_v55 = vshrl.u32 %v2376_v8, 16  ;;  %1270 = vst [vmem:[#allocation2 + $0xfc] sm:$0x1] %v1269_v52 }
 0x292   :  { %v1457_v50 = vpack.c.bf16 %v1158_v51, %v1158_v51  ;;  %v684_v20 = vmul.f32 1.442695, %v584_v47  ;;  %v7428_v57 = vsel %vm7419_vm2, %v10050_v34, %v12144_v37  ;;  %v2699_v6 = vshll.u32 %v2376_v8, 16  ;;  %v4451_v8 = vld [vmem:[#allocation2 + $0x78] sm:$0xe] }
 0x293   :  { %v7400_v51 = vpack.c.b16 %v7350_v40, %v7349_v3  ;;  %6413 = vrot.lane.b32.xlu0 %v6372_v9, %s10852_s7  ;;  %v2698_v41 = vrot.slane %v2696_v55, 4  ;;  %v2705_v31 = vshll.u32 %v12414_v44, 16  ;;  %v2709_v23 = vshrl.u32 %v12414_v44, 16  ;;  %v2251_v40 = vld [vmem:[#allocation2 + $0xf0] sm:$0xf] }
 0x294   :  { %v1779_v24 = vshrl.u32 %v1457_v50, 16  ;;  %10371 = vpow2.f32 %v684_v20  ;;  %v1782_v47 = vshll.u32 %v1457_v50, 16  ;;  %v2701_v37 = vrot.slane %v2699_v6, 5  ;;  %v12434_v55 = vld [vmem:[#allocation2 + $0x7c] sm:$0xf] }
 0x295   :  { %9931 = vmatmul.msk.bf16.gmra.mxu2 %vm7419_vm2, %v7400_v51  ;;  %v2715_v34 = vshll.u32 %v12418_v29, 16  ;;  %v7521_v3 = vsel %vm282_vm0, %v7428_v57, %v12112_v56  ;;  %v967_v9 = vmul.f32 %v9373_v63, %v12354_v39  ;;  %v2707_v20 = vrot.slane %v2705_v31, 5  ;;  %v2374_v56 = vld [vmem:[#allocation2 + $0x6c] sm:$0xf]  ;;  %v12446_v57 = vpop.permute.xlu1 %6801 }
 0x296   :  { %v12427_v7 = vrot.slane %v1779_v24, 7  ;;  %v2711_v52 = vrot.slane %v2709_v23, 4  ;;  %v7586_v50 = vsel %vm7580_vm3, %v7521_v3, %v12310_v59  ;;  %v12440_v24 = vsel %vm7419_vm2, %v10051_v30, %v12339_v38 }
 0x297   :  { %v10370_v53 = vpop.eup %10369  ;;  %v2702_v6 = vor.u32 %v2701_v37, %v2698_v41  ;;  %v2717_v23 = vrot.slane %v2715_v34, 5  ;;  %v9443_v43 = vrot.slane %v4451_v8, 9  ;;  %v4635_v38 = vrot.slane %v12434_v55, 5 }
 0x298   :  { %v1784_v51 = vor.u32 %v1782_v47, %v12427_v7  ;;  %v1785_v39 = vrot.slane %v12427_v7, 4  ;;  %v1159_v63 = vmul.f32 %v10370_v53, %v967_v9  ;;  %v2712_v31 = vor.u32 %v2711_v52, %v2707_v20  ;;  %v12451_v47 = vpop.permute.xlu0 %7103 }
 0x299   :  { %v2703_v3 = vrot.slane %v2702_v6, 4  ;;  %v4638_v7 = vrot.slane %v12443_v0, 5  ;;  %v2672_v53 = vshrl.u32 %v2374_v56, 16  ;;  %v4637_v52 = vrot.slane %v4635_v38, 4 }
 0x29a   :  { %v2252_v59 = vsel %vm11029_vm11, %v1784_v51, %v2251_v40  ;;  %v10372_v30 = vpop.eup %10371  ;;  %v1458_v41 = vpack.c.bf16 %v1159_v63, %v1159_v63  ;;  %v2713_v37 = vrot.slane %v2712_v31, 4  ;;  %v4636_v40 = vsel %vm11123_vm15, %v9443_v43, %v4635_v38 }
 0x29b   :  { %2253 = vst [vmem:[#allocation2 + $0xf0] sm:$0xf] %v2252_v59  ;;  %v776_v9 = vadd.f32 1.0, %v10372_v30  ;;  %v2708_v34 = vsel %vm10971_vm9, %v2703_v3, %v2707_v20  ;;  %v4639_v31 = vsel %vm11123_vm15, %v4637_v52, %v4638_v7  ;;  %v6829_v5 = vunpack.c.l.b16 %v4636_v40  ;;  %v2255_v3 = vld [vmem:[#allocation2 + $0xf8] sm:$0x1] }
 0x29c   :  { %v1787_v8 = vshrl.u32 %v1458_v41, 16  ;;  %v1790_v51 = vshll.u32 %v1458_v41, 16  ;;  %v2718_v6 = vsel %vm10971_vm9, %v2713_v37, %v2717_v23  ;;  %v6159_v26 = vunpack.c.l.b16 %v2708_v34  ;;  %v1378_v34 = vld [vmem:[#allocation2 + $0x104] sm:$0x1] }
 0x29d   :  { %v840_v59 = vmul.f32 %v776_v9, %v776_v9  ;;  %v6160_v63 = vunpack.c.l.b16 %v2718_v6  ;;  %v6830_v32 = vunpack.c.l.b16 %v4639_v31  ;;  %v2674_v60 = vrot.slane %v2672_v53, 4  ;;  %v480_v9 = vpop.f32.mrf.mxu0  ;;  %v4811_v6 = vld [vmem:[#allocation2 + $0x78] sm:$0xf] }
 0x29e   :  { %v1789_v30 = vrot.slane %v1787_v8, 7  ;;  %v2675_v20 = vshll.u32 %v2374_v56, 16  ;;  %v2681_v41 = vshll.u32 %v12377_v54, 16  ;;  %v7651_v7 = vsel %vm7645_vm5, %v7586_v50, %v12369_v35 }
 0x29f   :  { %v9374_v18 = vadd.f32 -1.0, %v840_v59  ;;  %v1032_v43 = vadd.f32 1.0, %v840_v59  ;;  %v6213_v38 = vpack.c.b16 %v6160_v63, %v6159_v26  ;;  %v6884_v23 = vpack.c.b16 %v6830_v32, %v6829_v5  ;;  %v12471_v32 = vpop.permute.xlu1 %7153 }
 0x2a0   :  { %v1792_v15 = vor.u32 %v1790_v51, %v1789_v30  ;;  %v1794_v49 = vrot.slane %v1789_v30, 4  ;;  %v2677_v37 = vrot.slane %v2675_v20, 5  ;;  %v2683_v56 = vrot.slane %v2681_v41, 5 }
 0x2a1   :  { %10373 = vrcp.f32 %v1032_v43  ;;  %6255 = vrot.lane.b32.xlu1 %v6213_v38, %s10849_s29  ;;  %v2685_v53 = vshrl.u32 %v12377_v54, 16  ;;  %6925 = vrot.lane.b32.xlu2 %v6884_v23, %s10853_s12  ;;  %v2691_v52 = vshll.u32 %v12379_v62, 16  ;;  %v12477_v50 = vadd.f32 %v12351_v1, %v480_v9  ;;  %v10712_v38 = vld [vmem:[#allocation2 + $0x80] sm:$0x1] }
 0x2a2   :  { %v1793_v26 = vsel %vm11052_vm12, %v1785_v39, %v1792_v15  ;;  %v2256_v40 = vsel %vm10919_vm4, %v1794_v49, %v2255_v3  ;;  %v2678_v5 = vor.u32 %v2677_v37, %v2674_v60  ;;  %v1379_v54 = vsel %vm10937_vm6, 0, %v1378_v34  ;;  %v12481_v39 = vpop.permute.xlu0 %7311  ;;  %v10711_v60 = vld [vmem:[#allocation2 + $0x7c] sm:$0xf] }
 0x2a3   :  { %2254 = vst.msk [vmem:[#allocation2 + $0xf4] sm:$0xf] %vm1188_vm1, %v1793_v26  ;;  %v2687_v35 = vrot.slane %v2685_v53, 4  ;;  %v5084_v15 = vshrl.u32 %v4811_v6, 16  ;;  %v968_v49 = vmul.f32 %v9374_v18, %v12406_v28  ;;  %v5087_v51 = vshll.u32 %v4811_v6, 16  ;;  %v10090_v26 = vld [vmem:[#allocation2 + $0x84] sm:$0xff] }
 0x2a4   :  { %14755 = vst [vmem:[#allocation19_spill] sm:$0xff] %v12481_v39  ;;  %v2679_v8 = vrot.slane %v2678_v5, 4  ;;  %v5093_v59 = vshll.u32 %v10711_v60, 16  ;;  %v585_v63 = vmin.f32 %v12477_v50, 20.0  ;;  %v5097_v30 = vshrl.u32 %v10711_v60, 16 }
 0x2a5   :  { %2257 = vst [vmem:[#allocation2 + $0xf8] sm:$0x1] %v2256_v40  ;;  %v2688_v62 = vor.u32 %v2687_v35, %v2683_v56  ;;  %v5086_v31 = vrot.slane %v5084_v15, 4  ;;  %v5089_v3 = vrot.slane %v5087_v51, 5  ;;  %v5103_v41 = vshll.u32 %v10712_v38, 16 }
 0x2a6   :  { %1380 = vst [vmem:[#allocation2 + $0x104] sm:$0x1] %v1379_v54  ;;  %v2684_v20 = vsel %vm10971_vm9, %v2679_v8, %v2683_v56  ;;  %v5095_v43 = vrot.slane %v5093_v59, 5  ;;  %v2693_v18 = vrot.slane %v2691_v52, 5  ;;  %v686_v28 = vmul.f32 1.442695, %v585_v63 }
 0x2a7   :  { %v10374_v23 = vpop.eup %10373  ;;  %v2689_v37 = vrot.slane %v2688_v62, 4  ;;  %v5099_v9 = vrot.slane %v5097_v30, 4  ;;  %v12490_v34 = vsel %vm282_vm0, %v12440_v24, %v12134_v48  ;;  %v12494_v6 = vsel %vm7710_vm7, %v7651_v7, %v12158_v27  ;;  %v3596_v40 = vld [vmem:[#allocation2 + $0x78] sm:$0xf]  ;;  %v4824_v54 = vld [vmem:[#allocation2 + $0xc4] sm:$0xf]  ;;  %v12499_v27 = vpop.f32.mrf.mxu2 }
 0x2a8   :  { %v1160_v53 = vmul.f32 %v10374_v23, %v968_v49  ;;  %v5090_v56 = vor.u32 %v5089_v3, %v5086_v31  ;;  %v6157_v35 = vunpack.c.l.b16 %v2684_v20  ;;  %10375 = vpow2.f32 %v686_v28  ;;  %v4873_v15 = vld [vmem:[#allocation2 + $0xc8] sm:$0x1]  ;;  %v5673_v8 = vld [vmem:[#allocation2 + $0xc0] sm:$0xe]  ;;  %v483_v62 = vpop.f32.mrf.mxu0  ;;  %v12503_v3 = vpop.permute.xlu1 %6913 }
 0x2a9   :  { %v2694_v5 = vsel %vm10971_vm9, %v2689_v37, %v2693_v18  ;;  %v5100_v52 = vor.u32 %v5099_v9, %v5095_v43  ;;  %v5105_v60 = vrot.slane %v5103_v41, 5  ;;  %6607 = vrot.lane.b32.xlu2 %v10090_v26, %s10850_s30  ;;  %v9480_v49 = vrot.slane %v5673_v8, 9  ;;  %v1271_v23 = vld [vmem:[#allocation2 + $0x108] sm:$0x1] }
 0x2aa   :  { %v1459_v51 = vpack.c.bf16 %v1160_v53, %v1160_v53  ;;  %v6158_v48 = vunpack.c.l.b16 %v2694_v5  ;;  %v5091_v24 = vrot.slane %v5090_v56, 4  ;;  %v5887_v59 = vrot.slane %v4824_v54, 5  ;;  %v12509_v9 = vpop.permute.xlu0 %6403 }
 0x2ab   :  { %v5101_v7 = vrot.slane %v5100_v52, 4  ;;  %v3891_v63 = vshrl.u32 %v3596_v40, 16  ;;  %v5890_v38 = vrot.slane %v4873_v15, 5  ;;  %v12515_v26 = vadd.f32 %v12351_v1, %v483_v62 }
 0x2ac   :  { %v1796_v31 = vshrl.u32 %v1459_v51, 16  ;;  %v6212_v30 = vpack.c.b16 %v6158_v48, %v6157_v35  ;;  %v5096_v20 = vsel %vm10971_vm9, %v5091_v24, %v5095_v43  ;;  %v1799_v37 = vshll.u32 %v1459_v51, 16  ;;  %v2258_v35 = vld [vmem:[#allocation2 + $0xfc] sm:$0xf] }
 0x2ad   :  { %v5106_v41 = vsel %vm10971_vm9, %v5101_v7, %v5105_v60  ;;  %v5888_v18 = vsel %vm11123_vm15, %v9480_v49, %v5887_v59  ;;  %v5889_v28 = vrot.slane %v5887_v59, 4  ;;  %v7179_v56 = vunpack.c.l.b16 %v5096_v20  ;;  %v12529_v20 = vld [vmem:[#allocation2 + $0x88] sm:$0xf] }
 0x2ae   :  { %v12511_v53 = vrot.slane %v1796_v31, 7  ;;  %6253 = vrot.lane.b32.xlu0 %v6212_v30, %s10849_s29  ;;  %v7180_v43 = vunpack.c.l.b16 %v5106_v41  ;;  %v10376_v5 = vpop.eup %10375  ;;  %v1272_v54 = vsel %vm10919_vm4, 0, %v1271_v23  ;;  %v3893_v15 = vrot.slane %v3891_v63, 4  ;;  %v3233_v23 = vld [vmem:[#allocation2 + $0x78] sm:$0xe] }
 0x2af   :  { %v5891_v52 = vsel %vm11123_vm15, %v5889_v28, %v5890_v38  ;;  %v3894_v8 = vshll.u32 %v3596_v40, 16  ;;  %v777_v48 = vadd.f32 1.0, %v10376_v5  ;;  %v7351_v60 = vunpack.c.l.b16 %v5888_v18  ;;  %1273 = vst [vmem:[#allocation2 + $0x108] sm:$0x1] %v1272_v54  ;;  %v4452_v38 = vld [vmem:[#allocation2 + $0x84] sm:$0xe] }
 0x2b0   :  { %v1801_v51 = vor.u32 %v1799_v37, %v12511_v53  ;;  %v7235_v24 = vpack.c.b16 %v7180_v43, %v7179_v56  ;;  %v7352_v7 = vunpack.c.l.b16 %v5891_v52  ;;  %v586_v49 = vmin.f32 %v12515_v26, 20.0  ;;  %v10120_v37 = vld [vmem:[#allocation2 + $0x78] sm:$0xff]  ;;  %v12532_v54 = vld [vmem:[#allocation2 + $0x8c] sm:$0x1] }
 0x2b1   :  { %v3896_v59 = vrot.slane %v3894_v8, 5  ;;  %v3900_v62 = vshll.u32 %v12434_v55, 16  ;;  %v841_v30 = vmul.f32 %v777_v48, %v777_v48  ;;  %v3904_v40 = vshrl.u32 %v12434_v55, 16  ;;  %v12534_v55 = vpop.permute.xlu2 %6961 }
 0x2b2   :  { %v2259_v31 = vsel %vm11029_vm11, %v1801_v51, %v2258_v35  ;;  %7275 = vrot.lane.b32.xlu1 %v7235_v24, %s10854_s13  ;;  %v3910_v63 = vshll.u32 %v12443_v0, 16  ;;  %v7401_v41 = vpack.c.b16 %v7352_v7, %v7351_v60  ;;  %v688_v18 = vmul.f32 1.442695, %v586_v49  ;;  %v12536_v0 = vpop.f32.mrf.mxu2  ;;  %v7264_v60 = vpop.permute.xlu1 %7263 }
 0x2b3   :  { %2260 = vst [vmem:[#allocation2 + $0xfc] sm:$0xf] %v2259_v31  ;;  %v3897_v28 = vor.u32 %v3896_v59, %v3893_v15  ;;  %v3902_v56 = vrot.slane %v3900_v62, 5  ;;  %v9375_v5 = vadd.f32 -1.0, %v841_v30  ;;  %v1033_v35 = vadd.f32 1.0, %v841_v30  ;;  %v485_v30 = vpop.f32.mrf.mxu0 }
 0x2b4   :  { %v3906_v52 = vrot.slane %v3904_v40, 4  ;;  %14756 = vst [vmem:[#allocation20_spill] sm:$0xff] %v12536_v0  ;;  %9932 = vmatmul.msk.bf16.gmra.mxu2 %vm7419_vm2, %v7401_v41  ;;  %10377 = vpow2.f32 %v688_v18  ;;  %v3912_v51 = vrot.slane %v3910_v63, 5  ;;  %v9444_v48 = vrot.slane %v4452_v38, 9  ;;  %v1381_v40 = vld [vmem:[#allocation2 + $0x110] sm:$0x1] }
 0x2b5   :  { %v3898_v8 = vrot.slane %v3897_v28, 4  ;;  %v969_v15 = vmul.f32 %v9375_v5, %v12477_v50  ;;  %10379 = vrcp.f32 %v1033_v35  ;;  %v4642_v7 = vrot.slane %v12529_v20, 5  ;;  %v12548_v50 = vpop.permute.xlu0 %6753  ;;  %v4813_v35 = vld [vmem:[#allocation2 + $0x84] sm:$0xf] }
 0x2b6   :  { %7115 = vrot.lane.b32.xlu0 %v10120_v37, %s10851_s6  ;;  %v3907_v24 = vor.u32 %v3906_v52, %v3902_v56  ;;  %v4645_v59 = vrot.slane %v12532_v54, 5  ;;  %v7781_v62 = vsel %vm7775_vm8, %v12494_v6, %v12451_v47  ;;  %v9412_v31 = vrot.slane %v3233_v23, 9 }
 0x2b7   :  { %v3903_v49 = vsel %vm10971_vm9, %v3898_v8, %v3902_v56  ;;  %v4643_v37 = vsel %vm11123_vm15, %v9444_v48, %v4642_v7  ;;  %v4644_v41 = vrot.slane %v4642_v7, 4  ;;  %v7848_v28 = vsel %vm7840_vm10, %v7781_v62, %v7264_v60 }
 0x2b8   :  { %v3908_v63 = vrot.slane %v3907_v24, 4  ;;  %v6669_v38 = vunpack.c.l.b16 %v3903_v49  ;;  %v6831_v18 = vunpack.c.l.b16 %v4643_v37  ;;  %v3426_v56 = vrot.slane %v12414_v44, 5  ;;  %8127 = vmatmul.bf16.gmra.mxu1 %v7848_v28 }
 0x2b9   :  { %v3429_v5 = vrot.slane %v12418_v29, 5  ;;  %v4646_v6 = vsel %vm11123_vm15, %v4644_v41, %v4645_v59  ;;  %v12560_v23 = vadd.f32 %v12351_v1, %v485_v30  ;;  %v1382_v52 = vsel %vm10937_vm6, 0, %v1381_v40 }
 0x2ba   :  { %v3913_v47 = vsel %vm10971_vm9, %v3908_v63, %v3912_v51  ;;  %v10378_v8 = vpop.eup %10377  ;;  %v6832_v24 = vunpack.c.l.b16 %v4646_v6  ;;  %v3427_v44 = vsel %vm11123_vm15, %v9412_v31, %v3426_v56  ;;  %v3428_v29 = vrot.slane %v3426_v56, 4  ;;  %1383 = vst [vmem:[#allocation2 + $0x110] sm:$0x1] %v1382_v52  ;;  %v12569_v6 = vpop.permute.xlu2 %6593  ;;  %v10713_v52 = vld [vmem:[#allocation2 + $0x88] sm:$0xf] }
 0x2bb   :  { %v6670_v48 = vunpack.c.l.b16 %v3913_v47  ;;  %v10380_v60 = vpop.eup %10379  ;;  %v778_v51 = vadd.f32 1.0, %v10378_v8  ;;  %v6319_v7 = vunpack.c.l.b16 %v3427_v44  ;;  %v587_v49 = vmin.f32 %v12560_v23, 20.0 }
 0x2bc   :  { %v5108_v59 = vshrl.u32 %v4813_v35, 16  ;;  %v1161_v62 = vmul.f32 %v10380_v60, %v969_v15  ;;  %v6885_v63 = vpack.c.b16 %v6832_v24, %v6831_v18  ;;  %v3430_v40 = vsel %vm11123_vm15, %v3428_v29, %v3429_v5  ;;  %v2378_v5 = vld [vmem:[#allocation2 + $0x84] sm:$0xf] }
 0x2bd   :  { %v6724_v30 = vpack.c.b16 %v6670_v48, %v6669_v38  ;;  %v842_v37 = vmul.f32 %v778_v51, %v778_v51  ;;  %v6320_v41 = vunpack.c.l.b16 %v3430_v40  ;;  %v690_v28 = vmul.f32 1.442695, %v587_v49  ;;  %v12573_v51 = vld [vmem:[#allocation2 + $0x88] sm:$0xf]  ;;  %v12575_v49 = vpop.permute.xlu0 %7313 }
 0x2be   :  { %v5110_v47 = vrot.slane %v5108_v59, 4  ;;  %v1460_v31 = vpack.c.bf16 %v1161_v62, %v1161_v62  ;;  %6927 = vrot.lane.b32.xlu2 %v6885_v63, %s10853_s12  ;;  %v5111_v56 = vshll.u32 %v4813_v35, 16  ;;  %v5117_v8 = vshll.u32 %v10713_v52, 16  ;;  %14757 = vst [vmem:[#allocation21_spill] sm:$0xff] %v12575_v49  ;;  %v10714_v62 = vld [vmem:[#allocation2 + $0x8c] sm:$0x1] }
 0x2bf   :  { %6765 = vrot.lane.b32.xlu1 %v6724_v30, %s10846_s23  ;;  %v5121_v15 = vshrl.u32 %v10713_v52, 16  ;;  %v9376_v38 = vadd.f32 -1.0, %v842_v37  ;;  %v1034_v18 = vadd.f32 1.0, %v842_v37  ;;  %v6373_v48 = vpack.c.b16 %v6320_v41, %v6319_v7  ;;  %v2262_v41 = vld [vmem:[#allocation2 + $0x104] sm:$0x1] }
 0x2c0   :  { %10381 = vpow2.f32 %v690_v28  ;;  %v1804_v24 = vshrl.u32 %v1460_v31, 16  ;;  %v1807_v44 = vshll.u32 %v1460_v31, 16  ;;  %v5113_v29 = vrot.slane %v5111_v56, 5 }
 0x2c1   :  { %v5119_v60 = vrot.slane %v5117_v8, 5  ;;  %v970_v59 = vmul.f32 %v9376_v38, %v12515_v26  ;;  %10383 = vrcp.f32 %v1034_v18  ;;  %6415 = vrot.lane.b32.xlu0 %v6373_v48, %s10852_s7  ;;  %v5123_v35 = vrot.slane %v5121_v15, 4  ;;  %v12581_v15 = vld [vmem:[#allocation2 + $0x8c] sm:$0x1] }
 0x2c2   :  { %v5127_v30 = vshll.u32 %v10714_v62, 16  ;;  %v1806_v63 = vrot.slane %v1804_v24, 7  ;;  %v5114_v7 = vor.u32 %v5113_v29, %v5110_v47  ;;  %v2720_v40 = vshrl.u32 %v2378_v5, 16 }
 0x2c3   :  { %v2723_v37 = vshll.u32 %v2378_v5, 16  ;;  %v5124_v28 = vor.u32 %v5123_v35, %v5119_v60  ;;  %v2729_v56 = vshll.u32 %v12573_v51, 16  ;;  %v2733_v52 = vshrl.u32 %v12573_v51, 16 }
 0x2c4   :  { %v5129_v31 = vrot.slane %v5127_v30, 5  ;;  %v1809_v8 = vor.u32 %v1807_v44, %v1806_v63  ;;  %v1811_v43 = vrot.slane %v1806_v63, 4  ;;  %v5115_v26 = vrot.slane %v5114_v7, 4  ;;  %v1366_v63 = vld [vmem:[#allocation2 + $0xd4] sm:$0x1] }
 0x2c5   :  { %v2722_v38 = vrot.slane %v2720_v40, 4  ;;  %v5125_v48 = vrot.slane %v5124_v28, 4  ;;  %v2725_v62 = vrot.slane %v2723_v37, 5  ;;  %v2731_v24 = vrot.slane %v2729_v56, 5  ;;  %v10121_v56 = vld [vmem:[#allocation2 + $0x84] sm:$0xff] }
 0x2c6   :  { %v10382_v18 = vpop.eup %10381  ;;  %v2735_v47 = vrot.slane %v2733_v52, 4  ;;  %v14758_v5 = vrot.slane %v12511_v53, 4  ;;  %v2263_v35 = vsel %vm10919_vm4, %v1811_v43, %v2262_v41  ;;  %v5120_v44 = vsel %vm10971_vm9, %v5115_v26, %v5119_v60  ;;  %v5674_v52 = vld [vmem:[#allocation2 + $0xcc] sm:$0xe]  ;;  %v488_v26 = vpop.f32.mrf.mxu0 }
 0x2c7   :  { %v779_v30 = vadd.f32 1.0, %v10382_v18  ;;  %v10384_v7 = vpop.eup %10383  ;;  %v5130_v40 = vsel %vm10971_vm9, %v5125_v48, %v5129_v31  ;;  %v7181_v37 = vunpack.c.l.b16 %v5120_v44  ;;  %v2726_v28 = vor.u32 %v2725_v62, %v2722_v38  ;;  %2264 = vst [vmem:[#allocation2 + $0x104] sm:$0x1] %v2263_v35  ;;  %v4826_v48 = vld [vmem:[#allocation2 + $0xd0] sm:$0xf]  ;;  %v12605_v44 = vpop.permute.xlu0 %6405 }
 0x2c8   :  { %v1810_v29 = vsel %vm11052_vm12, %v14758_v5, %v1809_v8  ;;  %v2736_v53 = vor.u32 %v2735_v47, %v2731_v24  ;;  %v12594_v8 = vpop.permute.xlu2 %6243  ;;  %v1162_v43 = vmul.f32 %v10384_v7, %v970_v59  ;;  %v7182_v18 = vunpack.c.l.b16 %v5130_v40 }
 0x2c9   :  { %2261 = vst.msk [vmem:[#allocation2 + $0x100] sm:$0xf] %vm1188_vm1, %v1810_v29  ;;  %v843_v41 = vmul.f32 %v779_v30, %v779_v30  ;;  %v2739_v60 = vshll.u32 %v12581_v15, 16  ;;  %v7588_v5 = vsel %vm7580_vm3, %v12490_v34, %v12569_v6  ;;  %v2727_v29 = vrot.slane %v2726_v28, 4  ;;  %7117 = vrot.lane.b32.xlu0 %v10121_v56, %s10851_s6  ;;  %v1274_v28 = vld [vmem:[#allocation2 + $0x114] sm:$0x1] }
 0x2ca   :  { %v2737_v31 = vrot.slane %v2736_v53, 4  ;;  %v1367_v38 = vsel %vm10937_vm6, 0, %v1366_v63  ;;  %v1461_v62 = vpack.c.bf16 %v1162_v43, %v1162_v43  ;;  %v7236_v59 = vpack.c.b16 %v7182_v18, %v7181_v37  ;;  %v3598_v53 = vld [vmem:[#allocation2 + $0x84] sm:$0xf] }
 0x2cb   :  { %v1035_v47 = vadd.f32 1.0, %v843_v41  ;;  %1368 = vst [vmem:[#allocation2 + $0xd4] sm:$0x1] %v1367_v38  ;;  %v9481_v35 = vrot.slane %v5674_v52, 9  ;;  %v7653_v30 = vsel %vm7645_vm5, %v7588_v5, %v12548_v50  ;;  %v2732_v34 = vsel %vm10971_vm9, %v2727_v29, %v2731_v24 }
 0x2cc   :  { %v2741_v6 = vrot.slane %v2739_v60, 5  ;;  %v12610_v7 = vadd.f32 %v12351_v1, %v488_v26  ;;  %v7718_v63 = vsel %vm7710_vm7, %v7653_v30, %v12503_v3  ;;  %v1813_v40 = vshrl.u32 %v1461_v62, 16  ;;  %7277 = vrot.lane.b32.xlu1 %v7236_v59, %s10854_s13  ;;  %v12622_v60 = vpop.f32.mrf.mxu2  ;;  %v2265_v26 = vld [vmem:[#allocation2 + $0x108] sm:$0xf] }
 0x2cd   :  { %10385 = vrcp.f32 %v1035_v47  ;;  %v5894_v37 = vrot.slane %v4826_v48, 5  ;;  %v1816_v50 = vshll.u32 %v1461_v62, 16  ;;  %v9377_v56 = vadd.f32 -1.0, %v843_v41  ;;  %14759 = vst [vmem:[#allocation22_spill] sm:$0xff] %v12622_v60  ;;  %v10045_v30 = vld [vmem:[#allocation3 + $0xf8] sm:$0xff]  ;;  %v10074_v60 = vld [vmem:[#allocation2 + $0x150] sm:$0xff] }
 0x2ce   :  { %v2742_v52 = vsel %vm10971_vm9, %v2737_v31, %v2741_v6  ;;  %v6161_v24 = vunpack.c.l.b16 %v2732_v34  ;;  %v12617_v43 = vrot.slane %v1813_v40, 7  ;;  %v588_v3 = vmin.f32 %v12610_v7, 20.0  ;;  %9337 = vmatmul.msk.bf16.gmra.mxu3 %vm282_vm0, %v10045_v30 }
 0x2cf   :  { %v6162_v1 = vunpack.c.l.b16 %v2742_v52  ;;  %v5895_v18 = vsel %vm11123_vm15, %v9481_v35, %v5894_v37  ;;  %v1275_v5 = vsel %vm10919_vm4, 0, %v1274_v28  ;;  %v3915_v29 = vshrl.u32 %v3598_v53, 16  ;;  %v8118_v52 = vpop.f32.mrf.mxu1 }
 0x2d0   :  { %v3918_v41 = vshll.u32 %v3598_v53, 16  ;;  %v3924_v38 = vshll.u32 %v12529_v20, 16  ;;  %v1818_v31 = vor.u32 %v1816_v50, %v12617_v43  ;;  %v5896_v62 = vrot.slane %v5894_v37, 4  ;;  %1276 = vst [vmem:[#allocation2 + $0x114] sm:$0x1] %v1275_v5  ;;  %v7106_v28 = vpop.permute.xlu2 %7105 }
 0x2d1   :  { %v6214_v48 = vpack.c.b16 %v6162_v1, %v6161_v24  ;;  %v692_v47 = vmul.f32 1.442695, %v588_v3  ;;  %v971_v59 = vmul.f32 %v9377_v56, %v12560_v23  ;;  %v3917_v34 = vrot.slane %v3915_v29, 4  ;;  %v12636_v23 = vld [vmem:[%s14726_s4] ss:$0 sm:$0xff] }
 0x2d2   :  { %v4874_v35 = vld [vmem:[#allocation2 + $0xd4] sm:$0x1]  ;;  %v3920_v6 = vrot.slane %v3918_v41, 5  ;;  %v3926_v40 = vrot.slane %v3924_v38, 5  ;;  %v2266_v53 = vsel %vm11029_vm11, %v1818_v31, %v2265_v26  ;;  %v3928_v37 = vshrl.u32 %v12529_v20, 16  ;;  %v7266_v38 = vpop.permute.xlu0 %7265 }
 0x2d3   :  { %v10386_v49 = vpop.eup %10385  ;;  %6257 = vrot.lane.b32.xlu2 %v6214_v48, %s10849_s29  ;;  %v5897_v50 = vrot.slane %v4874_v35, 5  ;;  %10387 = vpow2.f32 %v692_v47  ;;  %2267 = vst [vmem:[#allocation2 + $0x108] sm:$0xf] %v2266_v53  ;;  %v7353_v24 = vunpack.c.l.b16 %v5895_v18  ;;  %v3934_v3 = vshll.u32 %v12532_v54, 16  ;;  %v3234_v54 = vld [vmem:[#allocation2 + $0x84] sm:$0xe] }
 0x2d4   :  { %v1163_v56 = vmul.f32 %v10386_v49, %v971_v59  ;;  %v3921_v1 = vor.u32 %v3920_v6, %v3917_v34  ;;  %v3930_v5 = vrot.slane %v3928_v37, 4  ;;  %v8119_v29 = vadd.f32 %v12636_v23, %v8118_v52  ;;  %v490_v6 = vpop.f32.mrf.mxu0  ;;  %v10091_v37 = vld [vmem:[#allocation2 + $0x90] sm:$0xff] }
 0x2d5   :  { %v5898_v26 = vsel %vm11123_vm15, %v5896_v62, %v5897_v50  ;;  %v1819_v20 = vrot.slane %v12617_v43, 4  ;;  %v3936_v49 = vrot.slane %v3934_v3, 5  ;;  %v7783_v59 = vsel %vm7775_vm8, %v7718_v63, %v7106_v28 }
 0x2d6   :  { %v1462_v41 = vpack.c.bf16 %v1163_v56, %v1163_v56  ;;  %v7354_v31 = vunpack.c.l.b16 %v5898_v26  ;;  %v3922_v48 = vrot.slane %v3921_v1, 4  ;;  %v3931_v47 = vor.u32 %v3930_v5, %v3926_v40 }
 0x2d7   :  { %v12645_v18 = vadd.f32 %v12300_v10, %v8119_v29  ;;  %v7851_v56 = vsel %vm7840_vm10, %v7783_v59, %v7266_v38  ;;  %v12652_v10 = vpop.f32.mrf.mxu2  ;;  %v9413_v28 = vrot.slane %v3234_v54, 9  ;;  %v3436_v5 = vrot.slane %v12581_v15, 5  ;;  %v12663_v29 = vld [vmem:[%s14724_s2] ss:$0 sm:$0xff]  ;;  %v1384_v54 = vld [vmem:[#allocation2 + $0x11c] sm:$0x1] }
 0x2d8   :  { %v1821_v35 = vshrl.u32 %v1462_v41, 16  ;;  %v1824_v30 = vshll.u32 %v1462_v41, 16  ;;  %v7402_v62 = vpack.c.b16 %v7354_v31, %v7353_v24  ;;  %v3927_v34 = vsel %vm10971_vm9, %v3922_v48, %v3926_v40  ;;  %14760 = vst [vmem:[#allocation23_spill] sm:$0xff] %v12652_v10  ;;  %8132 = vmatmul.bf16.gmra.mxu1 %v7851_v56  ;;  %v2269_v40 = vld [vmem:[#allocation2 + $0x110] sm:$0x1] }
 0x2d9   :  { %v10388_v43 = vpop.eup %10387  ;;  %v3932_v52 = vrot.slane %v3931_v47, 4  ;;  %v6671_v53 = vunpack.c.l.b16 %v3927_v34  ;;  %v8447_v50 = vmin.f32 %v12645_v18, 20.0  ;;  %v3433_v24 = vrot.slane %v12573_v51, 5  ;;  %v12668_v47 = vpop.permute.xlu2 %6595  ;;  %v4815_v34 = vld [vmem:[#allocation2 + $0x90] sm:$0xf] }
 0x2da   :  { %v1823_v1 = vrot.slane %v1821_v35, 7  ;;  %9933 = vmatmul.msk.bf16.gmra.mxu2 %vm7419_vm2, %v7402_v62  ;;  %v780_v63 = vadd.f32 1.0, %v10388_v43  ;;  %v12666_v41 = vadd.f32 %v12663_v29, %v490_v6 }
 0x2db   :  { %v3937_v3 = vsel %vm10971_vm9, %v3932_v52, %v3936_v49  ;;  %v8511_v26 = vmul.f32 1.442695, %v8447_v50  ;;  %6609 = vrot.lane.b32.xlu2 %v10091_v37, %s10850_s30  ;;  %v3434_v49 = vsel %vm11123_vm15, %v9413_v28, %v3433_v24  ;;  %v3435_v59 = vrot.slane %v3433_v24, 4  ;;  %v10716_v24 = vld [vmem:[#allocation2 + $0x94] sm:$0xf] }
 0x2dc   :  { %v1826_v38 = vor.u32 %v1824_v30, %v1823_v1  ;;  %v1828_v31 = vrot.slane %v1823_v1, 4  ;;  %v844_v51 = vmul.f32 %v780_v63, %v780_v63  ;;  %v6672_v48 = vunpack.c.l.b16 %v3937_v3  ;;  %v4453_v1 = vld [vmem:[#allocation2 + $0x90] sm:$0xe] }
 0x2dd   :  { %10389 = vpow2.f32 %v8511_v26  ;;  %v589_v15 = vmin.f32 %v12666_v41, 20.0  ;;  %v3437_v52 = vsel %vm11123_vm15, %v3435_v59, %v3436_v5  ;;  %v6321_v37 = vunpack.c.l.b16 %v3434_v49  ;;  %v10717_v5 = vld [vmem:[#allocation2 + $0x98] sm:$0x1] }
 0x2de   :  { %v1827_v35 = vsel %vm11052_vm12, %v1819_v20, %v1826_v38  ;;  %v2270_v62 = vsel %vm10919_vm4, %v1828_v31, %v2269_v40  ;;  %v1036_v30 = vadd.f32 1.0, %v844_v51  ;;  %v9378_v6 = vadd.f32 -1.0, %v844_v51  ;;  %v8120_v40 = vpop.f32.mrf.mxu1  ;;  %v12683_v31 = vld [vmem:[#allocation2 + $0x94] sm:$0xf]  ;;  %v12685_v51 = vld [vmem:[#allocation2 + $0x98] sm:$0x1] }
 0x2df   :  { %2268 = vst.msk [vmem:[#allocation2 + $0x10c] sm:$0xf] %vm1188_vm1, %v1827_v35  ;;  %v6725_v43 = vpack.c.b16 %v6672_v48, %v6671_v53  ;;  %v694_v50 = vmul.f32 1.442695, %v589_v15  ;;  %v6322_v56 = vunpack.c.l.b16 %v3437_v52  ;;  %v1385_v20 = vsel %vm10937_vm6, 0, %v1384_v54  ;;  %v12704_v39 = vpop.f32.mrf.mxu2 }
 0x2e0   :  { %2271 = vst [vmem:[#allocation2 + $0x110] sm:$0x1] %v2270_v62  ;;  %10391 = vrcp.f32 %v1036_v30  ;;  %v5132_v63 = vshrl.u32 %v4815_v34, 16  ;;  %v5135_v28 = vshll.u32 %v4815_v34, 16  ;;  %v5141_v53 = vshll.u32 %v10716_v24, 16 }
 0x2e1   :  { %6767 = vrot.lane.b32.xlu1 %v6725_v43, %s10846_s23  ;;  %10393 = vpow2.f32 %v694_v50  ;;  %1386 = vst [vmem:[#allocation2 + $0x11c] sm:$0x1] %v1385_v20  ;;  %v6374_v3 = vpack.c.b16 %v6322_v56, %v6321_v37  ;;  %v5145_v26 = vshrl.u32 %v10716_v24, 16  ;;  %v5151_v38 = vshll.u32 %v10717_v5, 16  ;;  %v5675_v35 = vld [vmem:[#allocation2 + $0xf0] sm:$0xe] }
 0x2e2   :  { %v5134_v49 = vrot.slane %v5132_v63, 4  ;;  %v5137_v59 = vrot.slane %v5135_v28, 5  ;;  %v5143_v15 = vrot.slane %v5141_v53, 5  ;;  %v8121_v54 = vadd.f32 %v12636_v23, %v8120_v40  ;;  %v4828_v52 = vld [vmem:[#allocation2 + $0xf4] sm:$0xf]  ;;  %14761 = vst [vmem:[#allocation24_spill] sm:$0xff] %v12704_v39  ;;  %v12747_v39 = vpop.permute.xlu1 %6915 }
 0x2e3   :  { %v10390_v48 = vpop.eup %10389  ;;  %v972_v62 = vmul.f32 %v9378_v6, %v12610_v7  ;;  %6417 = vrot.lane.b32.xlu0 %v6374_v3, %s10852_s7  ;;  %v5147_v34 = vrot.slane %v5145_v26, 4  ;;  %v5153_v43 = vrot.slane %v5151_v38, 5  ;;  %v9445_v56 = vrot.slane %v4453_v1, 9  ;;  %v12695_v6 = vpop.permute.xlu2 %6293 }
 0x2e4   :  { %v8639_v30 = vadd.f32 1.0, %v10390_v48  ;;  %v5138_v50 = vor.u32 %v5137_v59, %v5134_v49  ;;  %v12691_v37 = vadd.f32 %v12332_v4, %v8121_v54  ;;  %v4649_v20 = vrot.slane %v12683_v31, 5 }
 0x2e5   :  { %v5148_v24 = vor.u32 %v5147_v34, %v5143_v15  ;;  %v4652_v23 = vrot.slane %v12685_v51, 5  ;;  %v9482_v53 = vrot.slane %v5675_v35, 9  ;;  %v5901_v5 = vrot.slane %v4828_v52, 5 }
 0x2e6   :  { %v10392_v63 = vpop.eup %10391  ;;  %v8703_v28 = vmul.f32 %v8639_v30, %v8639_v30  ;;  %v5139_v3 = vrot.slane %v5138_v50, 4  ;;  %v8448_v26 = vmin.f32 %v12691_v37, 20.0  ;;  %v4650_v1 = vsel %vm11123_vm15, %v9445_v56, %v4649_v20  ;;  %v10122_v50 = vld [vmem:[#allocation2 + $0x90] sm:$0xff] }
 0x2e7   :  { %v10394_v7 = vpop.eup %10393  ;;  %v1164_v40 = vmul.f32 %v10392_v63, %v972_v62  ;;  %v5149_v48 = vrot.slane %v5148_v24, 4  ;;  %v4651_v35 = vrot.slane %v4649_v20, 4  ;;  %v4875_v20 = vld [vmem:[#allocation2 + $0xf8] sm:$0x1] }
 0x2e8   :  { %v8895_v38 = vadd.f32 1.0, %v8703_v28  ;;  %v781_v4 = vadd.f32 1.0, %v10394_v7  ;;  %v5144_v59 = vsel %vm10971_vm9, %v5139_v3, %v5143_v15  ;;  %v8513_v54 = vmul.f32 1.442695, %v8448_v26 }
 0x2e9   :  { %v1463_v49 = vpack.c.bf16 %v1164_v40, %v1164_v40  ;;  %v9950_v30 = vadd.f32 -1.0, %v8703_v28  ;;  %v5154_v62 = vsel %vm10971_vm9, %v5149_v48, %v5153_v43  ;;  %v7183_v7 = vunpack.c.l.b16 %v5144_v59  ;;  %v3600_v48 = vld [vmem:[#allocation2 + $0x90] sm:$0xf] }
 0x2ea   :  { %10395 = vrcp.f32 %v8895_v38  ;;  %v845_v34 = vmul.f32 %v781_v4, %v781_v4  ;;  %v7184_v24 = vunpack.c.l.b16 %v5154_v62  ;;  %v4653_v15 = vsel %vm11123_vm15, %v4651_v35, %v4652_v23  ;;  %v493_v38 = vpop.f32.mrf.mxu0  ;;  %v1277_v4 = vld [vmem:[#allocation2 + $0x120] sm:$0x1] }
 0x2eb   :  { %v1830_v52 = vshrl.u32 %v1463_v49, 16  ;;  %v1833_v63 = vshll.u32 %v1463_v49, 16  ;;  %10397 = vpow2.f32 %v8513_v54  ;;  %7119 = vrot.lane.b32.xlu0 %v10122_v50, %s10851_s6  ;;  %v6833_v43 = vunpack.c.l.b16 %v4650_v1  ;;  %v2272_v49 = vld [vmem:[#allocation2 + $0x114] sm:$0xf] }
 0x2ec   :  { %v9379_v56 = vadd.f32 -1.0, %v845_v34  ;;  %v1037_v40 = vadd.f32 1.0, %v845_v34  ;;  %v7237_v3 = vpack.c.b16 %v7184_v24, %v7183_v7  ;;  %v6834_v26 = vunpack.c.l.b16 %v4653_v15  ;;  %v12722_v24 = vpop.permute.xlu2 %6245 }
 0x2ed   :  { %v12709_v28 = vrot.slane %v1830_v52, 7  ;;  %v8831_v59 = vmul.f32 %v9950_v30, %v12645_v18  ;;  %v5902_v54 = vsel %vm11123_vm15, %v9482_v53, %v5901_v5  ;;  %v5903_v34 = vrot.slane %v5901_v5, 4 }
 0x2ee   :  { %10399 = vrcp.f32 %v1037_v40  ;;  %v973_v35 = vmul.f32 %v9379_v56, %v12666_v41  ;;  %7279 = vrot.lane.b32.xlu1 %v7237_v3, %s10854_s13  ;;  %v6886_v62 = vpack.c.b16 %v6834_v26, %v6833_v43  ;;  %v5904_v1 = vrot.slane %v4875_v20, 5  ;;  %v2384_v56 = vld [vmem:[#allocation2 + $0xa8] sm:$0xf] }
 0x2ef   :  { %v1835_v23 = vor.u32 %v1833_v63, %v12709_v28  ;;  %v7355_v52 = vunpack.c.l.b16 %v5902_v54  ;;  %v12718_v7 = vadd.f32 %v12663_v29, %v493_v38  ;;  %v1278_v18 = vsel %vm10919_vm4, 0, %v1277_v4 }
 0x2f0   :  { %v10396_v50 = vpop.eup %10395  ;;  %v3939_v30 = vshrl.u32 %v3600_v48, 16  ;;  %6929 = vrot.lane.b32.xlu2 %v6886_v62, %s10853_s12  ;;  %v5905_v41 = vsel %vm11123_vm15, %v5903_v34, %v5904_v1  ;;  %1279 = vst [vmem:[#allocation2 + $0x120] sm:$0x1] %v1278_v18  ;;  %v3942_v63 = vshll.u32 %v3600_v48, 16  ;;  %v3948_v43 = vshll.u32 %v12683_v31, 16 }
 0x2f1   :  { %v2273_v53 = vsel %vm11029_vm11, %v1835_v23, %v2272_v49  ;;  %v9023_v5 = vmul.f32 %v10396_v50, %v8831_v59  ;;  %v10398_v40 = vpop.eup %10397  ;;  %v7356_v15 = vunpack.c.l.b16 %v5905_v41  ;;  %v590_v20 = vmin.f32 %v12718_v7, 20.0 }
 0x2f2   :  { %2274 = vst [vmem:[#allocation2 + $0x114] sm:$0xf] %v2273_v53  ;;  %v3941_v3 = vrot.slane %v3939_v30, 4  ;;  %v8640_v26 = vadd.f32 1.0, %v10398_v40  ;;  %v3944_v38 = vrot.slane %v3942_v63, 5  ;;  %v3952_v4 = vshrl.u32 %v12683_v31, 16  ;;  %v12734_v53 = vpop.f32.mrf.mxu2 }
 0x2f3   :  { %9087 = vst.msk [vmem:[#allocation6] sm:$0xff] %vm282_vm0, %v9023_v5  ;;  %v3958_v49 = vshll.u32 %v12685_v51, 16  ;;  %v7403_v54 = vpack.c.b16 %v7356_v15, %v7355_v52  ;;  %v696_v48 = vmul.f32 1.442695, %v590_v20  ;;  %v3950_v34 = vrot.slane %v3948_v43, 5 }
 0x2f4   :  { %v10400_v59 = vpop.eup %10399  ;;  %v2792_v23 = vshrl.u32 %v2384_v56, 16  ;;  %v8704_v1 = vmul.f32 %v8640_v26, %v8640_v26  ;;  %v3945_v50 = vor.u32 %v3944_v38, %v3941_v3  ;;  %v3954_v18 = vrot.slane %v3952_v4, 4  ;;  %v2385_v30 = vld [vmem:[#allocation2 + $0xac] sm:$0xf]  ;;  %14762 = vst [vmem:[#allocation25_spill] sm:$0xff] %v12734_v53 }
 0x2f5   :  { %v1165_v62 = vmul.f32 %v10400_v59, %v973_v35  ;;  %9934 = vmatmul.msk.bf16.gmra.mxu2 %vm7419_vm2, %v7403_v54  ;;  %10401 = vpow2.f32 %v696_v48  ;;  %v2795_v52 = vshll.u32 %v2384_v56, 16  ;;  %v2801_v15 = vshll.u32 %v2385_v30, 16  ;;  %v12738_v35 = vpop.permute.xlu0 %6755  ;;  %v2434_v26 = vld [vmem:[#allocation2 + $0xb0] sm:$0x1]  ;;  %v12742_v48 = vpop.permute.xlu2 %7107 }
 0x2f6   :  { %v9951_v41 = vadd.f32 -1.0, %v8704_v1  ;;  %v8896_v31 = vadd.f32 1.0, %v8704_v1  ;;  %v2794_v63 = vrot.slane %v2792_v23, 4  ;;  %v3946_v51 = vrot.slane %v3945_v50, 4 }
 0x2f7   :  { %v1464_v5 = vpack.c.bf16 %v1165_v62, %v1165_v62  ;;  %v3955_v40 = vor.u32 %v3954_v18, %v3950_v34  ;;  %v1836_v20 = vrot.slane %v12709_v28, 4  ;;  %v3960_v43 = vrot.slane %v3958_v49, 5  ;;  %v2380_v28 = vld [vmem:[#allocation2 + $0x90] sm:$0xf]  ;;  %v2276_v18 = vld [vmem:[#allocation2 + $0x11c] sm:$0x1] }
 0x2f8   :  { %10403 = vrcp.f32 %v8896_v31  ;;  %v3951_v4 = vsel %vm10971_vm9, %v3946_v51, %v3950_v34  ;;  %v2797_v54 = vrot.slane %v2795_v52, 5  ;;  %v8832_v56 = vmul.f32 %v9951_v41, %v12691_v37 }
 0x2f9   :  { %v1838_v3 = vshrl.u32 %v1464_v5, 16  ;;  %v1841_v38 = vshll.u32 %v1464_v5, 16  ;;  %v3956_v59 = vrot.slane %v3955_v40, 4  ;;  %v6673_v62 = vunpack.c.l.b16 %v3951_v4 }
 0x2fa   :  { %v2805_v1 = vshrl.u32 %v2385_v30, 16  ;;  %v2798_v31 = vor.u32 %v2797_v54, %v2794_v63  ;;  %v2803_v5 = vrot.slane %v2801_v15, 5  ;;  %v2811_v53 = vshll.u32 %v2434_v26, 16  ;;  %v2381_v26 = vld [vmem:[#allocation2 + $0x94] sm:$0xf] }
 0x2fb   :  { %v1840_v23 = vrot.slane %v1838_v3, 7  ;;  %v10402_v50 = vpop.eup %10401  ;;  %v3961_v49 = vsel %vm10971_vm9, %v3956_v59, %v3960_v43  ;;  %v2744_v41 = vshrl.u32 %v2380_v28, 16  ;;  %v2432_v59 = vld [vmem:[#allocation2 + $0x98] sm:$0x1] }
 0x2fc   :  { %v782_v40 = vadd.f32 1.0, %v10402_v50  ;;  %v6674_v52 = vunpack.c.l.b16 %v3961_v49  ;;  %v2799_v3 = vrot.slane %v2798_v31, 4  ;;  %v2807_v10 = vrot.slane %v2805_v1, 4  ;;  %v495_v1 = vpop.f32.mrf.mxu0  ;;  %v1387_v50 = vld [vmem:[#allocation2 + $0x128] sm:$0x1] }
 0x2fd   :  { %v1843_v34 = vor.u32 %v1841_v38, %v1840_v23  ;;  %v1845_v51 = vrot.slane %v1840_v23, 4  ;;  %v2813_v37 = vrot.slane %v2811_v53, 5  ;;  %v2746_v53 = vrot.slane %v2744_v41, 4  ;;  %v2383_v41 = vld [vmem:[#allocation2 + $0xa0] sm:$0xf] }
 0x2fe   :  { %v10404_v30 = vpop.eup %10403  ;;  %v846_v63 = vmul.f32 %v782_v40, %v782_v40  ;;  %v6726_v15 = vpack.c.b16 %v6674_v52, %v6673_v62  ;;  %v2804_v54 = vsel %vm10971_vm9, %v2799_v3, %v2803_v5  ;;  %v2808_v23 = vor.u32 %v2807_v10, %v2803_v5  ;;  %v12758_v40 = vpop.permute.xlu0 %6295  ;;  %v2382_v3 = vld [vmem:[#allocation2 + $0x9c] sm:$0xf] }
 0x2ff   :  { %v1844_v4 = vsel %vm11052_vm12, %v1836_v20, %v1843_v34  ;;  %v2277_v43 = vsel %vm10919_vm4, %v1845_v51, %v2276_v18  ;;  %v9024_v38 = vmul.f32 %v10404_v30, %v8832_v56  ;;  %v6167_v18 = vunpack.c.l.b16 %v2804_v54 }
 0x300   :  { %2275 = vst.msk [vmem:[#allocation2 + $0x118] sm:$0xf] %vm1188_vm1, %v1844_v4  ;;  %v9380_v49 = vadd.f32 -1.0, %v846_v63  ;;  %v1038_v20 = vadd.f32 1.0, %v846_v63  ;;  %6769 = vrot.lane.b32.xlu1 %v6726_v15, %s10846_s23  ;;  %v2747_v31 = vshll.u32 %v2380_v28, 16  ;;  %v2809_v62 = vrot.slane %v2808_v23, 4  ;;  %v12766_v63 = vpop.permute.xlu2 %6757 }
 0x301   :  { %2278 = vst [vmem:[#allocation2 + $0x11c] sm:$0x1] %v2277_v43  ;;  %v2753_v34 = vshll.u32 %v2381_v26, 16  ;;  %v2757_v51 = vshrl.u32 %v2381_v26, 16  ;;  %v2763_v56 = vshll.u32 %v2432_v59, 16  ;;  %v12762_v52 = vadd.f32 %v12663_v29, %v495_v1 }
 0x302   :  { %9088 = vst.msk [vmem:[#allocation6 + $0x8] sm:$0xff] %vm282_vm0, %v9024_v38  ;;  %v974_v10 = vmul.f32 %v9380_v49, %v12718_v7  ;;  %10405 = vrcp.f32 %v1038_v20  ;;  %v2749_v5 = vrot.slane %v2747_v31, 5  ;;  %v2814_v28 = vsel %vm10971_vm9, %v2809_v62, %v2813_v37  ;;  %v2433_v38 = vld [vmem:[#allocation2 + $0xa4] sm:$0x1]  ;;  %v12771_v20 = vpop.permute.xlu1 %6597 }
 0x303   :  { %v2755_v30 = vrot.slane %v2753_v34, 5  ;;  %v2759_v4 = vrot.slane %v2757_v51, 4  ;;  %v2765_v43 = vrot.slane %v2763_v56, 5  ;;  %v6168_v15 = vunpack.c.l.b16 %v2814_v28 }
 0x304   :  { %v2750_v26 = vor.u32 %v2749_v5, %v2746_v53  ;;  %v591_v59 = vmin.f32 %v12762_v52, 20.0  ;;  %v1388_v7 = vsel %vm10937_vm6, 0, %v1387_v50  ;;  %v2768_v23 = vshrl.u32 %v2382_v3, 16 }
 0x305   :  { %v2760_v54 = vor.u32 %v2759_v4, %v2755_v30  ;;  %1389 = vst [vmem:[#allocation2 + $0x128] sm:$0x1] %v1388_v7  ;;  %v2771_v1 = vshll.u32 %v2382_v3, 16  ;;  %v2777_v49 = vshll.u32 %v2383_v41, 16  ;;  %v6217_v37 = vpack.c.b16 %v6168_v15, %v6167_v18  ;;  %v12776_v7 = vld [vmem:[#allocation2 + $0xdc] sm:$0xf] }
 0x306   :  { %v2751_v31 = vrot.slane %v2750_v26, 4  ;;  %v698_v62 = vmul.f32 1.442695, %v591_v59  ;;  %v2781_v34 = vshrl.u32 %v2383_v41, 16  ;;  %v2770_v56 = vrot.slane %v2768_v23, 4  ;;  %14763 = vst [vmem:[#allocation26_spill] sm:$0xff] %v12776_v7  ;;  %v12785_v18 = vpop.permute.xlu0 %6917 }
 0x307   :  { %v2761_v51 = vrot.slane %v2760_v54, 4  ;;  %v2773_v53 = vrot.slane %v2771_v1, 5  ;;  %v2779_v5 = vrot.slane %v2777_v49, 5  ;;  %6263 = vrot.lane.b32.xlu2 %v6217_v37, %s10849_s29  ;;  %v2787_v4 = vshll.u32 %v2433_v38, 16  ;;  %v10052_v15 = vld [vmem:[#allocation2 + $0x30] sm:$0xff] }
 0x308   :  { %v10406_v28 = vpop.eup %10405  ;;  %v2756_v50 = vsel %vm10971_vm9, %v2751_v31, %v2755_v30  ;;  %10407 = vpow2.f32 %v698_v62  ;;  %v2783_v3 = vrot.slane %v2781_v34, 4  ;;  %v2390_v54 = vld [vmem:[#allocation2 + $0xe4] sm:$0xf]  ;;  %v7500_v23 = vsel %vm7419_vm2, %v10074_v60, %v11932_v13  ;;  %v2391_v37 = vld [vmem:[#allocation2 + $0xe8] sm:$0xf] }
 0x309   :  { %v1166_v41 = vmul.f32 %v10406_v28, %v974_v10  ;;  %v2766_v26 = vsel %vm10971_vm9, %v2761_v51, %v2765_v43  ;;  %v2774_v59 = vor.u32 %v2773_v53, %v2770_v56  ;;  %v6163_v1 = vunpack.c.l.b16 %v2756_v50 }
 0x30a   :  { %v6164_v49 = vunpack.c.l.b16 %v2766_v26  ;;  %v2784_v30 = vor.u32 %v2783_v3, %v2779_v5  ;;  %v7434_v38 = vsel %vm7419_vm2, %v10052_v15, %v12594_v8  ;;  %v2789_v34 = vrot.slane %v2787_v4, 5  ;;  %v12791_v3 = vpop.permute.xlu2 %6919  ;;  %v2437_v15 = vld [vmem:[#allocation2 + $0xec] sm:$0x1] }
 0x30b   :  { %v1465_v31 = vpack.c.bf16 %v1166_v41, %v1166_v41  ;;  %v2775_v62 = vrot.slane %v2774_v59, 4  ;;  %v2864_v43 = vshrl.u32 %v2390_v54, 16  ;;  %v2867_v51 = vshll.u32 %v2390_v54, 16 }
 0x30c   :  { %v6215_v10 = vpack.c.b16 %v6164_v49, %v6163_v1  ;;  %v2785_v28 = vrot.slane %v2784_v30, 4  ;;  %v7525_v56 = vsel %vm282_vm0, %v7434_v38, %v12509_v9  ;;  %v2873_v53 = vshll.u32 %v2391_v37, 16  ;;  %v12800_v49 = vpop.permute.xlu1 %6407  ;;  %v2279_v30 = vld [vmem:[#allocation2 + $0x120] sm:$0xf] }
 0x30d   :  { %v1847_v13 = vshrl.u32 %v1465_v31, 16  ;;  %v2780_v60 = vsel %vm10971_vm9, %v2775_v62, %v2779_v5  ;;  %v1850_v8 = vshll.u32 %v1465_v31, 16  ;;  %v2866_v41 = vrot.slane %v2864_v43, 4 }
 0x30e   :  { %v10408_v50 = vpop.eup %10407  ;;  %6259 = vrot.lane.b32.xlu0 %v6215_v10, %s10849_s29  ;;  %v2790_v4 = vsel %vm10971_vm9, %v2785_v28, %v2789_v34  ;;  %v2869_v26 = vrot.slane %v2867_v51, 5  ;;  %v6165_v54 = vunpack.c.l.b16 %v2780_v60  ;;  %v7569_v5 = vsel %vm282_vm0, %v7500_v23, %v11903_v33  ;;  %v2386_v10 = vld [vmem:[#allocation2 + $0xb4] sm:$0xf] }
 0x30f   :  { %v12796_v59 = vrot.slane %v1847_v13, 7  ;;  %v783_v9 = vadd.f32 1.0, %v10408_v50  ;;  %v6166_v1 = vunpack.c.l.b16 %v2790_v4  ;;  %v2875_v31 = vrot.slane %v2873_v53, 5  ;;  %v2387_v13 = vld [vmem:[#allocation2 + $0xb8] sm:$0xf] }
 0x310   :  { %v2870_v38 = vor.u32 %v2869_v26, %v2866_v41  ;;  %v2877_v62 = vshrl.u32 %v2391_v37, 16  ;;  %v2883_v51 = vshll.u32 %v2437_v15, 16  ;;  %v7634_v60 = vsel %vm7580_vm3, %v7569_v5, %v12125_v61  ;;  %v2435_v4 = vld [vmem:[#allocation2 + $0xbc] sm:$0x1]  ;;  %v4830_v26 = vld [vmem:[#allocation2 + $0x100] sm:$0xf] }
 0x311   :  { %v1852_v34 = vor.u32 %v1850_v8, %v12796_v59  ;;  %v847_v28 = vmul.f32 %v783_v9, %v783_v9  ;;  %v6216_v43 = vpack.c.b16 %v6166_v1, %v6165_v54  ;;  %v7590_v50 = vsel %vm7580_vm3, %v7525_v56, %v12668_v47  ;;  %v5676_v47 = vld [vmem:[#allocation2 + $0xfc] sm:$0xe] }
 0x312   :  { %v2871_v33 = vrot.slane %v2870_v38, 4  ;;  %v2879_v23 = vrot.slane %v2877_v62, 4  ;;  %v2816_v8 = vshrl.u32 %v2386_v10, 16  ;;  %v7655_v15 = vsel %vm7645_vm5, %v7590_v50, %v12738_v35  ;;  %v12816_v38 = vpop.permute.xlu0 %6247  ;;  %v4876_v35 = vld [vmem:[#allocation2 + $0x104] sm:$0x1]  ;;  %v12819_v7 = vpop.permute.xlu2 %7269 }
 0x313   :  { %v2280_v53 = vsel %vm11029_vm11, %v1852_v34, %v2279_v30  ;;  %v9381_v37 = vadd.f32 -1.0, %v847_v28  ;;  %v1039_v41 = vadd.f32 1.0, %v847_v28  ;;  %6261 = vrot.lane.b32.xlu1 %v6216_v43, %s10849_s29  ;;  %v2819_v9 = vshll.u32 %v2386_v10, 16  ;;  %v12814_v30 = vpop.f32.mrf.mxu2 }
 0x314   :  { %2281 = vst [vmem:[#allocation2 + $0x120] sm:$0xf] %v2280_v53  ;;  %v2880_v61 = vor.u32 %v2879_v23, %v2875_v31  ;;  %v2825_v54 = vshll.u32 %v2387_v13, 16  ;;  %v2876_v56 = vsel %vm10971_vm9, %v2871_v33, %v2875_v31  ;;  %v2885_v1 = vrot.slane %v2883_v51, 5 }
 0x315   :  { %10409 = vrcp.f32 %v1039_v41  ;;  %v2818_v5 = vrot.slane %v2816_v8, 4  ;;  %14764 = vst [vmem:[#allocation27_spill] sm:$0xff] %v12814_v30  ;;  %v2821_v34 = vrot.slane %v2819_v9, 5  ;;  %v2829_v43 = vshrl.u32 %v2387_v13, 16  ;;  %v498_v41 = vpop.f32.mrf.mxu0  ;;  %v1280_v30 = vld [vmem:[#allocation2 + $0x12c] sm:$0x1] }
 0x316   :  { %v2881_v62 = vrot.slane %v2880_v61, 4  ;;  %v2827_v28 = vrot.slane %v2825_v54, 5  ;;  %v975_v50 = vmul.f32 %v9381_v37, %v12762_v52  ;;  %v2835_v10 = vshll.u32 %v2435_v4, 16  ;;  %v12825_v52 = vpop.permute.xlu1 %7109 }
 0x317   :  { %v9483_v23 = vrot.slane %v5676_v47, 9  ;;  %v5908_v53 = vrot.slane %v4830_v26, 5  ;;  %v6173_v51 = vunpack.c.l.b16 %v2876_v56  ;;  %v2822_v33 = vor.u32 %v2821_v34, %v2818_v5 }
 0x318   :  { %v2886_v31 = vsel %vm10971_vm9, %v2881_v62, %v2885_v1  ;;  %v2831_v8 = vrot.slane %v2829_v43, 4  ;;  %v5911_v54 = vrot.slane %v4876_v35, 5  ;;  %v2837_v26 = vrot.slane %v2835_v10, 5  ;;  %v12836_v10 = vld [vmem:[#allocation2 + $0xe0] sm:$0x1] }
 0x319   :  { %v6174_v61 = vunpack.c.l.b16 %v2886_v31  ;;  %v5909_v13 = vsel %vm11123_vm15, %v9483_v23, %v5908_v53  ;;  %v5910_v9 = vrot.slane %v5908_v53, 4  ;;  %v2823_v4 = vrot.slane %v2822_v33, 4  ;;  %14765 = vst [vmem:[#allocation28_spill] sm:$0xff] %v12836_v10 }
 0x31a   :  { %v2832_v37 = vor.u32 %v2831_v8, %v2827_v28  ;;  %v12828_v47 = vadd.f32 %v12663_v29, %v498_v41  ;;  %v7357_v5 = vunpack.c.l.b16 %v5909_v13  ;;  %v1281_v62 = vsel %vm10919_vm4, 0, %v1280_v30  ;;  %v12845_v30 = vld [vmem:[#allocation2 + $0x158] sm:$0x1] }
 0x31b   :  { %v10410_v0 = vpop.eup %10409  ;;  %v6220_v1 = vpack.c.b16 %v6174_v61, %v6173_v51  ;;  %v5912_v56 = vsel %vm11123_vm15, %v5910_v9, %v5911_v54  ;;  %v2828_v43 = vsel %vm10971_vm9, %v2823_v4, %v2827_v28  ;;  %1282 = vst [vmem:[#allocation2 + $0x12c] sm:$0x1] %v1281_v62  ;;  %v7699_v41 = vsel %vm7645_vm5, %v7634_v60, %v12277_v58  ;;  %v12850_v61 = vld [vmem:[#allocation2 + $0x188] sm:$0x1]  ;;  %v12859_v54 = vpop.f32.mrf.mxu2 }
 0x31c   :  { %v1167_v34 = vmul.f32 %v10410_v0, %v975_v50  ;;  %v2833_v35 = vrot.slane %v2832_v37, 4  ;;  %v7358_v23 = vunpack.c.l.b16 %v5912_v56  ;;  %v7720_v31 = vsel %vm7710_vm7, %v7655_v15, %v12747_v39  ;;  %v10075_v50 = vld [vmem:[#allocation2 + $0x15c] sm:$0xff]  ;;  %v7268_v37 = vpop.permute.xlu0 %7267 }
 0x31d   :  { %6269 = vrot.lane.b32.xlu2 %v6220_v1, %s10849_s29  ;;  %v592_v0 = vmin.f32 %v12828_v47, 20.0  ;;  %v6169_v60 = vunpack.c.l.b16 %v2828_v43  ;;  %v7503_v13 = vsel %vm7419_vm2, %v10075_v50, %v12343_v46  ;;  %v12857_v9 = vsel %vm7710_vm7, %v7699_v41, %v12064_v19  ;;  %v2394_v1 = vld [vmem:[#allocation2 + $0xfc] sm:$0xf]  ;;  %v2395_v56 = vld [vmem:[#allocation2 + $0x100] sm:$0xf]  ;;  %v12865_v19 = vpop.permute.xlu2 %6601 }
 0x31e   :  { %v1466_v51 = vpack.c.bf16 %v1167_v34, %v1167_v34  ;;  %v2838_v33 = vsel %vm10971_vm9, %v2833_v35, %v2837_v26  ;;  %v7404_v8 = vpack.c.b16 %v7358_v23, %v7357_v5  ;;  %v7785_v26 = vsel %vm7775_vm8, %v7720_v31, %v12742_v48  ;;  %v2283_v5 = vld [vmem:[#allocation2 + $0x128] sm:$0x1]  ;;  %v2439_v34 = vld [vmem:[#allocation2 + $0x104] sm:$0x1]  ;;  %v2392_v50 = vld [vmem:[#allocation2 + $0xf0] sm:$0xf] }
 0x31f   :  { %v6170_v39 = vunpack.c.l.b16 %v2838_v33  ;;  %v700_v15 = vmul.f32 1.442695, %v592_v0  ;;  %v7854_v46 = vsel %vm7840_vm10, %v7785_v26, %v7268_v37  ;;  %v2912_v43 = vshrl.u32 %v2394_v1, 16  ;;  %v12869_v37 = vpop.permute.xlu1 %6297 }
 0x320   :  { %v1855_v4 = vshrl.u32 %v1466_v51, 16  ;;  %9935 = vmatmul.msk.bf16.gmra.mxu2 %vm7419_vm2, %v7404_v8  ;;  %v1858_v23 = vshll.u32 %v1466_v51, 16  ;;  %8137 = vmatmul.bf16.gmra.mxu1 %v7854_v46  ;;  %v2915_v41 = vshll.u32 %v2394_v1, 16  ;;  %v2921_v0 = vshll.u32 %v2395_v56, 16 }
 0x321   :  { %v6218_v62 = vpack.c.b16 %v6170_v39, %v6169_v60  ;;  %10411 = vpow2.f32 %v700_v15  ;;  %v1853_v33 = vrot.slane %v12796_v59, 4  ;;  %v2914_v48 = vrot.slane %v2912_v43, 4  ;;  %v2393_v60 = vld [vmem:[#allocation2 + $0xf4] sm:$0xf] }
 0x322   :  { %v1857_v35 = vrot.slane %v1855_v4, 7  ;;  %v2925_v31 = vshrl.u32 %v2395_v56, 16  ;;  %v2931_v8 = vshll.u32 %v2439_v34, 16  ;;  %v2917_v26 = vrot.slane %v2915_v41, 5  ;;  %v2438_v34 = vld [vmem:[#allocation2 + $0xf8] sm:$0x1] }
 0x323   :  { %6265 = vrot.lane.b32.xlu0 %v6218_v62, %s10849_s29  ;;  %v2923_v53 = vrot.slane %v2921_v0, 5  ;;  %v7571_v51 = vsel %vm282_vm0, %v7503_v13, %v12099_v14  ;;  %v2888_v1 = vshrl.u32 %v2392_v50, 16  ;;  %v2891_v46 = vshll.u32 %v2392_v50, 16  ;;  %v500_v13 = vpop.f32.mrf.mxu0 }
 0x324   :  { %v1860_v39 = vor.u32 %v1858_v23, %v1857_v35  ;;  %v1862_v15 = vrot.slane %v1857_v35, 4  ;;  %v2927_v4 = vrot.slane %v2925_v31, 4  ;;  %v2918_v62 = vor.u32 %v2917_v26, %v2914_v48  ;;  %v10053_v23 = vld [vmem:[#allocation2 + $0x3c] sm:$0xff]  ;;  %v12880_v26 = vpop.f32.mrf.mxu2 }
 0x325   :  { %v2897_v43 = vshll.u32 %v2393_v60, 16  ;;  %v2890_v0 = vrot.slane %v2888_v1, 4  ;;  %v2893_v58 = vrot.slane %v2891_v46, 5  ;;  %v2901_v14 = vshrl.u32 %v2393_v60, 16  ;;  %v1390_v1 = vld [vmem:[#allocation2 + $0x134] sm:$0x1] }
 0x326   :  { %v1861_v59 = vsel %vm11052_vm12, %v1853_v33, %v1860_v39  ;;  %v2284_v56 = vsel %vm10919_vm4, %v1862_v15, %v2283_v5  ;;  %v2928_v41 = vor.u32 %v2927_v4, %v2923_v53  ;;  %v2919_v31 = vrot.slane %v2918_v62, 4  ;;  %v12891_v62 = vpop.permute.xlu2 %6921 }
 0x327   :  { %v10412_v35 = vpop.eup %10411  ;;  %2282 = vst.msk [vmem:[#allocation2 + $0x124] sm:$0xf] %vm1188_vm1, %v1861_v59  ;;  %v2933_v28 = vrot.slane %v2931_v8, 5  ;;  %v2899_v33 = vrot.slane %v2897_v43, 5  ;;  %v2894_v10 = vor.u32 %v2893_v58, %v2890_v0  ;;  %v2903_v5 = vrot.slane %v2901_v14, 4  ;;  %v12902_v0 = vpop.permute.xlu1 %6249 }
 0x328   :  { %2285 = vst [vmem:[#allocation2 + $0x128] sm:$0x1] %v2284_v56  ;;  %v784_v50 = vadd.f32 1.0, %v10412_v35  ;;  %v2929_v39 = vrot.slane %v2928_v41, 4  ;;  %v2907_v48 = vshll.u32 %v2438_v34, 16  ;;  %v7437_v15 = vsel %vm7419_vm2, %v10053_v23, %v12722_v24 }
 0x329   :  { %v2924_v4 = vsel %vm10971_vm9, %v2919_v31, %v2923_v53  ;;  %v12885_v60 = vadd.f32 %v12663_v29, %v500_v13  ;;  %v7527_v8 = vsel %vm282_vm0, %v7437_v15, %v12605_v44  ;;  %v2895_v46 = vrot.slane %v2894_v10, 4  ;;  %v12904_v13 = vld [vmem:[#allocation2 + $0x9c] sm:$0xf] }
 0x32a   :  { %v848_v59 = vmul.f32 %v784_v50, %v784_v50  ;;  %v2934_v58 = vsel %vm10971_vm9, %v2929_v39, %v2933_v28  ;;  %v2904_v56 = vor.u32 %v2903_v5, %v2899_v33  ;;  %v6177_v34 = vunpack.c.l.b16 %v2924_v4  ;;  %v10076_v50 = vld [vmem:[#allocation2 + $0x168] sm:$0xff] }
 0x32b   :  { %v6178_v43 = vunpack.c.l.b16 %v2934_v58  ;;  %v593_v35 = vmin.f32 %v12885_v60, 20.0  ;;  %v2900_v53 = vsel %vm10971_vm9, %v2895_v46, %v2899_v33  ;;  %v2909_v41 = vrot.slane %v2907_v48, 5  ;;  %v10077_v48 = vld [vmem:[#allocation2 + $0x174] sm:$0xff]  ;;  %v8123_v46 = vpop.f32.mrf.mxu1 }
 0x32c   :  { %v1040_v24 = vadd.f32 1.0, %v848_v59  ;;  %v2905_v23 = vrot.slane %v2904_v56, 4  ;;  %v1391_v44 = vsel %vm10937_vm6, 0, %v1390_v1  ;;  %v7636_v28 = vsel %vm7580_vm3, %v7571_v51, %v12408_v25  ;;  %v12910_v25 = vld [vmem:[#allocation2 + $0x194] sm:$0x1] }
 0x32d   :  { %v7592_v10 = vsel %vm7580_vm3, %v7527_v8, %v12771_v20  ;;  %v6222_v14 = vpack.c.b16 %v6178_v43, %v6177_v34  ;;  %1392 = vst [vmem:[#allocation2 + $0x134] sm:$0x1] %v1391_v44  ;;  %v7701_v31 = vsel %vm7645_vm5, %v7636_v28, %v12446_v57  ;;  %v9382_v33 = vadd.f32 -1.0, %v848_v59  ;;  %v4877_v56 = vld [vmem:[#allocation2 + $0x110] sm:$0x1]  ;;  %v10078_v44 = vld [vmem:[#allocation2 + $0x180] sm:$0xff] }
 0x32e   :  { %10413 = vrcp.f32 %v1040_v24  ;;  %v2910_v39 = vsel %vm10971_vm9, %v2905_v23, %v2909_v41  ;;  %v702_v5 = vmul.f32 1.442695, %v593_v35  ;;  %v12916_v51 = vsel %vm7775_vm8, %v12857_v9, %v12303_v45  ;;  %v5677_v24 = vld [vmem:[#allocation2 + $0x108] sm:$0xe]  ;;  %v12938_v34 = vld [vmem:[%s14726_s4] ss:$0 sm:$0xff]  ;;  %v12945_v41 = vpop.f32.mrf.mxu2 }
 0x32f   :  { %14766 = vst [vmem:[#allocation29_spill] sm:$0xff] %v12916_v51  ;;  %6273 = vrot.lane.b32.xlu1 %v6222_v14, %s10849_s29  ;;  %v6175_v15 = vunpack.c.l.b16 %v2900_v53  ;;  %v6176_v4 = vunpack.c.l.b16 %v2910_v39  ;;  %v12921_v57 = vsel %vm7419_vm2, %v10076_v50, %v12399_v21  ;;  %v7657_v59 = vsel %vm7645_vm5, %v7592_v10, %v12766_v63  ;;  %v4832_v21 = vld [vmem:[#allocation2 + $0x10c] sm:$0xf]  ;;  %v1283_v53 = vld [vmem:[#allocation2 + $0x138] sm:$0x1] }
 0x330   :  { %10415 = vpow2.f32 %v702_v5  ;;  %v5156_v1 = vshrl.u32 %v12904_v13, 16  ;;  %v12928_v8 = vsel %vm7419_vm2, %v10077_v48, %v12695_v6  ;;  %v7766_v45 = vsel %vm7710_vm7, %v7701_v31, %v12534_v55  ;;  %v503_v55 = vpop.f32.mrf.mxu0  ;;  %v12968_v48 = vpop.permute.xlu2 %6251 }
 0x331   :  { %14767 = vst [vmem:[#allocation30_spill] sm:$0xff] %v12928_v8  ;;  %v7722_v9 = vsel %vm7710_vm7, %v7657_v59, %v12785_v18  ;;  %v6221_v58 = vpack.c.b16 %v6176_v4, %v6175_v15  ;;  %v976_v63 = vmul.f32 %v9382_v33, %v12828_v47  ;;  %v8124_v6 = vadd.f32 %v12938_v34, %v8123_v46  ;;  %v10054_v47 = vld [vmem:[#allocation2 + $0x48] sm:$0xff]  ;;  %v12971_v59 = vpop.permute.xlu0 %6599 }
 0x332   :  { %v9484_v43 = vrot.slane %v5677_v24, 9  ;;  %v5915_v35 = vrot.slane %v4832_v21, 5  ;;  %v12943_v18 = vsel %vm7775_vm8, %v7766_v45, %v12471_v32  ;;  %v5918_v28 = vrot.slane %v4877_v56, 5 }
 0x333   :  { %14768 = vst [vmem:[#allocation31_spill] sm:$0xff] %v12943_v18  ;;  %6271 = vrot.lane.b32.xlu0 %v6221_v58, %s10849_s29  ;;  %v12949_v10 = vadd.f32 %v12663_v29, %v503_v55  ;;  %v1284_v14 = vsel %vm10919_vm4, 0, %v1283_v53  ;;  %v12954_v31 = vadd.f32 %v12387_v42, %v8124_v6  ;;  %v12960_v39 = vsel %vm7419_vm2, %v10078_v44, %v12758_v40  ;;  %v2396_v6 = vld [vmem:[#allocation2 + $0x108] sm:$0xf]  ;;  %v2286_v44 = vld [vmem:[#allocation2 + $0x12c] sm:$0xf] }
 0x334   :  { %v10414_v23 = vpop.eup %10413  ;;  %v5916_v32 = vsel %vm11123_vm15, %v9484_v43, %v5915_v35  ;;  %v5917_v33 = vrot.slane %v5915_v35, 4  ;;  %1285 = vst [vmem:[#allocation2 + $0x138] sm:$0x1] %v1284_v14  ;;  %v7787_v29 = vsel %vm7775_vm8, %v7722_v9, %v12825_v52  ;;  %v12966_v5 = vsel %vm7419_vm2, %v10054_v47, %v12816_v38  ;;  %v12978_v9 = vpop.permute.xlu1 %6759 }
 0x335   :  { %v1168_v50 = vmul.f32 %v10414_v23, %v976_v63  ;;  %14769 = vst [vmem:[#allocation32_spill] sm:$0xff] %v12960_v39  ;;  %v594_v42 = vmin.f32 %v12949_v10, 20.0  ;;  %v8449_v45 = vmin.f32 %v12954_v31, 20.0  ;;  %v12976_v58 = vrot.slane %v5156_v1, 4  ;;  %v2397_v1 = vld [vmem:[#allocation2 + $0x10c] sm:$0xf] }
 0x336   :  { %v10416_v15 = vpop.eup %10415  ;;  %v5919_v40 = vsel %vm11123_vm15, %v5917_v33, %v5918_v28  ;;  %v7359_v38 = vunpack.c.l.b16 %v5916_v32  ;;  %v7857_v63 = vsel %vm7840_vm10, %v7787_v29, %v12819_v7  ;;  %v5159_v43 = vshll.u32 %v12904_v13, 16  ;;  %v10724_v33 = vld [vmem:[#allocation2 + $0xa0] sm:$0xf] }
 0x337   :  { %v1467_v4 = vpack.c.bf16 %v1168_v50, %v1168_v50  ;;  %v785_v52 = vadd.f32 1.0, %v10416_v15  ;;  %v7360_v46 = vunpack.c.l.b16 %v5919_v40  ;;  %v704_v21 = vmul.f32 1.442695, %v594_v42  ;;  %8142 = vmatmul.bf16.gmra.mxu1 %v7857_v63  ;;  %v2440_v50 = vld [vmem:[#allocation2 + $0x110] sm:$0x1]  ;;  %v12989_v40 = vpop.f32.mrf.mxu2 }
 0x338   :  { %v8515_v24 = vmul.f32 1.442695, %v8449_v45  ;;  %v2936_v47 = vshrl.u32 %v2396_v6, 16  ;;  %v2939_v28 = vshll.u32 %v2396_v6, 16  ;;  %v2945_v7 = vshll.u32 %v2397_v1, 16  ;;  %v505_v6 = vpop.f32.mrf.mxu0 }
 0x339   :  { %v1864_v56 = vshrl.u32 %v1467_v4, 16  ;;  %v1867_v35 = vshll.u32 %v1467_v4, 16  ;;  %v849_v55 = vmul.f32 %v785_v52, %v785_v52  ;;  %v7405_v53 = vpack.c.b16 %v7360_v46, %v7359_v38  ;;  %v8125_v4 = vpop.f32.mrf.mxu1 }
 0x33a   :  { %10417 = vpow2.f32 %v704_v21  ;;  %v2949_v32 = vshrl.u32 %v2397_v1, 16  ;;  %v5165_v13 = vshll.u32 %v10724_v33, 16  ;;  %v2938_v42 = vrot.slane %v2936_v47, 4  ;;  %v12993_v1 = vpop.permute.xlu2 %6603 }
 0x33b   :  { %v12983_v23 = vrot.slane %v1864_v56, 7  ;;  %10419 = vpow2.f32 %v8515_v24  ;;  %v1041_v14 = vadd.f32 1.0, %v849_v55  ;;  %9936 = vmatmul.msk.bf16.gmra.mxu2 %vm7419_vm2, %v7405_v53  ;;  %v2941_v15 = vrot.slane %v2939_v28, 5  ;;  %v1393_v53 = vld [vmem:[#allocation2 + $0x140] sm:$0x1] }
 0x33c   :  { %v12987_v45 = vrot.slane %v5159_v43, 5  ;;  %v2947_v52 = vrot.slane %v2945_v7, 5  ;;  %v2951_v38 = vrot.slane %v2949_v32, 4  ;;  %v5169_v46 = vshrl.u32 %v10724_v33, 16  ;;  %v12999_v28 = vld [vmem:[%s14724_s2] ss:$0 sm:$0xff]  ;;  %v13006_v7 = vpop.permute.xlu0 %6409 }
 0x33d   :  { %v1869_v29 = vor.u32 %v1867_v35, %v12983_v23  ;;  %10421 = vrcp.f32 %v1041_v14  ;;  %v9383_v56 = vadd.f32 -1.0, %v849_v55  ;;  %v2942_v24 = vor.u32 %v2941_v15, %v2938_v42  ;;  %v13010_v15 = vpop.permute.xlu1 %7271 }
 0x33e   :  { %v2955_v63 = vshll.u32 %v2440_v50, 16  ;;  %v2952_v43 = vor.u32 %v2951_v38, %v2947_v52  ;;  %v8126_v47 = vadd.f32 %v12938_v34, %v8125_v4  ;;  %v13002_v14 = vadd.f32 %v12999_v28, %v505_v6 }
 0x33f   :  { %v2287_v21 = vsel %vm11029_vm11, %v1869_v29, %v2286_v44  ;;  %v1394_v55 = vsel %vm10937_vm6, 0, %v1393_v53  ;;  %v2943_v32 = vrot.slane %v2942_v24, 4  ;;  %v5162_v29 = vor.u32 %v12987_v45, %v12976_v58 }
 0x340   :  { %v10418_v35 = vpop.eup %10417  ;;  %2288 = vst [vmem:[#allocation2 + $0x12c] sm:$0xf] %v2287_v21  ;;  %v2957_v33 = vrot.slane %v2955_v63, 5  ;;  %v2953_v4 = vrot.slane %v2952_v43, 4  ;;  %v13013_v38 = vadd.f32 %v12425_v12, %v8126_v47  ;;  %v595_v21 = vmin.f32 %v13002_v14, 20.0 }
 0x341   :  { %v10420_v44 = vpop.eup %10419  ;;  %v786_v50 = vadd.f32 1.0, %v10418_v35  ;;  %1395 = vst [vmem:[#allocation2 + $0x140] sm:$0x1] %v1394_v55  ;;  %v977_v6 = vmul.f32 %v9383_v56, %v12885_v60  ;;  %v2948_v24 = vsel %vm10971_vm9, %v2943_v32, %v2947_v52  ;;  %v13019_v63 = vrot.slane %v5165_v13, 5  ;;  %v10056_v60 = vld [vmem:[#allocation2 + $0x60] sm:$0xff] }
 0x342   :  { %v8641_v42 = vadd.f32 1.0, %v10420_v44  ;;  %v2958_v58 = vsel %vm10971_vm9, %v2953_v4, %v2957_v33  ;;  %v8450_v45 = vmin.f32 %v13013_v38, 20.0  ;;  %v13024_v43 = vrot.slane %v5169_v46, 4  ;;  %v13031_v46 = vpop.f32.mrf.mxu2 }
 0x343   :  { %v850_v53 = vmul.f32 %v786_v50, %v786_v50  ;;  %v10422_v35 = vpop.eup %10421  ;;  %v6179_v44 = vunpack.c.l.b16 %v2948_v24  ;;  %v6180_v20 = vunpack.c.l.b16 %v2958_v58  ;;  %v7529_v52 = vsel %vm282_vm0, %v12966_v5, %v12800_v49  ;;  %v5678_v58 = vld [vmem:[#allocation2 + $0x114] sm:$0xe] }
 0x344   :  { %v8705_v55 = vmul.f32 %v8641_v42, %v8641_v42  ;;  %v1169_v12 = vmul.f32 %v10422_v35, %v977_v6  ;;  %v8517_v56 = vmul.f32 1.442695, %v8450_v45  ;;  %v706_v50 = vmul.f32 1.442695, %v595_v21  ;;  %v10055_v6 = vld [vmem:[#allocation2 + $0x54] sm:$0xff] }
 0x345   :  { %v1042_v47 = vadd.f32 1.0, %v850_v53  ;;  %v7594_v33 = vsel %vm7580_vm3, %v7529_v52, %v12971_v59  ;;  %v6223_v42 = vpack.c.b16 %v6180_v20, %v6179_v44  ;;  %v13035_v4 = vsel %vm7419_vm2, %v10056_v60, %v12968_v48  ;;  %v13047_v59 = vpop.permute.xlu2 %6923  ;;  %v1286_v60 = vld [vmem:[#allocation2 + $0x144] sm:$0x1] }
 0x346   :  { %v8897_v13 = vadd.f32 1.0, %v8705_v55  ;;  %v1468_v32 = vpack.c.bf16 %v1169_v12, %v1169_v12  ;;  %v9952_v24 = vadd.f32 -1.0, %v8705_v55  ;;  %v9384_v35 = vadd.f32 -1.0, %v850_v53  ;;  %v4834_v55 = vld [vmem:[#allocation2 + $0x118] sm:$0xf] }
 0x347   :  { %10423 = vrcp.f32 %v1042_v47  ;;  %v1870_v49 = vrot.slane %v12983_v23, 4  ;;  %6275 = vrot.lane.b32.xlu2 %v6223_v42, %s10849_s29  ;;  %v13039_v21 = vrot.slane %v5162_v29, 4  ;;  %v13043_v20 = vsel %vm7419_vm2, %v10055_v6, %v12902_v0  ;;  %v4878_v53 = vld [vmem:[#allocation2 + $0x11c] sm:$0x1]  ;;  %v7112_v29 = vpop.permute.xlu0 %7111  ;;  %v2290_v0 = vld [vmem:[#allocation2 + $0x134] sm:$0x1] }
 0x348   :  { %10425 = vrcp.f32 %v8897_v13  ;;  %v1872_v5 = vshrl.u32 %v1468_v32, 16  ;;  %v7659_v48 = vsel %vm7645_vm5, %v7594_v33, %v12978_v9  ;;  %v5172_v23 = vor.u32 %v13024_v43, %v13019_v63  ;;  %v13053_v13 = vpop.permute.xlu1 %6761 }
 0x349   :  { %10427 = vpow2.f32 %v8517_v56  ;;  %v1875_v12 = vshll.u32 %v1468_v32, 16  ;;  %v9485_v47 = vrot.slane %v5678_v58, 9  ;;  %v5922_v44 = vrot.slane %v4834_v55, 5 }
 0x34a   :  { %10429 = vpow2.f32 %v706_v50  ;;  %v1874_v45 = vrot.slane %v1872_v5, 7  ;;  %v8833_v52 = vmul.f32 %v9952_v24, %v12954_v31  ;;  %v978_v9 = vmul.f32 %v9384_v35, %v12949_v10  ;;  %v508_v50 = vpop.f32.mrf.mxu0  ;;  %v5683_v35 = vld [vmem:[#allocation2 + $0x150] sm:$0xe] }
 0x34b   :  { %v5925_v56 = vrot.slane %v4878_v53, 5  ;;  %v1287_v33 = vsel %vm10919_vm4, 0, %v1286_v60  ;;  %v5923_v32 = vsel %vm11123_vm15, %v9485_v47, %v5922_v44  ;;  %v5924_v5 = vrot.slane %v5922_v44, 4 }
 0x34c   :  { %v1877_v43 = vor.u32 %v1875_v12, %v1874_v45  ;;  %v1879_v6 = vrot.slane %v1874_v45, 4  ;;  %1288 = vst [vmem:[#allocation2 + $0x144] sm:$0x1] %v1287_v33  ;;  %v7724_v10 = vsel %vm7710_vm7, %v7659_v48, %v12791_v3  ;;  %v7361_v31 = vunpack.c.l.b16 %v5923_v32 }
 0x34d   :  { %v10424_v42 = vpop.eup %10423  ;;  %v13062_v24 = vadd.f32 %v12999_v28, %v508_v50  ;;  %v5926_v44 = vsel %vm11123_vm15, %v5924_v5, %v5925_v56  ;;  %v9490_v32 = vrot.slane %v5683_v35, 9  ;;  %v10727_v5 = vld [vmem:[#allocation2 + $0x154] sm:$0xf] }
 0x34e   :  { %v10426_v55 = vpop.eup %10425  ;;  %v1170_v58 = vmul.f32 %v10424_v42, %v978_v9  ;;  %v1878_v12 = vsel %vm11052_vm12, %v1870_v49, %v1877_v43  ;;  %v2291_v45 = vsel %vm10919_vm4, %v1879_v6, %v2290_v0  ;;  %v7362_v9 = vunpack.c.l.b16 %v5926_v44  ;;  %v10726_v49 = vld [vmem:[#allocation2 + $0xa4] sm:$0x1]  ;;  %v13073_v0 = vpop.f32.mrf.mxu2 }
 0x34f   :  { %v10428_v53 = vpop.eup %10427  ;;  %v9025_v47 = vmul.f32 %v10426_v55, %v8833_v52  ;;  %2289 = vst.msk [vmem:[#allocation2 + $0x130] sm:$0xf] %vm1188_vm1, %v1878_v12  ;;  %v596_v50 = vmin.f32 %v13062_v24, 20.0  ;;  %v7789_v42 = vsel %vm7775_vm8, %v7724_v10, %v7112_v29  ;;  %v5175_v43 = vshll.u32 %v10726_v49, 16 }
 0x350   :  { %v10430_v60 = vpop.eup %10429  ;;  %v1469_v3 = vpack.c.bf16 %v1170_v58, %v1170_v58  ;;  %v8642_v48 = vadd.f32 1.0, %v10428_v53  ;;  %2292 = vst [vmem:[#allocation2 + $0x134] sm:$0x1] %v2291_v45  ;;  %v7406_v6 = vpack.c.b16 %v7362_v9, %v7361_v31  ;;  %v5957_v55 = vrot.slane %v10727_v5, 5  ;;  %v2293_v45 = vld [vmem:[#allocation2 + $0x138] sm:$0xf] }
 0x351   :  { %v787_v33 = vadd.f32 1.0, %v10430_v60  ;;  %9089 = vst.msk [vmem:[#allocation6 + $0x10] sm:$0xff] %vm282_vm0, %v9025_v47  ;;  %v708_v53 = vmul.f32 1.442695, %v596_v50  ;;  %v5173_v29 = vrot.slane %v5172_v23, 4  ;;  %v13082_v60 = vpop.permute.xlu2 %6605  ;;  %v7860_v31 = vsel %vm7840_vm10, %v7789_v42, %v13010_v15 }
 0x352   :  { %v1881_v52 = vshrl.u32 %v1469_v3, 16  ;;  %v8706_v56 = vmul.f32 %v8642_v48, %v8642_v48  ;;  %v1884_v35 = vshll.u32 %v1469_v3, 16  ;;  %9937 = vmatmul.msk.bf16.gmra.mxu2 %vm7419_vm2, %v7406_v6  ;;  %v6412_v48 = vpop.permute.xlu0 %6411  ;;  %8147 = vmatmul.bf16.gmra.mxu1 %v7860_v31  ;;  %v2398_v9 = vld [vmem:[#allocation2 + $0x114] sm:$0xf]  ;;  %v2399_v50 = vld [vmem:[#allocation2 + $0x118] sm:$0xf]  ;;  %v13089_v23 = vsel %vm11123_vm15, %v9490_v32, %v5957_v55  ;;  %v510_v6 = vpop.f32.mrf.mxu0 }
 0x353   :  { %v851_v58 = vmul.f32 %v787_v33, %v787_v33  ;;  %10431 = vpow2.f32 %v708_v53  ;;  %v5177_v33 = vrot.slane %v5175_v43, 5  ;;  %v13094_v5 = vrot.slane %v5957_v55, 4  ;;  %v2441_v42 = vld [vmem:[#allocation2 + $0x11c] sm:$0x1]  ;;  %v1396_v31 = vld [vmem:[#allocation2 + $0x14c] sm:$0x1] }
 0x354   :  { %v13080_v10 = vrot.slane %v1881_v52, 7  ;;  %v8898_v44 = vadd.f32 1.0, %v8706_v56  ;;  %v9953_v49 = vadd.f32 -1.0, %v8706_v56  ;;  %v13092_v52 = vpop.permute.xlu1 %7273  ;;  %v7531_v15 = vsel %vm282_vm0, %v13043_v20, %v13006_v7 }
 0x355   :  { %v1043_v47 = vadd.f32 1.0, %v851_v58  ;;  %v2960_v43 = vshrl.u32 %v2398_v9, 16  ;;  %v2963_v53 = vshll.u32 %v2398_v9, 16  ;;  %v2969_v56 = vshll.u32 %v2399_v50, 16 }
 0x356   :  { %v1886_v3 = vor.u32 %v1884_v35, %v13080_v10  ;;  %10433 = vrcp.f32 %v8898_v44  ;;  %v9385_v35 = vadd.f32 -1.0, %v851_v58  ;;  %v2973_v44 = vshrl.u32 %v2399_v50, 16 }
 0x357   :  { %10435 = vrcp.f32 %v1043_v47  ;;  %v2962_v12 = vrot.slane %v2960_v43, 4  ;;  %v2965_v39 = vrot.slane %v2963_v53, 5  ;;  %v13102_v55 = vadd.f32 %v12999_v28, %v510_v6  ;;  %v13112_v43 = vpop.f32.mrf.mxu2 }
 0x358   :  { %v2294_v32 = vsel %vm11029_vm11, %v1886_v3, %v2293_v45  ;;  %v5178_v7 = vsel %vm10971_vm9, %v5173_v29, %v5177_v33  ;;  %v2971_v20 = vrot.slane %v2969_v56, 5  ;;  %v2975_v47 = vrot.slane %v2973_v44, 4 }
 0x359   :  { %2295 = vst [vmem:[#allocation2 + $0x138] sm:$0xf] %v2294_v32  ;;  %v2979_v18 = vshll.u32 %v2441_v42, 16  ;;  %v1397_v9 = vsel %vm10937_vm6, 0, %v1396_v31  ;;  %v10432_v51 = vpop.eup %10431  ;;  %v8834_v58 = vmul.f32 %v9953_v49, %v13013_v38  ;;  %v7596_v45 = vsel %vm7580_vm3, %v7531_v15, %v12865_v19 }
 0x35a   :  { %v2966_v50 = vor.u32 %v2965_v39, %v2962_v12  ;;  %v597_v3 = vmin.f32 %v13102_v55, 20.0  ;;  %1398 = vst [vmem:[#allocation2 + $0x14c] sm:$0x1] %v1397_v9  ;;  %v979_v29 = vmul.f32 %v9385_v35, %v13002_v14  ;;  %v7661_v33 = vsel %vm7645_vm5, %v7596_v45, %v13053_v13  ;;  %v13119_v39 = vpop.permute.xlu2 %6925  ;;  %v7114_v35 = vpop.permute.xlu0 %7113 }
 0x35b   :  { %v788_v42 = vadd.f32 1.0, %v10432_v51  ;;  %v2976_v53 = vor.u32 %v2975_v47, %v2971_v20  ;;  %v13117_v56 = vunpack.c.l.b16 %v5178_v7  ;;  %v2981_v44 = vrot.slane %v2979_v18, 5  ;;  %v4836_v7 = vld [vmem:[#allocation2 + $0x124] sm:$0xf] }
 0x35c   :  { %v10434_v6 = vpop.eup %10433  ;;  %v2967_v38 = vrot.slane %v2966_v50, 4  ;;  %v710_v49 = vmul.f32 1.442695, %v597_v3  ;;  %v13124_v14 = vsel %vm282_vm0, %v13035_v4, %v6412_v48  ;;  %v7726_v13 = vsel %vm7710_vm7, %v7661_v33, %v12891_v62  ;;  %v13132_v45 = vpop.permute.xlu1 %6763  ;;  %v4879_v50 = vld [vmem:[#allocation2 + $0x128] sm:$0x1] }
 0x35d   :  { %v10436_v31 = vpop.eup %10435  ;;  %v9026_v32 = vmul.f32 %v10434_v6, %v8834_v58  ;;  %v852_v12 = vmul.f32 %v788_v42, %v788_v42  ;;  %v2977_v15 = vrot.slane %v2976_v53, 4  ;;  %v5679_v4 = vld [vmem:[#allocation2 + $0x120] sm:$0xe]  ;;  %v1887_v48 = vrot.slane %v13080_v10, 4  ;;  %v2401_v53 = vld [vmem:[#allocation2 + $0x124] sm:$0xf] }
 0x35e   :  { %v1171_v19 = vmul.f32 %v10436_v31, %v979_v29  ;;  %v2972_v51 = vsel %vm10971_vm9, %v2967_v38, %v2971_v20  ;;  %10437 = vpow2.f32 %v710_v49  ;;  %v7791_v6 = vsel %vm7775_vm8, %v7726_v13, %v7114_v35  ;;  %v2400_v29 = vld [vmem:[#allocation2 + $0x120] sm:$0xf] }
 0x35f   :  { %9090 = vst.msk [vmem:[#allocation6 + $0x18] sm:$0xff] %vm282_vm0, %v9026_v32  ;;  %v9386_v9 = vadd.f32 -1.0, %v852_v12  ;;  %v1044_v58 = vadd.f32 1.0, %v852_v12  ;;  %v2982_v18 = vsel %vm10971_vm9, %v2977_v15, %v2981_v44  ;;  %v6181_v3 = vunpack.c.l.b16 %v2972_v51  ;;  %v2297_v51 = vld [vmem:[#allocation2 + $0x140] sm:$0x1] }
 0x360   :  { %v1470_v47 = vpack.c.bf16 %v1171_v19, %v1171_v19  ;;  %v6182_v20 = vunpack.c.l.b16 %v2982_v18  ;;  %v9486_v32 = vrot.slane %v5679_v4, 9  ;;  %v5929_v38 = vrot.slane %v4836_v7, 5 }
 0x361   :  { %v980_v42 = vmul.f32 %v9386_v9, %v13062_v24  ;;  %10439 = vrcp.f32 %v1044_v58  ;;  %v5932_v49 = vrot.slane %v4879_v50, 5  ;;  %v7863_v12 = vsel %vm7840_vm10, %v7791_v6, %v13092_v52  ;;  %v13142_v9 = vpop.f32.mrf.mxu2 }
 0x362   :  { %v1889_v62 = vshrl.u32 %v1470_v47, 16  ;;  %v1892_v33 = vshll.u32 %v1470_v47, 16  ;;  %v6224_v31 = vpack.c.b16 %v6182_v20, %v6181_v3  ;;  %v2984_v10 = vshrl.u32 %v2400_v29, 16  ;;  %8152 = vmatmul.bf16.gmra.mxu1 %v7863_v12  ;;  %v13146_v4 = vpop.permute.xlu0 %6413  ;;  %v2442_v3 = vld [vmem:[#allocation2 + $0x128] sm:$0x1] }
 0x363   :  { %v2987_v15 = vshll.u32 %v2400_v29, 16  ;;  %v5930_v13 = vsel %vm11123_vm15, %v9486_v32, %v5929_v38  ;;  %v5931_v24 = vrot.slane %v5929_v38, 4  ;;  %v2993_v35 = vshll.u32 %v2401_v53, 16 }
 0x364   :  { %v1891_v19 = vrot.slane %v1889_v62, 7  ;;  %v10438_v44 = vpop.eup %10437  ;;  %6277 = vrot.lane.b32.xlu0 %v6224_v31, %s10849_s29  ;;  %v2997_v47 = vshrl.u32 %v2401_v53, 16  ;;  %v7363_v50 = vunpack.c.l.b16 %v5930_v13  ;;  %v2986_v20 = vrot.slane %v2984_v10, 4 }
 0x365   :  { %v789_v18 = vadd.f32 1.0, %v10438_v44  ;;  %v5933_v52 = vsel %vm11123_vm15, %v5931_v24, %v5932_v49  ;;  %v2989_v6 = vrot.slane %v2987_v15, 5  ;;  %v2995_v29 = vrot.slane %v2993_v35, 5  ;;  %v10058_v24 = vld [vmem:[#allocation2 + $0x78] sm:$0xff] }
 0x366   :  { %v1894_v7 = vor.u32 %v1892_v33, %v1891_v19  ;;  %v1896_v58 = vrot.slane %v1891_v19, 4  ;;  %v13152_v33 = vpop.permute.xlu2 %6607  ;;  %v7364_v38 = vunpack.c.l.b16 %v5933_v52  ;;  %v6256_v19 = vpop.permute.xlu1 %6255  ;;  %v2999_v44 = vrot.slane %v2997_v47, 4  ;;  %v5680_v52 = vld [vmem:[#allocation2 + $0x12c] sm:$0xe] }
 0x367   :  { %v10440_v62 = vpop.eup %10439  ;;  %v853_v32 = vmul.f32 %v789_v18, %v789_v18  ;;  %v2990_v12 = vor.u32 %v2989_v6, %v2986_v20  ;;  %v14770_v10 = vrot.slane %v12845_v30, 5  ;;  %v3003_v35 = vshll.u32 %v2442_v3, 16  ;;  %v4838_v18 = vld [vmem:[#allocation2 + $0x130] sm:$0xf] }
 0x368   :  { %v1895_v31 = vsel %vm11052_vm12, %v1887_v48, %v1894_v7  ;;  %v2298_v53 = vsel %vm10919_vm4, %v1896_v58, %v2297_v51  ;;  %v1172_v49 = vmul.f32 %v10440_v62, %v980_v42  ;;  %v7407_v13 = vpack.c.b16 %v7364_v38, %v7363_v50  ;;  %v4880_v50 = vld [vmem:[#allocation2 + $0x134] sm:$0x1]  ;;  %v13171_v3 = vld [vmem:[#allocation2 + $0x130] sm:$0xf] }
 0x369   :  { %2296 = vst.msk [vmem:[#allocation2 + $0x13c] sm:$0xf] %vm1188_vm1, %v1895_v31  ;;  %v13160_v15 = vsel %vm11123_vm15, %v13094_v5, %v14770_v10  ;;  %v9387_v48 = vadd.f32 -1.0, %v853_v32  ;;  %v1045_v51 = vadd.f32 1.0, %v853_v32  ;;  %v7598_v42 = vsel %vm7580_vm3, %v13124_v14, %v12993_v1  ;;  %v3246_v31 = vld [vmem:[#allocation2 + $0x12c] sm:$0xe] }
 0x36a   :  { %2299 = vst [vmem:[#allocation2 + $0x140] sm:$0x1] %v2298_v53  ;;  %v1471_v7 = vpack.c.bf16 %v1172_v49, %v1172_v49  ;;  %v2991_v58 = vrot.slane %v2990_v12, 4  ;;  %v3000_v47 = vor.u32 %v2999_v44, %v2995_v29  ;;  %v7663_v30 = vsel %vm7645_vm5, %v7598_v42, %v13132_v45  ;;  %9938 = vmatmul.msk.bf16.gmra.mxu2 %vm7419_vm2, %v7407_v13  ;;  %v2300_v49 = vld [vmem:[#allocation2 + $0x144] sm:$0xf]  ;;  %v10057_v44 = vld [vmem:[#allocation2 + $0x6c] sm:$0xff]  ;;  %v6254_v10 = vpop.permute.xlu0 %6253 }
 0x36b   :  { %10441 = vrcp.f32 %v1045_v51  ;;  %v13169_v5 = vsel %vm7419_vm2, %v10058_v24, %v6256_v19  ;;  %v3005_v62 = vrot.slane %v3003_v35, 5  ;;  %v981_v45 = vmul.f32 %v9387_v48, %v13102_v55  ;;  %v2443_v55 = vld [vmem:[#allocation2 + $0x134] sm:$0x1] }
 0x36c   :  { %v1898_v6 = vshrl.u32 %v1471_v7, 16  ;;  %v2996_v1 = vsel %vm10971_vm9, %v2991_v58, %v2995_v29  ;;  %v3001_v14 = vrot.slane %v3000_v47, 4  ;;  %v1901_v53 = vshll.u32 %v1471_v7, 16  ;;  %v13182_v29 = vpop.f32.mrf.mxu2 }
 0x36d   :  { %v6183_v32 = vunpack.c.l.b16 %v2996_v1  ;;  %v5936_v38 = vrot.slane %v4838_v18, 5  ;;  %v9487_v51 = vrot.slane %v5680_v52, 9  ;;  %v3517_v13 = vrot.slane %v13171_v3, 5  ;;  %14771 = vst [vmem:[#allocation33_spill] sm:$0xff] %v13182_v29  ;;  %v2402_v1 = vld [vmem:[#allocation2 + $0x12c] sm:$0xf] }
 0x36e   :  { %v13177_v19 = vrot.slane %v1898_v6, 7  ;;  %v3006_v12 = vsel %vm10971_vm9, %v3001_v14, %v3005_v62  ;;  %v7276_v35 = vpop.permute.xlu1 %7275  ;;  %v5939_v42 = vrot.slane %v4880_v50, 5  ;;  %v9425_v48 = vrot.slane %v3246_v31, 9  ;;  %v13189_v62 = vpop.permute.xlu2 %6927  ;;  %v2304_v29 = vld [vmem:[#allocation2 + $0x14c] sm:$0x1] }
 0x36f   :  { %v6184_v24 = vunpack.c.l.b16 %v3006_v12  ;;  %v5938_v7 = vrot.slane %v5936_v38, 4  ;;  %v7449_v6 = vsel %vm7419_vm2, %v10057_v44, %v6254_v10  ;;  %v5937_v52 = vsel %vm11123_vm15, %v9487_v51, %v5936_v38 }
 0x370   :  { %v10103_v58 = vld [vmem:[#allocation2 + $0x138] sm:$0xff]  ;;  %v1903_v47 = vor.u32 %v1901_v53, %v13177_v19  ;;  %v3518_v31 = vsel %vm11123_vm15, %v9425_v48, %v3517_v13  ;;  %v3519_v20 = vrot.slane %v3517_v13, 4  ;;  %v3520_v38 = vrot.slane %v2443_v55, 5 }
 0x371   :  { %v10442_v14 = vpop.eup %10441  ;;  %v6225_v12 = vpack.c.b16 %v6184_v24, %v6183_v32  ;;  %v5940_v50 = vsel %vm11123_vm15, %v5938_v7, %v5939_v42  ;;  %6633 = vrot.lane.b32.xlu0 %v10103_v58, %s10850_s30  ;;  %v7535_v32 = vsel %vm282_vm0, %v7449_v6, %v13146_v4  ;;  %v7365_v51 = vunpack.c.l.b16 %v5937_v52  ;;  %v4881_v8 = vld [vmem:[#allocation2 + $0x140] sm:$0x1] }
 0x372   :  { %v2301_v53 = vsel %vm11029_vm11, %v1903_v47, %v2300_v49  ;;  %v1173_v44 = vmul.f32 %v10442_v14, %v981_v45  ;;  %v7366_v10 = vunpack.c.l.b16 %v5940_v50  ;;  %v6345_v24 = vunpack.c.l.b16 %v3518_v31  ;;  %v7116_v6 = vpop.permute.xlu0 %7115 }
 0x373   :  { %2302 = vst [vmem:[#allocation2 + $0x144] sm:$0xf] %v2301_v53  ;;  %6279 = vrot.lane.b32.xlu1 %v6225_v12, %s10849_s29  ;;  %v3008_v7 = vshrl.u32 %v2402_v1, 16  ;;  %v3521_v13 = vsel %vm11123_vm15, %v3519_v20, %v3520_v38  ;;  %v7728_v48 = vsel %vm7710_vm7, %v7663_v30, %v13047_v59  ;;  %v3011_v49 = vshll.u32 %v2402_v1, 16  ;;  %v5681_v12 = vld [vmem:[#allocation2 + $0x138] sm:$0xe] }
 0x374   :  { %v1472_v42 = vpack.c.bf16 %v1173_v44, %v1173_v44  ;;  %v6346_v45 = vunpack.c.l.b16 %v3521_v13  ;;  %v3017_v47 = vshll.u32 %v13171_v3, 16  ;;  %v3021_v14 = vshrl.u32 %v13171_v3, 16  ;;  %v4840_v53 = vld [vmem:[#allocation2 + $0x13c] sm:$0xf]  ;;  %v13209_v3 = vpop.f32.mrf.mxu2 }
 0x375   :  { %v3010_v58 = vrot.slane %v3008_v7, 4  ;;  %v7408_v4 = vpack.c.b16 %v7366_v10, %v7365_v51  ;;  %v3013_v52 = vrot.slane %v3011_v49, 5  ;;  %v3027_v31 = vshll.u32 %v2443_v55, 16 }
 0x376   :  { %v1906_v50 = vshrl.u32 %v1472_v42, 16  ;;  %v6386_v44 = vpack.c.b16 %v6346_v45, %v6345_v24  ;;  %v7793_v20 = vsel %vm7775_vm8, %v7728_v48, %v7116_v6  ;;  %v6766_v38 = vpop.permute.xlu1 %6765  ;;  %v3019_v18 = vrot.slane %v3017_v47, 5  ;;  %v4465_v48 = vld [vmem:[#allocation2 + $0x138] sm:$0xe] }
 0x377   :  { %v3023_v59 = vrot.slane %v3021_v14, 4  ;;  %v1909_v1 = vshll.u32 %v1472_v42, 16  ;;  %v7866_v7 = vsel %vm7840_vm10, %v7793_v20, %v7276_v35  ;;  %v3014_v13 = vor.u32 %v3013_v52, %v3010_v58  ;;  %v3625_v35 = vld [vmem:[#allocation2 + $0x13c] sm:$0xf]  ;;  %v6258_v58 = vpop.permute.xlu2 %6257  ;;  %v8128_v20 = vpop.f32.mrf.mxu1 }
 0x378   :  { %v1908_v30 = vrot.slane %v1906_v50, 7  ;;  %6441 = vrot.lane.b32.xlu2 %v6386_v44, %s10852_s7  ;;  %v7600_v55 = vsel %vm7580_vm3, %v7535_v32, %v13082_v60  ;;  %8157 = vmatmul.bf16.gmra.mxu1 %v7866_v7  ;;  %v9488_v51 = vrot.slane %v5681_v12, 9  ;;  %v5943_v24 = vrot.slane %v4840_v53, 5  ;;  %v10059_v53 = vld [vmem:[#allocation2 + $0x84] sm:$0xff]  ;;  %v3665_v44 = vld [vmem:[#allocation2 + $0x140] sm:$0x1] }
 0x379   :  { %v3024_v10 = vor.u32 %v3023_v59, %v3019_v18  ;;  %v3015_v42 = vrot.slane %v3014_v13, 4  ;;  %v3029_v47 = vrot.slane %v3027_v31, 5  ;;  %v5946_v52 = vrot.slane %v4881_v8, 5  ;;  %v3624_v13 = vld [vmem:[#allocation2 + $0x138] sm:$0xf] }
 0x37a   :  { %v1911_v49 = vor.u32 %v1909_v1, %v1908_v30  ;;  %v1913_v45 = vrot.slane %v1908_v30, 4  ;;  %9939 = vmatmul.msk.bf16.gmra.mxu2 %vm7419_vm2, %v7408_v4  ;;  %v5944_v50 = vsel %vm11123_vm15, %v9488_v51, %v5943_v24  ;;  %v5945_v6 = vrot.slane %v5943_v24, 4  ;;  %v6416_v7 = vpop.permute.xlu0 %6415 }
 0x37b   :  { %v3025_v14 = vrot.slane %v3024_v10, 4  ;;  %v14772_v60 = vrot.slane %v13177_v19, 4  ;;  %v7665_v31 = vsel %vm7645_vm5, %v7600_v55, %v6766_v38  ;;  %v3020_v4 = vsel %vm10971_vm9, %v3015_v42, %v3019_v18 }
 0x37c   :  { %v2305_v12 = vsel %vm10919_vm4, %v1913_v45, %v2304_v29  ;;  %v5947_v19 = vsel %vm11123_vm15, %v5945_v6, %v5946_v52  ;;  %v9457_v59 = vrot.slane %v4465_v48, 9  ;;  %v4733_v30 = vrot.slane %v3625_v35, 5 }
 0x37d   :  { %v1912_v32 = vsel %vm11052_vm12, %v14772_v60, %v1911_v49  ;;  %v3030_v8 = vsel %vm10971_vm9, %v3025_v14, %v3029_v47  ;;  %2306 = vst [vmem:[#allocation2 + $0x14c] sm:$0x1] %v2305_v12  ;;  %v13232_v29 = vsel %vm7419_vm2, %v10059_v53, %v6258_v58  ;;  %v6185_v38 = vunpack.c.l.b16 %v3020_v4  ;;  %v2404_v58 = vld [vmem:[#allocation2 + $0x138] sm:$0xf] }
 0x37e   :  { %2303 = vst.msk [vmem:[#allocation2 + $0x148] sm:$0xf] %vm1188_vm1, %v1912_v32  ;;  %v6186_v1 = vunpack.c.l.b16 %v3030_v8  ;;  %v7367_v18 = vunpack.c.l.b16 %v5944_v50  ;;  %v7278_v55 = vpop.permute.xlu1 %7277  ;;  %v4734_v10 = vsel %vm11123_vm15, %v9457_v59, %v4733_v30  ;;  %v4735_v51 = vrot.slane %v4733_v30, 4 }
 0x37f   :  { %v4736_v24 = vrot.slane %v3665_v44, 5  ;;  %v8129_v49 = vadd.f32 %v12938_v34, %v8128_v20  ;;  %v7537_v48 = vsel %vm282_vm0, %v13169_v5, %v6416_v7  ;;  %v7368_v42 = vunpack.c.l.b16 %v5947_v19  ;;  %v13247_v5 = vpop.f32.mrf.mxu2  ;;  %v2405_v20 = vld [vmem:[#allocation2 + $0x13c] sm:$0xf]  ;;  %v2444_v7 = vld [vmem:[#allocation2 + $0x140] sm:$0x1] }
 0x380   :  { %v6226_v45 = vpack.c.b16 %v6186_v1, %v6185_v38  ;;  %v7730_v47 = vsel %vm7710_vm7, %v7665_v31, %v13119_v39  ;;  %v6857_v50 = vunpack.c.l.b16 %v4734_v10  ;;  %v4227_v52 = vshrl.u32 %v3624_v13, 16  ;;  %14773 = vst [vmem:[#allocation34_spill] sm:$0xff] %v13247_v5 }
 0x381   :  { %v4737_v14 = vsel %vm11123_vm15, %v4735_v51, %v4736_v24  ;;  %v13244_v6 = vadd.f32 %v12499_v27, %v8129_v49  ;;  %v4230_v32 = vshll.u32 %v3624_v13, 16  ;;  %v4236_v12 = vshll.u32 %v3625_v35, 16 }
 0x382   :  { %6281 = vrot.lane.b32.xlu2 %v6226_v45, %s10849_s29  ;;  %v6858_v60 = vunpack.c.l.b16 %v4737_v14  ;;  %v4240_v53 = vshrl.u32 %v3625_v35, 16  ;;  %v4229_v39 = vrot.slane %v4227_v52, 4  ;;  %v4246_v31 = vshll.u32 %v3665_v44, 16  ;;  %v7118_v13 = vpop.permute.xlu0 %7117 }
 0x383   :  { %v8451_v4 = vmin.f32 %v13244_v6, 20.0  ;;  %v3032_v8 = vshrl.u32 %v2404_v58, 16  ;;  %v7409_v19 = vpack.c.b16 %v7368_v42, %v7367_v18  ;;  %v4232_v59 = vrot.slane %v4230_v32, 5 }
 0x384   :  { %v4238_v30 = vrot.slane %v4236_v12, 5  ;;  %v4242_v27 = vrot.slane %v4240_v53, 4  ;;  %v6898_v38 = vpack.c.b16 %v6858_v60, %v6857_v50  ;;  %v3035_v51 = vshll.u32 %v2404_v58, 16  ;;  %v8130_v50 = vpop.f32.mrf.mxu1 }
 0x385   :  { %v8519_v1 = vmul.f32 1.442695, %v8451_v4  ;;  %v3034_v10 = vrot.slane %v3032_v8, 4  ;;  %v4233_v24 = vor.u32 %v4232_v59, %v4229_v39  ;;  %v3041_v49 = vshll.u32 %v2405_v20, 16  ;;  %v3247_v39 = vld [vmem:[#allocation2 + $0x138] sm:$0xe] }
 0x386   :  { %v4243_v35 = vor.u32 %v4242_v27, %v4238_v30  ;;  %v3045_v45 = vshrl.u32 %v2405_v20, 16  ;;  %v7795_v14 = vsel %vm7775_vm8, %v7730_v47, %v7118_v13  ;;  %v6768_v44 = vpop.permute.xlu1 %6767  ;;  %v4248_v52 = vrot.slane %v4246_v31, 5 }
 0x387   :  { %10443 = vpow2.f32 %v8519_v1  ;;  %v3037_v5 = vrot.slane %v3035_v51, 5  ;;  %v4234_v18 = vrot.slane %v4233_v24, 4  ;;  %v3043_v32 = vrot.slane %v3041_v49, 5  ;;  %v5682_v51 = vld [vmem:[#allocation2 + $0x144] sm:$0xe] }
 0x388   :  { %v4244_v42 = vrot.slane %v4243_v35, 4  ;;  %v3051_v12 = vshll.u32 %v2444_v7, 16  ;;  %v7602_v60 = vsel %vm7580_vm3, %v7537_v48, %v13152_v33  ;;  %v3047_v53 = vrot.slane %v3045_v45, 4 }
 0x389   :  { %v3038_v58 = vor.u32 %v3037_v5, %v3034_v10  ;;  %v7869_v4 = vsel %vm7840_vm10, %v7795_v14, %v7278_v55  ;;  %v13256_v47 = vsel %vm7645_vm5, %v7602_v60, %v6768_v44  ;;  %v4239_v31 = vsel %vm10971_vm9, %v4234_v18, %v4238_v30  ;;  %v13265_v30 = vpop.f32.mrf.mxu2  ;;  %v13273_v18 = vld [vmem:[#allocation2 + $0x14c] sm:$0x1]  ;;  %v4466_v60 = vld [vmem:[#allocation2 + $0x144] sm:$0xe] }
 0x38a   :  { %6953 = vrot.lane.b32.xlu2 %v6898_v38, %s10853_s12  ;;  %v4249_v8 = vsel %vm10971_vm9, %v4244_v42, %v4248_v52  ;;  %8162 = vmatmul.bf16.gmra.mxu1 %v7869_v4  ;;  %v7372_v59 = vunpack.c.l.b16 %v13160_v15  ;;  %v6697_v33 = vunpack.c.l.b16 %v4239_v31  ;;  %v3048_v5 = vor.u32 %v3047_v53, %v3043_v32  ;;  %14774 = vst [vmem:[#allocation35_spill] sm:$0xff] %v13265_v30 }
 0x38b   :  { %9940 = vmatmul.msk.bf16.gmra.mxu2 %vm7419_vm2, %v7409_v19  ;;  %v6698_v48 = vunpack.c.l.b16 %v4249_v8  ;;  %v3039_v55 = vrot.slane %v3038_v58, 4  ;;  %v3053_v27 = vrot.slane %v3051_v12, 5  ;;  %v9426_v38 = vrot.slane %v3247_v39, 9  ;;  %v13269_v19 = vld [vmem:[#allocation2 + $0x148] sm:$0xf] }
 0x38c   :  { %v3524_v1 = vrot.slane %v2405_v20, 5  ;;  %v8131_v10 = vadd.f32 %v12938_v34, %v8130_v50  ;;  %v3049_v49 = vrot.slane %v3048_v5, 4  ;;  %v3527_v45 = vrot.slane %v2444_v7, 5  ;;  %v6418_v20 = vpop.permute.xlu0 %6417 }
 0x38d   :  { %v10444_v13 = vpop.eup %10443  ;;  %v6738_v24 = vpack.c.b16 %v6698_v48, %v6697_v33  ;;  %v3044_v35 = vsel %vm10971_vm9, %v3039_v55, %v3043_v32  ;;  %v9489_v34 = vrot.slane %v5682_v51, 9  ;;  %v7539_v7 = vsel %vm282_vm0, %v13232_v29, %v6418_v20  ;;  %v14775_v32 = vld [vmem:[#allocation20_spill] sm:$0xff] }
 0x38e   :  { %v8643_v14 = vadd.f32 1.0, %v10444_v13  ;;  %v3525_v44 = vsel %vm11123_vm15, %v9426_v38, %v3524_v1  ;;  %v3526_v52 = vrot.slane %v3524_v1, 4  ;;  %v3054_v42 = vsel %vm10971_vm9, %v3049_v49, %v3053_v27  ;;  %v13288_v55 = vld [vmem:[#allocation2 + $0x148] sm:$0xf]  ;;  %v13290_v29 = vld [vmem:[#allocation2 + $0x14c] sm:$0x1]  ;;  %v6610_v49 = vpop.permute.xlu2 %6609 }
 0x38f   :  { %6793 = vrot.lane.b32.xlu1 %v6738_v24, %s10846_s23  ;;  %v6187_v12 = vunpack.c.l.b16 %v3044_v35  ;;  %v13281_v50 = vadd.f32 %v14775_v32, %v8131_v10  ;;  %v6188_v53 = vunpack.c.l.b16 %v3054_v42  ;;  %v5950_v39 = vrot.slane %v13269_v19, 5  ;;  %v8133_v10 = vpop.f32.mrf.mxu1  ;;  %v10135_v20 = vld [vmem:[#allocation2 + $0x144] sm:$0xff]  ;;  %v13303_v42 = vld [vmem:[%s14726_s4] ss:$0 sm:$0xff] }
 0x390   :  { %v8707_v58 = vmul.f32 %v8643_v14, %v8643_v14  ;;  %v3528_v4 = vsel %vm11123_vm15, %v3526_v52, %v3527_v45  ;;  %v6347_v31 = vunpack.c.l.b16 %v3525_v44  ;;  %v5953_v48 = vrot.slane %v13273_v18, 5  ;;  %v1307_v52 = vld [vmem:[#allocation2 + $0x198] sm:$0x1] }
 0x391   :  { %v6348_v8 = vunpack.c.l.b16 %v3528_v4  ;;  %v8452_v33 = vmin.f32 %v13281_v50, 20.0  ;;  %v6227_v27 = vpack.c.b16 %v6188_v53, %v6187_v12  ;;  %v5951_v38 = vsel %vm11123_vm15, %v9489_v34, %v5950_v39 }
 0x392   :  { %v8899_v5 = vadd.f32 1.0, %v8707_v58  ;;  %v9458_v1 = vrot.slane %v4466_v60, 9  ;;  %v9954_v51 = vadd.f32 -1.0, %v8707_v58  ;;  %v5952_v35 = vrot.slane %v5950_v39, 4  ;;  %v543_v60 = vpop.f32.mrf.mxu3 }
 0x393   :  { %v6387_v13 = vpack.c.b16 %v6348_v8, %v6347_v31  ;;  %v8521_v24 = vmul.f32 1.442695, %v8452_v33  ;;  %6283 = vrot.lane.b32.xlu0 %v6227_v27, %s10849_s29  ;;  %v7369_v45 = vunpack.c.l.b16 %v5951_v38  ;;  %v4740_v14 = vrot.slane %v13288_v55, 5  ;;  %v13314_v8 = vpop.f32.mrf.mxu2 }
 0x394   :  { %10445 = vrcp.f32 %v8899_v5  ;;  %v4743_v44 = vrot.slane %v13290_v29, 5  ;;  %v5954_v34 = vsel %vm11123_vm15, %v5952_v35, %v5953_v48  ;;  %v8134_v12 = vadd.f32 %v13303_v42, %v8133_v10  ;;  %v7120_v39 = vpop.permute.xlu0 %7119  ;;  %14776 = vst [vmem:[#allocation20_spill] sm:$0xff] %v13314_v8  ;;  %v3607_v8 = vld [vmem:[#allocation2 + $0xb8] sm:$0xf] }
 0x395   :  { %6443 = vrot.lane.b32.xlu2 %v6387_v13, %s10852_s7  ;;  %10447 = vpow2.f32 %v8521_v24  ;;  %v13307_v32 = vsel %vm7580_vm3, %v7539_v7, %v6610_v49  ;;  %v7370_v58 = vunpack.c.l.b16 %v5954_v34  ;;  %v4741_v53 = vsel %vm11123_vm15, %v9458_v1, %v4740_v14  ;;  %v14777_v7 = vld [vmem:[#allocation22_spill] sm:$0xff] }
 0x396   :  { %v4742_v4 = vrot.slane %v4740_v14, 4  ;;  %v13312_v31 = vadd.f32 %v12999_v28, %v543_v60  ;;  %v7732_v33 = vsel %vm7710_vm7, %v13256_v47, %v13189_v62  ;;  %v13321_v48 = vadd.f32 %v14777_v7, %v8134_v12  ;;  %v13338_v14 = vld [vmem:[#allocation2 + $0xb0] sm:$0x1] }
 0x397   :  { %7145 = vrot.lane.b32.xlu1 %v10135_v20, %s10851_s6  ;;  %v1308_v5 = vsel %vm10919_vm4, 0, %v1307_v52  ;;  %v14778_v28 = vsel %vm10971_vm9, %v13039_v21, %v13019_v63  ;;  %v7410_v38 = vpack.c.b16 %v7370_v58, %v7369_v45  ;;  %v7797_v10 = vsel %vm7775_vm8, %v7732_v33, %v7120_v39  ;;  %v7280_v21 = vpop.permute.xlu1 %7279  ;;  %v10104_v45 = vld [vmem:[#allocation2 + $0x144] sm:$0xff] }
 0x398   :  { %v13330_v27 = vunpack.c.l.b16 %v14778_v28  ;;  %v4744_v1 = vsel %vm11123_vm15, %v4742_v4, %v4743_v44  ;;  %v610_v62 = vmin.f32 %v13312_v31, 20.0  ;;  %1309 = vst [vmem:[#allocation2 + $0x198] sm:$0x1] %v1308_v5  ;;  %v8835_v47 = vmul.f32 %v9954_v51, %v13244_v6  ;;  %v2406_v58 = vld [vmem:[#allocation2 + $0x144] sm:$0xf] }
 0x399   :  { %v6859_v13 = vunpack.c.l.b16 %v4741_v53  ;;  %v6860_v24 = vunpack.c.l.b16 %v4744_v1  ;;  %v8453_v35 = vmin.f32 %v13321_v48, 20.0  ;;  %v14779_v20 = vunpack.c.l.b16 %v13089_v23  ;;  %v13350_v53 = vld [vmem:[#allocation2 + $0x148] sm:$0xf]  ;;  %v13354_v23 = vld [vmem:[#allocation2 + $0x14c] sm:$0x1] }
 0x39a   :  { %v10446_v49 = vpop.eup %10445  ;;  %v736_v52 = vmul.f32 1.442695, %v610_v62  ;;  %v7238_v44 = vpack.c.b16 %v13117_v56, %v13330_v27  ;;  %v7872_v4 = vsel %vm7840_vm10, %v7797_v10, %v7280_v21  ;;  %v3056_v15 = vshrl.u32 %v2406_v58, 16  ;;  %v4841_v28 = vld [vmem:[#allocation2 + $0x144] sm:$0xf]  ;;  %v10123_v56 = vld [vmem:[#allocation2 + $0x9c] sm:$0xff] }
 0x39b   :  { %v13347_v6 = vpack.c.b16 %v7372_v59, %v14779_v20  ;;  %v10448_v51 = vpop.eup %10447  ;;  %v9027_v34 = vmul.f32 %v10446_v49, %v8835_v47  ;;  %9941 = vmatmul.msk.bf16.gmra.mxu2 %vm7419_vm2, %v7410_v38  ;;  %v6899_v12 = vpack.c.b16 %v6860_v24, %v6859_v13  ;;  %v8523_v60 = vmul.f32 1.442695, %v8453_v35  ;;  %6635 = vrot.lane.b32.xlu0 %v10104_v45, %s10850_s30  ;;  %v13361_v20 = vpop.f32.mrf.mxu2 }
 0x39c   :  { %v8644_v39 = vadd.f32 1.0, %v10448_v51  ;;  %10449 = vpow2.f32 %v736_v52  ;;  %v3059_v59 = vshll.u32 %v2406_v58, 16  ;;  %8167 = vmatmul.bf16.gmra.mxu1 %v7872_v4  ;;  %v3065_v33 = vshll.u32 %v13350_v53, 16  ;;  %14780 = vst [vmem:[#allocation22_spill] sm:$0xff] %v13361_v20 }
 0x39d   :  { %9091 = vst.msk [vmem:[#allocation6 + $0x20] sm:$0xff] %vm282_vm0, %v9027_v34  ;;  %6955 = vrot.lane.b32.xlu2 %v6899_v12, %s10853_s12  ;;  %10451 = vpow2.f32 %v8523_v60  ;;  %v3069_v7 = vshrl.u32 %v13350_v53, 16  ;;  %v3075_v5 = vshll.u32 %v13354_v23, 16  ;;  %v3058_v1 = vrot.slane %v3056_v15, 4 }
 0x39e   :  { %v8708_v38 = vmul.f32 %v8644_v39, %v8644_v39  ;;  %v3061_v10 = vrot.slane %v3059_v59, 5  ;;  %v5444_v62 = vshrl.u32 %v4841_v28, 16  ;;  %v3067_v47 = vrot.slane %v3065_v33, 5 }
 0x39f   :  { %v3071_v13 = vrot.slane %v3069_v7, 4  ;;  %v3077_v24 = vrot.slane %v3075_v5, 5  ;;  %v5447_v35 = vshll.u32 %v4841_v28, 16  ;;  %v5453_v12 = vshll.u32 %v13269_v19, 16 }
 0x3a0   :  { %v9955_v49 = vadd.f32 -1.0, %v8708_v38  ;;  %v8900_v21 = vadd.f32 1.0, %v8708_v38  ;;  %v3062_v45 = vor.u32 %v3061_v10, %v3058_v1  ;;  %v5446_v52 = vrot.slane %v5444_v62, 4  ;;  %v3248_v38 = vld [vmem:[#allocation2 + $0x144] sm:$0xe] }
 0x3a1   :  { %v3072_v51 = vor.u32 %v3071_v13, %v3067_v47  ;;  %v5449_v34 = vrot.slane %v5447_v35, 5  ;;  %v5457_v60 = vshrl.u32 %v13269_v19, 16  ;;  %v5463_v15 = vshll.u32 %v13273_v18, 16 }
 0x3a2   :  { %v10450_v58 = vpop.eup %10449  ;;  %v8836_v4 = vmul.f32 %v9955_v49, %v13281_v50  ;;  %10453 = vrcp.f32 %v8900_v21  ;;  %v3063_v39 = vrot.slane %v3062_v45, 4  ;;  %v5455_v28 = vrot.slane %v5453_v12, 5 }
 0x3a3   :  { %v10452_v59 = vpop.eup %10451  ;;  %v802_v33 = vadd.f32 1.0, %v10450_v58  ;;  %v3073_v7 = vrot.slane %v3072_v51, 4  ;;  %v5450_v5 = vor.u32 %v5449_v34, %v5446_v52  ;;  %v5459_v62 = vrot.slane %v5457_v60, 4  ;;  %v3251_v51 = vld [vmem:[#allocation2 + $0x168] sm:$0xe] }
 0x3a4   :  { %v8645_v1 = vadd.f32 1.0, %v10452_v59  ;;  %v3068_v10 = vsel %vm10971_vm9, %v3063_v39, %v3067_v47  ;;  %v5465_v13 = vrot.slane %v5463_v15, 5  ;;  %v9427_v58 = vrot.slane %v3248_v38, 9 }
 0x3a5   :  { %v866_v19 = vmul.f32 %v802_v33, %v802_v33  ;;  %v3078_v50 = vsel %vm10971_vm9, %v3073_v7, %v3077_v24  ;;  %v6189_v35 = vunpack.c.l.b16 %v3068_v10  ;;  %v5451_v49 = vrot.slane %v5450_v5, 4  ;;  %v8135_v7 = vpop.f32.mrf.mxu1 }
 0x3a6   :  { %v8709_v21 = vmul.f32 %v8645_v1, %v8645_v1  ;;  %v6190_v18 = vunpack.c.l.b16 %v3078_v50  ;;  %v5460_v45 = vor.u32 %v5459_v62, %v5455_v28  ;;  %v3531_v47 = vrot.slane %v13350_v53, 5  ;;  %v10730_v1 = vld [vmem:[#allocation2 + $0x16c] sm:$0xf]  ;;  %v10731_v62 = vld [vmem:[#allocation2 + $0x170] sm:$0x1]  ;;  %v13379_v50 = vpop.f32.mrf.mxu2 }
 0x3a7   :  { %v9400_v52 = vadd.f32 -1.0, %v866_v19  ;;  %v1058_v34 = vadd.f32 1.0, %v866_v19  ;;  %v5456_v12 = vsel %vm10971_vm9, %v5451_v49, %v5455_v28  ;;  %v9430_v5 = vrot.slane %v3251_v51, 9  ;;  %v1417_v28 = vld [vmem:[#allocation2 + $0x1a0] sm:$0x1]  ;;  %14781 = vst [vmem:[#allocation36_spill] sm:$0xff] %v13379_v50 }
 0x3a8   :  { %v10454_v60 = vpop.eup %10453  ;;  %v9956_v39 = vadd.f32 -1.0, %v8709_v21  ;;  %v8901_v15 = vadd.f32 1.0, %v8709_v21  ;;  %v6228_v59 = vpack.c.b16 %v6190_v18, %v6189_v35  ;;  %v5461_v33 = vrot.slane %v5460_v45, 4  ;;  %v545_v18 = vpop.f32.mrf.mxu3  ;;  %v10732_v51 = vld [vmem:[%s14724_s2] ss:$0 sm:$0xff] }
 0x3a9   :  { %v9028_v24 = vmul.f32 %v10454_v60, %v8836_v4  ;;  %10455 = vrcp.f32 %v1058_v34  ;;  %v3552_v10 = vrot.slane %v10730_v1, 5  ;;  %v3532_v53 = vsel %vm11123_vm15, %v9427_v58, %v3531_v47 }
 0x3aa   :  { %10457 = vrcp.f32 %v8901_v15  ;;  %6285 = vrot.lane.b32.xlu1 %v6228_v59, %s10849_s29  ;;  %v5466_v38 = vsel %vm10971_vm9, %v5461_v33, %v5465_v13  ;;  %v3555_v19 = vrot.slane %v10731_v62, 5  ;;  %v7209_v4 = vunpack.c.l.b16 %v5456_v12  ;;  %v3634_v12 = vld [vmem:[#allocation2 + $0x174] sm:$0xf] }
 0x3ab   :  { %9092 = vst.msk [vmem:[#allocation6 + $0x28] sm:$0xff] %vm282_vm0, %v9028_v24  ;;  %v7210_v35 = vunpack.c.l.b16 %v5466_v38  ;;  %v3533_v49 = vrot.slane %v3531_v47, 4  ;;  %v3534_v21 = vrot.slane %v13354_v23, 5  ;;  %9942 = vmatmul.msk.bf16.gmra.mxu2 %vm7419_vm2, %v13347_v6  ;;  %v8837_v13 = vmul.f32 %v9956_v39, %v13321_v48  ;;  %v13393_v47 = vld [vmem:[#allocation2 + $0x178] sm:$0xf] }
 0x3ac   :  { %v994_v45 = vmul.f32 %v9400_v52, %v13312_v31  ;;  %v8136_v58 = vadd.f32 %v13303_v42, %v8135_v7  ;;  %v13391_v34 = vadd.f32 %v10732_v51, %v545_v18  ;;  %v6349_v6 = vunpack.c.l.b16 %v3532_v53  ;;  %v14782_v52 = vld [vmem:[#allocation23_spill] sm:$0xff] }
 0x3ad   :  { %v7250_v23 = vpack.c.b16 %v7210_v35, %v7209_v4  ;;  %v3535_v60 = vsel %vm11123_vm15, %v3533_v49, %v3534_v21  ;;  %v1418_v48 = vsel %vm10937_vm6, 0, %v1417_v28  ;;  %v3554_v59 = vrot.slane %v3552_v10, 4  ;;  %v13410_v51 = vld [vmem:[#allocation2 + $0xa4] sm:$0x1] }
 0x3ae   :  { %v6350_v31 = vunpack.c.l.b16 %v3535_v60  ;;  %v13400_v39 = vadd.f32 %v14782_v52, %v8136_v58  ;;  %v611_v15 = vmin.f32 %v13391_v34, 20.0  ;;  %1419 = vst [vmem:[#allocation2 + $0x1a0] sm:$0x1] %v1418_v48  ;;  %v3553_v24 = vsel %vm11123_vm15, %v9430_v5, %v3552_v10  ;;  %v4470_v48 = vld [vmem:[#allocation2 + $0x174] sm:$0xe] }
 0x3af   :  { %v10456_v33 = vpop.eup %10455  ;;  %7305 = vrot.lane.b32.xlu0 %v7250_v23, %s10854_s13  ;;  %v4347_v7 = vshrl.u32 %v3634_v12, 16  ;;  %v4350_v1 = vshll.u32 %v3634_v12, 16  ;;  %v4356_v38 = vshll.u32 %v13393_v47, 16  ;;  %v3556_v21 = vsel %vm11123_vm15, %v3554_v59, %v3555_v19 }
 0x3b0   :  { %v10458_v53 = vpop.eup %10457  ;;  %v1186_v28 = vmul.f32 %v10456_v33, %v994_v45  ;;  %v6388_v62 = vpack.c.b16 %v6350_v31, %v6349_v6  ;;  %v8454_v4 = vmin.f32 %v13400_v39, 20.0  ;;  %v738_v35 = vmul.f32 1.442695, %v611_v15  ;;  %v10079_v45 = vld [vmem:[#allocation2 + $0x18c] sm:$0xff] }
 0x3b1   :  { %v9029_v49 = vmul.f32 %v10458_v53, %v8837_v13  ;;  %v4349_v18 = vrot.slane %v4347_v7, 4  ;;  %v4352_v58 = vrot.slane %v4350_v1, 5  ;;  %v3670_v13 = vld [vmem:[#allocation2 + $0x17c] sm:$0x1]  ;;  %v6355_v19 = vunpack.c.l.b16 %v3553_v24  ;;  %v13424_v7 = vld [vmem:[#allocation2 + $0xec] sm:$0x1] }
 0x3b2   :  { %v1485_v10 = vpack.c.bf16 %v1186_v28, %v1186_v28  ;;  %6445 = vrot.lane.b32.xlu2 %v6388_v62, %s10852_s7  ;;  %v8525_v12 = vmul.f32 1.442695, %v8454_v4  ;;  %10459 = vpow2.f32 %v738_v35  ;;  %7281 = vrot.lane.b32.xlu1 %v7238_v44, %s10854_s13  ;;  %v4358_v60 = vrot.slane %v4356_v38, 5  ;;  %v2349_v28 = vld [vmem:[#allocation2 + $0x198] sm:$0xf] }
 0x3b3   :  { %9093 = vst.msk [vmem:[#allocation6 + $0x30] sm:$0xff] %vm282_vm0, %v9029_v49  ;;  %v4353_v23 = vor.u32 %v4352_v58, %v4349_v18  ;;  %v4360_v6 = vshrl.u32 %v13393_v47, 16  ;;  %v6356_v15 = vunpack.c.l.b16 %v3556_v21  ;;  %v13422_v59 = vsel %vm7419_vm2, %v10079_v45, %v12869_v37  ;;  %v3626_v49 = vld [vmem:[#allocation2 + $0x144] sm:$0xf]  ;;  %v3636_v24 = vld [vmem:[#allocation2 + $0x180] sm:$0xf] }
 0x3b4   :  { %v2017_v31 = vshrl.u32 %v1485_v10, 16  ;;  %v2020_v52 = vshll.u32 %v1485_v10, 16  ;;  %10461 = vpow2.f32 %v8525_v12  ;;  %v4366_v33 = vshll.u32 %v3670_v13, 16 }
 0x3b5   :  { %v4354_v27 = vrot.slane %v4353_v23, 4  ;;  %v4362_v44 = vrot.slane %v4360_v6, 4  ;;  %v9462_v38 = vrot.slane %v4470_v48, 9  ;;  %v4768_v53 = vrot.slane %v13393_v47, 5 }
 0x3b6   :  { %v13427_v1 = vrot.slane %v2017_v31, 7  ;;  %v4368_v4 = vrot.slane %v4366_v33, 5  ;;  %v4771_v35 = vrot.slane %v3670_v13, 5  ;;  %v6391_v58 = vpack.c.b16 %v6356_v15, %v6355_v19 }
 0x3b7   :  { %7121 = vrot.lane.b32.xlu0 %v10123_v56, %s10851_s6  ;;  %v4359_v37 = vsel %vm10971_vm9, %v4354_v27, %v4358_v60  ;;  %v4363_v62 = vor.u32 %v4362_v44, %v4358_v60  ;;  %v4769_v12 = vsel %vm11123_vm15, %v9462_v38, %v4768_v53  ;;  %v4770_v23 = vrot.slane %v4768_v53, 4  ;;  %v13444_v44 = vld [vmem:[#allocation2 + $0xbc] sm:$0x1] }
 0x3b8   :  { %v10460_v21 = vpop.eup %10459  ;;  %v2022_v18 = vor.u32 %v2020_v52, %v13427_v1  ;;  %v6707_v10 = vunpack.c.l.b16 %v4359_v37  ;;  %v6867_v6 = vunpack.c.l.b16 %v4769_v12  ;;  %v4251_v13 = vshrl.u32 %v3626_v49, 16 }
 0x3b9   :  { %v803_v45 = vadd.f32 1.0, %v10460_v21  ;;  %v4364_v47 = vrot.slane %v4363_v62, 4  ;;  %v4254_v60 = vshll.u32 %v3626_v49, 16  ;;  %v4260_v56 = vshll.u32 %v13288_v55, 16  ;;  %v10108_v49 = vld [vmem:[#allocation2 + $0x174] sm:$0xff] }
 0x3ba   :  { %v10462_v48 = vpop.eup %10461  ;;  %v2350_v31 = vsel %vm11029_vm11, %v2022_v18, %v2349_v28  ;;  %6451 = vrot.lane.b32.xlu2 %v6391_v58, %s10852_s7  ;;  %v4772_v27 = vsel %vm11123_vm15, %v4770_v23, %v4771_v35  ;;  %v4253_v53 = vrot.slane %v4251_v13, 4  ;;  %v3235_v18 = vld [vmem:[#allocation2 + $0x90] sm:$0xe] }
 0x3bb   :  { %2351 = vst [vmem:[#allocation2 + $0x198] sm:$0xf] %v2350_v31  ;;  %v8646_v19 = vadd.f32 1.0, %v10462_v48  ;;  %v867_v52 = vmul.f32 %v803_v45, %v803_v45  ;;  %v4369_v15 = vsel %vm10971_vm9, %v4364_v47, %v4368_v4  ;;  %v6868_v38 = vunpack.c.l.b16 %v4772_v27  ;;  %v8138_v48 = vpop.f32.mrf.mxu1 }
 0x3bc   :  { %v6708_v33 = vunpack.c.l.b16 %v4369_v15  ;;  %v4256_v21 = vrot.slane %v4254_v60, 5  ;;  %v4262_v45 = vrot.slane %v4260_v56, 5  ;;  %v4264_v4 = vshrl.u32 %v13288_v55, 16  ;;  %v10736_v55 = vld [vmem:[#allocation2 + $0x94] sm:$0xf] }
 0x3bd   :  { %v8710_v28 = vmul.f32 %v8646_v19, %v8646_v19  ;;  %v9401_v37 = vadd.f32 -1.0, %v867_v52  ;;  %v1059_v62 = vadd.f32 1.0, %v867_v52  ;;  %v6903_v12 = vpack.c.b16 %v6868_v38, %v6867_v6  ;;  %v10737_v52 = vld [vmem:[#allocation2 + $0x98] sm:$0x1] }
 0x3be   :  { %v6743_v58 = vpack.c.b16 %v6708_v33, %v6707_v10  ;;  %v4257_v31 = vor.u32 %v4256_v21, %v4253_v53  ;;  %v4266_v13 = vrot.slane %v4264_v4, 4  ;;  %v4270_v60 = vshll.u32 %v13290_v29, 16  ;;  %v4851_v10 = vld [vmem:[#allocation2 + $0x180] sm:$0xf]  ;;  %v13455_v53 = vpop.permute.xlu2 %6929 }
 0x3bf   :  { %v9957_v47 = vadd.f32 -1.0, %v8710_v28  ;;  %v8902_v35 = vadd.f32 1.0, %v8710_v28  ;;  %v995_v23 = vmul.f32 %v9401_v37, %v13391_v34  ;;  %10463 = vrcp.f32 %v1059_v62  ;;  %6643 = vrot.lane.b32.xlu0 %v10108_v49, %s10850_s30 }
 0x3c0   :  { %6803 = vrot.lane.b32.xlu1 %v6743_v58, %s10846_s23  ;;  %v9414_v19 = vrot.slane %v3235_v18, 9  ;;  %v3440_v56 = vrot.slane %v10736_v55, 5  ;;  %v3443_v15 = vrot.slane %v10737_v52, 5  ;;  %v4258_v34 = vrot.slane %v4257_v31, 4  ;;  %v14783_v18 = vld [vmem:[#allocation24_spill] sm:$0xff] }
 0x3c1   :  { %v8838_v6 = vmul.f32 %v9957_v47, %v13400_v39  ;;  %10465 = vrcp.f32 %v8902_v35  ;;  %v4267_v27 = vor.u32 %v4266_v13, %v4262_v45  ;;  %v4272_v33 = vrot.slane %v4270_v60, 5 }
 0x3c2   :  { %6963 = vrot.lane.b32.xlu2 %v6903_v12, %s10853_s12  ;;  %v8139_v38 = vadd.f32 %v13303_v42, %v8138_v48  ;;  %v3441_v29 = vsel %vm11123_vm15, %v9414_v19, %v3440_v56  ;;  %v3442_v28 = vrot.slane %v3440_v56, 4  ;;  %v5564_v37 = vshrl.u32 %v4851_v10, 16  ;;  %v4852_v12 = vld [vmem:[#allocation2 + $0x184] sm:$0xf]  ;;  %v4887_v56 = vld [vmem:[#allocation2 + $0x188] sm:$0x1] }
 0x3c3   :  { %v5567_v39 = vshll.u32 %v4851_v10, 16  ;;  %v4263_v62 = vsel %vm10971_vm9, %v4258_v34, %v4262_v45  ;;  %v4268_v49 = vrot.slane %v4267_v27, 4  ;;  %v6323_v21 = vunpack.c.l.b16 %v3441_v29 }
 0x3c4   :  { %v13462_v58 = vadd.f32 %v14783_v18, %v8139_v38  ;;  %v6699_v47 = vunpack.c.l.b16 %v4263_v62  ;;  %v3444_v35 = vsel %vm11123_vm15, %v3442_v28, %v3443_v15  ;;  %v5566_v48 = vrot.slane %v5564_v37, 4  ;;  %v10092_v18 = vld [vmem:[#allocation2 + $0x9c] sm:$0xff] }
 0x3c5   :  { %v10464_v4 = vpop.eup %10463  ;;  %v5569_v31 = vrot.slane %v5567_v39, 5  ;;  %v4273_v60 = vsel %vm10971_vm9, %v4268_v49, %v4272_v33  ;;  %v6324_v19 = vunpack.c.l.b16 %v3444_v35  ;;  %v5573_v34 = vshll.u32 %v4852_v12, 16  ;;  %v4454_v28 = vld [vmem:[#allocation2 + $0x9c] sm:$0xe]  ;;  %v3603_v33 = vld [vmem:[#allocation2 + $0xa0] sm:$0xf]  ;;  %v8140_v49 = vpop.f32.mrf.mxu1 }
 0x3c6   :  { %v1187_v13 = vmul.f32 %v10464_v4, %v995_v23  ;;  %v8455_v45 = vmin.f32 %v13462_v58, 20.0  ;;  %v6700_v55 = vunpack.c.l.b16 %v4273_v60  ;;  %v5577_v27 = vshrl.u32 %v4852_v12, 16 }
 0x3c7   :  { %v10466_v10 = vpop.eup %10465  ;;  %v5570_v52 = vor.u32 %v5569_v31, %v5566_v48  ;;  %v6375_v62 = vpack.c.b16 %v6324_v19, %v6323_v21  ;;  %v5575_v39 = vrot.slane %v5573_v34, 5  ;;  %v3654_v21 = vld [vmem:[#allocation2 + $0xa4] sm:$0x1]  ;;  %v2023_v12 = vrot.slane %v13427_v1, 4  ;;  %v2353_v34 = vld [vmem:[#allocation2 + $0x1a0] sm:$0x1] }
 0x3c8   :  { %v9030_v38 = vmul.f32 %v10466_v10, %v8838_v6  ;;  %v1486_v29 = vpack.c.bf16 %v1187_v13, %v1187_v13  ;;  %v8527_v15 = vmul.f32 1.442695, %v8455_v45  ;;  %v6739_v37 = vpack.c.b16 %v6700_v55, %v6699_v47  ;;  %v3602_v13 = vld [vmem:[#allocation2 + $0x9c] sm:$0xf] }
 0x3c9   :  { %v5571_v23 = vrot.slane %v5570_v52, 4  ;;  %v5579_v4 = vrot.slane %v5577_v27, 4  ;;  %6419 = vrot.lane.b32.xlu0 %v6375_v62, %s10852_s7  ;;  %v5583_v6 = vshll.u32 %v4887_v56, 16  ;;  %v9446_v31 = vrot.slane %v4454_v28, 9  ;;  %v13476_v52 = vpop.permute.xlu2 %6263 }
 0x3ca   :  { %9094 = vst.msk [vmem:[#allocation6 + $0x38] sm:$0xff] %vm282_vm0, %v9030_v38  ;;  %v2025_v35 = vshrl.u32 %v1486_v29, 16  ;;  %v2028_v60 = vshll.u32 %v1486_v29, 16  ;;  %6611 = vrot.lane.b32.xlu2 %v10092_v18, %s10850_s30  ;;  %10467 = vpow2.f32 %v8527_v15  ;;  %6795 = vrot.lane.b32.xlu1 %v6739_v37, %s10846_s23  ;;  %v4656_v55 = vrot.slane %v3603_v33, 5 }
 0x3cb   :  { %v5576_v47 = vsel %vm10971_vm9, %v5571_v23, %v5575_v39  ;;  %v5580_v48 = vor.u32 %v5579_v4, %v5575_v39  ;;  %v5585_v45 = vrot.slane %v5583_v6, 5  ;;  %v4659_v56 = vrot.slane %v3654_v21, 5  ;;  %v14784_v23 = vld [vmem:[#allocation25_spill] sm:$0xff] }
 0x3cc   :  { %v2027_v19 = vrot.slane %v2025_v35, 7  ;;  %v7219_v10 = vunpack.c.l.b16 %v5576_v47  ;;  %v8141_v38 = vadd.f32 %v13303_v42, %v8140_v49  ;;  %v3963_v1 = vshrl.u32 %v3602_v13, 16 }
 0x3cd   :  { %v5581_v27 = vrot.slane %v5580_v48, 4  ;;  %v4657_v18 = vsel %vm11123_vm15, %v9446_v31, %v4656_v55  ;;  %v4658_v15 = vrot.slane %v4656_v55, 4  ;;  %v3252_v48 = vld [vmem:[#allocation2 + $0x174] sm:$0xe]  ;;  %v3972_v17 = vshll.u32 %v3603_v33, 16 }
 0x3ce   :  { %v2030_v29 = vor.u32 %v2028_v60, %v2027_v19  ;;  %v2032_v62 = vrot.slane %v2027_v19, 4  ;;  %v6835_v37 = vunpack.c.l.b16 %v4657_v18  ;;  %v13484_v39 = vadd.f32 %v14784_v23, %v8141_v38  ;;  %v10140_v19 = vld [vmem:[#allocation2 + $0x180] sm:$0xff]  ;;  %v8143_v18 = vpop.f32.mrf.mxu1 }
 0x3cf   :  { %v5586_v28 = vsel %vm10971_vm9, %v5581_v27, %v5585_v45  ;;  %v3965_v4 = vrot.slane %v3963_v1, 4  ;;  %v4660_v47 = vsel %vm11123_vm15, %v4658_v15, %v4659_v56  ;;  %v3966_v27 = vshll.u32 %v3602_v13, 16 }
 0x3d0   :  { %v10468_v35 = vpop.eup %10467  ;;  %v2031_v6 = vsel %vm11052_vm12, %v2023_v12, %v2030_v29  ;;  %v2354_v49 = vsel %vm10919_vm4, %v2032_v62, %v2353_v34  ;;  %v7220_v60 = vunpack.c.l.b16 %v5586_v28  ;;  %v6836_v45 = vunpack.c.l.b16 %v4660_v47 }
 0x3d1   :  { %2352 = vst.msk [vmem:[#allocation2 + $0x19c] sm:$0xf] %vm1188_vm1, %v2031_v6  ;;  %v8647_v31 = vadd.f32 1.0, %v10468_v35  ;;  %v8456_v55 = vmin.f32 %v13484_v39, 20.0  ;;  %v3976_v12 = vshrl.u32 %v3603_v33, 16  ;;  %v3982_v1 = vshll.u32 %v3654_v21, 16 }
 0x3d2   :  { %2355 = vst [vmem:[#allocation2 + $0x1a0] sm:$0x1] %v2354_v49  ;;  %v7255_v38 = vpack.c.b16 %v7220_v60, %v7219_v10  ;;  %7155 = vrot.lane.b32.xlu1 %v10140_v19, %s10851_s6  ;;  %v6887_v34 = vpack.c.b16 %v6836_v45, %v6835_v37  ;;  %v3968_v56 = vrot.slane %v3966_v27, 5  ;;  %v3974_v15 = vrot.slane %v3972_v17, 5  ;;  %v4819_v6 = vld [vmem:[#allocation2 + $0xa8] sm:$0xf]  ;;  %v13498_v19 = vpop.permute.xlu2 %6269 }
 0x3d3   :  { %v8711_v29 = vmul.f32 %v8647_v31, %v8647_v31  ;;  %v8529_v62 = vmul.f32 1.442695, %v8456_v55  ;;  %v3978_v28 = vrot.slane %v3976_v12, 4  ;;  %v3984_v23 = vrot.slane %v3982_v1, 5  ;;  %v10738_v10 = vld [vmem:[#allocation2 + $0x178] sm:$0xf] }
 0x3d4   :  { %7315 = vrot.lane.b32.xlu0 %v7255_v38, %s10854_s13  ;;  %v9431_v35 = vrot.slane %v3252_v48, 9  ;;  %6931 = vrot.lane.b32.xlu2 %v6887_v34, %s10853_s12  ;;  %v3969_v33 = vor.u32 %v3968_v56, %v3965_v4  ;;  %v3559_v60 = vrot.slane %v10738_v10, 5  ;;  %v10739_v37 = vld [vmem:[#allocation2 + $0x17c] sm:$0x1]  ;;  %v8144_v31 = vadd.f32 %v13303_v42, %v8143_v18  ;;  %14785 = vst [vmem:[#allocation23_spill] sm:$0xff] %v13498_v19  ;;  %v14786_v4 = vld [vmem:[#allocation27_spill] sm:$0xff] }
 0x3d5   :  { %v9958_v13 = vadd.f32 -1.0, %v8711_v29  ;;  %v8903_v49 = vadd.f32 1.0, %v8711_v29  ;;  %10469 = vpow2.f32 %v8529_v62  ;;  %v3979_v21 = vor.u32 %v3978_v28, %v3974_v15  ;;  %v10124_v18 = vld [vmem:[#allocation2 + $0xa8] sm:$0xff] }
 0x3d6   :  { %v3562_v47 = vrot.slane %v10739_v37, 5  ;;  %v3970_v48 = vrot.slane %v3969_v33, 4  ;;  %v5180_v55 = vshrl.u32 %v4819_v6, 16  ;;  %v3560_v38 = vsel %vm11123_vm15, %v9431_v35, %v3559_v60  ;;  %v10740_v10 = vld [vmem:[#allocation2 + $0xac] sm:$0xf] }
 0x3d7   :  { %v8839_v45 = vmul.f32 %v9958_v13, %v13462_v58  ;;  %10471 = vrcp.f32 %v8903_v49  ;;  %v3980_v27 = vrot.slane %v3979_v21, 4  ;;  %v3561_v17 = vrot.slane %v3559_v60, 4 }
 0x3d8   :  { %v13504_v12 = vadd.f32 %v14786_v4, %v8144_v31  ;;  %v3975_v1 = vsel %vm10971_vm9, %v3970_v48, %v3974_v15  ;;  %v6357_v29 = vunpack.c.l.b16 %v3560_v38  ;;  %v5182_v34 = vrot.slane %v5180_v55, 4  ;;  %v4471_v15 = vld [vmem:[#allocation2 + $0x180] sm:$0xe] }
 0x3d9   :  { %v5183_v62 = vshll.u32 %v4819_v6, 16  ;;  %v3985_v58 = vsel %vm10971_vm9, %v3980_v27, %v3984_v23  ;;  %v6675_v56 = vunpack.c.l.b16 %v3975_v1  ;;  %v3563_v28 = vsel %vm11123_vm15, %v3561_v17, %v3562_v47  ;;  %v10741_v23 = vld [vmem:[#allocation2 + $0xb0] sm:$0x1] }
 0x3da   :  { %v8457_v35 = vmin.f32 %v13504_v12, 20.0  ;;  %v6676_v49 = vunpack.c.l.b16 %v3985_v58  ;;  %v6358_v33 = vunpack.c.l.b16 %v3563_v28  ;;  %v5189_v60 = vshll.u32 %v10740_v10, 16  ;;  %v8145_v28 = vpop.f32.mrf.mxu1 }
 0x3db   :  { %v10470_v13 = vpop.eup %10469  ;;  %v5185_v21 = vrot.slane %v5183_v62, 5  ;;  %v5193_v31 = vshrl.u32 %v10740_v10, 16  ;;  %v5199_v48 = vshll.u32 %v10741_v23, 16  ;;  %v13514_v62 = vld [vmem:[#allocation2 + $0x188] sm:$0x1] }
 0x3dc   :  { %v8648_v37 = vadd.f32 1.0, %v10470_v13  ;;  %7123 = vrot.lane.b32.xlu0 %v10124_v18, %s10851_s6  ;;  %v8531_v6 = vmul.f32 1.442695, %v8457_v35  ;;  %v6727_v27 = vpack.c.b16 %v6676_v49, %v6675_v56  ;;  %v6392_v38 = vpack.c.b16 %v6358_v33, %v6357_v29  ;;  %v13516_v13 = vld [vmem:[#allocation2 + $0x104] sm:$0x1]  ;;  %v13519_v35 = vpop.permute.xlu2 %6275 }
 0x3dd   :  { %v10472_v55 = vpop.eup %10471  ;;  %v5186_v47 = vor.u32 %v5185_v21, %v5182_v34  ;;  %v5191_v17 = vrot.slane %v5189_v60, 5  ;;  %v5195_v58 = vrot.slane %v5193_v31, 4  ;;  %14787 = vst [vmem:[#allocation24_spill] sm:$0xff] %v13519_v35  ;;  %v5201_v34 = vrot.slane %v5199_v48, 5  ;;  %v3253_v35 = vld [vmem:[#allocation2 + $0x180] sm:$0xe] }
 0x3de   :  { %v9031_v4 = vmul.f32 %v10472_v55, %v8839_v45  ;;  %v8712_v1 = vmul.f32 %v8648_v37, %v8648_v37  ;;  %10473 = vpow2.f32 %v8531_v6  ;;  %6771 = vrot.lane.b32.xlu1 %v6727_v27, %s10846_s23  ;;  %6453 = vrot.lane.b32.xlu2 %v6392_v38, %s10852_s7  ;;  %v3637_v45 = vld [vmem:[#allocation2 + $0x184] sm:$0xf]  ;;  %v9463_v56 = vrot.slane %v4471_v15, 9 }
 0x3df   :  { %v5187_v29 = vrot.slane %v5186_v47, 4  ;;  %v5196_v21 = vor.u32 %v5195_v58, %v5191_v17  ;;  %v4775_v10 = vrot.slane %v3637_v45, 5  ;;  %v4778_v37 = vrot.slane %v13514_v62, 5  ;;  %v10109_v15 = vld [vmem:[#allocation2 + $0x180] sm:$0xff] }
 0x3e0   :  { %9095 = vst.msk [vmem:[#allocation6 + $0x40] sm:$0xff] %vm282_vm0, %v9031_v4  ;;  %v9959_v49 = vadd.f32 -1.0, %v8712_v1  ;;  %v8904_v33 = vadd.f32 1.0, %v8712_v1  ;;  %v8146_v6 = vadd.f32 %v13303_v42, %v8145_v28  ;;  %v4371_v31 = vshrl.u32 %v3636_v24, 16 }
 0x3e1   :  { %v5192_v60 = vsel %vm10971_vm9, %v5187_v29, %v5191_v17  ;;  %v5197_v48 = vrot.slane %v5196_v21, 4  ;;  %v4776_v27 = vsel %vm11123_vm15, %v9463_v56, %v4775_v10  ;;  %v4777_v38 = vrot.slane %v4775_v10, 4  ;;  %v3236_v21 = vld [vmem:[#allocation2 + $0x9c] sm:$0xe] }
 0x3e2   :  { %v8840_v23 = vmul.f32 %v9959_v49, %v13484_v39  ;;  %10475 = vrcp.f32 %v8904_v33  ;;  %v7187_v55 = vunpack.c.l.b16 %v5192_v60  ;;  %v13532_v47 = vadd.f32 %v12859_v54, %v8146_v6 }
 0x3e3   :  { %v4373_v4 = vrot.slane %v4371_v31, 4  ;;  %v5202_v1 = vsel %vm10971_vm9, %v5197_v48, %v5201_v34  ;;  %v6869_v58 = vunpack.c.l.b16 %v4776_v27  ;;  %v4374_v39 = vshll.u32 %v3636_v24, 16 }
 0x3e4   :  { %v10474_v17 = vpop.eup %10473  ;;  %6645 = vrot.lane.b32.xlu0 %v10109_v15, %s10850_s30  ;;  %v4380_v28 = vshll.u32 %v3637_v45, 16  ;;  %v7188_v49 = vunpack.c.l.b16 %v5202_v1  ;;  %v4779_v33 = vsel %vm11123_vm15, %v4777_v38, %v4778_v37  ;;  %v8458_v56 = vmin.f32 %v13532_v47, 20.0  ;;  %v13540_v48 = vpop.permute.xlu2 %6441 }
 0x3e5   :  { %v8649_v29 = vadd.f32 1.0, %v10474_v17  ;;  %v6870_v54 = vunpack.c.l.b16 %v4779_v33  ;;  %v4376_v10 = vrot.slane %v4374_v39, 5  ;;  %v4384_v6 = vshrl.u32 %v3637_v45, 16  ;;  %v8148_v37 = vpop.f32.mrf.mxu1  ;;  %v13551_v33 = vpop.permute.xlu0 %6259 }
 0x3e6   :  { %v4382_v60 = vrot.slane %v4380_v28, 5  ;;  %v7239_v18 = vpack.c.b16 %v7188_v49, %v7187_v55  ;;  %v8533_v34 = vmul.f32 1.442695, %v8458_v56  ;;  %v4390_v24 = vshll.u32 %v13514_v62, 16  ;;  %v10743_v28 = vld [vmem:[#allocation2 + $0xa0] sm:$0xf] }
 0x3e7   :  { %v8713_v31 = vmul.f32 %v8649_v29, %v8649_v29  ;;  %v6904_v27 = vpack.c.b16 %v6870_v54, %v6869_v58  ;;  %v4377_v17 = vor.u32 %v4376_v10, %v4373_v4  ;;  %v4386_v1 = vrot.slane %v4384_v6, 4  ;;  %v4853_v62 = vld [vmem:[#allocation2 + $0x18c] sm:$0xf]  ;;  %v13545_v49 = vld [vmem:[#allocation2 + $0xf8] sm:$0x1] }
 0x3e8   :  { %v10476_v15 = vpop.eup %10475  ;;  %v9415_v36 = vrot.slane %v3236_v21, 9  ;;  %7283 = vrot.lane.b32.xlu1 %v7239_v18, %s10854_s13  ;;  %10477 = vpow2.f32 %v8533_v34  ;;  %v4392_v39 = vrot.slane %v4390_v24, 5  ;;  %v3447_v29 = vrot.slane %v10743_v28, 5  ;;  %v4854_v58 = vld [vmem:[#allocation2 + $0x190] sm:$0xf] }
 0x3e9   :  { %v9032_v38 = vmul.f32 %v10476_v15, %v8840_v23  ;;  %v9960_v63 = vadd.f32 -1.0, %v8713_v31  ;;  %v8905_v5 = vadd.f32 1.0, %v8713_v31  ;;  %6965 = vrot.lane.b32.xlu2 %v6904_v27, %s10853_s12  ;;  %v4378_v45 = vrot.slane %v4377_v17, 4  ;;  %v3655_v4 = vld [vmem:[#allocation2 + $0xb0] sm:$0x1] }
 0x3ea   :  { %v4387_v55 = vor.u32 %v4386_v1, %v4382_v60  ;;  %v8149_v18 = vadd.f32 %v13303_v42, %v8148_v37  ;;  %v3448_v54 = vsel %vm11123_vm15, %v9415_v36, %v3447_v29  ;;  %v3449_v10 = vrot.slane %v3447_v29, 4  ;;  %v10093_v1 = vld [vmem:[#allocation2 + $0xa8] sm:$0xff] }
 0x3eb   :  { %9096 = vst.msk [vmem:[#allocation6 + $0x48] sm:$0xff] %vm282_vm0, %v9032_v38  ;;  %v8841_v23 = vmul.f32 %v9960_v63, %v13504_v12  ;;  %10479 = vrcp.f32 %v8905_v5  ;;  %v4383_v56 = vsel %vm10971_vm9, %v4378_v45, %v4382_v60  ;;  %v6325_v31 = vunpack.c.l.b16 %v3448_v54  ;;  %v4888_v60 = vld [vmem:[#allocation2 + $0x194] sm:$0x1]  ;;  %v13567_v38 = vpop.f32.mrf.mxu2 }
 0x3ec   :  { %v4388_v21 = vrot.slane %v4387_v55, 4  ;;  %v6709_v6 = vunpack.c.l.b16 %v4383_v56  ;;  %v13558_v34 = vadd.f32 %v12880_v26, %v8149_v18  ;;  %v5588_v63 = vshrl.u32 %v4853_v62, 16  ;;  %14789 = vst [vmem:[#allocation25_spill] sm:$0xff] %v13567_v38 }
 0x3ed   :  { %v14788_v5 = vrot.slane %v13410_v51, 5  ;;  %v5591_v24 = vshll.u32 %v4853_v62, 16  ;;  %v5597_v15 = vshll.u32 %v4854_v58, 16  ;;  %v5601_v28 = vshrl.u32 %v4854_v58, 16  ;;  %v4455_v51 = vld [vmem:[#allocation2 + $0xa8] sm:$0xe]  ;;  %v13569_v62 = vpop.permute.xlu2 %6281 }
 0x3ee   :  { %v4393_v42 = vsel %vm10971_vm9, %v4388_v21, %v4392_v39  ;;  %v10478_v27 = vpop.eup %10477  ;;  %v8459_v37 = vmin.f32 %v13558_v34, 20.0  ;;  %v5590_v26 = vrot.slane %v5588_v63, 4  ;;  %v5607_v54 = vshll.u32 %v4888_v60, 16 }
 0x3ef   :  { %v3451_v12 = vsel %vm11123_vm15, %v3449_v10, %v14788_v5  ;;  %v6710_v36 = vunpack.c.l.b16 %v4393_v42  ;;  %v8650_v45 = vadd.f32 1.0, %v10478_v27  ;;  %v5593_v55 = vrot.slane %v5591_v24, 5  ;;  %v3605_v10 = vld [vmem:[#allocation2 + $0xac] sm:$0xf]  ;;  %v8150_v27 = vpop.f32.mrf.mxu1  ;;  %v3604_v24 = vld [vmem:[#allocation2 + $0xa8] sm:$0xf] }
 0x3f0   :  { %v6326_v17 = vunpack.c.l.b16 %v3451_v12  ;;  %v5599_v39 = vrot.slane %v5597_v15, 5  ;;  %v8535_v21 = vmul.f32 1.442695, %v8459_v37  ;;  %v5603_v12 = vrot.slane %v5601_v28, 4  ;;  %v13572_v15 = vld [vmem:[#allocation2 + $0x110] sm:$0x1] }
 0x3f1   :  { %v10480_v29 = vpop.eup %10479  ;;  %v6744_v18 = vpack.c.b16 %v6710_v36, %v6709_v6  ;;  %v8714_v5 = vmul.f32 %v8650_v45, %v8650_v45  ;;  %6613 = vrot.lane.b32.xlu2 %v10093_v1, %s10850_s30  ;;  %v5594_v63 = vor.u32 %v5593_v55, %v5590_v26  ;;  %v5609_v6 = vrot.slane %v5607_v54, 5  ;;  %v13578_v1 = vpop.permute.xlu1 %6769  ;;  %v13583_v45 = vld [vmem:[%s14726_s4] ss:$0 sm:$0xff] }
 0x3f2   :  { %v6376_v56 = vpack.c.b16 %v6326_v17, %v6325_v31  ;;  %v9033_v42 = vmul.f32 %v10480_v29, %v8841_v23  ;;  %10481 = vpow2.f32 %v8535_v21  ;;  %v9447_v31 = vrot.slane %v4455_v51, 9  ;;  %v13586_v29 = vpop.permute.xlu0 %6265 }
 0x3f3   :  { %6805 = vrot.lane.b32.xlu1 %v6744_v18, %s10846_s23  ;;  %v9961_v23 = vadd.f32 -1.0, %v8714_v5  ;;  %v8906_v60 = vadd.f32 1.0, %v8714_v5  ;;  %v5595_v36 = vrot.slane %v5594_v63, 4  ;;  %v5604_v17 = vor.u32 %v5603_v12, %v5599_v39  ;;  %14790 = vst [vmem:[#allocation27_spill] sm:$0xff] %v13586_v29 }
 0x3f4   :  { %6421 = vrot.lane.b32.xlu0 %v6376_v56, %s10852_s7  ;;  %9097 = vst.msk [vmem:[#allocation6 + $0x50] sm:$0xff] %vm282_vm0, %v9033_v42  ;;  %v4663_v37 = vrot.slane %v3605_v10, 5  ;;  %v4666_v26 = vrot.slane %v3655_v4, 5  ;;  %v8151_v55 = vadd.f32 %v13583_v45, %v8150_v27  ;;  %v3987_v28 = vshrl.u32 %v3604_v24, 16 }
 0x3f5   :  { %v8842_v51 = vmul.f32 %v9961_v23, %v13532_v47  ;;  %10483 = vrcp.f32 %v8906_v60  ;;  %v5600_v18 = vsel %vm10971_vm9, %v5595_v36, %v5599_v39  ;;  %v5605_v56 = vrot.slane %v5604_v17, 4  ;;  %v10141_v23 = vld [vmem:[#allocation2 + $0x18c] sm:$0xff] }
 0x3f6   :  { %v7221_v21 = vunpack.c.l.b16 %v5600_v18  ;;  %v4664_v54 = vsel %vm11123_vm15, %v9447_v31, %v4663_v37  ;;  %v4665_v42 = vrot.slane %v4663_v37, 4  ;;  %v13594_v5 = vadd.f32 %v12945_v41, %v8151_v55  ;;  %v13601_v31 = vpop.f32.mrf.mxu2 }
 0x3f7   :  { %v5610_v63 = vsel %vm10971_vm9, %v5605_v56, %v5609_v6  ;;  %v6837_v12 = vunpack.c.l.b16 %v4664_v54  ;;  %v3989_v27 = vrot.slane %v3987_v28, 4  ;;  %v3990_v58 = vshll.u32 %v3604_v24, 16  ;;  %14791 = vst [vmem:[#allocation37_spill] sm:$0xff] %v13601_v31  ;;  %v13604_v28 = vpop.permute.xlu2 %6953  ;;  %v8153_v19 = vpop.f32.mrf.mxu1 }
 0x3f8   :  { %v10482_v47 = vpop.eup %10481  ;;  %v7222_v60 = vunpack.c.l.b16 %v5610_v63  ;;  %v4667_v39 = vsel %vm11123_vm15, %v4665_v42, %v4666_v26  ;;  %v8460_v36 = vmin.f32 %v13594_v5, 20.0  ;;  %v3996_v17 = vshll.u32 %v3605_v10, 16 }
 0x3f9   :  { %v8651_v37 = vadd.f32 1.0, %v10482_v47  ;;  %v6838_v41 = vunpack.c.l.b16 %v4667_v39  ;;  %v3992_v55 = vrot.slane %v3990_v58, 5  ;;  %v4000_v18 = vshrl.u32 %v3605_v10, 16  ;;  %v4821_v47 = vld [vmem:[#allocation2 + $0xb4] sm:$0xf] }
 0x3fa   :  { %v7256_v6 = vpack.c.b16 %v7222_v60, %v7221_v21  ;;  %v8537_v24 = vmul.f32 1.442695, %v8460_v36  ;;  %v3998_v56 = vrot.slane %v3996_v17, 5  ;;  %v4006_v54 = vshll.u32 %v3655_v4, 16  ;;  %v13608_v4 = vpop.permute.xlu1 %6261 }
 0x3fb   :  { %7157 = vrot.lane.b32.xlu1 %v10141_v23, %s10851_s6  ;;  %v10484_v63 = vpop.eup %10483  ;;  %v8715_v26 = vmul.f32 %v8651_v37, %v8651_v37  ;;  %v6888_v42 = vpack.c.b16 %v6838_v41, %v6837_v12  ;;  %v3993_v38 = vor.u32 %v3992_v55, %v3989_v27  ;;  %v4002_v50 = vrot.slane %v4000_v18, 4  ;;  %v10747_v12 = vld [vmem:[#allocation2 + $0x184] sm:$0xf]  ;;  %v13612_v37 = vpop.permute.xlu0 %6271 }
 0x3fc   :  { %v9034_v31 = vmul.f32 %v10484_v63, %v8842_v51  ;;  %7317 = vrot.lane.b32.xlu0 %v7256_v6, %s10854_s13  ;;  %10485 = vpow2.f32 %v8537_v24  ;;  %v4008_v10 = vrot.slane %v4006_v54, 5  ;;  %v9432_v58 = vrot.slane %v3253_v35, 9  ;;  %14792 = vst [vmem:[#allocation38_spill] sm:$0xff] %v13612_v37 }
 0x3fd   :  { %v9962_v23 = vadd.f32 -1.0, %v8715_v26  ;;  %v8907_v21 = vadd.f32 1.0, %v8715_v26  ;;  %6933 = vrot.lane.b32.xlu2 %v6888_v42, %s10853_s12  ;;  %v3994_v60 = vrot.slane %v3993_v38, 4  ;;  %v4003_v39 = vor.u32 %v4002_v50, %v3998_v56  ;;  %v10125_v26 = vld [vmem:[#allocation2 + $0xb4] sm:$0xff] }
 0x3fe   :  { %9098 = vst.msk [vmem:[#allocation6 + $0x58] sm:$0xff] %vm282_vm0, %v9034_v31  ;;  %v3566_v27 = vrot.slane %v10747_v12, 5  ;;  %v8154_v51 = vadd.f32 %v13583_v45, %v8153_v19  ;;  %v5204_v36 = vshrl.u32 %v4821_v47, 16  ;;  %v5207_v17 = vshll.u32 %v4821_v47, 16  ;;  %v10748_v47 = vld [vmem:[#allocation2 + $0xb8] sm:$0xf] }
 0x3ff   :  { %v8843_v35 = vmul.f32 %v9962_v23, %v13558_v34  ;;  %10487 = vrcp.f32 %v8907_v21  ;;  %v3999_v41 = vsel %vm10971_vm9, %v3994_v60, %v3998_v56  ;;  %v4004_v38 = vrot.slane %v4003_v39, 4  ;;  %v4472_v12 = vld [vmem:[#allocation2 + $0x18c] sm:$0xe] }
 0x400   :  { %v6677_v50 = vunpack.c.l.b16 %v3999_v41  ;;  %v3567_v55 = vsel %vm11123_vm15, %v9432_v58, %v3566_v27  ;;  %v3568_v31 = vrot.slane %v3566_v27, 4  ;;  %v13620_v18 = vadd.f32 %v12989_v40, %v8154_v51  ;;  %v13629_v40 = vpop.f32.mrf.mxu2 }
 0x401   :  { %v4009_v19 = vsel %vm10971_vm9, %v4004_v38, %v4008_v10  ;;  %v6359_v6 = vunpack.c.l.b16 %v3567_v55  ;;  %v5206_v24 = vrot.slane %v5204_v36, 4  ;;  %v5209_v54 = vrot.slane %v5207_v17, 5  ;;  %14794 = vst [vmem:[#allocation39_spill] sm:$0xff] %v13629_v40  ;;  %v13632_v36 = vpop.permute.xlu2 %6443  ;;  %v10749_v17 = vld [vmem:[#allocation2 + $0xbc] sm:$0x1] }
 0x402   :  { %v10486_v34 = vpop.eup %10485  ;;  %v6678_v63 = vunpack.c.l.b16 %v4009_v19  ;;  %v14793_v56 = vrot.slane %v12850_v61, 5  ;;  %v8461_v58 = vmin.f32 %v13620_v18, 20.0  ;;  %v5213_v23 = vshll.u32 %v10748_v47, 16  ;;  %v13634_v40 = vld [vmem:[#allocation2 + $0x194] sm:$0x1] }
 0x403   :  { %v8652_v21 = vadd.f32 1.0, %v10486_v34  ;;  %v5210_v10 = vor.u32 %v5209_v54, %v5206_v24  ;;  %v5217_v39 = vshrl.u32 %v10748_v47, 16  ;;  %v5223_v41 = vshll.u32 %v10749_v17, 16  ;;  %v8155_v34 = vpop.f32.mrf.mxu1  ;;  %v13636_v24 = vld [vmem:[#allocation2 + $0x11c] sm:$0x1]  ;;  %v13639_v54 = vpop.permute.xlu1 %6273 }
 0x404   :  { %v3570_v42 = vsel %vm11123_vm15, %v3568_v31, %v14793_v56  ;;  %v6728_v27 = vpack.c.b16 %v6678_v63, %v6677_v50  ;;  %7125 = vrot.lane.b32.xlu0 %v10125_v26, %s10851_s6  ;;  %v8539_v51 = vmul.f32 1.442695, %v8461_v58  ;;  %v5215_v61 = vrot.slane %v5213_v23, 5  ;;  %14795 = vst [vmem:[#allocation40_spill] sm:$0xff] %v13639_v54  ;;  %v3237_v50 = vld [vmem:[#allocation2 + $0xa8] sm:$0xe] }
 0x405   :  { %v6360_v60 = vunpack.c.l.b16 %v3570_v42  ;;  %v10488_v38 = vpop.eup %10487  ;;  %v8716_v55 = vmul.f32 %v8652_v21, %v8652_v21  ;;  %v5211_v19 = vrot.slane %v5210_v10, 4  ;;  %v5219_v56 = vrot.slane %v5217_v39, 4  ;;  %v13642_v42 = vpop.permute.xlu0 %6277  ;;  %v3639_v21 = vld [vmem:[#allocation2 + $0x190] sm:$0xf] }
 0x406   :  { %v9035_v63 = vmul.f32 %v10488_v38, %v8843_v35  ;;  %6773 = vrot.lane.b32.xlu1 %v6728_v27, %s10846_s23  ;;  %10489 = vpow2.f32 %v8539_v51  ;;  %v9464_v26 = vrot.slane %v4472_v12, 9  ;;  %14796 = vst [vmem:[#allocation41_spill] sm:$0xff] %v13642_v42  ;;  %v4782_v35 = vrot.slane %v3639_v21, 5  ;;  %v3638_v12 = vld [vmem:[#allocation2 + $0x18c] sm:$0xf] }
 0x407   :  { %v6393_v31 = vpack.c.b16 %v6360_v60, %v6359_v6  ;;  %v9963_v58 = vadd.f32 -1.0, %v8716_v55  ;;  %v8908_v6 = vadd.f32 1.0, %v8716_v55  ;;  %v5216_v47 = vsel %vm10971_vm9, %v5211_v19, %v5215_v61  ;;  %v10110_v38 = vld [vmem:[#allocation2 + $0x18c] sm:$0xff] }
 0x408   :  { %v5220_v23 = vor.u32 %v5219_v56, %v5215_v61  ;;  %v13650_v60 = vsel %vm7645_vm5, %v13307_v32, %v13578_v1  ;;  %9099 = vst.msk [vmem:[#allocation6 + $0x60] sm:$0xff] %vm282_vm0, %v9035_v63  ;;  %v4785_v10 = vrot.slane %v13634_v40, 5  ;;  %v8156_v39 = vadd.f32 %v13583_v45, %v8155_v34 }
 0x409   :  { %6455 = vrot.lane.b32.xlu2 %v6393_v31, %s10852_s7  ;;  %10491 = vrcp.f32 %v8908_v6  ;;  %v5225_v51 = vrot.slane %v5223_v41, 5  ;;  %v7189_v17 = vunpack.c.l.b16 %v5216_v47  ;;  %v8844_v61 = vmul.f32 %v9963_v58, %v13594_v5  ;;  %v13667_v58 = vpop.f32.mrf.mxu2 }
 0x40a   :  { %v5221_v27 = vrot.slane %v5220_v23, 4  ;;  %v4783_v55 = vsel %vm11123_vm15, %v9464_v26, %v4782_v35  ;;  %v4784_v32 = vrot.slane %v4782_v35, 4  ;;  %v13659_v1 = vadd.f32 %v13031_v46, %v8156_v39  ;;  %14797 = vst [vmem:[#allocation42_spill] sm:$0xff] %v13667_v58  ;;  %v10071_v46 = vld [vmem:[#allocation2 + $0x12c] sm:$0xff] }
 0x40b   :  { %v6871_v19 = vunpack.c.l.b16 %v4783_v55  ;;  %v4395_v56 = vshrl.u32 %v3638_v12, 16  ;;  %v4398_v34 = vshll.u32 %v3638_v12, 16  ;;  %v4404_v26 = vshll.u32 %v3639_v21, 16  ;;  %v13671_v55 = vpop.permute.xlu2 %6955 }
 0x40c   :  { %v5226_v31 = vsel %vm10971_vm9, %v5221_v27, %v5225_v51  ;;  %v10490_v63 = vpop.eup %10489  ;;  %6647 = vrot.lane.b32.xlu0 %v10110_v38, %s10850_s30  ;;  %v4786_v5 = vsel %vm11123_vm15, %v4784_v32, %v4785_v10  ;;  %v8462_v41 = vmin.f32 %v13659_v1, 20.0  ;;  %v13669_v27 = vpop.permute.xlu1 %6279 }
 0x40d   :  { %v7190_v6 = vunpack.c.l.b16 %v5226_v31  ;;  %v8653_v47 = vadd.f32 1.0, %v10490_v63  ;;  %v6872_v23 = vunpack.c.l.b16 %v4786_v5  ;;  %v4397_v35 = vrot.slane %v4395_v56, 4  ;;  %14798 = vst [vmem:[#allocation43_spill] sm:$0xff] %v13669_v27  ;;  %v13673_v54 = vpop.permute.xlu0 %6633  ;;  %v8158_v5 = vpop.f32.mrf.mxu1 }
 0x40e   :  { %v4400_v39 = vrot.slane %v4398_v34, 5  ;;  %v8541_v51 = vmul.f32 1.442695, %v8462_v41  ;;  %v4406_v38 = vrot.slane %v4404_v26, 5  ;;  %v4408_v31 = vshrl.u32 %v3639_v21, 16 }
 0x40f   :  { %v7240_v12 = vpack.c.b16 %v7190_v6, %v7189_v17  ;;  %v10492_v10 = vpop.eup %10491  ;;  %v8717_v32 = vmul.f32 %v8653_v47, %v8653_v47  ;;  %v6905_v42 = vpack.c.b16 %v6872_v23, %v6871_v19  ;;  %v4414_v63 = vshll.u32 %v13634_v40, 16  ;;  %v10751_v47 = vld [vmem:[#allocation2 + $0xac] sm:$0xf] }
 0x410   :  { %v4401_v58 = vor.u32 %v4400_v39, %v4397_v35  ;;  %v13678_v56 = vsel %vm7419_vm2, %v10071_v46, %v13569_v62  ;;  %v9036_v17 = vmul.f32 %v10492_v10, %v8844_v61  ;;  %10493 = vpow2.f32 %v8541_v51  ;;  %v4855_v46 = vld [vmem:[#allocation2 + $0x198] sm:$0xf]  ;;  %v4856_v39 = vld [vmem:[#allocation2 + $0x19c] sm:$0xf] }
 0x411   :  { %7285 = vrot.lane.b32.xlu1 %v7240_v12, %s10854_s13  ;;  %v4410_v34 = vrot.slane %v4408_v31, 4  ;;  %v9964_v21 = vadd.f32 -1.0, %v8717_v32  ;;  %v8909_v6 = vadd.f32 1.0, %v8717_v32  ;;  %6967 = vrot.lane.b32.xlu2 %v6905_v42, %s10853_s12  ;;  %v9416_v41 = vrot.slane %v3237_v50, 9  ;;  %v4889_v32 = vld [vmem:[#allocation2 + $0x1a0] sm:$0x1] }
 0x412   :  { %v4402_v19 = vrot.slane %v4401_v58, 4  ;;  %9100 = vst.msk [vmem:[#allocation6 + $0x68] sm:$0xff] %vm282_vm0, %v9036_v17  ;;  %v4416_v40 = vrot.slane %v4414_v63, 5  ;;  %v3454_v23 = vrot.slane %v10751_v47, 5  ;;  %v8159_v62 = vadd.f32 %v13583_v45, %v8158_v5  ;;  %v10094_v47 = vld [vmem:[#allocation2 + $0xb4] sm:$0xff] }
 0x413   :  { %v4411_v26 = vor.u32 %v4410_v34, %v4406_v38  ;;  %v8845_v61 = vmul.f32 %v9964_v21, %v13620_v18  ;;  %10495 = vrcp.f32 %v8909_v6  ;;  %v5612_v12 = vshrl.u32 %v4855_v46, 16 }
 0x414   :  { %v4407_v35 = vsel %vm10971_vm9, %v4402_v19, %v4406_v38  ;;  %v3455_v50 = vsel %vm11123_vm15, %v9416_v41, %v3454_v23  ;;  %v3456_v51 = vrot.slane %v3454_v23, 4  ;;  %v13690_v10 = vadd.f32 %v13073_v0, %v8159_v62  ;;  %v13699_v23 = vpop.permute.xlu1 %6793 }
 0x415   :  { %v4412_v42 = vrot.slane %v4411_v26, 4  ;;  %v6711_v58 = vunpack.c.l.b16 %v4407_v35  ;;  %v6327_v31 = vunpack.c.l.b16 %v3455_v50  ;;  %v5614_v63 = vrot.slane %v5612_v12, 4  ;;  %v13701_v62 = vpop.permute.xlu0 %6283  ;;  %v8160_v29 = vpop.f32.mrf.mxu1 }
 0x416   :  { %v5615_v5 = vshll.u32 %v4855_v46, 16  ;;  %v10494_v18 = vpop.eup %10493  ;;  %v14799_v38 = vrot.slane %v13338_v14, 5  ;;  %v5621_v21 = vshll.u32 %v4856_v39, 16  ;;  %v5625_v6 = vshrl.u32 %v4856_v39, 16  ;;  %v13703_v46 = vpop.f32.mrf.mxu2 }
 0x417   :  { %v4417_v17 = vsel %vm10971_vm9, %v4412_v42, %v4416_v40  ;;  %v8654_v19 = vadd.f32 1.0, %v10494_v18  ;;  %v8463_v0 = vmin.f32 %v13690_v10, 20.0  ;;  %14800 = vst [vmem:[#allocation44_spill] sm:$0xff] %v13703_v46  ;;  %v13705_v40 = vpop.permute.xlu2 %6445  ;;  %v5631_v42 = vshll.u32 %v4889_v32, 16  ;;  %v4456_v46 = vld [vmem:[#allocation2 + $0xb4] sm:$0xe] }
 0x418   :  { %v3458_v34 = vsel %vm11123_vm15, %v3456_v51, %v14799_v38  ;;  %v6712_v41 = vunpack.c.l.b16 %v4417_v17  ;;  %v5617_v14 = vrot.slane %v5615_v5, 5  ;;  %v5623_v35 = vrot.slane %v5621_v21, 5  ;;  %v10060_v38 = vld [vmem:[#allocation2 + $0x90] sm:$0xff] }
 0x419   :  { %v6328_v26 = vunpack.c.l.b16 %v3458_v34  ;;  %v5627_v12 = vrot.slane %v5625_v6, 4  ;;  %v10496_v50 = vpop.eup %10495  ;;  %v8718_v39 = vmul.f32 %v8654_v19, %v8654_v19  ;;  %6615 = vrot.lane.b32.xlu2 %v10094_v47, %s10850_s30  ;;  %v8543_v17 = vmul.f32 1.442695, %v8463_v0  ;;  %v3606_v19 = vld [vmem:[#allocation2 + $0xb4] sm:$0xf] }
 0x41a   :  { %v6745_v51 = vpack.c.b16 %v6712_v41, %v6711_v58  ;;  %v9037_v34 = vmul.f32 %v10496_v50, %v8845_v61  ;;  %v5618_v27 = vor.u32 %v5617_v14, %v5614_v63  ;;  %v5633_v20 = vrot.slane %v5631_v42, 5  ;;  %v13713_v58 = vld [vmem:[#allocation2 + $0xbc] sm:$0x1] }
 0x41b   :  { %v6377_v18 = vpack.c.b16 %v6328_v26, %v6327_v31  ;;  %v5628_v37 = vor.u32 %v5627_v12, %v5623_v35  ;;  %v9965_v30 = vadd.f32 -1.0, %v8718_v39  ;;  %v8910_v5 = vadd.f32 1.0, %v8718_v39  ;;  %v10142_v12 = vld [vmem:[#allocation2 + $0x198] sm:$0xff] }
 0x41c   :  { %v7563_v32 = vsel %vm282_vm0, %v13678_v56, %v13540_v48  ;;  %6807 = vrot.lane.b32.xlu1 %v6745_v51, %s10846_s23  ;;  %10497 = vpow2.f32 %v8543_v17  ;;  %v13717_v61 = vsel %vm7419_vm2, %v10060_v38, %v13551_v33  ;;  %9101 = vst.msk [vmem:[#allocation6 + $0x70] sm:$0xff] %vm282_vm0, %v9037_v34  ;;  %v5619_v63 = vrot.slane %v5618_v27, 4  ;;  %v13736_v39 = vpop.permute.xlu1 %7145 }
 0x41d   :  { %6423 = vrot.lane.b32.xlu0 %v6377_v18, %s10852_s7  ;;  %v7628_v31 = vsel %vm7580_vm3, %v7563_v32, %v13673_v54  ;;  %v5629_v21 = vrot.slane %v5628_v37, 4  ;;  %v8846_v48 = vmul.f32 %v9965_v30, %v13659_v1  ;;  %10499 = vrcp.f32 %v8910_v5  ;;  %v13738_v51 = vpop.permute.xlu0 %6635 }
 0x41e   :  { %v9448_v56 = vrot.slane %v4456_v46, 9  ;;  %v4670_v6 = vrot.slane %v3607_v8, 5  ;;  %v5624_v41 = vsel %vm10971_vm9, %v5619_v63, %v5623_v35  ;;  %v4673_v26 = vrot.slane %v13713_v58, 5  ;;  %v13740_v18 = vpop.f32.mrf.mxu2  ;;  %v10072_v63 = vld [vmem:[#allocation2 + $0x138] sm:$0xff] }
 0x41f   :  { %v5634_v33 = vsel %vm10971_vm9, %v5629_v21, %v5633_v20  ;;  %v8161_v47 = vadd.f32 %v13583_v45, %v8160_v29  ;;  %v7223_v0 = vunpack.c.l.b16 %v5624_v41  ;;  %v4011_v46 = vshrl.u32 %v3606_v19, 16  ;;  %v6452_v34 = vpop.permute.xlu2 %6451 }
 0x420   :  { %v7224_v54 = vunpack.c.l.b16 %v5634_v33  ;;  %v4671_v37 = vsel %vm11123_vm15, %v9448_v56, %v4670_v6  ;;  %v4672_v30 = vrot.slane %v4670_v6, 4  ;;  %v4014_v14 = vshll.u32 %v3606_v19, 16 }
 0x421   :  { %v6839_v1 = vunpack.c.l.b16 %v4671_v37  ;;  %v13732_v27 = vadd.f32 %v13112_v43, %v8161_v47  ;;  %v4020_v50 = vshll.u32 %v3607_v8, 16  ;;  %v4024_v29 = vshrl.u32 %v3607_v8, 16  ;;  %v3254_v47 = vld [vmem:[#allocation2 + $0x18c] sm:$0xe] }
 0x422   :  { %v10498_v35 = vpop.eup %10497  ;;  %v7257_v42 = vpack.c.b16 %v7224_v54, %v7223_v0  ;;  %v4674_v20 = vsel %vm11123_vm15, %v4672_v30, %v4673_v26  ;;  %v4013_v5 = vrot.slane %v4011_v46, 4  ;;  %v4016_v21 = vrot.slane %v4014_v14, 5  ;;  %v8163_v0 = vpop.f32.mrf.mxu1 }
 0x423   :  { %v8655_v17 = vadd.f32 1.0, %v10498_v35  ;;  %v6840_v38 = vunpack.c.l.b16 %v4674_v20  ;;  %v8464_v43 = vmin.f32 %v13732_v27, 20.0  ;;  %v10500_v32 = vpop.eup %10499  ;;  %v4022_v8 = vrot.slane %v4020_v50, 5  ;;  %v10752_v20 = vld [vmem:[#allocation2 + $0x190] sm:$0xf] }
 0x424   :  { %7159 = vrot.lane.b32.xlu1 %v10142_v12, %s10851_s6  ;;  %v4026_v56 = vrot.slane %v4024_v29, 4  ;;  %v4030_v6 = vshll.u32 %v13713_v58, 16  ;;  %v9038_v19 = vmul.f32 %v10500_v32, %v8846_v48  ;;  %v7693_v54 = vsel %vm7645_vm5, %v7628_v31, %v13699_v23  ;;  %v4823_v31 = vld [vmem:[#allocation2 + $0xc0] sm:$0xf] }
 0x425   :  { %7319 = vrot.lane.b32.xlu0 %v7257_v42, %s10854_s13  ;;  %v8719_v41 = vmul.f32 %v8655_v17, %v8655_v17  ;;  %v6889_v33 = vpack.c.b16 %v6840_v38, %v6839_v1  ;;  %v8545_v26 = vmul.f32 1.442695, %v8464_v43  ;;  %v7494_v37 = vsel %vm7419_vm2, %v10072_v63, %v13701_v62  ;;  %v10126_v17 = vld [vmem:[#allocation2 + $0xc0] sm:$0xff] }
 0x426   :  { %v4017_v30 = vor.u32 %v4016_v21, %v4013_v5  ;;  %v4027_v46 = vor.u32 %v4026_v56, %v4022_v8  ;;  %9102 = vst.msk [vmem:[#allocation6 + $0x78] sm:$0xff] %vm282_vm0, %v9038_v19  ;;  %v13754_v58 = vsel %vm282_vm0, %v12921_v57, %v6452_v34  ;;  %v4032_v12 = vrot.slane %v4030_v6, 5  ;;  %v6286_v56 = vpop.permute.xlu1 %6285  ;;  %v7306_v6 = vpop.permute.xlu0 %7305 }
 0x427   :  { %v9966_v14 = vadd.f32 -1.0, %v8719_v41  ;;  %v8911_v35 = vadd.f32 1.0, %v8719_v41  ;;  %6935 = vrot.lane.b32.xlu2 %v6889_v33, %s10853_s12  ;;  %10501 = vpow2.f32 %v8545_v26  ;;  %v9433_v23 = vrot.slane %v3254_v47, 9  ;;  %v13770_v41 = vpop.f32.mrf.mxu2 }
 0x428   :  { %v4018_v48 = vrot.slane %v4017_v30, 4  ;;  %v4028_v1 = vrot.slane %v4027_v46, 4  ;;  %v7758_v42 = vsel %vm7710_vm7, %v7693_v54, %v13604_v28  ;;  %v3573_v50 = vrot.slane %v10752_v20, 5  ;;  %v10753_v54 = vld [vmem:[#allocation2 + $0xc4] sm:$0xf] }
 0x429   :  { %v8847_v62 = vmul.f32 %v9966_v14, %v13690_v10  ;;  %10503 = vrcp.f32 %v8911_v35  ;;  %v8164_v38 = vadd.f32 %v13583_v45, %v8163_v0  ;;  %v5228_v43 = vshrl.u32 %v4823_v31, 16  ;;  %v13776_v0 = vpop.permute.xlu2 %6963 }
 0x42a   :  { %v4023_v29 = vsel %vm10971_vm9, %v4018_v48, %v4022_v8  ;;  %v4033_v57 = vsel %vm10971_vm9, %v4028_v1, %v4032_v12  ;;  %v3574_v10 = vsel %vm11123_vm15, %v9433_v23, %v3573_v50  ;;  %v3575_v32 = vrot.slane %v3573_v50, 4  ;;  %v10073_v50 = vld [vmem:[#allocation2 + $0x144] sm:$0xff] }
 0x42b   :  { %v6679_v34 = vunpack.c.l.b16 %v4023_v29  ;;  %v6680_v5 = vunpack.c.l.b16 %v4033_v57  ;;  %v6361_v28 = vunpack.c.l.b16 %v3574_v10  ;;  %v13768_v63 = vadd.f32 %v13142_v9, %v8164_v38  ;;  %v8165_v29 = vpop.f32.mrf.mxu1 }
 0x42c   :  { %v5230_v21 = vrot.slane %v5228_v43, 4  ;;  %v5231_v8 = vshll.u32 %v4823_v31, 16  ;;  %v14801_v26 = vrot.slane %v12910_v25, 5  ;;  %v5237_v30 = vshll.u32 %v10753_v54, 16  ;;  %v10754_v31 = vld [vmem:[#allocation2 + $0xc8] sm:$0x1] }
 0x42d   :  { %7127 = vrot.lane.b32.xlu0 %v10126_v17, %s10851_s6  ;;  %v10502_v19 = vpop.eup %10501  ;;  %v6729_v33 = vpack.c.b16 %v6680_v5, %v6679_v34  ;;  %v5241_v46 = vshrl.u32 %v10753_v54, 16  ;;  %v8465_v35 = vmin.f32 %v13768_v63, 20.0  ;;  %v7823_v12 = vsel %vm7775_vm8, %v7758_v42, %v13736_v39  ;;  %v4473_v34 = vld [vmem:[#allocation2 + $0x198] sm:$0xe]  ;;  %v3673_v42 = vld [vmem:[#allocation2 + $0x1a0] sm:$0x1] }
 0x42e   :  { %v3577_v47 = vsel %vm11123_vm15, %v3575_v32, %v14801_v26  ;;  %v8656_v9 = vadd.f32 1.0, %v10502_v19  ;;  %v5233_v48 = vrot.slane %v5231_v8, 5  ;;  %v5239_v25 = vrot.slane %v5237_v30, 5  ;;  %v10111_v8 = vld [vmem:[#allocation2 + $0x198] sm:$0xff] }
 0x42f   :  { %v6362_v14 = vunpack.c.l.b16 %v3577_v47  ;;  %v10504_v1 = vpop.eup %10503  ;;  %6775 = vrot.lane.b32.xlu1 %v6729_v33, %s10846_s23  ;;  %v5243_v23 = vrot.slane %v5241_v46, 4  ;;  %v5247_v20 = vshll.u32 %v10754_v31, 16  ;;  %v8547_v43 = vmul.f32 1.442695, %v8465_v35  ;;  %v3640_v30 = vld [vmem:[#allocation2 + $0x198] sm:$0xf]  ;;  %v13801_v31 = vpop.permute.xlu1 %7281 }
 0x430   :  { %v9039_v57 = vmul.f32 %v10504_v1, %v8847_v62  ;;  %v8720_v17 = vmul.f32 %v8656_v9, %v8656_v9  ;;  %v13784_v5 = vsel %vm282_vm0, %v7494_v37, %v13632_v36  ;;  %v5234_v10 = vor.u32 %v5233_v48, %v5230_v21 }
 0x431   :  { %v6394_v38 = vpack.c.b16 %v6362_v14, %v6361_v28  ;;  %v5244_v32 = vor.u32 %v5243_v23, %v5239_v25  ;;  %v13787_v39 = vsel %vm7419_vm2, %v10073_v50, %v6286_v56  ;;  %10505 = vpow2.f32 %v8547_v43  ;;  %v3641_v28 = vld [vmem:[#allocation2 + $0x19c] sm:$0xf] }
 0x432   :  { %9103 = vst.msk [vmem:[#allocation6 + $0x80] sm:$0xff] %vm282_vm0, %v9039_v57  ;;  %v9967_v19 = vadd.f32 -1.0, %v8720_v17  ;;  %v8912_v33 = vadd.f32 1.0, %v8720_v17  ;;  %v5249_v62 = vrot.slane %v5247_v20, 5  ;;  %v5235_v26 = vrot.slane %v5234_v10, 4  ;;  %v13807_v20 = vpop.permute.xlu2 %6611  ;;  %v14802_v10 = vld [vmem:[#allocation33_spill] sm:$0xff] }
 0x433   :  { %6457 = vrot.lane.b32.xlu2 %v6394_v38, %s10852_s7  ;;  %v5245_v47 = vrot.slane %v5244_v32, 4  ;;  %v9465_v36 = vrot.slane %v4473_v34, 9  ;;  %v4789_v37 = vrot.slane %v3641_v28, 5  ;;  %v4792_v56 = vrot.slane %v3673_v42, 5 }
 0x434   :  { %v8848_v21 = vmul.f32 %v9967_v19, %v13732_v27  ;;  %10507 = vrcp.f32 %v8912_v33  ;;  %v7911_v54 = vsel %vm7840_vm10, %v7823_v12, %v7306_v6  ;;  %v5240_v46 = vsel %vm10971_vm9, %v5235_v26, %v5239_v25  ;;  %v7122_v6 = vpop.permute.xlu0 %7121  ;;  %v13803_v12 = vpop.f32.mrf.mxu2 }
 0x435   :  { %6649 = vrot.lane.b32.xlu0 %v10111_v8, %s10850_s30  ;;  %v5250_v9 = vsel %vm10971_vm9, %v5245_v47, %v5249_v62  ;;  %v4790_v14 = vsel %vm11123_vm15, %v9465_v36, %v4789_v37  ;;  %v4791_v35 = vrot.slane %v4789_v37, 4  ;;  %8232 = vmatmul.bf16.vlgmr.msrb.gmra.mxu3 %v7911_v54  ;;  %v7191_v48 = vunpack.c.l.b16 %v5240_v46  ;;  %v3238_v8 = vld [vmem:[#allocation2 + $0xb4] sm:$0xe]  ;;  %v8168_v47 = vpop.f32.mrf.mxu1 }
 0x436   :  { %v7192_v27 = vunpack.c.l.b16 %v5250_v9  ;;  %v6873_v1 = vunpack.c.l.b16 %v4790_v14  ;;  %v8166_v23 = vadd.f32 %v13583_v45, %v8165_v29  ;;  %v4419_v50 = vshrl.u32 %v3640_v30, 16 }
 0x437   :  { %v4793_v25 = vsel %vm11123_vm15, %v4791_v35, %v4792_v56  ;;  %v4422_v57 = vshll.u32 %v3640_v30, 16  ;;  %v4428_v17 = vshll.u32 %v3641_v28, 16  ;;  %v10506_v38 = vpop.eup %10505  ;;  %v4432_v29 = vshrl.u32 %v3641_v28, 16 }
 0x438   :  { %v7241_v43 = vpack.c.b16 %v7192_v27, %v7191_v48  ;;  %v6874_v34 = vunpack.c.l.b16 %v4793_v25  ;;  %v13810_v32 = vadd.f32 %v14802_v10, %v8166_v23  ;;  %v8657_v19 = vadd.f32 1.0, %v10506_v38  ;;  %v10755_v23 = vld [vmem:[#allocation2 + $0xb8] sm:$0xf] }
 0x439   :  { %v4421_v33 = vrot.slane %v4419_v50, 4  ;;  %v4424_v62 = vrot.slane %v4422_v57, 5  ;;  %v4430_v26 = vrot.slane %v4428_v17, 5  ;;  %v4434_v54 = vrot.slane %v4432_v29, 4  ;;  %v1310_v29 = vld [vmem:[#allocation2 + $0x1a4] sm:$0x1] }
 0x43a   :  { %v10508_v36 = vpop.eup %10507  ;;  %7287 = vrot.lane.b32.xlu1 %v7241_v43, %s10854_s13  ;;  %v6906_v37 = vpack.c.b16 %v6874_v34, %v6873_v1  ;;  %v8466_v56 = vmin.f32 %v13810_v32, 20.0  ;;  %v4438_v30 = vshll.u32 %v3673_v42, 16  ;;  %v8721_v9 = vmul.f32 %v8657_v19, %v8657_v19  ;;  %v4858_v19 = vld [vmem:[#allocation2 + $0x1a8] sm:$0xf] }
 0x43b   :  { %v9040_v46 = vmul.f32 %v10508_v36, %v8848_v21  ;;  %v4425_v14 = vor.u32 %v4424_v62, %v4421_v33  ;;  %v9417_v35 = vrot.slane %v3238_v8, 9  ;;  %v4435_v48 = vor.u32 %v4434_v54, %v4430_v26  ;;  %v1420_v8 = vld [vmem:[#allocation2 + $0x1ac] sm:$0x1] }
 0x43c   :  { %6969 = vrot.lane.b32.xlu2 %v6906_v37, %s10853_s12  ;;  %v8549_v28 = vmul.f32 1.442695, %v8466_v56  ;;  %v4440_v27 = vrot.slane %v4438_v30, 5  ;;  %v3461_v25 = vrot.slane %v10755_v23, 5  ;;  %v9968_v50 = vadd.f32 -1.0, %v8721_v9  ;;  %v6644_v37 = vpop.permute.xlu0 %6643  ;;  %v13831_v56 = vpop.f32.mrf.mxu2  ;;  %v10095_v30 = vld [vmem:[#allocation2 + $0xc0] sm:$0xff] }
 0x43d   :  { %9104 = vst.msk [vmem:[#allocation6 + $0x88] sm:$0xff] %vm282_vm0, %v9040_v46  ;;  %v8913_v57 = vadd.f32 1.0, %v8721_v9  ;;  %v4426_v1 = vrot.slane %v4425_v14, 4  ;;  %v7734_v42 = vsel %vm7710_vm7, %v13650_v60, %v13455_v53  ;;  %v4436_v21 = vrot.slane %v4435_v48, 4  ;;  %v13836_v14 = vpop.permute.xlu2 %6931  ;;  %v13844_v23 = vld [vmem:[#allocation2 + $0xc8] sm:$0x1] }
 0x43e   :  { %10509 = vpow2.f32 %v8549_v28  ;;  %v3462_v17 = vsel %vm11123_vm15, %v9417_v35, %v3461_v25  ;;  %v3463_v38 = vrot.slane %v3461_v25, 4  ;;  %v8849_v43 = vmul.f32 %v9968_v50, %v13768_v63  ;;  %v6804_v63 = vpop.permute.xlu1 %6803  ;;  %v4457_v35 = vld [vmem:[#allocation2 + $0xc0] sm:$0xe] }
 0x43f   :  { %10511 = vrcp.f32 %v8913_v57  ;;  %v4431_v34 = vsel %vm10971_vm9, %v4426_v1, %v4430_v26  ;;  %v6329_v10 = vunpack.c.l.b16 %v3462_v17  ;;  %v4441_v33 = vsel %vm10971_vm9, %v4436_v21, %v4440_v27  ;;  %v8170_v57 = vpop.f32.mrf.mxu1  ;;  %v3608_v1 = vld [vmem:[#allocation2 + $0xc0] sm:$0xf] }
 0x440   :  { %v6713_v53 = vunpack.c.l.b16 %v4431_v34  ;;  %v14803_v60 = vrot.slane %v13444_v44, 5  ;;  %v7799_v36 = vsel %vm7775_vm8, %v7734_v42, %v7122_v6  ;;  %v6714_v26 = vunpack.c.l.b16 %v4441_v33  ;;  %v13838_v44 = vld [vmem:[#allocation2 + $0xc4] sm:$0xf] }
 0x441   :  { %v8169_v46 = vadd.f32 %v13583_v45, %v8168_v47  ;;  %v7875_v9 = vsel %vm7840_vm10, %v7799_v36, %v13801_v31  ;;  %v1311_v6 = vsel %vm10919_vm4, 0, %v1310_v29  ;;  %v1421_v28 = vsel %vm10937_vm6, 0, %v1420_v8 }
 0x442   :  { %v3465_v62 = vsel %vm11123_vm15, %v3463_v38, %v14803_v60  ;;  %8172 = vmatmul.bf16.gmra.mxu1 %v7875_v9  ;;  %v5645_v48 = vshll.u32 %v4858_v19, 16  ;;  %v5649_v27 = vshrl.u32 %v4858_v19, 16  ;;  %v6746_v47 = vpack.c.b16 %v6714_v26, %v6713_v53  ;;  %1312 = vst [vmem:[#allocation2 + $0x1a4] sm:$0x1] %v1311_v6 }
 0x443   :  { %v6330_v54 = vunpack.c.l.b16 %v3465_v62  ;;  %v13847_v31 = vadd.f32 %v13209_v3, %v8169_v46  ;;  %v7638_v50 = vsel %vm7580_vm3, %v13754_v58, %v6644_v37  ;;  %1422 = vst [vmem:[#allocation2 + $0x1ac] sm:$0x1] %v1421_v28  ;;  %v9449_v38 = vrot.slane %v4457_v35, 9 }
 0x444   :  { %v10510_v42 = vpop.eup %10509  ;;  %6617 = vrot.lane.b32.xlu2 %v10095_v30, %s10850_s30  ;;  %v13852_v22 = vrot.slane %v5645_v48, 5  ;;  %v5651_v21 = vrot.slane %v5649_v27, 4  ;;  %v13855_v17 = vsel %vm7645_vm5, %v7638_v50, %v6804_v63  ;;  %6809 = vrot.lane.b32.xlu1 %v6746_v47, %s10846_s23  ;;  %v4680_v29 = vrot.slane %v13844_v23, 5  ;;  %v13876_v46 = vpop.permute.xlu0 %6419 }
 0x445   :  { %v6378_v25 = vpack.c.b16 %v6330_v54, %v6329_v10  ;;  %v10512_v34 = vpop.eup %10511  ;;  %v8658_v3 = vadd.f32 1.0, %v10510_v42  ;;  %v8467_v58 = vmin.f32 %v13847_v31, 20.0  ;;  %v4677_v10 = vrot.slane %v13838_v44, 5  ;;  %v14804_v54 = vld [vmem:[#allocation34_spill] sm:$0xff]  ;;  %v13883_v42 = vpop.permute.xlu2 %6453 }
 0x446   :  { %v9041_v8 = vmul.f32 %v10512_v34, %v8849_v43  ;;  %v5652_v19 = vor.u32 %v5651_v21, %v13852_v22  ;;  %v8171_v33 = vadd.f32 %v13583_v45, %v8170_v57  ;;  %v4035_v53 = vshrl.u32 %v3608_v1, 16  ;;  %v6796_v30 = vpop.permute.xlu1 %6795 }
 0x447   :  { %6425 = vrot.lane.b32.xlu0 %v6378_v25, %s10852_s7  ;;  %v8722_v60 = vmul.f32 %v8658_v3, %v8658_v3  ;;  %v8551_v62 = vmul.f32 1.442695, %v8467_v58  ;;  %v4678_v36 = vsel %vm11123_vm15, %v9449_v38, %v4677_v10  ;;  %v4679_v63 = vrot.slane %v4677_v10, 4  ;;  %v1256_v58 = vld [vmem:[#allocation2 + $0xcc] sm:$0x1] }
 0x448   :  { %v7630_v37 = vsel %vm7580_vm3, %v13784_v5, %v13738_v51  ;;  %9105 = vst.msk [vmem:[#allocation6 + $0x90] sm:$0xff] %vm282_vm0, %v9041_v8  ;;  %v7567_v43 = vsel %vm282_vm0, %v13787_v39, %v13705_v40  ;;  %v5653_v26 = vrot.slane %v5652_v19, 4  ;;  %v13874_v45 = vadd.f32 %v14804_v54, %v8171_v33  ;;  %v13881_v39 = vpop.f32.mrf.mxu2 }
 0x449   :  { %v8914_v9 = vadd.f32 1.0, %v8722_v60  ;;  %10513 = vpow2.f32 %v8551_v62  ;;  %v4681_v35 = vsel %vm11123_vm15, %v4679_v63, %v4680_v29  ;;  %v6841_v6 = vunpack.c.l.b16 %v4678_v36  ;;  %v10143_v51 = vld [vmem:[#allocation2 + $0x1a4] sm:$0xff] }
 0x44a   :  { %v4857_v5 = vld [vmem:[#allocation2 + $0x1a4] sm:$0xf]  ;;  %v6842_v28 = vunpack.c.l.b16 %v4681_v35  ;;  %v8468_v48 = vmin.f32 %v13874_v45, 20.0  ;;  %v4037_v27 = vrot.slane %v4035_v53, 4  ;;  %v4038_v40 = vshll.u32 %v3608_v1, 16 }
 0x44b   :  { %v9969_v47 = vadd.f32 -1.0, %v8722_v60  ;;  %10515 = vrcp.f32 %v8914_v9  ;;  %v4890_v25 = vld [vmem:[#allocation2 + $0x1ac] sm:$0x1]  ;;  %v5636_v50 = vshrl.u32 %v4857_v5, 16  ;;  %v5639_v57 = vshll.u32 %v4857_v5, 16 }
 0x44c   :  { %v5655_v21 = vshll.u32 %v4890_v25, 16  ;;  %v6890_v38 = vpack.c.b16 %v6842_v28, %v6841_v6  ;;  %v8553_v34 = vmul.f32 1.442695, %v8468_v48  ;;  %v4040_v3 = vrot.slane %v4038_v40, 5  ;;  %7161 = vrot.lane.b32.xlu1 %v10143_v51, %s10851_s6  ;;  %v13897_v5 = vpop.permute.xlu0 %7315 }
 0x44d   :  { %v5638_v10 = vrot.slane %v5636_v50, 4  ;;  %v5641_v29 = vrot.slane %v5639_v57, 5  ;;  %v4044_v1 = vshll.u32 %v13838_v44, 16  ;;  %v4048_v8 = vshrl.u32 %v13838_v44, 16 }
 0x44e   :  { %v5657_v19 = vrot.slane %v5655_v21, 5  ;;  %6937 = vrot.lane.b32.xlu2 %v6890_v38, %s10853_s12  ;;  %10517 = vpow2.f32 %v8553_v34  ;;  %v4041_v33 = vor.u32 %v4040_v3, %v4037_v27  ;;  %v4054_v53 = vshll.u32 %v13844_v23, 16  ;;  %v13895_v51 = vpop.permute.xlu1 %7155 }
 0x44f   :  { %v10514_v60 = vpop.eup %10513  ;;  %v5642_v62 = vor.u32 %v5641_v29, %v5638_v10  ;;  %v4046_v36 = vrot.slane %v4044_v1, 5  ;;  %v4050_v63 = vrot.slane %v4048_v8, 4  ;;  %v1257_v54 = vsel %vm10919_vm4, 0, %v1256_v58  ;;  %v14806_v1 = vld [vmem:[#allocation26_spill] sm:$0xff] }
 0x450   :  { %v8850_v9 = vmul.f32 %v9969_v47, %v13810_v32  ;;  %v8659_v35 = vadd.f32 1.0, %v10514_v60  ;;  %v5658_v44 = vsel %vm10971_vm9, %v5653_v26, %v5657_v19  ;;  %v4042_v6 = vrot.slane %v4041_v33, 4  ;;  %1258 = vst [vmem:[#allocation2 + $0xcc] sm:$0x1] %v1257_v54  ;;  %v14805_v47 = vld [vmem:[#allocation12_spill] sm:$0xff]  ;;  %v13912_v29 = vpop.f32.mrf.mxu2  ;;  %v13918_v33 = vpop.permute.xlu2 %6965 }
 0x451   :  { %v10516_v23 = vpop.eup %10515  ;;  %v5643_v28 = vrot.slane %v5642_v62, 4  ;;  %v7226_v48 = vunpack.c.l.b16 %v5658_v44  ;;  %v4051_v27 = vor.u32 %v4050_v63, %v4046_v36  ;;  %v7695_v40 = vsel %vm7645_vm5, %v7630_v37, %v6796_v30 }
 0x452   :  { %v9042_v25 = vmul.f32 %v10516_v23, %v8850_v9  ;;  %v8723_v50 = vmul.f32 %v8659_v35, %v8659_v35  ;;  %v4047_v32 = vsel %vm10971_vm9, %v4042_v6, %v4046_v36  ;;  %v7760_v26 = vsel %vm7710_vm7, %v7695_v40, %v13671_v55  ;;  %v14810_v35 = vld [vmem:[#allocation28_spill] sm:$0xff]  ;;  %v14812_v23 = vld [vmem:[#allocation17_spill] sm:$0xff] }
 0x453   :  { %v13906_v57 = vsel %vm7580_vm3, %v7567_v43, %v14805_v47  ;;  %v5648_v21 = vsel %vm10971_vm9, %v5643_v28, %v13852_v22  ;;  %v4052_v38 = vrot.slane %v4051_v27, 4  ;;  %v4056_v34 = vrot.slane %v4054_v53, 5  ;;  %v14808_v22 = vld [vmem:[#allocation14_spill] sm:$0xff] }
 0x454   :  { %v10518_v37 = vpop.eup %10517  ;;  %9106 = vst.msk [vmem:[#allocation6 + $0x98] sm:$0xff] %vm282_vm0, %v9042_v25  ;;  %v8915_v30 = vadd.f32 1.0, %v8723_v50  ;;  %v7225_v3 = vunpack.c.l.b16 %v5648_v21  ;;  %v6681_v58 = vunpack.c.l.b16 %v4047_v32  ;;  %v9418_v10 = vrot.slane %v3239_v16, 9  ;;  %v13935_v32 = vpop.permute.xlu0 %7123 }
 0x455   :  { %v8660_v55 = vadd.f32 1.0, %v10518_v37  ;;  %v4057_v43 = vsel %vm10971_vm9, %v4052_v38, %v4056_v34  ;;  %v14807_v8 = vrot.slane %v14806_v1, 5  ;;  %v7825_v53 = vsel %vm7775_vm8, %v7760_v26, %v14808_v22  ;;  %v10756_v38 = vld [vmem:[#allocation2 + $0xd0] sm:$0xf]  ;;  %v4458_v37 = vld [vmem:[#allocation2 + $0xe4] sm:$0xe] }
 0x456   :  { %v9970_v60 = vadd.f32 -1.0, %v8723_v50  ;;  %10519 = vrcp.f32 %v8915_v30  ;;  %v7258_v62 = vpack.c.b16 %v7226_v48, %v7225_v3  ;;  %v6682_v36 = vunpack.c.l.b16 %v4057_v43  ;;  %v13933_v50 = vpop.permute.xlu1 %6771  ;;  %v3611_v43 = vld [vmem:[#allocation2 + $0xe8] sm:$0xf]  ;;  %v13939_v22 = vld [vmem:[#allocation2 + $0xec] sm:$0x1] }
 0x457   :  { %v3470_v19 = vrot.slane %v14807_v8, 4  ;;  %v8724_v63 = vmul.f32 %v8660_v55, %v8660_v55  ;;  %v14809_v54 = vmov %v14807_v8  ;;  %v14811_v44 = vrot.slane %v14810_v35, 5  ;;  %v4825_v27 = vld [vmem:[#allocation2 + $0xcc] sm:$0xf] }
 0x458   :  { %v3469_v9 = vsel %vm11123_vm15, %v9418_v10, %v14809_v54  ;;  %v7914_v28 = vsel %vm7840_vm10, %v7825_v53, %v14812_v23  ;;  %7321 = vrot.lane.b32.xlu0 %v7258_v62, %s10854_s13  ;;  %v6730_v40 = vpack.c.b16 %v6682_v36, %v6681_v58  ;;  %v5252_v25 = vshrl.u32 %v4825_v27, 16  ;;  %v10757_v58 = vld [vmem:[#allocation2 + $0xd4] sm:$0x1]  ;;  %v3610_v53 = vld [vmem:[#allocation2 + $0xe4] sm:$0xf] }
 0x459   :  { %v3472_v6 = vsel %vm11123_vm15, %v3470_v19, %v14811_v44  ;;  %v6331_v48 = vunpack.c.l.b16 %v3469_v9  ;;  %8237 = vmatmul.bf16.gmra.mxu3 %v7914_v28  ;;  %v9971_v26 = vadd.f32 -1.0, %v8724_v63  ;;  %v8916_v47 = vadd.f32 1.0, %v8724_v63  ;;  %v10127_v63 = vld [vmem:[#allocation2 + $0xcc] sm:$0xff] }
 0x45a   :  { %v6332_v16 = vunpack.c.l.b16 %v3472_v6  ;;  %v5255_v21 = vshll.u32 %v4825_v27, 16  ;;  %v5261_v34 = vshll.u32 %v10756_v38, 16  ;;  %6777 = vrot.lane.b32.xlu1 %v6730_v40, %s10846_s23  ;;  %v5254_v3 = vrot.slane %v5252_v25, 4 }
 0x45b   :  { %v5265_v10 = vshrl.u32 %v10756_v38, 16  ;;  %v5271_v55 = vshll.u32 %v10757_v58, 16  ;;  %v8851_v1 = vmul.f32 %v9970_v60, %v13847_v31  ;;  %10521 = vrcp.f32 %v8916_v47 }
 0x45c   :  { %v6379_v30 = vpack.c.b16 %v6332_v16, %v6331_v48  ;;  %v5257_v8 = vrot.slane %v5255_v21, 5  ;;  %v5263_v19 = vrot.slane %v5261_v34, 5  ;;  %v10520_v62 = vpop.eup %10519  ;;  %v8852_v36 = vmul.f32 %v9971_v26, %v13874_v45  ;;  %v13947_v48 = vpop.f32.mrf.mxu2 }
 0x45d   :  { %v7541_v54 = vsel %vm282_vm0, %v13717_v61, %v13876_v46  ;;  %v5267_v9 = vrot.slane %v5265_v10, 4  ;;  %v5273_v35 = vrot.slane %v5271_v55, 5  ;;  %v9043_v44 = vmul.f32 %v10520_v62, %v8851_v1  ;;  %v13952_v16 = vpop.permute.xlu2 %6613  ;;  %v3240_v1 = vld [vmem:[#allocation2 + $0xe4] sm:$0xe] }
 0x45e   :  { %6427 = vrot.lane.b32.xlu2 %v6379_v30, %s10852_s7  ;;  %v5258_v31 = vor.u32 %v5257_v8, %v5254_v3  ;;  %v9450_v60 = vrot.slane %v4458_v37, 9  ;;  %v4684_v6 = vrot.slane %v3611_v43, 5  ;;  %v4687_v28 = vrot.slane %v13939_v22, 5  ;;  %v13955_v34 = vpop.permute.xlu1 %7283  ;;  %v13957_v37 = vpop.permute.xlu0 %6645 }
 0x45f   :  { %v5268_v23 = vor.u32 %v5267_v9, %v5263_v19  ;;  %v4059_v27 = vshrl.u32 %v3610_v53, 16  ;;  %v4062_v40 = vshll.u32 %v3610_v53, 16  ;;  %9107 = vst.msk [vmem:[#allocation6 + $0xa0] sm:$0xff] %vm282_vm0, %v9043_v44  ;;  %v4068_v25 = vshll.u32 %v3611_v43, 16 }
 0x460   :  { %v5259_v45 = vrot.slane %v5258_v31, 4  ;;  %v4685_v61 = vsel %vm11123_vm15, %v9450_v60, %v4684_v6  ;;  %v4686_v46 = vrot.slane %v4684_v6, 4  ;;  %7129 = vrot.lane.b32.xlu0 %v10127_v63, %s10851_s6  ;;  %v4072_v55 = vshrl.u32 %v3611_v43, 16  ;;  %v13966_v6 = vld [vmem:[#allocation2 + $0x128] sm:$0x1] }
 0x461   :  { %v5269_v26 = vrot.slane %v5268_v23, 4  ;;  %v6843_v47 = vunpack.c.l.b16 %v4685_v61  ;;  %v4061_v21 = vrot.slane %v4059_v27, 4  ;;  %v4064_v38 = vrot.slane %v4062_v40, 5  ;;  %v10522_v30 = vpop.eup %10521  ;;  %v10062_v27 = vld [vmem:[#allocation2 + $0xa8] sm:$0xff] }
 0x462   :  { %v5264_v3 = vsel %vm10971_vm9, %v5259_v45, %v5263_v19  ;;  %v4688_v10 = vsel %vm11123_vm15, %v4686_v46, %v4687_v28  ;;  %v4070_v58 = vrot.slane %v4068_v25, 5  ;;  %v9044_v8 = vmul.f32 %v10522_v30, %v8852_v36  ;;  %v10759_v28 = vld [vmem:[#allocation2 + $0xe8] sm:$0xf] }
 0x463   :  { %v5274_v53 = vsel %vm10971_vm9, %v5269_v26, %v5273_v35  ;;  %v7193_v62 = vunpack.c.l.b16 %v5264_v3  ;;  %v6844_v63 = vunpack.c.l.b16 %v4688_v10  ;;  %v4065_v44 = vor.u32 %v4064_v38, %v4061_v21  ;;  %v10096_v46 = vld [vmem:[#allocation2 + $0xe4] sm:$0xff]  ;;  %v4827_v38 = vld [vmem:[#allocation2 + $0xf0] sm:$0xf] }
 0x464   :  { %v7194_v9 = vunpack.c.l.b16 %v5274_v53  ;;  %v4074_v31 = vrot.slane %v4072_v55, 4  ;;  %v4078_v60 = vshll.u32 %v13939_v22, 16  ;;  %v3513_v19 = vrot.slane %v13966_v6, 5  ;;  %9108 = vst.msk [vmem:[#allocation6 + $0xa8] sm:$0xff] %vm282_vm0, %v9044_v8 }
 0x465   :  { %v6891_v23 = vpack.c.b16 %v6844_v63, %v6843_v47  ;;  %v9419_v43 = vrot.slane %v3240_v1, 9  ;;  %v3475_v36 = vrot.slane %v10759_v28, 5  ;;  %v4066_v35 = vrot.slane %v4065_v44, 4  ;;  %v14813_v47 = vld [vmem:[#allocation15_spill] sm:$0xff]  ;;  %v14816_v63 = vld [vmem:[#allocation16_spill] sm:$0xff] }
 0x466   :  { %v7242_v40 = vpack.c.b16 %v7194_v9, %v7193_v62  ;;  %v4075_v45 = vor.u32 %v4074_v31, %v4070_v58  ;;  %v7606_v61 = vsel %vm7580_vm3, %v7541_v54, %v13807_v20  ;;  %v7697_v21 = vsel %vm7645_vm5, %v13906_v57, %v14813_v47  ;;  %v13996_v8 = vpop.permute.xlu1 %6805  ;;  %v14000_v62 = vpop.permute.xlu2 %6933  ;;  %v14817_v31 = vld [vmem:[#allocation18_spill] sm:$0xff] }
 0x467   :  { %6939 = vrot.lane.b32.xlu2 %v6891_v23, %s10853_s12  ;;  %v7671_v22 = vsel %vm7645_vm5, %v7606_v61, %v13933_v50  ;;  %v3476_v25 = vsel %vm11123_vm15, %v9419_v43, %v3475_v36  ;;  %v3477_v26 = vrot.slane %v3475_v36, 4  ;;  %v13982_v30 = vsel %vm7419_vm2, %v10062_v27, %v13476_v52  ;;  %v14815_v52 = vld [vmem:[#allocation13_spill] sm:$0xff] }
 0x468   :  { %7289 = vrot.lane.b32.xlu1 %v7242_v40, %s10854_s13  ;;  %v4071_v20 = vsel %vm10971_vm9, %v4066_v35, %v4070_v58  ;;  %v4076_v54 = vrot.slane %v4075_v45, 4  ;;  %v4080_v50 = vrot.slane %v4078_v60, 5  ;;  %6619 = vrot.lane.b32.xlu0 %v10096_v46, %s10850_s30  ;;  %v7736_v3 = vsel %vm7710_vm7, %v7671_v22, %v13836_v14  ;;  %v10760_v43 = vld [vmem:[#allocation2 + $0xf4] sm:$0xf]  ;;  %v4459_v27 = vld [vmem:[#allocation2 + $0xf0] sm:$0xe]  ;;  %v14008_v40 = vpop.permute.xlu0 %6421 }
 0x469   :  { %v14814_v10 = vrot.slane %v13424_v7, 5  ;;  %v6333_v55 = vunpack.c.l.b16 %v3476_v25  ;;  %v7762_v1 = vsel %vm7710_vm7, %v7697_v21, %v14815_v52  ;;  %v5276_v9 = vshrl.u32 %v4827_v38, 16  ;;  %v14004_v7 = vpop.f32.mrf.mxu2  ;;  %v3613_v36 = vld [vmem:[#allocation2 + $0xf4] sm:$0xf]  ;;  %v10761_v46 = vld [vmem:[#allocation2 + $0xf8] sm:$0x1] }
 0x46a   :  { %v4081_v58 = vsel %vm10971_vm9, %v4076_v54, %v4080_v50  ;;  %v7827_v14 = vsel %vm7775_vm8, %v7762_v1, %v14816_v63  ;;  %v5279_v23 = vshll.u32 %v4827_v38, 16  ;;  %v5285_v28 = vshll.u32 %v10760_v43, 16  ;;  %v3659_v25 = vld [vmem:[#allocation2 + $0xf8] sm:$0x1]  ;;  %v3612_v38 = vld [vmem:[#allocation2 + $0xf0] sm:$0xf] }
 0x46b   :  { %v3479_v57 = vsel %vm11123_vm15, %v3477_v26, %v14814_v10  ;;  %v6684_v44 = vunpack.c.l.b16 %v4081_v58  ;;  %v7917_v60 = vsel %vm7840_vm10, %v7827_v14, %v14817_v31  ;;  %v6683_v35 = vunpack.c.l.b16 %v4071_v20  ;;  %v10128_v1 = vld [vmem:[#allocation2 + $0xf0] sm:$0xff] }
 0x46c   :  { %v6334_v53 = vunpack.c.l.b16 %v3479_v57  ;;  %8242 = vmatmul.bf16.gmra.mxu3 %v7917_v60  ;;  %v5278_v45 = vrot.slane %v5276_v9, 4  ;;  %v5289_v61 = vshrl.u32 %v10760_v43, 16  ;;  %v5295_v22 = vshll.u32 %v10761_v46, 16 }
 0x46d   :  { %v7801_v26 = vsel %vm7775_vm8, %v7736_v3, %v13935_v32  ;;  %v5281_v21 = vrot.slane %v5279_v23, 5  ;;  %v5287_v54 = vrot.slane %v5285_v28, 5  ;;  %v6731_v50 = vpack.c.b16 %v6684_v44, %v6683_v35 }
 0x46e   :  { %v6380_v47 = vpack.c.b16 %v6334_v53, %v6333_v55  ;;  %v5291_v10 = vrot.slane %v5289_v61, 4  ;;  %v9451_v57 = vrot.slane %v4459_v27, 9  ;;  %v4691_v52 = vrot.slane %v3613_v36, 5  ;;  %v14019_v23 = vpop.permute.xlu1 %7157 }
 0x46f   :  { %v5282_v20 = vor.u32 %v5281_v21, %v5278_v45  ;;  %v5297_v58 = vrot.slane %v5295_v22, 5  ;;  %v4694_v63 = vrot.slane %v3659_v25, 5  ;;  %v7878_v14 = vsel %vm7840_vm10, %v7801_v26, %v13955_v34  ;;  %v10061_v22 = vld [vmem:[#allocation2 + $0x9c] sm:$0xff] }
 0x470   :  { %6429 = vrot.lane.b32.xlu2 %v6380_v47, %s10852_s7  ;;  %6779 = vrot.lane.b32.xlu1 %v6731_v50, %s10846_s23  ;;  %v5292_v32 = vor.u32 %v5291_v10, %v5287_v54  ;;  %v4692_v3 = vsel %vm11123_vm15, %v9451_v57, %v4691_v52  ;;  %v4693_v55 = vrot.slane %v4691_v52, 4  ;;  %v4083_v53 = vshrl.u32 %v3612_v38, 16  ;;  %v14818_v26 = vld [vmem:[#allocation30_spill] sm:$0xff]  ;;  %v3241_v57 = vld [vmem:[#allocation2 + $0xf0] sm:$0xe] }
 0x471   :  { %8177 = vmatmul.bf16.gmra.mxu1 %v7878_v14  ;;  %7131 = vrot.lane.b32.xlu0 %v10128_v1, %s10851_s6  ;;  %v5283_v9 = vrot.slane %v5282_v20, 4  ;;  %v6845_v44 = vunpack.c.l.b16 %v4692_v3  ;;  %v4086_v31 = vshll.u32 %v3612_v38, 16  ;;  %v4092_v60 = vshll.u32 %v3613_v36, 16  ;;  %v14030_v38 = vpop.permute.xlu2 %6455  ;;  %v14034_v14 = vpop.permute.xlu0 %7317 }
 0x472   :  { %v5293_v43 = vrot.slane %v5292_v32, 4  ;;  %v4695_v34 = vsel %vm11123_vm15, %v4693_v55, %v4694_v63  ;;  %v4085_v28 = vrot.slane %v4083_v53, 4  ;;  %v4096_v27 = vshrl.u32 %v3613_v36, 16  ;;  %v14032_v36 = vpop.f32.mrf.mxu2  ;;  %v4829_v63 = vld [vmem:[#allocation2 + $0xfc] sm:$0xf]  ;;  %v10097_v55 = vld [vmem:[#allocation2 + $0xf0] sm:$0xff] }
 0x473   :  { %v5288_v35 = vsel %vm10971_vm9, %v5283_v9, %v5287_v54  ;;  %v6846_v45 = vunpack.c.l.b16 %v4695_v34  ;;  %v4088_v61 = vrot.slane %v4086_v31, 5  ;;  %v4094_v46 = vrot.slane %v4092_v60, 5 }
 0x474   :  { %v7575_v47 = vsel %vm282_vm0, %v14818_v26, %v13883_v42  ;;  %v5298_v21 = vsel %vm10971_vm9, %v5293_v43, %v5297_v58  ;;  %v4098_v50 = vrot.slane %v4096_v27, 4  ;;  %v4102_v10 = vshll.u32 %v3659_v25, 16  ;;  %v14819_v26 = vld [vmem:[#allocation19_spill] sm:$0xff] }
 0x475   :  { %v7195_v52 = vunpack.c.l.b16 %v5288_v35  ;;  %v7196_v54 = vunpack.c.l.b16 %v5298_v21  ;;  %v6892_v1 = vpack.c.b16 %v6846_v45, %v6845_v44  ;;  %v4089_v20 = vor.u32 %v4088_v61, %v4085_v28  ;;  %v10762_v44 = vld [vmem:[#allocation2 + $0xf4] sm:$0xf]  ;;  %v10763_v28 = vld [vmem:[#allocation2 + $0x100] sm:$0xf] }
 0x476   :  { %v14038_v42 = vsel %vm7419_vm2, %v10061_v22, %v13608_v4  ;;  %v7640_v58 = vsel %vm7580_vm3, %v7575_v47, %v13957_v37  ;;  %v4099_v32 = vor.u32 %v4098_v50, %v4094_v46  ;;  %v4104_v3 = vrot.slane %v4102_v10, 5  ;;  %v14820_v47 = vld [vmem:[#allocation29_spill] sm:$0xff] }
 0x477   :  { %v7243_v25 = vpack.c.b16 %v7196_v54, %v7195_v52  ;;  %v4090_v53 = vrot.slane %v4089_v20, 4  ;;  %v9420_v9 = vrot.slane %v3241_v57, 9  ;;  %v3482_v31 = vrot.slane %v10762_v44, 5  ;;  %v4460_v20 = vld [vmem:[#allocation2 + $0xfc] sm:$0xe] }
 0x478   :  { %6941 = vrot.lane.b32.xlu2 %v6892_v1, %s10853_s12  ;;  %v4100_v60 = vrot.slane %v4099_v32, 4  ;;  %v5300_v43 = vshrl.u32 %v4829_v63, 16  ;;  %v5303_v34 = vshll.u32 %v4829_v63, 16  ;;  %v5309_v27 = vshll.u32 %v10763_v28, 16  ;;  %v3615_v1 = vld [vmem:[#allocation2 + $0x100] sm:$0xf]  ;;  %v6774_v63 = vpop.permute.xlu1 %6773 }
 0x479   :  { %7291 = vrot.lane.b32.xlu1 %v7243_v25, %s10854_s13  ;;  %6621 = vrot.lane.b32.xlu0 %v10097_v55, %s10850_s30  ;;  %v4095_v4 = vsel %vm10971_vm9, %v4090_v53, %v4094_v46  ;;  %v3483_v37 = vsel %vm11123_vm15, %v9420_v9, %v3482_v31  ;;  %v3484_v35 = vrot.slane %v3482_v31, 4  ;;  %v5313_v45 = vshrl.u32 %v10763_v28, 16  ;;  %v10764_v55 = vld [vmem:[#allocation2 + $0x104] sm:$0x1]  ;;  %v3614_v9 = vld [vmem:[#allocation2 + $0xfc] sm:$0xf]  ;;  %v14067_v28 = vpop.permute.xlu2 %6967 }
 0x47a   :  { %v4105_v61 = vsel %vm10971_vm9, %v4100_v60, %v4104_v3  ;;  %v6685_v22 = vunpack.c.l.b16 %v4095_v4  ;;  %v7920_v21 = vsel %vm7840_vm10, %v14820_v47, %v14819_v26  ;;  %v5302_v50 = vrot.slane %v5300_v43, 4  ;;  %v3660_v43 = vld [vmem:[#allocation2 + $0x104] sm:$0x1] }
 0x47b   :  { %v6686_v10 = vunpack.c.l.b16 %v4105_v61  ;;  %v14821_v57 = vrot.slane %v13545_v49, 5  ;;  %v5305_v52 = vrot.slane %v5303_v34, 5  ;;  %v5311_v54 = vrot.slane %v5309_v27, 5 }
 0x47c   :  { %v6335_v32 = vunpack.c.l.b16 %v3483_v37  ;;  %8247 = vmatmul.bf16.gmra.mxu3 %v7920_v21  ;;  %v5315_v3 = vrot.slane %v5313_v45, 4  ;;  %v5319_v53 = vshll.u32 %v10764_v55, 16  ;;  %v14061_v44 = vsel %vm7710_vm7, %v13855_v17, %v13776_v0  ;;  %v10129_v45 = vld [vmem:[#allocation2 + $0xfc] sm:$0xff] }
 0x47d   :  { %v3486_v46 = vsel %vm11123_vm15, %v3484_v35, %v14821_v57  ;;  %v6732_v49 = vpack.c.b16 %v6686_v10, %v6685_v22  ;;  %v14065_v31 = vsel %vm7645_vm5, %v7640_v58, %v13996_v8  ;;  %v5306_v60 = vor.u32 %v5305_v52, %v5302_v50  ;;  %v14069_v35 = vpop.f32.mrf.mxu2  ;;  %v7126_v22 = vpop.permute.xlu0 %7125  ;;  %v3242_v52 = vld [vmem:[#allocation2 + $0xfc] sm:$0xe] }
 0x47e   :  { %v6336_v25 = vunpack.c.l.b16 %v3486_v46  ;;  %v5316_v27 = vor.u32 %v5315_v3, %v5311_v54  ;;  %v9452_v4 = vrot.slane %v4460_v20, 9  ;;  %v4698_v37 = vrot.slane %v3615_v1, 5 }
 0x47f   :  { %v5307_v61 = vrot.slane %v5306_v60, 4  ;;  %v5321_v26 = vrot.slane %v5319_v53, 5  ;;  %v4107_v0 = vshrl.u32 %v3614_v9, 16  ;;  %v4110_v17 = vshll.u32 %v3614_v9, 16 }
 0x480   :  { %v6381_v34 = vpack.c.b16 %v6336_v25, %v6335_v32  ;;  %v5317_v8 = vrot.slane %v5316_v27, 4  ;;  %v4700_v58 = vrot.slane %v4698_v37, 4  ;;  %v4701_v47 = vrot.slane %v3660_v43, 5 }
 0x481   :  { %v4116_v21 = vshll.u32 %v3615_v1, 16  ;;  %6781 = vrot.lane.b32.xlu1 %v6732_v49, %s10846_s23  ;;  %7133 = vrot.lane.b32.xlu0 %v10129_v45, %s10851_s6  ;;  %v7543_v50 = vsel %vm282_vm0, %v14038_v42, %v14008_v40  ;;  %v4699_v10 = vsel %vm11123_vm15, %v9452_v4, %v4698_v37  ;;  %v4109_v57 = vrot.slane %v4107_v0, 4 }
 0x482   :  { %6431 = vrot.lane.b32.xlu2 %v6381_v34, %s10852_s7  ;;  %v4112_v46 = vrot.slane %v4110_v17, 5  ;;  %v5312_v20 = vsel %vm10971_vm9, %v5307_v61, %v5311_v54  ;;  %v5322_v32 = vsel %vm10971_vm9, %v5317_v8, %v5321_v26  ;;  %v4702_v25 = vsel %vm11123_vm15, %v4700_v58, %v4701_v47  ;;  %v10765_v34 = vld [vmem:[#allocation2 + $0x100] sm:$0xf] }
 0x483   :  { %v4118_v3 = vrot.slane %v4116_v21, 5  ;;  %v7198_v55 = vunpack.c.l.b16 %v5322_v32  ;;  %v6848_v53 = vunpack.c.l.b16 %v4702_v25  ;;  %v4120_v40 = vshrl.u32 %v3615_v1, 16  ;;  %v7286_v61 = vpop.permute.xlu1 %7285  ;;  %v4831_v1 = vld [vmem:[#allocation2 + $0x108] sm:$0xf] }
 0x484   :  { %v4113_v9 = vor.u32 %v4112_v46, %v4109_v57  ;;  %v6847_v42 = vunpack.c.l.b16 %v4699_v10  ;;  %v4126_v49 = vshll.u32 %v3660_v43, 16  ;;  %v9421_v60 = vrot.slane %v3242_v52, 9  ;;  %v10098_v43 = vld [vmem:[#allocation2 + $0xfc] sm:$0xff] }
 0x485   :  { %v3489_v27 = vrot.slane %v10765_v34, 5  ;;  %v7197_v4 = vunpack.c.l.b16 %v5312_v20  ;;  %v4122_v45 = vrot.slane %v4120_v40, 4  ;;  %v7608_v54 = vsel %vm7580_vm3, %v7543_v50, %v13952_v16  ;;  %v14095_v16 = vpop.permute.xlu2 %6615  ;;  %v14101_v20 = vpop.f32.mrf.mxu2  ;;  %v4461_v34 = vld [vmem:[#allocation2 + $0x108] sm:$0xe] }
 0x486   :  { %v4114_v37 = vrot.slane %v4113_v9, 4  ;;  %v6893_v26 = vpack.c.b16 %v6848_v53, %v6847_v42  ;;  %v7673_v0 = vsel %vm7645_vm5, %v7608_v54, %v6774_v63  ;;  %v4128_v50 = vrot.slane %v4126_v49, 5  ;;  %v3617_v53 = vld [vmem:[#allocation2 + $0x10c] sm:$0xf]  ;;  %v10767_v49 = vld [vmem:[#allocation2 + $0x110] sm:$0x1] }
 0x487   :  { %v3490_v17 = vsel %vm11123_vm15, %v9421_v60, %v3489_v27  ;;  %v3491_v8 = vrot.slane %v3489_v27, 4  ;;  %v7244_v58 = vpack.c.b16 %v7198_v55, %v7197_v4  ;;  %v4123_v21 = vor.u32 %v4122_v45, %v4118_v3  ;;  %v14105_v55 = vpop.permute.xlu0 %6647  ;;  %v14823_v4 = vld [vmem:[#allocation21_spill] sm:$0xff] }
 0x488   :  { %v4119_v47 = vsel %vm10971_vm9, %v4114_v37, %v4118_v3  ;;  %v7738_v10 = vsel %vm7710_vm7, %v7673_v0, %v14000_v62  ;;  %v14822_v57 = vrot.slane %v13516_v13, 5  ;;  %v6337_v52 = vunpack.c.l.b16 %v3490_v17  ;;  %v10766_v13 = vld [vmem:[#allocation2 + $0x10c] sm:$0xf]  ;;  %v14824_v37 = vld [vmem:[#allocation31_spill] sm:$0xff]  ;;  %v3661_v0 = vld [vmem:[#allocation2 + $0x110] sm:$0x1] }
 0x489   :  { %v6687_v63 = vunpack.c.l.b16 %v4119_v47  ;;  %7293 = vrot.lane.b32.xlu1 %v7244_v58, %s10854_s13  ;;  %6623 = vrot.lane.b32.xlu0 %v10098_v43, %s10850_s30  ;;  %v4124_v32 = vrot.slane %v4123_v21, 4  ;;  %v5324_v25 = vshrl.u32 %v4831_v1, 16  ;;  %v5327_v3 = vshll.u32 %v4831_v1, 16  ;;  %v3616_v58 = vld [vmem:[#allocation2 + $0x108] sm:$0xf] }
 0x48a   :  { %6943 = vrot.lane.b32.xlu2 %v6893_v26, %s10853_s12  ;;  %v3493_v46 = vsel %vm11123_vm15, %v3491_v8, %v14822_v57  ;;  %v7803_v9 = vsel %vm7775_vm8, %v7738_v10, %v7126_v22  ;;  %v5333_v40 = vshll.u32 %v10766_v13, 16  ;;  %v5337_v42 = vshrl.u32 %v10766_v13, 16  ;;  %v10130_v13 = vld [vmem:[#allocation2 + $0x108] sm:$0xff] }
 0x48b   :  { %v6338_v62 = vunpack.c.l.b16 %v3493_v46  ;;  %v5343_v60 = vshll.u32 %v10767_v49, 16  ;;  %v4129_v27 = vsel %vm10971_vm9, %v4124_v32, %v4128_v50  ;;  %v7923_v45 = vsel %vm7840_vm10, %v14824_v37, %v14823_v4 }
 0x48c   :  { %v5326_v54 = vrot.slane %v5324_v25, 4  ;;  %v5329_v26 = vrot.slane %v5327_v3, 5  ;;  %v6688_v17 = vunpack.c.l.b16 %v4129_v27  ;;  %8252 = vmatmul.bf16.gmra.mxu3 %v7923_v45  ;;  %v5335_v22 = vrot.slane %v5333_v40, 5 }
 0x48d   :  { %v6382_v8 = vpack.c.b16 %v6338_v62, %v6337_v52  ;;  %v5339_v1 = vrot.slane %v5337_v42, 4  ;;  %v5345_v47 = vrot.slane %v5343_v60, 5  ;;  %v9453_v21 = vrot.slane %v4461_v34, 9  ;;  %v14125_v4 = vpop.permute.xlu2 %6935 }
 0x48e   :  { %v5330_v43 = vor.u32 %v5329_v26, %v5326_v54  ;;  %v4705_v10 = vrot.slane %v3617_v53, 5  ;;  %v6733_v57 = vpack.c.b16 %v6688_v17, %v6687_v63  ;;  %v4708_v50 = vrot.slane %v3661_v0, 5  ;;  %v14116_v62 = vpop.permute.xlu1 %6807  ;;  %v3243_v17 = vld [vmem:[#allocation2 + $0x108] sm:$0xe] }
 0x48f   :  { %v5340_v46 = vor.u32 %v5339_v1, %v5335_v22  ;;  %v7881_v32 = vsel %vm7840_vm10, %v7803_v9, %v7286_v61  ;;  %v4131_v52 = vshrl.u32 %v3616_v58, 16  ;;  %v4134_v60 = vshll.u32 %v3616_v58, 16 }
 0x490   :  { %v5331_v49 = vrot.slane %v5330_v43, 4  ;;  %v4706_v25 = vsel %vm11123_vm15, %v9453_v21, %v4705_v10  ;;  %v4707_v3 = vrot.slane %v4705_v10, 4  ;;  %8182 = vmatmul.bf16.gmra.mxu1 %v7881_v32  ;;  %v4140_v63 = vshll.u32 %v3617_v53, 16  ;;  %v6424_v21 = vpop.permute.xlu0 %6423  ;;  %v4833_v10 = vld [vmem:[#allocation2 + $0x114] sm:$0xf] }
 0x491   :  { %v5341_v40 = vrot.slane %v5340_v46, 4  ;;  %v6849_v42 = vunpack.c.l.b16 %v4706_v25  ;;  %6783 = vrot.lane.b32.xlu1 %v6733_v57, %s10846_s23  ;;  %7135 = vrot.lane.b32.xlu0 %v10130_v13, %s10851_s6  ;;  %v4133_v34 = vrot.slane %v4131_v52, 4  ;;  %v4144_v27 = vshrl.u32 %v3617_v53, 16  ;;  %v14825_v57 = vld [vmem:[#allocation32_spill] sm:$0xff] }
 0x492   :  { %6433 = vrot.lane.b32.xlu2 %v6382_v8, %s10852_s7  ;;  %v5336_v61 = vsel %vm10971_vm9, %v5331_v49, %v5335_v22  ;;  %v4709_v9 = vsel %vm11123_vm15, %v4707_v3, %v4708_v50  ;;  %v4136_v26 = vrot.slane %v4134_v60, 5  ;;  %v14129_v8 = vpop.f32.mrf.mxu2  ;;  %v4142_v58 = vrot.slane %v4140_v63, 5  ;;  %v10768_v52 = vld [vmem:[#allocation2 + $0x10c] sm:$0xf] }
 0x493   :  { %v5346_v37 = vsel %vm10971_vm9, %v5341_v40, %v5345_v47  ;;  %v7199_v45 = vunpack.c.l.b16 %v5336_v61  ;;  %v6850_v54 = vunpack.c.l.b16 %v4709_v9  ;;  %v4146_v43 = vrot.slane %v4144_v27, 4  ;;  %v10769_v61 = vld [vmem:[#allocation2 + $0x118] sm:$0xf] }
 0x494   :  { %v7200_v1 = vunpack.c.l.b16 %v5346_v37  ;;  %v4150_v22 = vshll.u32 %v3661_v0, 16  ;;  %v7833_v53 = vsel %vm7775_vm8, %v14061_v44, %v13895_v51  ;;  %v14137_v47 = vsel %vm282_vm0, %v14825_v57, %v14030_v38  ;;  %v10099_v51 = vld [vmem:[#allocation2 + $0x108] sm:$0xff]  ;;  %v4462_v57 = vld [vmem:[#allocation2 + $0x114] sm:$0xe] }
 0x495   :  { %v7770_v46 = vsel %vm7710_vm7, %v14065_v31, %v13918_v33  ;;  %v4137_v50 = vor.u32 %v4136_v26, %v4133_v34  ;;  %v6894_v13 = vpack.c.b16 %v6850_v54, %v6849_v42  ;;  %v4147_v49 = vor.u32 %v4146_v43, %v4142_v58 }
 0x496   :  { %v7245_v32 = vpack.c.b16 %v7200_v1, %v7199_v45  ;;  %v4152_v0 = vrot.slane %v4150_v22, 5  ;;  %v9422_v3 = vrot.slane %v3243_v17, 9  ;;  %v3496_v40 = vrot.slane %v10768_v52, 5  ;;  %v14147_v27 = vpop.permute.xlu1 %7159 }
 0x497   :  { %v4138_v25 = vrot.slane %v4137_v50, 4  ;;  %v5348_v60 = vshrl.u32 %v4833_v10, 16  ;;  %v4148_v44 = vrot.slane %v4147_v49, 4  ;;  %v5351_v63 = vshll.u32 %v4833_v10, 16  ;;  %v3619_v10 = vld [vmem:[#allocation2 + $0x118] sm:$0xf] }
 0x498   :  { %v5357_v38 = vshll.u32 %v10769_v61, 16  ;;  %v5361_v9 = vshrl.u32 %v10769_v61, 16  ;;  %v3497_v31 = vsel %vm11123_vm15, %v9422_v3, %v3496_v40  ;;  %v3498_v42 = vrot.slane %v3496_v40, 4  ;;  %v10770_v49 = vld [vmem:[#allocation2 + $0x11c] sm:$0x1] }
 0x499   :  { %v4143_v33 = vsel %vm10971_vm9, %v4138_v25, %v4142_v58  ;;  %v5350_v34 = vrot.slane %v5348_v60, 4  ;;  %7295 = vrot.lane.b32.xlu1 %v7245_v32, %s10854_s13  ;;  %6625 = vrot.lane.b32.xlu0 %v10099_v51, %s10850_s30  ;;  %v4153_v37 = vsel %vm10971_vm9, %v4148_v44, %v4152_v0  ;;  %v7926_v54 = vsel %vm7840_vm10, %v7833_v53, %v13897_v5  ;;  %v3618_v25 = vld [vmem:[#allocation2 + $0x114] sm:$0xf]  ;;  %v14163_v53 = vpop.permute.xlu2 %6457  ;;  %v3662_v40 = vld [vmem:[#allocation2 + $0x11c] sm:$0x1] }
 0x49a   :  { %6945 = vrot.lane.b32.xlu2 %v6894_v13, %s10853_s12  ;;  %v6689_v45 = vunpack.c.l.b16 %v4143_v33  ;;  %v5353_v26 = vrot.slane %v5351_v63, 5  ;;  %v6690_v17 = vunpack.c.l.b16 %v4153_v37  ;;  %v14826_v1 = vrot.slane %v13572_v15, 5  ;;  %v14167_v60 = vpop.f32.mrf.mxu2  ;;  %v14169_v63 = vpop.permute.xlu0 %7319 }
 0x49b   :  { %v5359_v43 = vrot.slane %v5357_v38, 5  ;;  %v5363_v22 = vrot.slane %v5361_v9, 4  ;;  %v6339_v50 = vunpack.c.l.b16 %v3497_v31  ;;  %v5367_v0 = vshll.u32 %v10770_v49, 16  ;;  %v10131_v31 = vld [vmem:[#allocation2 + $0x114] sm:$0xff] }
 0x49c   :  { %v3500_v58 = vsel %vm11123_vm15, %v3498_v42, %v14826_v1  ;;  %v5354_v13 = vor.u32 %v5353_v26, %v5350_v34  ;;  %v14161_v5 = vsel %vm7775_vm8, %v7770_v46, %v14019_v23  ;;  %v6734_v15 = vpack.c.b16 %v6690_v17, %v6689_v45  ;;  %8257 = vmatmul.bf16.gmra.mxu3 %v7926_v54 }
 0x49d   :  { %v6340_v32 = vunpack.c.l.b16 %v3500_v58  ;;  %v7545_v3 = vsel %vm282_vm0, %v13982_v30, %v6424_v21  ;;  %v5364_v52 = vor.u32 %v5363_v22, %v5359_v43  ;;  %v9454_v61 = vrot.slane %v4462_v57, 9 }
 0x49e   :  { %v5355_v44 = vrot.slane %v5354_v13, 4  ;;  %v4712_v38 = vrot.slane %v3619_v10, 5  ;;  %v5369_v23 = vrot.slane %v5367_v0, 5  ;;  %v4155_v46 = vshrl.u32 %v3618_v25, 16 }
 0x49f   :  { %v6383_v51 = vpack.c.b16 %v6340_v32, %v6339_v50  ;;  %v5365_v9 = vrot.slane %v5364_v52, 4  ;;  %v4158_v33 = vshll.u32 %v3618_v25, 16  ;;  %v4715_v21 = vrot.slane %v3662_v40, 5 }
 0x4a0   :  { %v5360_v42 = vsel %vm10971_vm9, %v5355_v44, %v5359_v43  ;;  %v4714_v30 = vrot.slane %v4712_v38, 4  ;;  %v4164_v34 = vshll.u32 %v3619_v10, 16  ;;  %v7642_v37 = vsel %vm7580_vm3, %v14137_v47, %v14105_v55  ;;  %v3244_v55 = vld [vmem:[#allocation2 + $0x114] sm:$0xe] }
 0x4a1   :  { %v5370_v45 = vsel %vm10971_vm9, %v5365_v9, %v5369_v23  ;;  %v4713_v54 = vsel %vm11123_vm15, %v9454_v61, %v4712_v38  ;;  %v4157_v26 = vrot.slane %v4155_v46, 4  ;;  %6785 = vrot.lane.b32.xlu1 %v6734_v15, %s10846_s23  ;;  %7137 = vrot.lane.b32.xlu0 %v10131_v31, %s10851_s6  ;;  %v7201_v17 = vunpack.c.l.b16 %v5360_v42  ;;  %v6776_v50 = vpop.permute.xlu1 %6775  ;;  %v4835_v15 = vld [vmem:[#allocation2 + $0x120] sm:$0xf]  ;;  %v10771_v23 = vld [vmem:[#allocation2 + $0x118] sm:$0xf] }
 0x4a2   :  { %6435 = vrot.lane.b32.xlu2 %v6383_v51, %s10852_s7  ;;  %v7202_v1 = vunpack.c.l.b16 %v5370_v45  ;;  %v4716_v58 = vsel %vm11123_vm15, %v4714_v30, %v4715_v21  ;;  %v4160_v43 = vrot.slane %v4158_v33, 5  ;;  %v4166_v22 = vrot.slane %v4164_v34, 5  ;;  %v10772_v31 = vld [vmem:[#allocation2 + $0x124] sm:$0xf]  ;;  %v14196_v30 = vpop.f32.mrf.mxu2  ;;  %v7128_v34 = vpop.permute.xlu0 %7127 }
 0x4a3   :  { %v6852_v47 = vunpack.c.l.b16 %v4716_v58  ;;  %v4168_v57 = vshrl.u32 %v3619_v10, 16  ;;  %v7610_v32 = vsel %vm7580_vm3, %v7545_v3, %v14095_v16  ;;  %v6851_v13 = vunpack.c.l.b16 %v4713_v54  ;;  %v14194_v3 = vpop.permute.xlu2 %6969  ;;  %v3621_v58 = vld [vmem:[#allocation2 + $0x124] sm:$0xf] }
 0x4a4   :  { %v4161_v49 = vor.u32 %v4160_v43, %v4157_v26  ;;  %v4174_v0 = vshll.u32 %v3662_v40, 16  ;;  %v7675_v25 = vsel %vm7645_vm5, %v7610_v32, %v6776_v50  ;;  %v14190_v52 = vsel %vm7645_vm5, %v7642_v37, %v14116_v62  ;;  %v10100_v62 = vld [vmem:[#allocation2 + $0x114] sm:$0xff]  ;;  %v4463_v32 = vld [vmem:[#allocation2 + $0x120] sm:$0xe] }
 0x4a5   :  { %v7246_v51 = vpack.c.b16 %v7202_v1, %v7201_v17  ;;  %v4170_v44 = vrot.slane %v4168_v57, 4  ;;  %v9423_v61 = vrot.slane %v3244_v55, 9  ;;  %v6895_v38 = vpack.c.b16 %v6852_v47, %v6851_v13 }
 0x4a6   :  { %v4162_v9 = vrot.slane %v4161_v49, 4  ;;  %v7740_v10 = vsel %vm7710_vm7, %v7675_v25, %v14125_v4  ;;  %v3503_v16 = vrot.slane %v10771_v23, 5  ;;  %v5372_v46 = vshrl.u32 %v4835_v15, 16 }
 0x4a7   :  { %v4171_v40 = vor.u32 %v4170_v44, %v4166_v22  ;;  %v5375_v33 = vshll.u32 %v4835_v15, 16  ;;  %v5381_v42 = vshll.u32 %v10772_v31, 16  ;;  %v4176_v21 = vrot.slane %v4174_v0, 5  ;;  %v10773_v0 = vld [vmem:[#allocation2 + $0x128] sm:$0x1] }
 0x4a8   :  { %v3504_v37 = vsel %vm11123_vm15, %v9423_v61, %v3503_v16  ;;  %v3505_v45 = vrot.slane %v3503_v16, 4  ;;  %v5385_v54 = vshrl.u32 %v10772_v31, 16  ;;  %v4167_v4 = vsel %vm10971_vm9, %v4162_v9, %v4166_v22  ;;  %v3620_v15 = vld [vmem:[#allocation2 + $0x120] sm:$0xf] }
 0x4a9   :  { %v4172_v26 = vrot.slane %v4171_v40, 4  ;;  %v7805_v17 = vsel %vm7775_vm8, %v7740_v10, %v7128_v34  ;;  %v5374_v1 = vrot.slane %v5372_v46, 4  ;;  %7297 = vrot.lane.b32.xlu1 %v7246_v51, %s10854_s13  ;;  %6627 = vrot.lane.b32.xlu0 %v10100_v62, %s10850_s30  ;;  %v14827_v43 = vrot.slane %v13636_v24, 5 }
 0x4aa   :  { %6947 = vrot.lane.b32.xlu2 %v6895_v38, %s10853_s12  ;;  %v5377_v47 = vrot.slane %v5375_v33, 5  ;;  %v5383_v57 = vrot.slane %v5381_v42, 5  ;;  %v5387_v50 = vrot.slane %v5385_v54, 4  ;;  %v6341_v13 = vunpack.c.l.b16 %v3504_v37  ;;  %v3663_v38 = vld [vmem:[#allocation2 + $0x128] sm:$0x1] }
 0x4ab   :  { %v3507_v55 = vsel %vm11123_vm15, %v3505_v45, %v14827_v43  ;;  %v4177_v22 = vsel %vm10971_vm9, %v4172_v26, %v4176_v21  ;;  %v5391_v25 = vshll.u32 %v10773_v0, 16  ;;  %v7929_v24 = vsel %vm7840_vm10, %v14161_v5, %v14034_v14  ;;  %v10132_v14 = vld [vmem:[#allocation2 + $0x120] sm:$0xff]  ;;  %v14220_v26 = vpop.permute.xlu2 %6617 }
 0x4ac   :  { %v6342_v49 = vunpack.c.l.b16 %v3507_v55  ;;  %v6692_v51 = vunpack.c.l.b16 %v4177_v22  ;;  %v5378_v44 = vor.u32 %v5377_v47, %v5374_v1  ;;  %v5388_v61 = vor.u32 %v5387_v50, %v5383_v57  ;;  %8262 = vmatmul.bf16.gmra.mxu3 %v7929_v24  ;;  %v7288_v31 = vpop.permute.xlu1 %7287  ;;  %v14227_v47 = vpop.f32.mrf.mxu2  ;;  %v4837_v24 = vld [vmem:[#allocation2 + $0x12c] sm:$0xf] }
 0x4ad   :  { %v6691_v9 = vunpack.c.l.b16 %v4167_v4  ;;  %v9455_v23 = vrot.slane %v4463_v32, 9  ;;  %v4719_v16 = vrot.slane %v3621_v58, 5  ;;  %v5393_v33 = vrot.slane %v5391_v25, 5 }
 0x4ae   :  { %v6384_v10 = vpack.c.b16 %v6342_v49, %v6341_v13  ;;  %v5379_v40 = vrot.slane %v5378_v44, 4  ;;  %v5389_v46 = vrot.slane %v5388_v61, 4  ;;  %v4179_v42 = vshrl.u32 %v3620_v15, 16  ;;  %v3245_v13 = vld [vmem:[#allocation2 + $0x120] sm:$0xe] }
 0x4af   :  { %v4721_v62 = vrot.slane %v4719_v16, 4  ;;  %v4722_v21 = vrot.slane %v3663_v38, 5  ;;  %v7884_v34 = vsel %vm7840_vm10, %v7805_v17, %v7288_v31  ;;  %v4182_v37 = vshll.u32 %v3620_v15, 16  ;;  %v10774_v15 = vld [vmem:[#allocation2 + $0x124] sm:$0xf] }
 0x4b0   :  { %v6735_v45 = vpack.c.b16 %v6692_v51, %v6691_v9  ;;  %v5384_v5 = vsel %vm10971_vm9, %v5379_v40, %v5383_v57  ;;  %v5394_v54 = vsel %vm10971_vm9, %v5389_v46, %v5393_v33  ;;  %8187 = vmatmul.bf16.gmra.mxu1 %v7884_v34  ;;  %v4181_v4 = vrot.slane %v4179_v42, 4  ;;  %v6650_v33 = vpop.permute.xlu0 %6649 }
 0x4b1   :  { %v7204_v1 = vunpack.c.l.b16 %v5394_v54  ;;  %v4720_v43 = vsel %vm11123_vm15, %v9455_v23, %v4719_v16  ;;  %v4723_v17 = vsel %vm11123_vm15, %v4721_v62, %v4722_v21  ;;  %v4184_v55 = vrot.slane %v4182_v37, 5  ;;  %7139 = vrot.lane.b32.xlu0 %v10132_v14, %s10851_s6  ;;  %v10775_v62 = vld [vmem:[#allocation2 + $0x130] sm:$0xf] }
 0x4b2   :  { %6437 = vrot.lane.b32.xlu2 %v6384_v10, %s10852_s7  ;;  %v7579_v57 = vsel %vm282_vm0, %v13422_v59, %v14163_v53  ;;  %6787 = vrot.lane.b32.xlu1 %v6735_v45, %s10846_s23  ;;  %v6854_v50 = vunpack.c.l.b16 %v4723_v17  ;;  %v4188_v32 = vshll.u32 %v3621_v58, 16  ;;  %v4192_v22 = vshrl.u32 %v3621_v58, 16  ;;  %v10776_v17 = vld [vmem:[#allocation2 + $0x134] sm:$0x1] }
 0x4b3   :  { %v7203_v49 = vunpack.c.l.b16 %v5384_v5  ;;  %v4185_v0 = vor.u32 %v4184_v55, %v4181_v4  ;;  %v4198_v25 = vshll.u32 %v3663_v38, 16  ;;  %v3510_v51 = vrot.slane %v10774_v15, 5 }
 0x4b4   :  { %v7772_v44 = vsel %vm7710_vm7, %v14190_v52, %v14067_v28  ;;  %v6853_v61 = vunpack.c.l.b16 %v4720_v43  ;;  %v4190_v59 = vrot.slane %v4188_v32, 5  ;;  %v4194_v53 = vrot.slane %v4192_v22, 4  ;;  %v10101_v28 = vld [vmem:[#allocation2 + $0x120] sm:$0xff]  ;;  %v14253_v32 = vpop.permute.xlu2 %6937  ;;  %v8402_v15 = vpop.f32.mrf.mxu2 }
 0x4b5   :  { %v7837_v9 = vsel %vm7775_vm8, %v7772_v44, %v14147_v27  ;;  %v7247_v10 = vpack.c.b16 %v7204_v1, %v7203_v49  ;;  %v9424_v23 = vrot.slane %v3245_v13, 9  ;;  %v3512_v58 = vrot.slane %v3510_v51, 4  ;;  %v3623_v1 = vld [vmem:[#allocation2 + $0x130] sm:$0xf]  ;;  %v4464_v44 = vld [vmem:[#allocation2 + $0x12c] sm:$0xe] }
 0x4b6   :  { %v6896_v16 = vpack.c.b16 %v6854_v50, %v6853_v61  ;;  %v4195_v40 = vor.u32 %v4194_v53, %v4190_v59  ;;  %v5396_v46 = vshrl.u32 %v4837_v24, 16  ;;  %v5399_v38 = vshll.u32 %v4837_v24, 16 }
 0x4b7   :  { %v4186_v31 = vrot.slane %v4185_v0, 4  ;;  %v4200_v42 = vrot.slane %v4198_v25, 5  ;;  %v5405_v21 = vshll.u32 %v10775_v62, 16  ;;  %v5409_v34 = vshrl.u32 %v10775_v62, 16  ;;  %v14257_v25 = vld [vmem:[#allocation2 + $0x134] sm:$0x1] }
 0x4b8   :  { %v4196_v52 = vrot.slane %v4195_v40, 4  ;;  %v3511_v37 = vsel %vm11123_vm15, %v9424_v23, %v3510_v51  ;;  %v3514_v27 = vsel %vm11123_vm15, %v3512_v58, %v3513_v19  ;;  %v5398_v45 = vrot.slane %v5396_v46, 4  ;;  %v6810_v19 = vpop.permute.xlu1 %6809  ;;  %v8233_v50 = vpop.f32.mrf.mxu3 }
 0x4b9   :  { %v4191_v14 = vsel %vm10971_vm9, %v4186_v31, %v4190_v59  ;;  %v5401_v5 = vrot.slane %v5399_v38, 5  ;;  %v5407_v54 = vrot.slane %v5405_v21, 5  ;;  %v5411_v4 = vrot.slane %v5409_v34, 4  ;;  %6629 = vrot.lane.b32.xlu0 %v10101_v28, %s10850_s30  ;;  %v3622_v59 = vld [vmem:[#allocation2 + $0x12c] sm:$0xf] }
 0x4ba   :  { %6949 = vrot.lane.b32.xlu2 %v6896_v16, %s10853_s12  ;;  %7299 = vrot.lane.b32.xlu1 %v7247_v10, %s10854_s13  ;;  %v7644_v43 = vsel %vm7580_vm3, %v7579_v57, %v6650_v33  ;;  %v4201_v6 = vsel %vm10971_vm9, %v4196_v52, %v4200_v42  ;;  %v5415_v55 = vshll.u32 %v10776_v17, 16  ;;  %v6344_v22 = vunpack.c.l.b16 %v3514_v27  ;;  %v10133_v21 = vld [vmem:[#allocation2 + $0x12c] sm:$0xff] }
 0x4bb   :  { %v7932_v13 = vsel %vm7840_vm10, %v7837_v9, %v14169_v63  ;;  %v5402_v49 = vor.u32 %v5401_v5, %v5398_v45  ;;  %v5412_v0 = vor.u32 %v5411_v4, %v5407_v54  ;;  %v6693_v51 = vunpack.c.l.b16 %v4191_v14  ;;  %v14264_v9 = vld [vmem:[%s14726_s4] ss:$0 sm:$0xff]  ;;  %v14278_v4 = vpop.permute.xlu0 %6425 }
 0x4bc   :  { %v6694_v57 = vunpack.c.l.b16 %v4201_v6  ;;  %v6343_v24 = vunpack.c.l.b16 %v3511_v37  ;;  %v4726_v61 = vrot.slane %v3623_v1, 5  ;;  %v7709_v53 = vsel %vm7645_vm5, %v7644_v43, %v6810_v19  ;;  %8267 = vmatmul.bf16.gmra.mxu3 %v7932_v13 }
 0x4bd   :  { %v5403_v10 = vrot.slane %v5402_v49, 4  ;;  %v5413_v23 = vrot.slane %v5412_v0, 4  ;;  %v5417_v58 = vrot.slane %v5415_v55, 5  ;;  %v4729_v63 = vrot.slane %v14257_v25, 5  ;;  %v4839_v49 = vld [vmem:[#allocation2 + $0x138] sm:$0xf] }
 0x4be   :  { %v4728_v16 = vrot.slane %v4726_v61, 4  ;;  %v8234_v40 = vadd.f32 %v14264_v9, %v8233_v50  ;;  %v4203_v46 = vshrl.u32 %v3622_v59, 16  ;;  %v6385_v38 = vpack.c.b16 %v6344_v22, %v6343_v24 }
 0x4bf   :  { %v5418_v33 = vsel %vm10971_vm9, %v5413_v23, %v5417_v58  ;;  %v9456_v31 = vrot.slane %v4464_v44, 9  ;;  %v4206_v42 = vshll.u32 %v3622_v59, 16  ;;  %v6736_v62 = vpack.c.b16 %v6694_v57, %v6693_v51  ;;  %v8173_v5 = vpop.f32.mrf.mxu1  ;;  %v14828_v23 = vld [vmem:[#allocation35_spill] sm:$0xff] }
 0x4c0   :  { %v5408_v34 = vsel %vm10971_vm9, %v5403_v10, %v5407_v54  ;;  %v4730_v28 = vsel %vm11123_vm15, %v4728_v16, %v4729_v63  ;;  %v14273_v52 = vadd.f32 %v8402_v15, %v8234_v40  ;;  %v7206_v37 = vunpack.c.l.b16 %v5418_v33  ;;  %v8235_v17 = vpop.f32.mrf.mxu3  ;;  %v7162_v0 = vpop.permute.xlu1 %7161  ;;  %v10102_v33 = vld [vmem:[#allocation2 + $0x12c] sm:$0xff] }
 0x4c1   :  { %v4205_v27 = vrot.slane %v4203_v46, 4  ;;  %v4208_v45 = vrot.slane %v4206_v42, 5  ;;  %v4212_v14 = vshll.u32 %v3623_v1, 16  ;;  %7141 = vrot.lane.b32.xlu0 %v10133_v21, %s10851_s6  ;;  %v7774_v54 = vsel %vm7710_vm7, %v7709_v53, %v14194_v3  ;;  %v14287_v3 = vpop.permute.xlu2 %6427  ;;  %v8404_v53 = vpop.f32.mrf.mxu2  ;;  %v10778_v46 = vld [vmem:[#allocation2 + $0x13c] sm:$0xf] }
 0x4c2   :  { %6439 = vrot.lane.b32.xlu2 %v6385_v38, %s10852_s7  ;;  %6789 = vrot.lane.b32.xlu1 %v6736_v62, %s10846_s23  ;;  %v4727_v43 = vsel %vm11123_vm15, %v9456_v31, %v4726_v61  ;;  %v8493_v6 = vmin.f32 %v14273_v52, 20.0  ;;  %v4216_v19 = vshrl.u32 %v3623_v1, 16  ;;  %v7205_v55 = vunpack.c.l.b16 %v5408_v34 }
 0x4c3   :  { %v6856_v50 = vunpack.c.l.b16 %v4730_v28  ;;  %v4209_v22 = vor.u32 %v4208_v45, %v4205_v27  ;;  %v4214_v13 = vrot.slane %v4212_v14, 5  ;;  %v4222_v57 = vshll.u32 %v14257_v25, 16  ;;  %v10063_v14 = vld [vmem:[#allocation2 + $0xb4] sm:$0xff] }
 0x4c4   :  { %v8603_v15 = vmul.f32 1.442695, %v8493_v6  ;;  %v4218_v51 = vrot.slane %v4216_v19, 4  ;;  %v8174_v24 = vadd.f32 %v14264_v9, %v8173_v5  ;;  %v7248_v44 = vpack.c.b16 %v7206_v37, %v7205_v55 }
 0x4c5   :  { %v6855_v61 = vunpack.c.l.b16 %v4727_v43  ;;  %v8236_v59 = vadd.f32 %v14264_v9, %v8235_v17  ;;  %v5420_v1 = vshrl.u32 %v4839_v49, 16  ;;  %v5423_v16 = vshll.u32 %v4839_v49, 16  ;;  %v5684_v49 = vld [vmem:[#allocation2 + $0x15c] sm:$0xe] }
 0x4c6   :  { %10523 = vpow2.f32 %v8603_v15  ;;  %v4219_v10 = vor.u32 %v4218_v51, %v4214_v13  ;;  %v14291_v58 = vadd.f32 %v14828_v23, %v8174_v24  ;;  %v7839_v63 = vsel %vm7775_vm8, %v7774_v54, %v7162_v0  ;;  %v14829_v15 = vld [vmem:[#allocation27_spill] sm:$0xff] }
 0x4c7   :  { %v6897_v40 = vpack.c.b16 %v6856_v50, %v6855_v61  ;;  %v14294_v25 = vadd.f32 %v8404_v53, %v8236_v59  ;;  %v5429_v38 = vshll.u32 %v10778_v46, 16  ;;  %v4210_v31 = vrot.slane %v4209_v22, 4  ;;  %v8175_v45 = vpop.f32.mrf.mxu1  ;;  %v10779_v50 = vld [vmem:[#allocation2 + $0x140] sm:$0x1] }
 0x4c8   :  { %v4220_v42 = vrot.slane %v4219_v10, 4  ;;  %v4224_v62 = vrot.slane %v4222_v57, 5  ;;  %v8469_v21 = vmin.f32 %v14291_v58, 20.0  ;;  %v5422_v28 = vrot.slane %v5420_v1, 4 }
 0x4c9   :  { %v8494_v34 = vmin.f32 %v14294_v25, 20.0  ;;  %v5425_v37 = vrot.slane %v5423_v16, 5  ;;  %v5433_v27 = vshrl.u32 %v10778_v46, 16  ;;  %6631 = vrot.lane.b32.xlu0 %v10102_v33, %s10850_s30  ;;  %v5431_v43 = vrot.slane %v5429_v38, 5  ;;  %v14316_v33 = vpop.permute.xlu2 %6939 }
 0x4ca   :  { %6951 = vrot.lane.b32.xlu2 %v6897_v40, %s10853_s12  ;;  %7301 = vrot.lane.b32.xlu1 %v7248_v44, %s10854_s13  ;;  %v4225_v5 = vsel %vm10971_vm9, %v4220_v42, %v4224_v62  ;;  %v8555_v54 = vmul.f32 1.442695, %v8469_v21  ;;  %v8176_v6 = vadd.f32 %v14264_v9, %v8175_v45  ;;  %v4215_v19 = vsel %vm10971_vm9, %v4210_v31, %v4214_v13  ;;  %v7322_v57 = vpop.permute.xlu0 %7321  ;;  %v14830_v44 = vld [vmem:[#allocation20_spill] sm:$0xff]  ;;  %v14831_v40 = vld [vmem:[#allocation10_spill] sm:$0xff] }
 0x4cb   :  { %v8605_v17 = vmul.f32 1.442695, %v8494_v34  ;;  %v5435_v55 = vrot.slane %v5433_v27, 4  ;;  %v5439_v22 = vshll.u32 %v10779_v50, 16  ;;  %v7467_v51 = vsel %vm7419_vm2, %v10063_v14, %v14829_v15  ;;  %v10134_v21 = vld [vmem:[#allocation2 + $0x138] sm:$0xff] }
 0x4cc   :  { %v10524_v0 = vpop.eup %10523  ;;  %v6696_v24 = vunpack.c.l.b16 %v4225_v5  ;;  %10525 = vpow2.f32 %v8555_v54  ;;  %v14309_v61 = vadd.f32 %v14830_v44, %v8176_v6  ;;  %v7935_v1 = vsel %vm7840_vm10, %v7839_v63, %v7322_v57  ;;  %v6778_v14 = vpop.permute.xlu1 %6777 }
 0x4cd   :  { %v8685_v59 = vadd.f32 1.0, %v10524_v0  ;;  %10527 = vpow2.f32 %v8605_v17  ;;  %v5426_v13 = vor.u32 %v5425_v37, %v5422_v28  ;;  %v6695_v53 = vunpack.c.l.b16 %v4215_v19  ;;  %8272 = vmatmul.bf16.gmra.mxu3 %v7935_v1  ;;  %v14832_v28 = vld [vmem:[#allocation9_spill] sm:$0xff] }
 0x4ce   :  { %v5436_v10 = vor.u32 %v5435_v55, %v5431_v43  ;;  %v8470_v23 = vmin.f32 %v14309_v61, 20.0  ;;  %v9491_v16 = vrot.slane %v5684_v49, 9  ;;  %v7374_v46 = vunpack.c.l.b16 %v14831_v40 }
 0x4cf   :  { %v7547_v38 = vsel %vm282_vm0, %v7467_v51, %v14278_v4  ;;  %v8749_v31 = vmul.f32 %v8685_v59, %v8685_v59  ;;  %v5441_v42 = vrot.slane %v5439_v22, 5  ;;  %v6737_v62 = vpack.c.b16 %v6696_v24, %v6695_v53 }
 0x4d0   :  { %v5437_v34 = vrot.slane %v5436_v10, 4  ;;  %v8557_v63 = vmul.f32 1.442695, %v8470_v23  ;;  %v14833_v37 = vrot.slane %v14832_v28, 5  ;;  %v5427_v5 = vrot.slane %v5426_v13, 4 }
 0x4d1   :  { %v8941_v45 = vadd.f32 1.0, %v8749_v31  ;;  %7143 = vrot.lane.b32.xlu0 %v10134_v21, %s10851_s6  ;;  %v7612_v17 = vsel %vm7580_vm3, %v7547_v38, %v14220_v26  ;;  %v9996_v22 = vadd.f32 -1.0, %v8749_v31  ;;  %v14334_v23 = vpop.permute.xlu2 %6429  ;;  %v8407_v21 = vpop.f32.mrf.mxu2  ;;  %v10780_v28 = vld [vmem:[#allocation2 + $0x16c] sm:$0xf] }
 0x4d2   :  { %v5965_v27 = vsel %vm11123_vm15, %v9491_v16, %v14833_v37  ;;  %v10526_v6 = vpop.eup %10525  ;;  %6791 = vrot.lane.b32.xlu1 %v6737_v62, %s10846_s23  ;;  %v5442_v4 = vsel %vm10971_vm9, %v5437_v34, %v5441_v42  ;;  %10529 = vpow2.f32 %v8557_v63  ;;  %v5432_v50 = vsel %vm10971_vm9, %v5427_v5, %v5431_v43  ;;  %v7130_v49 = vpop.permute.xlu0 %7129 }
 0x4d3   :  { %v7373_v54 = vunpack.c.l.b16 %v5965_v27  ;;  %v10528_v19 = vpop.eup %10527  ;;  %10531 = vrcp.f32 %v8941_v45  ;;  %v8661_v55 = vadd.f32 1.0, %v10526_v6  ;;  %v7208_v15 = vunpack.c.l.b16 %v5442_v4 }
 0x4d4   :  { %v8686_v0 = vadd.f32 1.0, %v10528_v19  ;;  %v7677_v57 = vsel %vm7645_vm5, %v7612_v17, %v6778_v14  ;;  %v7207_v59 = vunpack.c.l.b16 %v5432_v50  ;;  %v8877_v53 = vmul.f32 %v9996_v22, %v14273_v52  ;;  %v5685_v14 = vld [vmem:[#allocation2 + $0x168] sm:$0xe]  ;;  %v10781_v50 = vld [vmem:[#allocation2 + $0x170] sm:$0x1] }
 0x4d5   :  { %v7412_v51 = vpack.c.b16 %v7374_v46, %v7373_v54  ;;  %v8725_v24 = vmul.f32 %v8661_v55, %v8661_v55  ;;  %v7742_v26 = vsel %vm7710_vm7, %v7677_v57, %v14253_v32  ;;  %v5971_v37 = vrot.slane %v10780_v28, 5  ;;  %v10064_v54 = vld [vmem:[#allocation2 + $0xd8] sm:$0xff] }
 0x4d6   :  { %v8750_v44 = vmul.f32 %v8686_v0, %v8686_v0  ;;  %v7249_v2 = vpack.c.b16 %v7208_v15, %v7207_v59  ;;  %v7807_v38 = vsel %vm7775_vm8, %v7742_v26, %v7130_v49  ;;  %v5974_v22 = vrot.slane %v10781_v50, 5  ;;  %v10782_v50 = vld [vmem:[#allocation2 + $0x17c] sm:$0x1] }
 0x4d7   :  { %v8917_v1 = vadd.f32 1.0, %v8725_v24  ;;  %v9972_v46 = vadd.f32 -1.0, %v8725_v24  ;;  %v9492_v0 = vrot.slane %v5685_v14, 9 }
 0x4d8   :  { %v10530_v13 = vpop.eup %10529  ;;  %v8942_v10 = vadd.f32 1.0, %v8750_v44  ;;  %v9997_v31 = vadd.f32 -1.0, %v8750_v44 }
 0x4d9   :  { %v10532_v43 = vpop.eup %10531  ;;  %10533 = vrcp.f32 %v8917_v1  ;;  %v8662_v16 = vadd.f32 1.0, %v10530_v13  ;;  %v8853_v27 = vmul.f32 %v9972_v46, %v14291_v58  ;;  %v5973_v58 = vrot.slane %v5971_v37, 4  ;;  %v14350_v24 = vpop.permute.xlu2 %6941 }
 0x4da   :  { %v9069_v40 = vmul.f32 %v10532_v43, %v8877_v53  ;;  %10535 = vrcp.f32 %v8942_v10  ;;  %7303 = vrot.lane.b32.xlu1 %v7249_v2, %s10854_s13  ;;  %v7290_v42 = vpop.permute.xlu1 %7289  ;;  %v6620_v32 = vpop.permute.xlu0 %6619  ;;  %v8878_v6 = vmul.f32 %v9997_v31, %v14294_v25  ;;  %v5972_v2 = vsel %vm11123_vm15, %v9492_v0, %v5971_v37  ;;  %v10783_v0 = vld [vmem:[#allocation2 + $0x178] sm:$0xf]  ;;  %s9157_s13 = sshll.u32 %s14727_s5, 4  ;;  %s9158_s13 = int_to_ptr.hbm [resolvable:$true] %s9157_s13 }
 0x4db   :  { %v8726_v52 = vmul.f32 %v8662_v16, %v8662_v16  ;;  %v7887_v62 = vsel %vm7840_vm10, %v7807_v38, %v7290_v42  ;;  %v5975_v43 = vsel %vm11123_vm15, %v5973_v58, %v5974_v22  ;;  %v8409_v46 = vpop.f32.mrf.mxu2  ;;  %v7375_v38 = vunpack.c.l.b16 %v5972_v2 }
 0x4dc   :  { %9133 = vst.msk [vmem:[#allocation6 + $0x170] sm:$0xff] %vm282_vm0, %v9069_v40  ;;  %8192 = vmatmul.bf16.gmra.mxu1 %v7887_v62  ;;  %v8238_v63 = vpop.f32.mrf.mxu3  ;;  %v7376_v31 = vunpack.c.l.b16 %v5975_v43  ;;  %v5981_v22 = vrot.slane %v10782_v50, 5  ;;  %v5978_v58 = vrot.slane %v10783_v0, 5 }
 0x4dd   :  { %v8918_v34 = vadd.f32 1.0, %v8726_v52  ;;  %9943 = vmatmul.msk.bf16.vlgmr.msra.gmra.mxu3 %vm7419_vm2, %v7412_v51  ;;  %v8239_v45 = vadd.f32 %v14264_v9, %v8238_v63  ;;  %v9973_v17 = vadd.f32 -1.0, %v8726_v52  ;;  %v14834_v51 = vld [vmem:[#allocation11_spill] sm:$0xff] }
 0x4de   :  { %v7470_v57 = vsel %vm7419_vm2, %v10064_v54, %v14834_v51  ;;  %v7413_v28 = vpack.c.b16 %v7376_v31, %v7375_v38 }
 0x4df   :  { %v10534_v5 = vpop.eup %10533  ;;  %10537 = vrcp.f32 %v8918_v34  ;;  %v14344_v55 = vadd.f32 %v8407_v21, %v8239_v45  ;;  %v7549_v44 = vsel %vm282_vm0, %v7470_v57, %v14287_v3  ;;  %v8854_v59 = vmul.f32 %v9973_v17, %v14309_v61 }
 0x4e0   :  { %v10536_v4 = vpop.eup %10535  ;;  %v9045_v19 = vmul.f32 %v10534_v5, %v8853_v27  ;;  %v7614_v26 = vsel %vm7580_vm3, %v7549_v44, %v6620_v32 }
 0x4e1   :  { %v9070_v49 = vmul.f32 %v10536_v4, %v8878_v6  ;;  %v8495_v15 = vmin.f32 %v14344_v55, 20.0  ;;  %v14370_v37 = vpop.permute.xlu2 %6431  ;;  %v10065_v6 = vld [vmem:[#allocation2 + $0xe4] sm:$0xff] }
 0x4e2   :  { %9109 = vst.msk [vmem:[#allocation6 + $0xb0] sm:$0xff] %vm282_vm0, %v9045_v19  ;;  %v6780_v25 = vpop.permute.xlu1 %6779  ;;  %v14835_v19 = vld [vmem:[#allocation22_spill] sm:$0xff] }
 0x4e3   :  { %9134 = vst.msk [vmem:[#allocation6 + $0x178] sm:$0xff] %vm282_vm0, %v9070_v49  ;;  %v7132_v1 = vpop.permute.xlu0 %7131  ;;  %v8607_v13 = vmul.f32 1.442695, %v8495_v15  ;;  %v7679_v40 = vsel %vm7645_vm5, %v7614_v26, %v6780_v25  ;;  %v5686_v49 = vld [vmem:[#allocation2 + $0x174] sm:$0xe]  ;;  %v14836_v15 = vld [vmem:[#allocation23_spill] sm:$0xff] }
 0x4e4   :  { %v8240_v10 = vpop.f32.mrf.mxu3  ;;  %v7744_v42 = vsel %vm7710_vm7, %v7679_v40, %v14316_v33  ;;  %v7473_v51 = vsel %vm7419_vm2, %v10065_v6, %v14836_v15  ;;  %v9493_v25 = vrot.slane %v5686_v49, 9  ;;  %v5980_v26 = vrot.slane %v5978_v58, 4 }
 0x4e5   :  { %v10538_v53 = vpop.eup %10537  ;;  %10539 = vpow2.f32 %v8607_v13  ;;  %v8241_v3 = vadd.f32 %v14264_v9, %v8240_v10  ;;  %v7809_v62 = vsel %vm7775_vm8, %v7744_v42, %v7132_v1 }
 0x4e6   :  { %v9046_v16 = vmul.f32 %v10538_v53, %v8854_v59  ;;  %v7551_v59 = vsel %vm282_vm0, %v7473_v51, %v14334_v23 }
 0x4e7   :  { %v14364_v61 = vadd.f32 %v8409_v46, %v8241_v3  ;;  %v5982_v46 = vsel %vm11123_vm15, %v5980_v26, %v5981_v22 }
 0x4e8   :  { %9110 = vst.msk [vmem:[#allocation6 + $0xb8] sm:$0xff] %vm282_vm0, %v9046_v16  ;;  %v5979_v16 = vsel %vm11123_vm15, %v9493_v25, %v5978_v58  ;;  %v5687_v58 = vld [vmem:[#allocation2 + $0x180] sm:$0xe] }
 0x4e9   :  { %v8496_v52 = vmin.f32 %v14364_v61, 20.0  ;;  %v6944_v38 = vpop.permute.xlu2 %6943 }
 0x4eb   :  { %v10540_v32 = vpop.eup %10539  ;;  %v7292_v21 = vpop.permute.xlu1 %7291  ;;  %v8609_v63 = vmul.f32 1.442695, %v8496_v52 }
 0x4ec   :  { %v6622_v34 = vpop.permute.xlu0 %6621  ;;  %v8687_v27 = vadd.f32 1.0, %v10540_v32  ;;  %v7890_v45 = vsel %vm7840_vm10, %v7809_v62, %v7292_v21  ;;  %v7377_v32 = vunpack.c.l.b16 %v5979_v16  ;;  %v7378_v62 = vunpack.c.l.b16 %v5982_v46 }
 0x4ed   :  { %8197 = vmatmul.bf16.gmra.mxu1 %v7890_v45  ;;  %10541 = vpow2.f32 %v8609_v63  ;;  %9944 = vmatmul.msk.bf16.gmra.mxu3 %vm7419_vm2, %v7413_v28  ;;  %v7616_v10 = vsel %vm7580_vm3, %v7551_v59, %v6622_v34  ;;  %v14837_v28 = vld [vmem:[#allocation36_spill] sm:$0xff] }
 0x4ee   :  { %v8178_v14 = vpop.f32.mrf.mxu1  ;;  %v8751_v33 = vmul.f32 %v8687_v27, %v8687_v27  ;;  %v10785_v59 = vld [vmem:[#allocation2 + $0x188] sm:$0x1] }
 0x4ef   :  { %v8179_v5 = vadd.f32 %v14264_v9, %v8178_v14  ;;  %v14375_v54 = vpop.f32.mrf.mxu3 }
 0x4f0   :  { %v8943_v4 = vadd.f32 1.0, %v8751_v33  ;;  %v9998_v1 = vadd.f32 -1.0, %v8751_v33 }
 0x4f1   :  { %v14378_v17 = vadd.f32 %v14835_v19, %v8179_v5 }
 0x4f2   :  { %10543 = vrcp.f32 %v8943_v4  ;;  %v8879_v42 = vmul.f32 %v9998_v1, %v14344_v55  ;;  %v7414_v4 = vpack.c.b16 %v7378_v62, %v7377_v32  ;;  %v5988_v1 = vrot.slane %v10785_v59, 5 }
 0x4f3   :  { %v8471_v57 = vmin.f32 %v14378_v17, 20.0  ;;  %v10542_v44 = vpop.eup %10541  ;;  %v6782_v13 = vpop.permute.xlu1 %6781 }
 0x4f4   :  { %v7134_v53 = vpop.permute.xlu0 %7133  ;;  %v8688_v2 = vadd.f32 1.0, %v10542_v44  ;;  %v7681_v40 = vsel %vm7645_vm5, %v7616_v10, %v6782_v13  ;;  %v10066_v44 = vld [vmem:[#allocation2 + $0xf0] sm:$0xff]  ;;  %v6434_v13 = vpop.permute.xlu2 %6433 }
 0x4f5   :  { %v8559_v43 = vmul.f32 1.442695, %v8471_v57  ;;  %v7746_v63 = vsel %vm7710_vm7, %v7681_v40, %v14350_v24  ;;  %v10784_v24 = vld [vmem:[#allocation2 + $0x184] sm:$0xf] }
 0x4f6   :  { %v8180_v3 = vpop.f32.mrf.mxu1  ;;  %v8752_v31 = vmul.f32 %v8688_v2, %v8688_v2  ;;  %v7811_v55 = vsel %vm7775_vm8, %v7746_v63, %v7134_v53  ;;  %v5985_v49 = vrot.slane %v10784_v24, 5  ;;  %v9494_v53 = vrot.slane %v5687_v58, 9 }
 0x4f7   :  { %10545 = vpow2.f32 %v8559_v43  ;;  %v8181_v23 = vadd.f32 %v14264_v9, %v8180_v3  ;;  %v14393_v52 = vpop.f32.mrf.mxu3  ;;  %v14838_v43 = vld [vmem:[#allocation38_spill] sm:$0xff] }
 0x4f8   :  { %v10544_v21 = vpop.eup %10543  ;;  %v8944_v34 = vadd.f32 1.0, %v8752_v31  ;;  %v9999_v33 = vadd.f32 -1.0, %v8752_v31  ;;  %v5987_v26 = vrot.slane %v5985_v49, 4  ;;  %v7476_v16 = vsel %vm7419_vm2, %v10066_v44, %v14838_v43 }
 0x4f9   :  { %v14398_v27 = vadd.f32 %v14837_v28, %v8181_v23  ;;  %v9071_v45 = vmul.f32 %v10544_v21, %v8879_v42  ;;  %v7553_v40 = vsel %vm282_vm0, %v7476_v16, %v14370_v37  ;;  %v5986_v42 = vsel %vm11123_vm15, %v9494_v53, %v5985_v49 }
 0x4fa   :  { %10547 = vrcp.f32 %v8944_v34  ;;  %v8880_v15 = vmul.f32 %v9999_v33, %v14364_v61  ;;  %v5989_v32 = vsel %vm11123_vm15, %v5987_v26, %v5988_v1  ;;  %v7379_v63 = vunpack.c.l.b16 %v5986_v42  ;;  %v14840_v1 = vld [vmem:[#allocation40_spill] sm:$0xff] }
 0x4fb   :  { %v8472_v14 = vmin.f32 %v14398_v27, 20.0  ;;  %9135 = vst.msk [vmem:[#allocation6 + $0x180] sm:$0xff] %vm282_vm0, %v9071_v45  ;;  %v7294_v5 = vpop.permute.xlu1 %7293  ;;  %v7380_v28 = vunpack.c.l.b16 %v5989_v32 }
 0x4fc   :  { %v6624_v6 = vpop.permute.xlu0 %6623  ;;  %v7893_v50 = vsel %vm7840_vm10, %v7811_v55, %v7294_v5  ;;  %v6946_v5 = vpop.permute.xlu2 %6945 }
 0x4fd   :  { %v10546_v19 = vpop.eup %10545  ;;  %v8561_v22 = vmul.f32 1.442695, %v8472_v14  ;;  %8202 = vmatmul.bf16.gmra.mxu1 %v7893_v50  ;;  %9945 = vmatmul.msk.bf16.gmra.mxu3 %vm7419_vm2, %v7414_v4  ;;  %v7618_v23 = vsel %vm7580_vm3, %v7553_v40, %v6624_v6  ;;  %v5688_v40 = vld [vmem:[#allocation2 + $0x18c] sm:$0xe] }
 0x4fe   :  { %v8663_v0 = vadd.f32 1.0, %v10546_v19  ;;  %v9495_v42 = vrot.slane %v5688_v40, 9  ;;  %v14842_v40 = vld [vmem:[#allocation24_spill] sm:$0xff] }
 0x4ff   :  { %10549 = vpow2.f32 %v8561_v22  ;;  %v14406_v57 = vpop.f32.mrf.mxu3  ;;  %v7415_v22 = vpack.c.b16 %v7380_v28, %v7379_v63  ;;  %v14841_v63 = vld [vmem:[#allocation37_spill] sm:$0xff] }
 0x500   :  { %v8727_v51 = vmul.f32 %v8663_v0, %v8663_v0  ;;  %v10548_v25 = vpop.eup %10547 }
 0x501   :  { %v9072_v10 = vmul.f32 %v10548_v25, %v8880_v15 }
 0x502   :  { %v8919_v2 = vadd.f32 1.0, %v8727_v51  ;;  %v9974_v31 = vadd.f32 -1.0, %v8727_v51  ;;  %v10067_v51 = vld [vmem:[#allocation2 + $0xfc] sm:$0xff] }
 0x503   :  { %9136 = vst.msk [vmem:[#allocation6 + $0x188] sm:$0xff] %vm282_vm0, %v9072_v10  ;;  %v6784_v61 = vpop.permute.xlu1 %6783  ;;  %v7479_v53 = vsel %vm7419_vm2, %v10067_v51, %v14840_v1  ;;  %v10788_v51 = vld [vmem:[#allocation2 + $0x19c] sm:$0xf] }
 0x504   :  { %10551 = vrcp.f32 %v8919_v2  ;;  %v7136_v3 = vpop.permute.xlu0 %7135  ;;  %v7683_v21 = vsel %vm7645_vm5, %v7618_v23, %v6784_v61  ;;  %v8855_v45 = vmul.f32 %v9974_v31, %v14378_v17  ;;  %v7555_v10 = vsel %vm282_vm0, %v7479_v53, %v6434_v13  ;;  %v10786_v61 = vld [vmem:[#allocation2 + $0x190] sm:$0xf]  ;;  %v6436_v32 = vpop.permute.xlu2 %6435  ;;  %v10068_v53 = vld [vmem:[#allocation2 + $0x108] sm:$0xff] }
 0x505   :  { %v10550_v46 = vpop.eup %10549  ;;  %v7748_v14 = vsel %vm7710_vm7, %v7683_v21, %v6944_v38  ;;  %v14839_v38 = vld [vmem:[#allocation25_spill] sm:$0xff] }
 0x506   :  { %v8664_v62 = vadd.f32 1.0, %v10550_v46  ;;  %v7813_v4 = vsel %vm7775_vm8, %v7748_v14, %v7136_v3  ;;  %v5992_v3 = vrot.slane %v10786_v61, 5  ;;  %v10787_v46 = vld [vmem:[#allocation2 + $0x194] sm:$0x1]  ;;  %v7482_v61 = vsel %vm7419_vm2, %v10068_v53, %v14842_v40 }
 0x507   :  { %v14419_v37 = vpop.f32.mrf.mxu3  ;;  %v5995_v31 = vrot.slane %v10787_v46, 5  ;;  %v7557_v46 = vsel %vm282_vm0, %v7482_v61, %v6436_v32 }
 0x508   :  { %v8728_v34 = vmul.f32 %v8664_v62, %v8664_v62  ;;  %v5994_v21 = vrot.slane %v5992_v3, 4 }
 0x50a   :  { %v10552_v33 = vpop.eup %10551  ;;  %v8920_v55 = vadd.f32 1.0, %v8728_v34  ;;  %v9975_v24 = vadd.f32 -1.0, %v8728_v34  ;;  %v5993_v34 = vsel %vm11123_vm15, %v9495_v42, %v5992_v3  ;;  %v5996_v14 = vsel %vm11123_vm15, %v5994_v21, %v5995_v31 }
 0x50b   :  { %v9047_v6 = vmul.f32 %v10552_v33, %v8855_v45  ;;  %v7296_v19 = vpop.permute.xlu1 %7295  ;;  %v7381_v33 = vunpack.c.l.b16 %v5993_v34 }
 0x50c   :  { %10553 = vrcp.f32 %v8920_v55  ;;  %v6626_v50 = vpop.permute.xlu0 %6625  ;;  %v7896_v49 = vsel %vm7840_vm10, %v7813_v4, %v7296_v19  ;;  %v8856_v25 = vmul.f32 %v9975_v24, %v14398_v27 }
 0x50d   :  { %9111 = vst.msk [vmem:[#allocation6 + $0xc0] sm:$0xff] %vm282_vm0, %v9047_v6  ;;  %v8183_v0 = vpop.f32.mrf.mxu1  ;;  %8207 = vmatmul.bf16.gmra.mxu1 %v7896_v49  ;;  %9946 = vmatmul.msk.bf16.gmra.mxu3 %vm7419_vm2, %v7415_v22  ;;  %v7620_v27 = vsel %vm7580_vm3, %v7555_v10, %v6626_v50  ;;  %v7382_v6 = vunpack.c.l.b16 %v5996_v14 }
 0x50e   :  { %v8184_v17 = vadd.f32 %v14264_v9, %v8183_v0 }
 0x50f   :  { %v14431_v15 = vpop.f32.mrf.mxu3  ;;  %v7416_v0 = vpack.c.b16 %v7382_v6, %v7381_v33 }
 0x510   :  { %v14429_v58 = vadd.f32 %v14839_v38, %v8184_v17 }
 0x512   :  { %v10554_v44 = vpop.eup %10553  ;;  %v8473_v59 = vmin.f32 %v14429_v58, 20.0 }
 0x513   :  { %v9048_v26 = vmul.f32 %v10554_v44, %v8856_v25  ;;  %v6786_v2 = vpop.permute.xlu1 %6785  ;;  %v5999_v25 = vrot.slane %v10788_v51, 5 }
 0x514   :  { %v7138_v43 = vpop.permute.xlu0 %7137  ;;  %v8563_v16 = vmul.f32 1.442695, %v8473_v59  ;;  %v7685_v62 = vsel %vm7645_vm5, %v7620_v27, %v6786_v2  ;;  %v6948_v59 = vpop.permute.xlu2 %6947 }
 0x515   :  { %9112 = vst.msk [vmem:[#allocation6 + $0xc8] sm:$0xff] %vm282_vm0, %v9048_v26  ;;  %v8185_v23 = vpop.f32.mrf.mxu1  ;;  %v7750_v55 = vsel %vm7710_vm7, %v7685_v62, %v6946_v5  ;;  %v5689_v5 = vld [vmem:[#allocation2 + $0x198] sm:$0xe]  ;;  %v6001_v2 = vrot.slane %v5999_v25, 4 }
 0x516   :  { %10555 = vpow2.f32 %v8563_v16  ;;  %v8186_v13 = vadd.f32 %v14264_v9, %v8185_v23  ;;  %v7815_v50 = vsel %vm7775_vm8, %v7750_v55, %v7138_v43  ;;  %v9496_v10 = vrot.slane %v5689_v5, 9  ;;  %v10789_v43 = vld [vmem:[#allocation2 + $0x1a0] sm:$0x1] }
 0x517   :  { %v14447_v45 = vpop.f32.mrf.mxu3  ;;  %v6002_v16 = vrot.slane %v10789_v43, 5 }
 0x518   :  { %v14445_v28 = vadd.f32 %v14841_v63, %v8186_v13  ;;  %v6000_v13 = vsel %vm11123_vm15, %v9496_v10, %v5999_v25 }
 0x519   :  { %v6003_v21 = vsel %vm11123_vm15, %v6001_v2, %v6002_v16  ;;  %v7383_v32 = vunpack.c.l.b16 %v6000_v13  ;;  %v14844_v16 = vld [vmem:[#allocation41_spill] sm:$0xff] }
 0x51a   :  { %v8474_v4 = vmin.f32 %v14445_v28, 20.0  ;;  %v7384_v55 = vunpack.c.l.b16 %v6003_v21  ;;  %v10791_v21 = vld [vmem:[#allocation2 + $0x1ac] sm:$0x1] }
 0x51b   :  { %v7298_v22 = vpop.permute.xlu1 %7297 }
 0x51c   :  { %v10556_v19 = vpop.eup %10555  ;;  %v6628_v24 = vpop.permute.xlu0 %6627  ;;  %v8565_v49 = vmul.f32 1.442695, %v8474_v4  ;;  %v7899_v38 = vsel %vm7840_vm10, %v7815_v50, %v7298_v22 }
 0x51d   :  { %v8665_v17 = vadd.f32 1.0, %v10556_v19  ;;  %8212 = vmatmul.bf16.gmra.mxu1 %v7899_v38  ;;  %9947 = vmatmul.msk.bf16.gmra.mxu3 %vm7419_vm2, %v7416_v0  ;;  %v7622_v42 = vsel %vm7580_vm3, %v7557_v46, %v6628_v24  ;;  %v6438_v50 = vpop.permute.xlu2 %6437 }
 0x51e   :  { %10557 = vpow2.f32 %v8565_v49 }
 0x51f   :  { %v8729_v44 = vmul.f32 %v8665_v17, %v8665_v17  ;;  %v14456_v1 = vpop.f32.mrf.mxu3  ;;  %v7417_v17 = vpack.c.b16 %v7384_v55, %v7383_v32 }
 0x521   :  { %v8921_v26 = vadd.f32 1.0, %v8729_v44  ;;  %v9976_v31 = vadd.f32 -1.0, %v8729_v44  ;;  %v14843_v44 = vld [vmem:[#allocation39_spill] sm:$0xff] }
 0x523   :  { %10559 = vrcp.f32 %v8921_v26  ;;  %v8857_v14 = vmul.f32 %v9976_v31, %v14429_v58  ;;  %v10069_v26 = vld [vmem:[#allocation2 + $0x114] sm:$0xff] }
 0x524   :  { %v10558_v3 = vpop.eup %10557  ;;  %v6788_v27 = vpop.permute.xlu1 %6787  ;;  %v7485_v40 = vsel %vm7419_vm2, %v10069_v26, %v14844_v16 }
 0x525   :  { %v7140_v23 = vpop.permute.xlu0 %7139  ;;  %v8666_v62 = vadd.f32 1.0, %v10558_v3  ;;  %v7687_v34 = vsel %vm7645_vm5, %v7622_v42, %v6788_v27  ;;  %v7559_v61 = vsel %vm282_vm0, %v7485_v40, %v6438_v50  ;;  %v6950_v3 = vpop.permute.xlu2 %6949  ;;  %v5690_v27 = vld [vmem:[#allocation2 + $0x1a4] sm:$0xe] }
 0x526   :  { %v7752_v19 = vsel %vm7710_vm7, %v7687_v34, %v6948_v59  ;;  %v9497_v13 = vrot.slane %v5690_v27, 9  ;;  %v6009_v34 = vrot.slane %v10791_v21, 5  ;;  %v14846_v40 = vld [vmem:[#allocation43_spill] sm:$0xff] }
 0x527   :  { %v8730_v63 = vmul.f32 %v8666_v62, %v8666_v62  ;;  %v14468_v33 = vpop.f32.mrf.mxu3  ;;  %v7817_v49 = vsel %vm7775_vm8, %v7752_v19, %v7140_v23 }
 0x529   :  { %v10560_v6 = vpop.eup %10559  ;;  %v8922_v4 = vadd.f32 1.0, %v8730_v63  ;;  %v9977_v24 = vadd.f32 -1.0, %v8730_v63 }
 0x52a   :  { %v9049_v22 = vmul.f32 %v10560_v6, %v8857_v14 }
 0x52b   :  { %10561 = vrcp.f32 %v8922_v4  ;;  %v8858_v5 = vmul.f32 %v9977_v24, %v14445_v28  ;;  %v10790_v28 = vld [vmem:[#allocation2 + $0x1a8] sm:$0xf]  ;;  %v14845_v4 = vld [vmem:[#allocation42_spill] sm:$0xff] }
 0x52c   :  { %9113 = vst.msk [vmem:[#allocation6 + $0xd0] sm:$0xff] %vm282_vm0, %v9049_v22  ;;  %v7300_v0 = vpop.permute.xlu1 %7299  ;;  %v6006_v23 = vrot.slane %v10790_v28, 5 }
 0x52d   :  { %v6630_v38 = vpop.permute.xlu0 %6629  ;;  %v7902_v58 = vsel %vm7840_vm10, %v7817_v49, %v7300_v0  ;;  %v8188_v51 = vpop.f32.mrf.mxu1  ;;  %9948 = vmatmul.msk.bf16.gmra.mxu3 %vm7419_vm2, %v7417_v17 }
 0x52e   :  { %8217 = vmatmul.bf16.gmra.mxu1 %v7902_v58  ;;  %v8189_v25 = vadd.f32 %v14264_v9, %v8188_v51  ;;  %v7624_v42 = vsel %vm7580_vm3, %v7559_v61, %v6630_v38  ;;  %v6008_v32 = vrot.slane %v6006_v23, 4  ;;  %v6007_v6 = vsel %vm11123_vm15, %v9497_v13, %v6006_v23  ;;  %v6440_v26 = vpop.permute.xlu2 %6439 }
 0x52f   :  { %v14478_v10 = vpop.f32.mrf.mxu3  ;;  %v7385_v22 = vunpack.c.l.b16 %v6007_v6 }
 0x530   :  { %v8358_v59 = vadd.f32 %v14843_v44, %v8189_v25  ;;  %v6010_v50 = vsel %vm11123_vm15, %v6008_v32, %v6009_v34 }
 0x531   :  { %v10562_v53 = vpop.eup %10561  ;;  %v7386_v49 = vunpack.c.l.b16 %v6010_v50 }
 0x532   :  { %v9050_v2 = vmul.f32 %v10562_v53, %v8858_v5  ;;  %v8475_v43 = vmin.f32 %v8358_v59, 20.0 }
 0x533   :  { %v7418_v38 = vpack.c.b16 %v7386_v49, %v7385_v22 }
 0x534   :  { %9114 = vst.msk [vmem:[#allocation6 + $0xd8] sm:$0xff] %vm282_vm0, %v9050_v2  ;;  %v6790_v46 = vpop.permute.xlu1 %6789  ;;  %v8567_v31 = vmul.f32 1.442695, %v8475_v43  ;;  %v10070_v2 = vld [vmem:[#allocation2 + $0x120] sm:$0xff] }
 0x535   :  { %v8190_v62 = vpop.f32.mrf.mxu1  ;;  %v7689_v63 = vsel %vm7645_vm5, %v7624_v42, %v6790_v46  ;;  %v7142_v55 = vpop.permute.xlu0 %7141  ;;  %v7488_v61 = vsel %vm7419_vm2, %v10070_v2, %v14846_v40 }
 0x536   :  { %10563 = vpow2.f32 %v8567_v31  ;;  %v8191_v14 = vadd.f32 %v14264_v9, %v8190_v62  ;;  %v7754_v24 = vsel %vm7710_vm7, %v7689_v63, %v6950_v3  ;;  %v7561_v46 = vsel %vm282_vm0, %v7488_v61, %v6440_v26  ;;  %v6952_v21 = vpop.permute.xlu2 %6951 }
 0x537   :  { %v14493_v17 = vpop.f32.mrf.mxu3  ;;  %v7819_v51 = vsel %vm7775_vm8, %v7754_v24, %v7142_v55  ;;  %v8244_v61 = vadd.f32 %v14264_v9, %v14375_v54 }
 0x538   :  { %v8360_v19 = vadd.f32 %v14845_v4, %v8191_v14 }
 0x53a   :  { %v8476_v0 = vmin.f32 %v8360_v19, 20.0 }
 0x53c   :  { %v10564_v58 = vpop.eup %10563  ;;  %v7302_v25 = vpop.permute.xlu1 %7301  ;;  %v8569_v5 = vmul.f32 1.442695, %v8476_v0 }
 0x53d   :  { %v8667_v44 = vadd.f32 1.0, %v10564_v58  ;;  %v7905_v53 = vsel %vm7840_vm10, %v7819_v51, %v7302_v25  ;;  %9949 = vmatmul.msk.bf16.gmra.mxu3 %vm7419_vm2, %v7418_v38  ;;  %v6632_v16 = vpop.permute.xlu0 %6631 }
 0x53e   :  { %8222 = vmatmul.bf16.gmra.mxu1 %v7905_v53  ;;  %10565 = vpow2.f32 %v8569_v5  ;;  %v7626_v28 = vsel %vm7580_vm3, %v7561_v46, %v6632_v16  ;;  %v14847_v5 = vld [vmem:[#allocation44_spill] sm:$0xff] }
 0x53f   :  { %v8731_v11 = vmul.f32 %v8667_v44, %v8667_v44  ;;  %v14502_v42 = vpop.f32.mrf.mxu3 }
 0x541   :  { %v8923_v43 = vadd.f32 1.0, %v8731_v11  ;;  %v9978_v31 = vadd.f32 -1.0, %v8731_v11 }
 0x543   :  { %10567 = vrcp.f32 %v8923_v43  ;;  %v8859_v34 = vmul.f32 %v9978_v31, %v8358_v59 }
 0x544   :  { %v10566_v3 = vpop.eup %10565  ;;  %v6792_v27 = vpop.permute.xlu1 %6791 }
 0x545   :  { %v8668_v23 = vadd.f32 1.0, %v10566_v3  ;;  %v7691_v62 = vsel %vm7645_vm5, %v7626_v28, %v6792_v27  ;;  %v7144_v6 = vpop.permute.xlu0 %7143 }
 0x546   :  { %v7756_v32 = vsel %vm7710_vm7, %v7691_v62, %v6952_v21 }
 0x547   :  { %v8732_v13 = vmul.f32 %v8668_v23, %v8668_v23  ;;  %v7821_v50 = vsel %vm7775_vm8, %v7756_v32, %v7144_v6  ;;  %v14509_v49 = vpop.f32.mrf.mxu3 }
 0x549   :  { %v10568_v63 = vpop.eup %10567  ;;  %v8924_v14 = vadd.f32 1.0, %v8732_v13  ;;  %v9979_v4 = vadd.f32 -1.0, %v8732_v13 }
 0x54a   :  { %v9051_v55 = vmul.f32 %v10568_v63, %v8859_v34 }
 0x54b   :  { %10569 = vrcp.f32 %v8924_v14  ;;  %v8860_v0 = vmul.f32 %v9979_v4, %v8360_v19  ;;  %v8246_v14 = vadd.f32 %v14264_v9, %v14393_v52 }
 0x54c   :  { %9115 = vst.msk [vmem:[#allocation6 + $0xe0] sm:$0xff] %vm282_vm0, %v9051_v55  ;;  %v7304_v22 = vpop.permute.xlu1 %7303 }
 0x54d   :  { %v7908_v24 = vsel %vm7840_vm10, %v7821_v50, %v7304_v22 }
 0x54e   :  { %8227 = vmatmul.bf16.gmra.mxu1 %v7908_v24 }
 0x550   :  { %v14512_v58 = vpop.f32.mrf.mxu3 }
 0x551   :  { %v10570_v59 = vpop.eup %10569 }
 0x552   :  { %v9052_v38 = vmul.f32 %v10570_v59, %v8860_v0 }
 0x554   :  { %9116 = vst.msk [vmem:[#allocation6 + $0xe8] sm:$0xff] %vm282_vm0, %v9052_v38 }
 0x558   :  { %v14516_v11 = vpop.f32.mrf.mxu3 }
 0x559   :  { %v8193_v51 = vpop.f32.mrf.mxu1 }
 0x55a   :  { %v8194_v25 = vadd.f32 %v14264_v9, %v8193_v51 }
 0x55c   :  { %v8363_v44 = vadd.f32 %v14847_v5, %v8194_v25 }
 0x55e   :  { %v8477_v53 = vmin.f32 %v8363_v44, 20.0 }
 0x560   :  { %v8571_v26 = vmul.f32 1.442695, %v8477_v53  ;;  %v8412_v31 = vpop.f32.mrf.mxu3 }
 0x561   :  { %v8195_v2 = vpop.f32.mrf.mxu1  ;;  %v14522_v28 = vadd.f32 %v8412_v31, %v8244_v61 }
 0x562   :  { %10571 = vpow2.f32 %v8571_v26  ;;  %v8196_v43 = vadd.f32 %v14264_v9, %v8195_v2 }
 0x563   :  { %v8497_v13 = vmin.f32 %v14522_v28, 20.0 }
 0x564   :  { %v8365_v19 = vadd.f32 %v13740_v18, %v8196_v43  ;;  %v14543_v43 = vld [vmem:[%s14726_s4] ss:$0 sm:$0xff]  ;;  %s10855_s4 = smov [#allocation6]  }
 0x565   :  { %v8611_v34 = vmul.f32 1.442695, %v8497_v13  ;;  %s9155_s6 = sshll.u32 %s10855_s4, 4  ;;  %s9156_s6 = int_to_ptr.vmem [resolvable:$true] %s9155_s6 }
 0x566   :  { %v8478_v16 = vmin.f32 %v8365_v19, 20.0 }
 0x568   :  { %v10572_v40 = vpop.eup %10571  ;;  %v8573_v3 = vmul.f32 1.442695, %v8478_v16  ;;  %v8414_v4 = vpop.f32.mrf.mxu3 }
 0x569   :  { %v8669_v46 = vadd.f32 1.0, %v10572_v40  ;;  %v14532_v22 = vadd.f32 %v8414_v4, %v8246_v14 }
 0x56a   :  { %10573 = vpow2.f32 %v8573_v3  ;;  %v8198_v27 = vpop.f32.mrf.mxu1 }
 0x56b   :  { %v8733_v23 = vmul.f32 %v8669_v46, %v8669_v46  ;;  %v8199_v62 = vadd.f32 %v14264_v9, %v8198_v27  ;;  %v8498_v59 = vmin.f32 %v14532_v22, 20.0 }
 0x56d   :  { %v8925_v21 = vadd.f32 1.0, %v8733_v23  ;;  %v14527_v18 = vadd.f32 %v13770_v41, %v8199_v62  ;;  %v9980_v32 = vadd.f32 -1.0, %v8733_v23  ;;  %v8613_v53 = vmul.f32 1.442695, %v8498_v59 }
 0x56f   :  { %10575 = vrcp.f32 %v8925_v21  ;;  %v8479_v54 = vmin.f32 %v14527_v18, 20.0  ;;  %v8861_v0 = vmul.f32 %v9980_v32, %v8363_v44 }
 0x570   :  { %v10574_v63 = vpop.eup %10573  ;;  %10577 = vpow2.f32 %v8611_v34  ;;  %v8417_v61 = vpop.f32.mrf.mxu3 }
 0x571   :  { %v8670_v55 = vadd.f32 1.0, %v10574_v63  ;;  %v8575_v6 = vmul.f32 1.442695, %v8479_v54 }
 0x572   :  { %v8200_v50 = vpop.f32.mrf.mxu1 }
 0x573   :  { %v8734_v24 = vmul.f32 %v8670_v55, %v8670_v55  ;;  %10579 = vpow2.f32 %v8575_v6  ;;  %v8201_v41 = vadd.f32 %v14264_v9, %v8200_v50  ;;  %v8249_v9 = vadd.f32 %v14543_v43, %v14406_v57 }
 0x574   :  { %v8251_v50 = vadd.f32 %v14543_v43, %v14419_v37 }
 0x575   :  { %v10576_v38 = vpop.eup %10575  ;;  %v8926_v51 = vadd.f32 1.0, %v8734_v24  ;;  %v14537_v25 = vadd.f32 %v13803_v12, %v8201_v41  ;;  %v9981_v44 = vadd.f32 -1.0, %v8734_v24  ;;  %v14548_v31 = vadd.f32 %v8417_v61, %v8249_v9 }
 0x576   :  { %v10578_v52 = vpop.eup %10577  ;;  %v9053_v5 = vmul.f32 %v10576_v38, %v8861_v0 }
 0x577   :  { %10581 = vrcp.f32 %v8926_v51  ;;  %v8689_v26 = vadd.f32 1.0, %v10578_v52  ;;  %v8480_v2 = vmin.f32 %v14537_v25, 20.0  ;;  %v8862_v62 = vmul.f32 %v9981_v44, %v8365_v19 }
 0x578   :  { %9117 = vst.msk [vmem:[#allocation6 + $0xf0] sm:$0xff] %vm282_vm0, %v9053_v5  ;;  %10583 = vpow2.f32 %v8613_v53  ;;  %v8499_v57 = vmin.f32 %v14548_v31, 20.0 }
 0x579   :  { %v10580_v12 = vpop.eup %10579  ;;  %v8753_v16 = vmul.f32 %v8689_v26, %v8689_v26  ;;  %v8577_v40 = vmul.f32 1.442695, %v8480_v2 }
 0x57a   :  { %v8671_v3 = vadd.f32 1.0, %v10580_v12  ;;  %v8203_v46 = vpop.f32.mrf.mxu1  ;;  %v8615_v55 = vmul.f32 1.442695, %v8499_v57 }
 0x57b   :  { %v8945_v27 = vadd.f32 1.0, %v8753_v16  ;;  %10585 = vpow2.f32 %v8577_v40  ;;  %v8204_v23 = vadd.f32 %v14543_v43, %v8203_v46  ;;  %v10000_v32 = vadd.f32 -1.0, %v8753_v16 }
 0x57c   :  { %v8735_v13 = vmul.f32 %v8671_v3, %v8671_v3 }
 0x57d   :  { %v10582_v21 = vpop.eup %10581  ;;  %10587 = vrcp.f32 %v8945_v27  ;;  %v14553_v34 = vadd.f32 %v13831_v56, %v8204_v23  ;;  %v8419_v56 = vpop.f32.mrf.mxu3  ;;  %v8881_v59 = vmul.f32 %v10000_v32, %v14522_v28  ;;  %v8254_v23 = vadd.f32 %v14543_v43, %v14431_v15 }
 0x57e   :  { %v10584_v54 = vpop.eup %10583  ;;  %v9054_v63 = vmul.f32 %v10582_v21, %v8862_v62  ;;  %v8927_v14 = vadd.f32 1.0, %v8735_v13  ;;  %v9982_v24 = vadd.f32 -1.0, %v8735_v13  ;;  %v14560_v52 = vadd.f32 %v8419_v56, %v8251_v50 }
 0x57f   :  { %v8690_v6 = vadd.f32 1.0, %v10584_v54  ;;  %v8481_v4 = vmin.f32 %v14553_v34, 20.0 }
 0x580   :  { %9118 = vst.msk [vmem:[#allocation6 + $0xf8] sm:$0xff] %vm282_vm0, %v9054_v63  ;;  %10589 = vrcp.f32 %v8927_v14  ;;  %v8500_v9 = vmin.f32 %v14560_v52, 20.0  ;;  %v8863_v44 = vmul.f32 %v9982_v24, %v14527_v18 }
 0x581   :  { %v10586_v19 = vpop.eup %10585  ;;  %v8754_v41 = vmul.f32 %v8690_v6, %v8690_v6  ;;  %v8579_v0 = vmul.f32 1.442695, %v8481_v4  ;;  %10591 = vpow2.f32 %v8615_v55 }
 0x582   :  { %v8672_v38 = vadd.f32 1.0, %v10586_v19  ;;  %v8205_v51 = vpop.f32.mrf.mxu1  ;;  %v8617_v61 = vmul.f32 1.442695, %v8500_v9 }
 0x583   :  { %v10588_v5 = vpop.eup %10587  ;;  %v8946_v53 = vadd.f32 1.0, %v8754_v41  ;;  %10593 = vpow2.f32 %v8579_v0  ;;  %v8206_v37 = vadd.f32 %v14543_v43, %v8205_v51  ;;  %v10001_v40 = vadd.f32 -1.0, %v8754_v41 }
 0x584   :  { %v9073_v26 = vmul.f32 %v10588_v5, %v8881_v59  ;;  %v8736_v2 = vmul.f32 %v8672_v38, %v8672_v38 }
 0x585   :  { %10595 = vrcp.f32 %v8946_v53  ;;  %v14566_v12 = vadd.f32 %v13881_v39, %v8206_v37  ;;  %v8422_v57 = vpop.f32.mrf.mxu3  ;;  %v8882_v21 = vmul.f32 %v10001_v40, %v14532_v22  ;;  %v8256_v53 = vadd.f32 %v14543_v43, %v14447_v45 }
 0x586   :  { %v10590_v28 = vpop.eup %10589  ;;  %9137 = vst.msk [vmem:[#allocation6 + $0x190] sm:$0xff] %vm282_vm0, %v9073_v26  ;;  %v8928_v16 = vadd.f32 1.0, %v8736_v2  ;;  %v9983_v39 = vadd.f32 -1.0, %v8736_v2  ;;  %v14574_v32 = vadd.f32 %v8422_v57, %v8254_v23 }
 0x587   :  { %v10592_v3 = vpop.eup %10591  ;;  %v9055_v46 = vmul.f32 %v10590_v28, %v8863_v44  ;;  %v8482_v27 = vmin.f32 %v14566_v12, 20.0 }
 0x588   :  { %10597 = vrcp.f32 %v8928_v16  ;;  %v8691_v62 = vadd.f32 1.0, %v10592_v3  ;;  %v8864_v19 = vmul.f32 %v9983_v39, %v14537_v25  ;;  %v8501_v41 = vmin.f32 %v14574_v32, 20.0 }
 0x589   :  { %v10594_v18 = vpop.eup %10593  ;;  %9119 = vst.msk [vmem:[#allocation6 + $0x100] sm:$0xff] %vm282_vm0, %v9055_v46  ;;  %v8581_v13 = vmul.f32 1.442695, %v8482_v27  ;;  %10599 = vpow2.f32 %v8617_v61 }
 0x58a   :  { %v8673_v54 = vadd.f32 1.0, %v10594_v18  ;;  %v8755_v63 = vmul.f32 %v8691_v62, %v8691_v62  ;;  %v8208_v14 = vpop.f32.mrf.mxu1  ;;  %v8619_v5 = vmul.f32 1.442695, %v8501_v41 }
 0x58b   :  { %v10596_v55 = vpop.eup %10595  ;;  %10601 = vpow2.f32 %v8581_v13  ;;  %v8209_v15 = vadd.f32 %v14543_v43, %v8208_v14  ;;  %v8259_v14 = vadd.f32 %v14543_v43, %v14456_v1 }
 0x58c   :  { %v9074_v6 = vmul.f32 %v10596_v55, %v8882_v21  ;;  %v8737_v4 = vmul.f32 %v8673_v54, %v8673_v54  ;;  %v8947_v50 = vadd.f32 1.0, %v8755_v63  ;;  %v10002_v38 = vadd.f32 -1.0, %v8755_v63 }
 0x58d   :  { %v14579_v24 = vadd.f32 %v13912_v29, %v8209_v15  ;;  %v8424_v2 = vpop.f32.mrf.mxu3 }
 0x58e   :  { %v10598_v22 = vpop.eup %10597  ;;  %9138 = vst.msk [vmem:[#allocation6 + $0x198] sm:$0xff] %vm282_vm0, %v9074_v6  ;;  %v8929_v0 = vadd.f32 1.0, %v8737_v4  ;;  %10603 = vrcp.f32 %v8947_v50  ;;  %v9984_v37 = vadd.f32 -1.0, %v8737_v4  ;;  %v14587_v16 = vadd.f32 %v8424_v2, %v8256_v53 }
 0x58f   :  { %v10600_v56 = vpop.eup %10599  ;;  %v9056_v59 = vmul.f32 %v10598_v22, %v8864_v19  ;;  %v8483_v51 = vmin.f32 %v14579_v24, 20.0  ;;  %v8883_v40 = vmul.f32 %v10002_v38, %v14548_v31 }
 0x590   :  { %10605 = vrcp.f32 %v8929_v0  ;;  %v8692_v25 = vadd.f32 1.0, %v10600_v56  ;;  %v8502_v27 = vmin.f32 %v14587_v16, 20.0  ;;  %v8865_v23 = vmul.f32 %v9984_v37, %v14553_v34 }
 0x591   :  { %v10602_v29 = vpop.eup %10601  ;;  %9120 = vst.msk [vmem:[#allocation6 + $0x108] sm:$0xff] %vm282_vm0, %v9056_v59  ;;  %v8583_v26 = vmul.f32 1.442695, %v8483_v51  ;;  %10607 = vpow2.f32 %v8619_v5 }
 0x592   :  { %v8674_v9 = vadd.f32 1.0, %v10602_v29  ;;  %v8756_v44 = vmul.f32 %v8692_v25, %v8692_v25  ;;  %v8210_v28 = vpop.f32.mrf.mxu1  ;;  %v8621_v63 = vmul.f32 1.442695, %v8502_v27 }
 0x593   :  { %10609 = vpow2.f32 %v8583_v26  ;;  %v8211_v61 = vadd.f32 %v14543_v43, %v8210_v28 }
 0x594   :  { %v10604_v45 = vpop.eup %10603  ;;  %v8738_v3 = vmul.f32 %v8674_v9, %v8674_v9  ;;  %v8948_v46 = vadd.f32 1.0, %v8756_v44  ;;  %v10003_v31 = vadd.f32 -1.0, %v8756_v44  ;;  %v8261_v44 = vadd.f32 %v14543_v43, %v14468_v33 }
 0x595   :  { %v9075_v62 = vmul.f32 %v10604_v45, %v8883_v40  ;;  %v14594_v18 = vadd.f32 %v13947_v48, %v8211_v61  ;;  %v8427_v6 = vpop.f32.mrf.mxu3 }
 0x596   :  { %v10606_v39 = vpop.eup %10605  ;;  %v8930_v13 = vadd.f32 1.0, %v8738_v3  ;;  %10611 = vrcp.f32 %v8948_v46  ;;  %v9985_v48 = vadd.f32 -1.0, %v8738_v3  ;;  %v14601_v41 = vadd.f32 %v8427_v6, %v8259_v14 }
 0x597   :  { %v10608_v57 = vpop.eup %10607  ;;  %v9057_v21 = vmul.f32 %v10606_v39, %v8865_v23  ;;  %9139 = vst.msk [vmem:[#allocation6 + $0x1a0] sm:$0xff] %vm282_vm0, %v9075_v62  ;;  %v8484_v54 = vmin.f32 %v14594_v18, 20.0  ;;  %v8884_v22 = vmul.f32 %v10003_v31, %v14560_v52  ;;  %v8264_v6 = vadd.f32 %v14543_v43, %v14478_v10 }
 0x598   :  { %10613 = vrcp.f32 %v8930_v13  ;;  %v8693_v34 = vadd.f32 1.0, %v10608_v57  ;;  %v8503_v38 = vmin.f32 %v14601_v41, 20.0  ;;  %v8866_v51 = vmul.f32 %v9985_v48, %v14566_v12 }
 0x599   :  { %v10610_v55 = vpop.eup %10609  ;;  %9121 = vst.msk [vmem:[#allocation6 + $0x110] sm:$0xff] %vm282_vm0, %v9057_v21  ;;  %v8585_v15 = vmul.f32 1.442695, %v8484_v54  ;;  %10615 = vpow2.f32 %v8621_v63 }
 0x59a   :  { %v8675_v4 = vadd.f32 1.0, %v10610_v55  ;;  %v8757_v50 = vmul.f32 %v8693_v34, %v8693_v34  ;;  %v8213_v19 = vpop.f32.mrf.mxu1  ;;  %v8623_v9 = vmul.f32 1.442695, %v8503_v38 }
 0x59b   :  { %10617 = vpow2.f32 %v8585_v15  ;;  %v8214_v0 = vadd.f32 %v14543_v43, %v8213_v19 }
 0x59c   :  { %v10612_v1 = vpop.eup %10611  ;;  %v8739_v56 = vmul.f32 %v8675_v4, %v8675_v4  ;;  %v8949_v59 = vadd.f32 1.0, %v8757_v50  ;;  %v10004_v52 = vadd.f32 -1.0, %v8757_v50 }
 0x59d   :  { %v9076_v5 = vmul.f32 %v10612_v1, %v8884_v22  ;;  %v14608_v53 = vadd.f32 %v14004_v7, %v8214_v0  ;;  %v8429_v61 = vpop.f32.mrf.mxu3 }
 0x59e   :  { %v10614_v25 = vpop.eup %10613  ;;  %v8931_v29 = vadd.f32 1.0, %v8739_v56  ;;  %10619 = vrcp.f32 %v8949_v59  ;;  %v9986_v7 = vadd.f32 -1.0, %v8739_v56  ;;  %v14615_v27 = vadd.f32 %v8429_v61, %v8261_v44 }
 0x59f   :  { %v10616_v37 = vpop.eup %10615  ;;  %v9058_v26 = vmul.f32 %v10614_v25, %v8866_v51  ;;  %9140 = vst.msk [vmem:[#allocation6 + $0x1a8] sm:$0xff] %vm282_vm0, %v9076_v5  ;;  %v8485_v2 = vmin.f32 %v14608_v53, 20.0  ;;  %v8885_v23 = vmul.f32 %v10004_v52, %v14574_v32 }
 0x5a0   :  { %10621 = vrcp.f32 %v8931_v29  ;;  %v8694_v12 = vadd.f32 1.0, %v10616_v37  ;;  %v8504_v57 = vmin.f32 %v14615_v27, 20.0  ;;  %v8867_v21 = vmul.f32 %v9986_v7, %v14579_v24 }
 0x5a1   :  { %v10618_v28 = vpop.eup %10617  ;;  %9122 = vst.msk [vmem:[#allocation6 + $0x118] sm:$0xff] %vm282_vm0, %v9058_v26  ;;  %v8587_v40 = vmul.f32 1.442695, %v8485_v2  ;;  %10623 = vpow2.f32 %v8623_v9  ;;  %v8266_v7 = vadd.f32 %v14543_v43, %v14493_v17 }
 0x5a2   :  { %v8676_v45 = vadd.f32 1.0, %v10618_v28  ;;  %v8758_v3 = vmul.f32 %v8694_v12, %v8694_v12  ;;  %v8215_v46 = vpop.f32.mrf.mxu1  ;;  %v8625_v15 = vmul.f32 1.442695, %v8504_v57 }
 0x5a3   :  { %10625 = vpow2.f32 %v8587_v40  ;;  %v8216_v62 = vadd.f32 %v14543_v43, %v8215_v46 }
 0x5a4   :  { %v10620_v33 = vpop.eup %10619  ;;  %v8740_v39 = vmul.f32 %v8676_v45, %v8676_v45  ;;  %v8950_v13 = vadd.f32 1.0, %v8758_v3  ;;  %v10005_v32 = vadd.f32 -1.0, %v8758_v3 }
 0x5a5   :  { %v9077_v31 = vmul.f32 %v10620_v33, %v8885_v23  ;;  %v14622_v54 = vadd.f32 %v14032_v36, %v8216_v62  ;;  %v8432_v19 = vpop.f32.mrf.mxu3 }
 0x5a6   :  { %v10622_v63 = vpop.eup %10621  ;;  %v8932_v14 = vadd.f32 1.0, %v8740_v39  ;;  %10627 = vrcp.f32 %v8950_v13  ;;  %v9987_v36 = vadd.f32 -1.0, %v8740_v39  ;;  %v14629_v56 = vadd.f32 %v8432_v19, %v8264_v6 }
 0x5a7   :  { %v10624_v34 = vpop.eup %10623  ;;  %v9059_v55 = vmul.f32 %v10622_v63, %v8867_v21  ;;  %9141 = vst.msk [vmem:[#allocation6 + $0x1b0] sm:$0xff] %vm282_vm0, %v9077_v31  ;;  %v8486_v48 = vmin.f32 %v14622_v54, 20.0  ;;  %v8886_v59 = vmul.f32 %v10005_v32, %v14587_v16 }
 0x5a8   :  { %10629 = vrcp.f32 %v8932_v14  ;;  %v8695_v24 = vadd.f32 1.0, %v10624_v34  ;;  %v8505_v25 = vmin.f32 %v14629_v56, 20.0  ;;  %v8868_v29 = vmul.f32 %v9987_v36, %v14594_v18 }
 0x5a9   :  { %v10626_v4 = vpop.eup %10625  ;;  %9123 = vst.msk [vmem:[#allocation6 + $0x120] sm:$0xff] %vm282_vm0, %v9059_v55  ;;  %v8589_v50 = vmul.f32 1.442695, %v8486_v48  ;;  %10631 = vpow2.f32 %v8625_v15 }
 0x5aa   :  { %v8677_v22 = vadd.f32 1.0, %v10626_v4  ;;  %v8759_v0 = vmul.f32 %v8695_v24, %v8695_v24  ;;  %v8627_v28 = vmul.f32 1.442695, %v8505_v25  ;;  %v8269_v24 = vadd.f32 %v14543_v43, %v14502_v42 }
 0x5ab   :  { %v8218_v1 = vpop.f32.mrf.mxu1  ;;  %10633 = vpow2.f32 %v8589_v50 }
 0x5ac   :  { %v8219_v38 = vadd.f32 %v14543_v43, %v8218_v1  ;;  %v10628_v10 = vpop.eup %10627  ;;  %v8741_v51 = vmul.f32 %v8677_v22, %v8677_v22  ;;  %v8951_v5 = vadd.f32 1.0, %v8759_v0  ;;  %v10006_v16 = vadd.f32 -1.0, %v8759_v0 }
 0x5ad   :  { %v9078_v37 = vmul.f32 %v10628_v10, %v8886_v59  ;;  %v8434_v45 = vpop.f32.mrf.mxu3 }
 0x5ae   :  { %v14636_v26 = vadd.f32 %v14069_v35, %v8219_v38  ;;  %v10630_v52 = vpop.eup %10629  ;;  %v8933_v2 = vadd.f32 1.0, %v8741_v51  ;;  %10635 = vrcp.f32 %v8951_v5  ;;  %v9988_v35 = vadd.f32 -1.0, %v8741_v51 }
 0x5af   :  { %v10632_v9 = vpop.eup %10631  ;;  %v9060_v44 = vmul.f32 %v10630_v52, %v8868_v29  ;;  %9142 = vst.msk [vmem:[#allocation6 + $0x1b8] sm:$0xff] %vm282_vm0, %v9078_v37  ;;  %v14643_v62 = vadd.f32 %v8434_v45, %v8266_v7  ;;  %v8887_v33 = vmul.f32 %v10006_v16, %v14601_v41 }
 0x5b0   :  { %v8487_v12 = vmin.f32 %v14636_v26, 20.0  ;;  %10637 = vrcp.f32 %v8933_v2  ;;  %v8696_v18 = vadd.f32 1.0, %v10632_v9  ;;  %v8869_v31 = vmul.f32 %v9988_v35, %v14608_v53 }
 0x5b1   :  { %v10634_v40 = vpop.eup %10633  ;;  %9124 = vst.msk [vmem:[#allocation6 + $0x128] sm:$0xff] %vm282_vm0, %v9060_v44  ;;  %10639 = vpow2.f32 %v8627_v28  ;;  %v8506_v21 = vmin.f32 %v14643_v62, 20.0  ;;  %v8271_v28 = vadd.f32 %v14543_v43, %v14509_v49 }
 0x5b2   :  { %v8591_v61 = vmul.f32 1.442695, %v8487_v12  ;;  %v8678_v3 = vadd.f32 1.0, %v10634_v40  ;;  %v8760_v46 = vmul.f32 %v8696_v18, %v8696_v18 }
 0x5b3   :  { %v8220_v23 = vpop.f32.mrf.mxu1  ;;  %v8629_v6 = vmul.f32 1.442695, %v8506_v21 }
 0x5b4   :  { %10641 = vpow2.f32 %v8591_v61  ;;  %v8221_v39 = vadd.f32 %v14543_v43, %v8220_v23  ;;  %v10636_v17 = vpop.eup %10635  ;;  %v8742_v13 = vmul.f32 %v8678_v3, %v8678_v3  ;;  %v8952_v57 = vadd.f32 1.0, %v8760_v46 }
 0x5b5   :  { %v9079_v63 = vmul.f32 %v10636_v17, %v8887_v33  ;;  %v10007_v41 = vadd.f32 -1.0, %v8760_v46  ;;  %v8437_v50 = vpop.f32.mrf.mxu3 }
 0x5b6   :  { %v14650_v14 = vadd.f32 %v14101_v20, %v8221_v39  ;;  %v10638_v34 = vpop.eup %10637  ;;  %v8934_v55 = vadd.f32 1.0, %v8742_v13  ;;  %10643 = vrcp.f32 %v8952_v57  ;;  %v9989_v20 = vadd.f32 -1.0, %v8742_v13 }
 0x5b7   :  { %v10640_v32 = vpop.eup %10639  ;;  %v9061_v48 = vmul.f32 %v10638_v34, %v8869_v31  ;;  %9143 = vst.msk [vmem:[#allocation6 + $0x1c0] sm:$0xff] %vm282_vm0, %v9079_v63  ;;  %v14657_v1 = vadd.f32 %v8437_v50, %v8269_v24  ;;  %v8888_v59 = vmul.f32 %v10007_v41, %v14615_v27  ;;  %v8274_v41 = vadd.f32 %v14543_v43, %v14512_v58 }
 0x5b8   :  { %v8488_v15 = vmin.f32 %v14650_v14, 20.0  ;;  %10645 = vrcp.f32 %v8934_v55  ;;  %v8697_v53 = vadd.f32 1.0, %v10640_v32  ;;  %v8870_v25 = vmul.f32 %v9989_v20, %v14622_v54 }
 0x5b9   :  { %9125 = vst.msk [vmem:[#allocation6 + $0x130] sm:$0xff] %vm282_vm0, %v9061_v48  ;;  %10647 = vpow2.f32 %v8629_v6  ;;  %v8507_v5 = vmin.f32 %v14657_v1, 20.0 }
 0x5ba   :  { %v10642_v4 = vpop.eup %10641  ;;  %v8593_v36 = vmul.f32 1.442695, %v8488_v15  ;;  %v8761_v22 = vmul.f32 %v8697_v53, %v8697_v53 }
 0x5bb   :  { %v8679_v19 = vadd.f32 1.0, %v10642_v4  ;;  %v8223_v0 = vpop.f32.mrf.mxu1  ;;  %v8631_v12 = vmul.f32 1.442695, %v8507_v5 }
 0x5bc   :  { %10649 = vpow2.f32 %v8593_v36  ;;  %v8224_v38 = vadd.f32 %v14543_v43, %v8223_v0  ;;  %v10644_v42 = vpop.eup %10643  ;;  %v8953_v51 = vadd.f32 1.0, %v8761_v22  ;;  %v10008_v27 = vadd.f32 -1.0, %v8761_v22 }
 0x5bd   :  { %v8743_v10 = vmul.f32 %v8679_v19, %v8679_v19  ;;  %v9080_v29 = vmul.f32 %v10644_v42, %v8888_v59  ;;  %v8439_v40 = vpop.f32.mrf.mxu3 }
 0x5be   :  { %v14664_v37 = vadd.f32 %v14129_v8, %v8224_v38  ;;  %v10646_v52 = vpop.eup %10645  ;;  %10651 = vrcp.f32 %v8953_v51  ;;  %v14671_v3 = vadd.f32 %v8439_v40, %v8271_v28  ;;  %v8889_v46 = vmul.f32 %v10008_v27, %v14629_v56 }
 0x5bf   :  { %v8935_v2 = vadd.f32 1.0, %v8743_v10  ;;  %v10648_v9 = vpop.eup %10647  ;;  %v9062_v44 = vmul.f32 %v10646_v52, %v8870_v25  ;;  %9144 = vst.msk [vmem:[#allocation6 + $0x1c8] sm:$0xff] %vm282_vm0, %v9080_v29  ;;  %v9990_v8 = vadd.f32 -1.0, %v8743_v10 }
 0x5c0   :  { %v8489_v16 = vmin.f32 %v14664_v37, 20.0  ;;  %v8698_v54 = vadd.f32 1.0, %v10648_v9  ;;  %v8508_v17 = vmin.f32 %v14671_v3, 20.0  ;;  %v8276_v9 = vadd.f32 %v14543_v43, %v14516_v11 }
 0x5c1   :  { %10653 = vrcp.f32 %v8935_v2  ;;  %9126 = vst.msk [vmem:[#allocation6 + $0x138] sm:$0xff] %vm282_vm0, %v9062_v44  ;;  %v8871_v13 = vmul.f32 %v9990_v8, %v14636_v26 }
 0x5c2   :  { %v10650_v7 = vpop.eup %10649  ;;  %v8595_v18 = vmul.f32 1.442695, %v8489_v16  ;;  %10655 = vpow2.f32 %v8631_v12  ;;  %v8762_v61 = vmul.f32 %v8698_v54, %v8698_v54  ;;  %v8633_v48 = vmul.f32 1.442695, %v8508_v17 }
 0x5c3   :  { %v8680_v35 = vadd.f32 1.0, %v10650_v7  ;;  %v8225_v45 = vpop.f32.mrf.mxu1 }
 0x5c4   :  { %10657 = vpow2.f32 %v8595_v18  ;;  %v8226_v23 = vadd.f32 %v14543_v43, %v8225_v45  ;;  %v10652_v49 = vpop.eup %10651  ;;  %v8954_v39 = vadd.f32 1.0, %v8762_v61  ;;  %v10009_v56 = vadd.f32 -1.0, %v8762_v61 }
 0x5c5   :  { %v8744_v33 = vmul.f32 %v8680_v35, %v8680_v35  ;;  %v9081_v57 = vmul.f32 %v10652_v49, %v8889_v46  ;;  %v8442_v24 = vpop.f32.mrf.mxu3 }
 0x5c6   :  { %v14678_v21 = vadd.f32 %v14167_v60, %v8226_v23  ;;  %10659 = vrcp.f32 %v8954_v39  ;;  %v14685_v36 = vadd.f32 %v8442_v24, %v8274_v41  ;;  %v8890_v50 = vmul.f32 %v10009_v56, %v14643_v62 }
 0x5c7   :  { %v10654_v31 = vpop.eup %10653  ;;  %v8936_v63 = vadd.f32 1.0, %v8744_v33  ;;  %9145 = vst.msk [vmem:[#allocation6 + $0x1d0] sm:$0xff] %vm282_vm0, %v9081_v57  ;;  %v9991_v60 = vadd.f32 -1.0, %v8744_v33 }
 0x5c8   :  { %v10656_v34 = vpop.eup %10655  ;;  %v9063_v55 = vmul.f32 %v10654_v31, %v8871_v13  ;;  %v8490_v32 = vmin.f32 %v14678_v21, 20.0  ;;  %v8509_v59 = vmin.f32 %v14685_v36, 20.0 }
 0x5c9   :  { %10661 = vrcp.f32 %v8936_v63  ;;  %v8699_v26 = vadd.f32 1.0, %v10656_v34  ;;  %v8872_v38 = vmul.f32 %v9991_v60, %v14650_v14 }
 0x5ca   :  { %v10658_v15 = vpop.eup %10657  ;;  %9127 = vst.msk [vmem:[#allocation6 + $0x140] sm:$0xff] %vm282_vm0, %v9063_v55  ;;  %v8597_v6 = vmul.f32 1.442695, %v8490_v32  ;;  %10663 = vpow2.f32 %v8633_v48  ;;  %v8635_v2 = vmul.f32 1.442695, %v8509_v59 }
 0x5cb   :  { %v8681_v53 = vadd.f32 1.0, %v10658_v15  ;;  %v8763_v4 = vmul.f32 %v8699_v26, %v8699_v26  ;;  %v8228_v20 = vpop.f32.mrf.mxu1 }
 0x5cc   :  { %10665 = vpow2.f32 %v8597_v6  ;;  %v8229_v19 = vadd.f32 %v14543_v43, %v8228_v20  ;;  %v10660_v58 = vpop.eup %10659 }
 0x5cd   :  { %v8745_v22 = vmul.f32 %v8681_v53, %v8681_v53  ;;  %v8955_v0 = vadd.f32 1.0, %v8763_v4  ;;  %v9082_v42 = vmul.f32 %v10660_v58, %v8890_v50  ;;  %v10010_v62 = vadd.f32 -1.0, %v8763_v4  ;;  %v8444_v16 = vpop.f32.mrf.mxu3 }
 0x5ce   :  { %v14692_v10 = vadd.f32 %v14196_v30, %v8229_v19  ;;  %v14699_v7 = vadd.f32 %v8444_v16, %v8276_v9 }
 0x5cf   :  { %v10662_v51 = vpop.eup %10661  ;;  %v8937_v5 = vadd.f32 1.0, %v8745_v22  ;;  %10667 = vrcp.f32 %v8955_v0  ;;  %9146 = vst.msk [vmem:[#allocation6 + $0x1d8] sm:$0xff] %vm282_vm0, %v9082_v42  ;;  %v9992_v30 = vadd.f32 -1.0, %v8745_v22  ;;  %v8891_v8 = vmul.f32 %v10010_v62, %v14657_v1 }
 0x5d0   :  { %v10664_v25 = vpop.eup %10663  ;;  %v9064_v29 = vmul.f32 %v10662_v51, %v8872_v38  ;;  %v8491_v52 = vmin.f32 %v14692_v10, 20.0  ;;  %v8510_v61 = vmin.f32 %v14699_v7, 20.0 }
 0x5d1   :  { %10669 = vrcp.f32 %v8937_v5  ;;  %v8700_v14 = vadd.f32 1.0, %v10664_v25  ;;  %v8873_v45 = vmul.f32 %v9992_v30, %v14664_v37 }
 0x5d2   :  { %v10666_v44 = vpop.eup %10665  ;;  %9128 = vst.msk [vmem:[#allocation6 + $0x148] sm:$0xff] %vm282_vm0, %v9064_v29  ;;  %v8599_v27 = vmul.f32 1.442695, %v8491_v52  ;;  %10671 = vpow2.f32 %v8635_v2 }
 0x5d3   :  { %v8682_v12 = vadd.f32 1.0, %v10666_v44  ;;  %v8764_v28 = vmul.f32 %v8700_v14, %v8700_v14  ;;  %v8230_v54 = vpop.f32.mrf.mxu1 }
 0x5d4   :  { %10673 = vpow2.f32 %v8599_v27  ;;  %v8231_v18 = vadd.f32 %v14543_v43, %v8230_v54  ;;  %v8637_v43 = vmul.f32 1.442695, %v8510_v61 }
 0x5d5   :  { %v10668_v11 = vpop.eup %10667  ;;  %v8746_v40 = vmul.f32 %v8682_v12, %v8682_v12  ;;  %v8956_v35 = vadd.f32 1.0, %v8764_v28  ;;  %v10011_v1 = vadd.f32 -1.0, %v8764_v28 }
 0x5d6   :  { %v9083_v46 = vmul.f32 %v10668_v11, %v8891_v8  ;;  %v8400_v23 = vadd.f32 %v14227_v47, %v8231_v18 }
 0x5d7   :  { %v10670_v49 = vpop.eup %10669  ;;  %v8938_v33 = vadd.f32 1.0, %v8746_v40  ;;  %10675 = vrcp.f32 %v8956_v35  ;;  %v9993_v63 = vadd.f32 -1.0, %v8746_v40  ;;  %v8892_v55 = vmul.f32 %v10011_v1, %v14671_v3 }
 0x5d8   :  { %v10672_v39 = vpop.eup %10671  ;;  %v9065_v17 = vmul.f32 %v10670_v49, %v8873_v45  ;;  %9147 = vst.msk [vmem:[#allocation6 + $0x1e0] sm:$0xff] %vm282_vm0, %v9083_v46  ;;  %v8492_v13 = vmin.f32 %v8400_v23, 20.0 }
 0x5d9   :  { %10677 = vrcp.f32 %v8938_v33  ;;  %v8701_v57 = vadd.f32 1.0, %v10672_v39  ;;  %v8874_v41 = vmul.f32 %v9993_v63, %v14678_v21 }
 0x5da   :  { %v10674_v31 = vpop.eup %10673  ;;  %9129 = vst.msk [vmem:[#allocation6 + $0x150] sm:$0xff] %vm282_vm0, %v9065_v17  ;;  %v8601_v37 = vmul.f32 1.442695, %v8492_v13  ;;  %10679 = vpow2.f32 %v8637_v43 }
 0x5db   :  { %v8683_v34 = vadd.f32 1.0, %v10674_v31  ;;  %v8765_v47 = vmul.f32 %v8701_v57, %v8701_v57 }
 0x5dc   :  { %10681 = vpow2.f32 %v8601_v37 }
 0x5dd   :  { %v10676_v56 = vpop.eup %10675  ;;  %v8747_v32 = vmul.f32 %v8683_v34, %v8683_v34  ;;  %v8957_v48 = vadd.f32 1.0, %v8765_v47  ;;  %v10012_v53 = vadd.f32 -1.0, %v8765_v47 }
 0x5de   :  { %v9084_v26 = vmul.f32 %v10676_v56, %v8892_v55 }
 0x5df   :  { %v10678_v15 = vpop.eup %10677  ;;  %v8939_v60 = vadd.f32 1.0, %v8747_v32  ;;  %10683 = vrcp.f32 %v8957_v48  ;;  %v9994_v3 = vadd.f32 -1.0, %v8747_v32  ;;  %v8893_v58 = vmul.f32 %v10012_v53, %v14685_v36 }
 0x5e0   :  { %v10680_v6 = vpop.eup %10679  ;;  %v9066_v24 = vmul.f32 %v10678_v15, %v8874_v41  ;;  %9148 = vst.msk [vmem:[#allocation6 + $0x1e8] sm:$0xff] %vm282_vm0, %v9084_v26 }
 0x5e1   :  { %10685 = vrcp.f32 %v8939_v60  ;;  %v8702_v4 = vadd.f32 1.0, %v10680_v6  ;;  %v8875_v59 = vmul.f32 %v9994_v3, %v14692_v10 }
 0x5e2   :  { %v10682_v20 = vpop.eup %10681  ;;  %9130 = vst.msk [vmem:[#allocation6 + $0x158] sm:$0xff] %vm282_vm0, %v9066_v24 }
 0x5e3   :  { %v8684_v50 = vadd.f32 1.0, %v10682_v20  ;;  %v8766_v19 = vmul.f32 %v8702_v4, %v8702_v4 }
 0x5e5   :  { %v10684_v21 = vpop.eup %10683  ;;  %v8748_v22 = vmul.f32 %v8684_v50, %v8684_v50  ;;  %v8958_v0 = vadd.f32 1.0, %v8766_v19  ;;  %v10013_v25 = vadd.f32 -1.0, %v8766_v19 }
 0x5e6   :  { %v9085_v38 = vmul.f32 %v10684_v21, %v8893_v58 }
 0x5e7   :  { %v10686_v42 = vpop.eup %10685  ;;  %v8940_v51 = vadd.f32 1.0, %v8748_v22  ;;  %10687 = vrcp.f32 %v8958_v0  ;;  %v9995_v29 = vadd.f32 -1.0, %v8748_v22  ;;  %v8894_v62 = vmul.f32 %v10013_v25, %v14699_v7 }
 0x5e8   :  { %v9067_v5 = vmul.f32 %v10686_v42, %v8875_v59  ;;  %9149 = vst.msk [vmem:[#allocation6 + $0x1f0] sm:$0xff] %vm282_vm0, %v9085_v38 }
 0x5e9   :  { %10689 = vrcp.f32 %v8940_v51  ;;  %v8876_v10 = vmul.f32 %v9995_v29, %v8400_v23 }
 0x5ea   :  { %9131 = vst.msk [vmem:[#allocation6 + $0x160] sm:$0xff] %vm282_vm0, %v9067_v5 }
 0x5ed   :  { %v10688_v36 = vpop.eup %10687 }
 0x5ee   :  { %v9086_v52 = vmul.f32 %v10688_v36, %v8894_v62 }
 0x5ef   :  { %v10690_v2 = vpop.eup %10689 }
 0x5f0   :  { %v9068_v9 = vmul.f32 %v10690_v2, %v8876_v10  ;;  %9150 = vst.msk [vmem:[#allocation6 + $0x1f8] sm:$0xff] %vm282_vm0, %v9086_v52 }
 0x5f2   :  { %9132 = vst.msk [vmem:[#allocation6 + $0x168] sm:$0xff] %vm282_vm0, %v9068_v9 }
 0x5f3   :  { %9163 = dma.vmem_to_hbm [thread:$0]  %s9156_s6, 8192, %s9158_s13, [#allocation5], %s10856_s11, %s10856_s11, %s10857_s14  }
 0x5f4   :  { %10843 = dma.done.wait [#allocation5], 8192  }
 0x5f5   :  { %10844 = vsyncadd [#allocation5], 4294959104 }
 0x5f6   :  { %9168 = vsyncpa [#allocation4], 1 }
 0x5f7   :  { %9169 = vsyncpa [#allocation5], 1 }

</bundles_post_ra>
